<compile_context>
chip_gen: v6e
topology: v6e:2x2x1
jax: 0.10.0
libtpu: 0.0.40
codegen_flags: <defaults>
</compile_context>

<pallas_src>
import numpy as np

import jax
import jax.numpy as jnp
from jax.experimental import pallas as pl
from jax.experimental.pallas import tpu as pltpu


def _choose_tile(batch):
    """Images per grid step: multiple of 8 (sublane alignment), grows with batch size."""
    for tb in (64, 32, 16):
        if batch >= tb:
            return tb
    return 8


# ---------------------------------------------------------------------------
# Fused Pallas kernel (built per tile size TB)
# ---------------------------------------------------------------------------

def _make_kernel(tb):
    f32 = jnp.float32

    def fused_lenet_kernel(xr_ref, a1e_ref, a1o_ref, s1_ref, a2e_ref, a2o_ref, s2_ref,
                           wfc1_ref, b1_ref, wfc2_ref, b2_ref, out_ref):
        """Whole CutMix-LeNet forward for one batch tile of `tb` images.

        xr_ref : [1, 4, 8*tb, 96]  input rows split by (h mod 4); rows (q-major, b-minor),
                                   lanes are (w*3 + c) of the 32x32x3 image.
        a1e/a1o: [5, 96, 56]       banded conv1 weights (even/odd output-w phase), BN scale folded.
        s1     : [1, 56]           conv1 BN shift, tiled per pooled-w position.
        a2e/a2o: [5, 56, 40]       banded conv2 weights (even/odd output-w phase), BN scale folded.
        s2     : [1, 40]           conv2 BN shift, tiled per pooled-w position.
        wfc1   : [5, 40, 64]       fc1 weights split per pooled row h4, rows permuted to (w*8+c).
        b1     : [1, 64]           fc1 bias.     wfc2: [64, 10], b2: [1, 10].
        out    : [tb, 10]          logits.
        """
        # ---- Stage 1: Conv2d(3->4, k5) + BN + ReLU + MaxPool(2), all in VMEM.
        # Conv row h1 = 4*a + s (a in [0,7), s in [0,4)); pooled row h2 = 2*a + s//2.
        pool1 = [None, None]                      # parity planes of pooled rows, each [7*tb, 56]
        for p_h in range(2):
            m_h = None
            for s in (2 * p_h, 2 * p_h + 1):      # the two conv rows feeding pooled row 2a+p_h
                acc_e = None
                acc_o = None
                for di in range(5):
                    r = (s + di) % 4
                    q0 = (s + di) // 4
                    xs = xr_ref[0, r, q0 * tb:(q0 + 7) * tb, :]          # [7*tb, 96]
                    pe = jnp.dot(xs, a1e_ref[di], preferred_element_type=f32)
                    po = jnp.dot(xs, a1o_ref[di], preferred_element_type=f32)
                    acc_e = pe if acc_e is None else acc_e + pe
                    acc_o = po if acc_o is None else acc_o + po
                cur = jnp.maximum(acc_e, acc_o)                          # max over W phases
                m_h = cur if m_h is None else jnp.maximum(m_h, cur)      # max over the 2 conv rows
            pool1[p_h] = jnp.maximum(m_h + s1_ref[...], 0.0)             # BN shift + ReLU [7*tb, 56]

        # ---- Stage 2: Conv2d(4->8, k5) + BN + ReLU + MaxPool(2).
        # Conv row h3 = 2*m + t (m in [0,5), t in [0,2)); pooled row h4 = m.
        m2 = None
        for t in range(2):
            acc_e = None
            acc_o = None
            for di in range(5):
                p = (t + di) % 2
                a0 = (t + di) // 2
                xs = pool1[p][a0 * tb:(a0 + 5) * tb, :]                  # [5*tb, 56]
                pe = jnp.dot(xs, a2e_ref[di], preferred_element_type=f32)
                po = jnp.dot(xs, a2o_ref[di], preferred_element_type=f32)
                acc_e = pe if acc_e is None else acc_e + pe
                acc_o = po if acc_o is None else acc_o + po
            cur = jnp.maximum(acc_e, acc_o)                              # max over W phases
            m2 = cur if m2 is None else jnp.maximum(m2, cur)             # max over the 2 conv rows
        pool2 = jnp.maximum(m2 + s2_ref[...], 0.0)                       # [5*tb, 40]

        # ---- Classifier: Linear(200->64) + ReLU + Dropout(id at inference) + Linear(64->10).
        h = None
        for m in range(5):                                               # accumulate over pooled row h4
            part = jnp.dot(pool2[m * tb:(m + 1) * tb, :], wfc1_ref[m],
                           preferred_element_type=f32)
            h = part if h is None else h + part
        h = jnp.maximum(h + b1_ref[...], 0.0)                            # [tb, 64]
        out_ref[...] = jnp.dot(h, wfc2_ref[...], preferred_element_type=f32) + b2_ref[...]

    return fused_lenet_kernel


def _resident_spec(shape):
    """Full-array block with a constant index map -> stays resident in VMEM across the grid."""
    zeros = (0,) * len(shape)
    return pl.BlockSpec(shape, lambda i, _z=zeros: _z)


def cutmix_lenet_forward(x_nchw, prep):
    """Forward pass. x_nchw: [B, 3, 32, 32] float32 -> [B, 10] logits."""
    B = x_nchw.shape[0]
    tb = _choose_tile(B)

    x = jnp.transpose(x_nchw, (0, 2, 3, 1)).astype(jnp.float32)      # NHWC [B,32,32,3]
    x = x.reshape(B, 32, 96)                                         # lanes = w*3 + c
    B_pad = ((B + tb - 1) // tb) * tb
    if B_pad != B:
        x = jnp.pad(x, ((0, B_pad - B), (0, 0), (0, 0)))
    T = B_pad // tb
    # Split rows by residue mod 4 (h = 4q + r) and order rows q-major / batch-minor
    # within each tile.  Cheap one-time XLA layout ops on 12 KB/image.
    x = x.reshape(B_pad, 8, 4, 96)                                   # (b, q, r, lane)
    x = x.reshape(T, tb, 8, 4, 96)                                   # (tile, b, q, r, lane)
    x = jnp.transpose(x, (0, 3, 2, 1, 4))                            # (tile, r, q, b, lane)
    xr = x.reshape(T, 4, 8 * tb, 96)                                 # rows = q*tb + b

    out = pl.pallas_call(
        _make_kernel(tb),
        out_shape=jax.ShapeDtypeStruct((B_pad, 10), jnp.float32),
        grid=(T,),
        in_specs=[
            pl.BlockSpec((1, 4, 8 * tb, 96), lambda i: (i, 0, 0, 0)),
            _resident_spec(prep["A1e"].shape),
            _resident_spec(prep["A1o"].shape),
            _resident_spec(prep["s1v"].shape),
            _resident_spec(prep["A2e"].shape),
            _resident_spec(prep["A2o"].shape),
            _resident_spec(prep["s2v"].shape),
            _resident_spec(prep["Wfc1"].shape),
            _resident_spec(prep["b1"].shape),
            _resident_spec(prep["Wfc2"].shape),
            _resident_spec(prep["b2"].shape),
        ],
        out_specs=pl.BlockSpec((tb, 10), lambda i: (i, 0)),
        compiler_params=pltpu.CompilerParams(dimension_semantics=("parallel",)),
    )(xr, prep["A1e"], prep["A1o"], prep["s1v"], prep["A2e"], prep["A2o"], prep["s2v"],
      prep["Wfc1"], prep["b1"], prep["Wfc2"], prep["b2"])
    return out[:B]


# ---------------------------------------------------------------------------
# One-time host-side parameter preparation (BN fold, banded conv matrices, fc permute)
# ---------------------------------------------------------------------------

def prepare_params(p, eps=1e-5):
    w1 = np.asarray(p["conv1_w"], dtype=np.float32)                  # [4,3,5,5]
    scale1 = np.asarray(p["bn1_gamma"], np.float32) / np.sqrt(
        np.asarray(p["bn1_var"], np.float32) + np.float32(eps))
    shift1 = (np.asarray(p["bn1_beta"], np.float32)
              - np.asarray(p["bn1_mean"], np.float32) * scale1
              + np.asarray(p["conv1_b"], np.float32) * scale1)
    w1f = w1 * scale1[:, None, None, None]                           # BN scale folded in

    w2 = np.asarray(p["conv2_w"], dtype=np.float32)                  # [8,4,5,5]
    scale2 = np.asarray(p["bn2_gamma"], np.float32) / np.sqrt(
        np.asarray(p["bn2_var"], np.float32) + np.float32(eps))
    shift2 = (np.asarray(p["bn2_beta"], np.float32)
              - np.asarray(p["bn2_mean"], np.float32) * scale2
              + np.asarray(p["conv2_b"], np.float32) * scale2)
    w2f = w2 * scale2[:, None, None, None]

    # Stage 1 banded matrices: input lane = w_in*3 + c (w_in<32), output lane = w2*4 + oc (w2<14).
    A1e = np.zeros((5, 96, 56), np.float32)
    A1o = np.zeros((5, 96, 56), np.float32)
    for di in range(5):
        for dj in range(5):
            blk = w1f[:, :, di, dj].T                                # [c=3, oc=4]
            for wp in range(14):
                re_ = (2 * wp + dj) * 3
                ro_ = (2 * wp + 1 + dj) * 3
                A1e[di, re_:re_ + 3, wp * 4:wp * 4 + 4] = blk
                A1o[di, ro_:ro_ + 3, wp * 4:wp * 4 + 4] = blk
    s1v = np.tile(shift1.astype(np.float32), 14).reshape(1, 56)

    # Stage 2 banded matrices: input lane = w2*4 + c (w2<14), output lane = w4*8 + oc (w4<5).
    A2e = np.zeros((5, 56, 40), np.float32)
    A2o = np.zeros((5, 56, 40), np.float32)
    for di in range(5):
        for dj in range(5):
            blk = w2f[:, :, di, dj].T                                # [c=4, oc=8]
            for wp in range(5):
                re_ = (2 * wp + dj) * 4
                ro_ = (2 * wp + 1 + dj) * 4
                A2e[di, re_:re_ + 4, wp * 8:wp * 8 + 8] = blk
                A2o[di, ro_:ro_ + 4, wp * 8:wp * 8 + 8] = blk
    s2v = np.tile(shift2.astype(np.float32), 5).reshape(1, 40)

    # fc1: torch flattens (C,H,W); kernel feeds (h4-row blocks, lanes w4*8 + oc).
    fc1_wT = np.asarray(p["fc1_w"], np.float32).T                    # [200, 64], row = c*25 + h*5 + w
    Wfc1 = np.zeros((5, 40, 64), np.float32)
    for h in range(5):
        for w in range(5):
            for c in range(8):
                Wfc1[h, w * 8 + c, :] = fc1_wT[c * 25 + h * 5 + w, :]
    b1 = np.asarray(p["fc1_b"], np.float32).reshape(1, 64)
    Wfc2 = np.asarray(p["fc2_w"], np.float32).T                      # [64, 10]
    b2 = np.asarray(p["fc2_b"], np.float32).reshape(1, 10)

    host = dict(A1e=A1e, A1o=A1o, s1v=s1v, A2e=A2e, A2o=A2o, s2v=s2v,
                Wfc1=Wfc1, b1=b1, Wfc2=Wfc2, b2=b2)
    return {k: jnp.asarray(v, dtype=jnp.float32) for k, v in host.items()}


# ---------------------------------------------------------------------------
# Parameters + pure-JAX reference (for a correctness check)
# ---------------------------------------------------------------------------

def init_params(key, num_classes=10):
    ks = jax.random.split(key, 12)
    p = {}
    p["conv1_w"] = 0.1 * jax.random.normal(ks[0], (4, 3, 5, 5), jnp.float32)
    p["conv1_b"] = 0.01 * jax.random.normal(ks[1], (4,), jnp.float32)
    p["bn1_gamma"] = 1.0 + 0.1 * jax.random.normal(ks[2], (4,), jnp.float32)
    p["bn1_beta"] = 0.05 * jax.random.normal(ks[3], (4,), jnp.float32)
    p["bn1_mean"] = 0.02 * jax.random.normal(ks[4], (4,), jnp.float32)
    p["bn1_var"] = 1.0 + 0.1 * jnp.abs(jax.random.normal(ks[5], (4,), jnp.float32))
    p["conv2_w"] = 0.1 * jax.random.normal(ks[6], (8, 4, 5, 5), jnp.float32)
    p["conv2_b"] = 0.01 * jax.random.normal(ks[7], (8,), jnp.float32)
    p["bn2_gamma"] = 1.0 + 0.1 * jax.random.normal(ks[8], (8,), jnp.float32)
    p["bn2_beta"] = 0.05 * jax.random.normal(ks[9], (8,), jnp.float32)
    p["bn2_mean"] = 0.02 * jax.random.normal(ks[10], (8,), jnp.float32)
    p["bn2_var"] = 1.0 + 0.1 * jnp.abs(jax.random.normal(ks[11], (8,), jnp.float32))
    kf = jax.random.split(jax.random.PRNGKey(123), 4)
    p["fc1_w"] = 0.05 * jax.random.normal(kf[0], (64, 8 * 5 * 5), jnp.float32)
    p["fc1_b"] = 0.01 * jax.random.normal(kf[1], (64,), jnp.float32)
    p["fc2_w"] = 0.05 * jax.random.normal(kf[2], (num_classes, 64), jnp.float32)
    p["fc2_b"] = 0.01 * jax.random.normal(kf[3], (num_classes,), jnp.float32)
    return p


def reference_forward(x_nchw, p, eps=1e-5):
    """Plain-JAX reference (eval-mode BN, dropout=identity), matching the torch module."""
    x = jnp.transpose(x_nchw, (0, 2, 3, 1)).astype(jnp.float32)
    B = x.shape[0]

    def im2col(z, k):
        _, H, W, _ = z.shape
        OH, OW = H - k + 1, W - k + 1
        cols = [z[:, di:di + OH, dj:dj + OW, :] for di in range(k) for dj in range(k)]
        return jnp.concatenate(cols, axis=-1)

    def conv_bn_relu(z, w, b, gamma, beta, mean, var):
        OC, IC, KH, KW = w.shape
        wm = jnp.transpose(w, (2, 3, 1, 0)).reshape(KH * KW * IC, OC)
        scale = gamma / jnp.sqrt(var + eps)
        shift = beta - mean * scale + b * scale
        Bz, H, W, _ = z.shape
        OH, OW = H - KH + 1, W - KW + 1
        patches = im2col(z, KH).reshape(Bz * OH * OW, KH * KW * IC)
        y = jnp.dot(patches, wm) * scale[None, :] + shift[None, :]
        return jnp.maximum(y, 0.0).reshape(Bz, OH, OW, OC)

    def maxpool2(z):
        Bz, H, W, C = z.shape
        return jnp.max(z.reshape(Bz, H // 2, 2, W // 2, 2, C), axis=(2, 4))

    y = maxpool2(conv_bn_relu(x, p["conv1_w"], p["conv1_b"], p["bn1_gamma"],
                              p["bn1_beta"], p["bn1_mean"], p["bn1_var"]))
    y = maxpool2(conv_bn_relu(y, p["conv2_w"], p["conv2_b"], p["bn2_gamma"],
                              p["bn2_beta"], p["bn2_mean"], p["bn2_var"]))
    feats = jnp.transpose(y, (0, 3, 1, 2)).reshape(B, 200)
    h = jnp.maximum(feats @ p["fc1_w"].T + p["fc1_b"], 0.0)
    return h @ p["fc2_w"].T + p["fc2_b"]


if __name__ == "__main__":
    # Input shape implied by the module: 3x32x32 (classifier expects 8*5*5 = 200 features).
    params = init_params(jax.random.PRNGKey(42))
    prep = prepare_params(params)
    fwd = jax.jit(cutmix_lenet_forward)

    ok = True
    for batch in (2, 64):   # exercises the small-tile (TB=8) and large-tile (TB=64) paths
        x = jax.random.normal(jax.random.PRNGKey(0), (batch, 3, 32, 32), jnp.float32)
        out = fwd(x, prep)
        jax.block_until_ready(out)
        assert out.shape == (batch, 10) and out.dtype == jnp.float32
        ref = reference_forward(x, params)
        ok = ok and bool(jnp.allclose(out, ref, atol=5e-2, rtol=5e-2))

    assert ok
    print("KERNEL_OK")
</pallas_src>

<mosaic_0001>
module attributes {stable_mosaic.version = 11 : i64} {
  func.func @fused_lenet_kernel(%arg0: i32, %arg1: memref<1x4x64x96xf32, #tpu.memory_space<vmem>>, %arg2: memref<5x96x56xf32, #tpu.memory_space<vmem>>, %arg3: memref<5x96x56xf32, #tpu.memory_space<vmem>>, %arg4: memref<1x56xf32, #tpu.memory_space<vmem>>, %arg5: memref<5x56x40xf32, #tpu.memory_space<vmem>>, %arg6: memref<5x56x40xf32, #tpu.memory_space<vmem>>, %arg7: memref<1x40xf32, #tpu.memory_space<vmem>>, %arg8: memref<5x40x64xf32, #tpu.memory_space<vmem>>, %arg9: memref<1x64xf32, #tpu.memory_space<vmem>>, %arg10: memref<64x10xf32, #tpu.memory_space<vmem>>, %arg11: memref<1x10xf32, #tpu.memory_space<vmem>>, %arg12: memref<8x10xf32, #tpu.memory_space<vmem>>) attributes {dimension_semantics = [#tpu.dimension_semantics<parallel>], iteration_bounds = array<i64: 1>, scalar_prefetch = 0 : i64, scratch_operands = 0 : i64, tpu.core_type = #tpu.core_type<tc>, window_params = [{transform_indices = @transform_0, window_bounds = array<i64: 1, 4, 64, 96>}, {pipeline_mode = #tpu.pipeline_mode<synchronous>, transform_indices = @transform_1, window_bounds = array<i64: 5, 96, 56>}, {pipeline_mode = #tpu.pipeline_mode<synchronous>, transform_indices = @transform_2, window_bounds = array<i64: 5, 96, 56>}, {pipeline_mode = #tpu.pipeline_mode<synchronous>, transform_indices = @transform_3, window_bounds = array<i64: 1, 56>}, {pipeline_mode = #tpu.pipeline_mode<synchronous>, transform_indices = @transform_4, window_bounds = array<i64: 5, 56, 40>}, {pipeline_mode = #tpu.pipeline_mode<synchronous>, transform_indices = @transform_5, window_bounds = array<i64: 5, 56, 40>}, {pipeline_mode = #tpu.pipeline_mode<synchronous>, transform_indices = @transform_6, window_bounds = array<i64: 1, 40>}, {pipeline_mode = #tpu.pipeline_mode<synchronous>, transform_indices = @transform_7, window_bounds = array<i64: 5, 40, 64>}, {pipeline_mode = #tpu.pipeline_mode<synchronous>, transform_indices = @transform_8, window_bounds = array<i64: 1, 64>}, {pipeline_mode = #tpu.pipeline_mode<synchronous>, transform_indices = @transform_9, window_bounds = array<i64: 64, 10>}, {pipeline_mode = #tpu.pipeline_mode<synchronous>, transform_indices = @transform_10, window_bounds = array<i64: 1, 10>}, {transform_indices = @transform_11, window_bounds = array<i64: 8, 10>}]} {
    %c0 = arith.constant 0 : index
    %c0_0 = arith.constant 0 : index
    %c0_1 = arith.constant 0 : index
    %c0_2 = arith.constant 0 : index
    %0 = vector.load %arg1[%c0, %c0_0, %c0_1, %c0_2] : memref<1x4x64x96xf32, #tpu.memory_space<vmem>>, vector<1x1x56x96xf32>
    %1 = vector.shape_cast %0 : vector<1x1x56x96xf32> to vector<56x96xf32>
    %c0_3 = arith.constant 0 : index
    %c0_4 = arith.constant 0 : index
    %c0_5 = arith.constant 0 : index
    %2 = vector.load %arg2[%c0_3, %c0_4, %c0_5] : memref<5x96x56xf32, #tpu.memory_space<vmem>>, vector<1x96x56xf32>
    %3 = vector.shape_cast %2 : vector<1x96x56xf32> to vector<96x56xf32>
    %cst = arith.constant dense<0.000000e+00> : vector<56x56xf32>
    %4 = tpu.matmul %1, %3, %cst {dimension_numbers = #tpu.dot_dimension_numbers<[1], [0], [0], [1], [0, 0, 1, 1], [], []>} : vector<56x96xf32>, vector<96x56xf32>, vector<56x56xf32> -> vector<56x56xf32>
    %c0_6 = arith.constant 0 : index
    %c0_7 = arith.constant 0 : index
    %c0_8 = arith.constant 0 : index
    %5 = vector.load %arg3[%c0_6, %c0_7, %c0_8] : memref<5x96x56xf32, #tpu.memory_space<vmem>>, vector<1x96x56xf32>
    %6 = vector.shape_cast %5 : vector<1x96x56xf32> to vector<96x56xf32>
    %cst_9 = arith.constant dense<0.000000e+00> : vector<56x56xf32>
    %7 = tpu.matmul %1, %6, %cst_9 {dimension_numbers = #tpu.dot_dimension_numbers<[1], [0], [0], [1], [0, 0, 1, 1], [], []>} : vector<56x96xf32>, vector<96x56xf32>, vector<56x56xf32> -> vector<56x56xf32>
    %c0_10 = arith.constant 0 : index
    %c1 = arith.constant 1 : index
    %c0_11 = arith.constant 0 : index
    %c0_12 = arith.constant 0 : index
    %8 = vector.load %arg1[%c0_10, %c1, %c0_11, %c0_12] : memref<1x4x64x96xf32, #tpu.memory_space<vmem>>, vector<1x1x56x96xf32>
    %9 = vector.shape_cast %8 : vector<1x1x56x96xf32> to vector<56x96xf32>
    %c1_13 = arith.constant 1 : index
    %c0_14 = arith.constant 0 : index
    %c0_15 = arith.constant 0 : index
    %10 = vector.load %arg2[%c1_13, %c0_14, %c0_15] : memref<5x96x56xf32, #tpu.memory_space<vmem>>, vector<1x96x56xf32>
    %11 = vector.shape_cast %10 : vector<1x96x56xf32> to vector<96x56xf32>
    %cst_16 = arith.constant dense<0.000000e+00> : vector<56x56xf32>
    %12 = tpu.matmul %9, %11, %cst_16 {dimension_numbers = #tpu.dot_dimension_numbers<[1], [0], [0], [1], [0, 0, 1, 1], [], []>} : vector<56x96xf32>, vector<96x56xf32>, vector<56x56xf32> -> vector<56x56xf32>
    %c1_17 = arith.constant 1 : index
    %c0_18 = arith.constant 0 : index
    %c0_19 = arith.constant 0 : index
    %13 = vector.load %arg3[%c1_17, %c0_18, %c0_19] : memref<5x96x56xf32, #tpu.memory_space<vmem>>, vector<1x96x56xf32>
    %14 = vector.shape_cast %13 : vector<1x96x56xf32> to vector<96x56xf32>
    %cst_20 = arith.constant dense<0.000000e+00> : vector<56x56xf32>
    %15 = tpu.matmul %9, %14, %cst_20 {dimension_numbers = #tpu.dot_dimension_numbers<[1], [0], [0], [1], [0, 0, 1, 1], [], []>} : vector<56x96xf32>, vector<96x56xf32>, vector<56x56xf32> -> vector<56x56xf32>
    %16 = arith.addf %4, %12 : vector<56x56xf32>
    %17 = arith.addf %7, %15 : vector<56x56xf32>
    %c0_21 = arith.constant 0 : index
    %c2 = arith.constant 2 : index
    %c0_22 = arith.constant 0 : index
    %c0_23 = arith.constant 0 : index
    %18 = vector.load %arg1[%c0_21, %c2, %c0_22, %c0_23] : memref<1x4x64x96xf32, #tpu.memory_space<vmem>>, vector<1x1x56x96xf32>
    %19 = vector.shape_cast %18 : vector<1x1x56x96xf32> to vector<56x96xf32>
    %c2_24 = arith.constant 2 : index
    %c0_25 = arith.constant 0 : index
    %c0_26 = arith.constant 0 : index
    %20 = vector.load %arg2[%c2_24, %c0_25, %c0_26] : memref<5x96x56xf32, #tpu.memory_space<vmem>>, vector<1x96x56xf32>
    %21 = vector.shape_cast %20 : vector<1x96x56xf32> to vector<96x56xf32>
    %cst_27 = arith.constant dense<0.000000e+00> : vector<56x56xf32>
    %22 = tpu.matmul %19, %21, %cst_27 {dimension_numbers = #tpu.dot_dimension_numbers<[1], [0], [0], [1], [0, 0, 1, 1], [], []>} : vector<56x96xf32>, vector<96x56xf32>, vector<56x56xf32> -> vector<56x56xf32>
    %c2_28 = arith.constant 2 : index
    %c0_29 = arith.constant 0 : index
    %c0_30 = arith.constant 0 : index
    %23 = vector.load %arg3[%c2_28, %c0_29, %c0_30] : memref<5x96x56xf32, #tpu.memory_space<vmem>>, vector<1x96x56xf32>
    %24 = vector.shape_cast %23 : vector<1x96x56xf32> to vector<96x56xf32>
    %cst_31 = arith.constant dense<0.000000e+00> : vector<56x56xf32>
    %25 = tpu.matmul %19, %24, %cst_31 {dimension_numbers = #tpu.dot_dimension_numbers<[1], [0], [0], [1], [0, 0, 1, 1], [], []>} : vector<56x96xf32>, vector<96x56xf32>, vector<56x56xf32> -> vector<56x56xf32>
    %26 = arith.addf %16, %22 : vector<56x56xf32>
    %27 = arith.addf %17, %25 : vector<56x56xf32>
    %c0_32 = arith.constant 0 : index
    %c3 = arith.constant 3 : index
    %c0_33 = arith.constant 0 : index
    %c0_34 = arith.constant 0 : index
    %28 = vector.load %arg1[%c0_32, %c3, %c0_33, %c0_34] : memref<1x4x64x96xf32, #tpu.memory_space<vmem>>, vector<1x1x56x96xf32>
    %29 = vector.shape_cast %28 : vector<1x1x56x96xf32> to vector<56x96xf32>
    %c3_35 = arith.constant 3 : index
    %c0_36 = arith.constant 0 : index
    %c0_37 = arith.constant 0 : index
    %30 = vector.load %arg2[%c3_35, %c0_36, %c0_37] : memref<5x96x56xf32, #tpu.memory_space<vmem>>, vector<1x96x56xf32>
    %31 = vector.shape_cast %30 : vector<1x96x56xf32> to vector<96x56xf32>
    %cst_38 = arith.constant dense<0.000000e+00> : vector<56x56xf32>
    %32 = tpu.matmul %29, %31, %cst_38 {dimension_numbers = #tpu.dot_dimension_numbers<[1], [0], [0], [1], [0, 0, 1, 1], [], []>} : vector<56x96xf32>, vector<96x56xf32>, vector<56x56xf32> -> vector<56x56xf32>
    %c3_39 = arith.constant 3 : index
    %c0_40 = arith.constant 0 : index
    %c0_41 = arith.constant 0 : index
    %33 = vector.load %arg3[%c3_39, %c0_40, %c0_41] : memref<5x96x56xf32, #tpu.memory_space<vmem>>, vector<1x96x56xf32>
    %34 = vector.shape_cast %33 : vector<1x96x56xf32> to vector<96x56xf32>
    %cst_42 = arith.constant dense<0.000000e+00> : vector<56x56xf32>
    %35 = tpu.matmul %29, %34, %cst_42 {dimension_numbers = #tpu.dot_dimension_numbers<[1], [0], [0], [1], [0, 0, 1, 1], [], []>} : vector<56x96xf32>, vector<96x56xf32>, vector<56x56xf32> -> vector<56x56xf32>
    %36 = arith.addf %26, %32 : vector<56x56xf32>
    %37 = arith.addf %27, %35 : vector<56x56xf32>
    %c0_43 = arith.constant 0 : index
    %c0_44 = arith.constant 0 : index
    %c8 = arith.constant 8 : index
    %c0_45 = arith.constant 0 : index
    %38 = vector.load %arg1[%c0_43, %c0_44, %c8, %c0_45] : memref<1x4x64x96xf32, #tpu.memory_space<vmem>>, vector<1x1x56x96xf32>
    %39 = vector.shape_cast %38 : vector<1x1x56x96xf32> to vector<56x96xf32>
    %c4 = arith.constant 4 : index
    %c0_46 = arith.constant 0 : index
    %c0_47 = arith.constant 0 : index
    %40 = vector.load %arg2[%c4, %c0_46, %c0_47] : memref<5x96x56xf32, #tpu.memory_space<vmem>>, vector<1x96x56xf32>
    %41 = vector.shape_cast %40 : vector<1x96x56xf32> to vector<96x56xf32>
    %cst_48 = arith.constant dense<0.000000e+00> : vector<56x56xf32>
    %42 = tpu.matmul %39, %41, %cst_48 {dimension_numbers = #tpu.dot_dimension_numbers<[1], [0], [0], [1], [0, 0, 1, 1], [], []>} : vector<56x96xf32>, vector<96x56xf32>, vector<56x56xf32> -> vector<56x56xf32>
    %c4_49 = arith.constant 4 : index
    %c0_50 = arith.constant 0 : index
    %c0_51 = arith.constant 0 : index
    %43 = vector.load %arg3[%c4_49, %c0_50, %c0_51] : memref<5x96x56xf32, #tpu.memory_space<vmem>>, vector<1x96x56xf32>
    %44 = vector.shape_cast %43 : vector<1x96x56xf32> to vector<96x56xf32>
    %cst_52 = arith.constant dense<0.000000e+00> : vector<56x56xf32>
    %45 = tpu.matmul %39, %44, %cst_52 {dimension_numbers = #tpu.dot_dimension_numbers<[1], [0], [0], [1], [0, 0, 1, 1], [], []>} : vector<56x96xf32>, vector<96x56xf32>, vector<56x56xf32> -> vector<56x56xf32>
    %46 = arith.addf %36, %42 : vector<56x56xf32>
    %47 = arith.addf %37, %45 : vector<56x56xf32>
    %48 = arith.maximumf %46, %47 : vector<56x56xf32>
    %c0_53 = arith.constant 0 : index
    %c1_54 = arith.constant 1 : index
    %c0_55 = arith.constant 0 : index
    %c0_56 = arith.constant 0 : index
    %49 = vector.load %arg1[%c0_53, %c1_54, %c0_55, %c0_56] : memref<1x4x64x96xf32, #tpu.memory_space<vmem>>, vector<1x1x56x96xf32>
    %50 = vector.shape_cast %49 : vector<1x1x56x96xf32> to vector<56x96xf32>
    %c0_57 = arith.constant 0 : index
    %c0_58 = arith.constant 0 : index
    %c0_59 = arith.constant 0 : index
    %51 = vector.load %arg2[%c0_57, %c0_58, %c0_59] : memref<5x96x56xf32, #tpu.memory_space<vmem>>, vector<1x96x56xf32>
    %52 = vector.shape_cast %51 : vector<1x96x56xf32> to vector<96x56xf32>
    %cst_60 = arith.constant dense<0.000000e+00> : vector<56x56xf32>
    %53 = tpu.matmul %50, %52, %cst_60 {dimension_numbers = #tpu.dot_dimension_numbers<[1], [0], [0], [1], [0, 0, 1, 1], [], []>} : vector<56x96xf32>, vector<96x56xf32>, vector<56x56xf32> -> vector<56x56xf32>
    %c0_61 = arith.constant 0 : index
    %c0_62 = arith.constant 0 : index
    %c0_63 = arith.constant 0 : index
    %54 = vector.load %arg3[%c0_61, %c0_62, %c0_63] : memref<5x96x56xf32, #tpu.memory_space<vmem>>, vector<1x96x56xf32>
    %55 = vector.shape_cast %54 : vector<1x96x56xf32> to vector<96x56xf32>
    %cst_64 = arith.constant dense<0.000000e+00> : vector<56x56xf32>
    %56 = tpu.matmul %50, %55, %cst_64 {dimension_numbers = #tpu.dot_dimension_numbers<[1], [0], [0], [1], [0, 0, 1, 1], [], []>} : vector<56x96xf32>, vector<96x56xf32>, vector<56x56xf32> -> vector<56x56xf32>
    %c0_65 = arith.constant 0 : index
    %c2_66 = arith.constant 2 : index
    %c0_67 = arith.constant 0 : index
    %c0_68 = arith.constant 0 : index
    %57 = vector.load %arg1[%c0_65, %c2_66, %c0_67, %c0_68] : memref<1x4x64x96xf32, #tpu.memory_space<vmem>>, vector<1x1x56x96xf32>
    %58 = vector.shape_cast %57 : vector<1x1x56x96xf32> to vector<56x96xf32>
    %c1_69 = arith.constant 1 : index
    %c0_70 = arith.constant 0 : index
    %c0_71 = arith.constant 0 : index
    %59 = vector.load %arg2[%c1_69, %c0_70, %c0_71] : memref<5x96x56xf32, #tpu.memory_space<vmem>>, vector<1x96x56xf32>
    %60 = vector.shape_cast %59 : vector<1x96x56xf32> to vector<96x56xf32>
    %cst_72 = arith.constant dense<0.000000e+00> : vector<56x56xf32>
    %61 = tpu.matmul %58, %60, %cst_72 {dimension_numbers = #tpu.dot_dimension_numbers<[1], [0], [0], [1], [0, 0, 1, 1], [], []>} : vector<56x96xf32>, vector<96x56xf32>, vector<56x56xf32> -> vector<56x56xf32>
    %c1_73 = arith.constant 1 : index
    %c0_74 = arith.constant 0 : index
    %c0_75 = arith.constant 0 : index
    %62 = vector.load %arg3[%c1_73, %c0_74, %c0_75] : memref<5x96x56xf32, #tpu.memory_space<vmem>>, vector<1x96x56xf32>
    %63 = vector.shape_cast %62 : vector<1x96x56xf32> to vector<96x56xf32>
    %cst_76 = arith.constant dense<0.000000e+00> : vector<56x56xf32>
    %64 = tpu.matmul %58, %63, %cst_76 {dimension_numbers = #tpu.dot_dimension_numbers<[1], [0], [0], [1], [0, 0, 1, 1], [], []>} : vector<56x96xf32>, vector<96x56xf32>, vector<56x56xf32> -> vector<56x56xf32>
    %65 = arith.addf %53, %61 : vector<56x56xf32>
    %66 = arith.addf %56, %64 : vector<56x56xf32>
    %c0_77 = arith.constant 0 : index
    %c3_78 = arith.constant 3 : index
    %c0_79 = arith.constant 0 : index
    %c0_80 = arith.constant 0 : index
    %67 = vector.load %arg1[%c0_77, %c3_78, %c0_79, %c0_80] : memref<1x4x64x96xf32, #tpu.memory_space<vmem>>, vector<1x1x56x96xf32>
    %68 = vector.shape_cast %67 : vector<1x1x56x96xf32> to vector<56x96xf32>
    %c2_81 = arith.constant 2 : index
    %c0_82 = arith.constant 0 : index
    %c0_83 = arith.constant 0 : index
    %69 = vector.load %arg2[%c2_81, %c0_82, %c0_83] : memref<5x96x56xf32, #tpu.memory_space<vmem>>, vector<1x96x56xf32>
    %70 = vector.shape_cast %69 : vector<1x96x56xf32> to vector<96x56xf32>
    %cst_84 = arith.constant dense<0.000000e+00> : vector<56x56xf32>
    %71 = tpu.matmul %68, %70, %cst_84 {dimension_numbers = #tpu.dot_dimension_numbers<[1], [0], [0], [1], [0, 0, 1, 1], [], []>} : vector<56x96xf32>, vector<96x56xf32>, vector<56x56xf32> -> vector<56x56xf32>
    %c2_85 = arith.constant 2 : index
    %c0_86 = arith.constant 0 : index
    %c0_87 = arith.constant 0 : index
    %72 = vector.load %arg3[%c2_85, %c0_86, %c0_87] : memref<5x96x56xf32, #tpu.memory_space<vmem>>, vector<1x96x56xf32>
    %73 = vector.shape_cast %72 : vector<1x96x56xf32> to vector<96x56xf32>
    %cst_88 = arith.constant dense<0.000000e+00> : vector<56x56xf32>
    %74 = tpu.matmul %68, %73, %cst_88 {dimension_numbers = #tpu.dot_dimension_numbers<[1], [0], [0], [1], [0, 0, 1, 1], [], []>} : vector<56x96xf32>, vector<96x56xf32>, vector<56x56xf32> -> vector<56x56xf32>
    %75 = arith.addf %65, %71 : vector<56x56xf32>
    %76 = arith.addf %66, %74 : vector<56x56xf32>
    %c0_89 = arith.constant 0 : index
    %c0_90 = arith.constant 0 : index
    %c8_91 = arith.constant 8 : index
    %c0_92 = arith.constant 0 : index
    %77 = vector.load %arg1[%c0_89, %c0_90, %c8_91, %c0_92] : memref<1x4x64x96xf32, #tpu.memory_space<vmem>>, vector<1x1x56x96xf32>
    %78 = vector.shape_cast %77 : vector<1x1x56x96xf32> to vector<56x96xf32>
    %c3_93 = arith.constant 3 : index
    %c0_94 = arith.constant 0 : index
    %c0_95 = arith.constant 0 : index
    %79 = vector.load %arg2[%c3_93, %c0_94, %c0_95] : memref<5x96x56xf32, #tpu.memory_space<vmem>>, vector<1x96x56xf32>
    %80 = vector.shape_cast %79 : vector<1x96x56xf32> to vector<96x56xf32>
    %cst_96 = arith.constant dense<0.000000e+00> : vector<56x56xf32>
    %81 = tpu.matmul %78, %80, %cst_96 {dimension_numbers = #tpu.dot_dimension_numbers<[1], [0], [0], [1], [0, 0, 1, 1], [], []>} : vector<56x96xf32>, vector<96x56xf32>, vector<56x56xf32> -> vector<56x56xf32>
    %c3_97 = arith.constant 3 : index
    %c0_98 = arith.constant 0 : index
    %c0_99 = arith.constant 0 : index
    %82 = vector.load %arg3[%c3_97, %c0_98, %c0_99] : memref<5x96x56xf32, #tpu.memory_space<vmem>>, vector<1x96x56xf32>
    %83 = vector.shape_cast %82 : vector<1x96x56xf32> to vector<96x56xf32>
    %cst_100 = arith.constant dense<0.000000e+00> : vector<56x56xf32>
    %84 = tpu.matmul %78, %83, %cst_100 {dimension_numbers = #tpu.dot_dimension_numbers<[1], [0], [0], [1], [0, 0, 1, 1], [], []>} : vector<56x96xf32>, vector<96x56xf32>, vector<56x56xf32> -> vector<56x56xf32>
    %85 = arith.addf %75, %81 : vector<56x56xf32>
    %86 = arith.addf %76, %84 : vector<56x56xf32>
    %c0_101 = arith.constant 0 : index
    %c1_102 = arith.constant 1 : index
    %c8_103 = arith.constant 8 : index
    %c0_104 = arith.constant 0 : index
    %87 = vector.load %arg1[%c0_101, %c1_102, %c8_103, %c0_104] : memref<1x4x64x96xf32, #tpu.memory_space<vmem>>, vector<1x1x56x96xf32>
    %88 = vector.shape_cast %87 : vector<1x1x56x96xf32> to vector<56x96xf32>
    %c4_105 = arith.constant 4 : index
    %c0_106 = arith.constant 0 : index
    %c0_107 = arith.constant 0 : index
    %89 = vector.load %arg2[%c4_105, %c0_106, %c0_107] : memref<5x96x56xf32, #tpu.memory_space<vmem>>, vector<1x96x56xf32>
    %90 = vector.shape_cast %89 : vector<1x96x56xf32> to vector<96x56xf32>
    %cst_108 = arith.constant dense<0.000000e+00> : vector<56x56xf32>
    %91 = tpu.matmul %88, %90, %cst_108 {dimension_numbers = #tpu.dot_dimension_numbers<[1], [0], [0], [1], [0, 0, 1, 1], [], []>} : vector<56x96xf32>, vector<96x56xf32>, vector<56x56xf32> -> vector<56x56xf32>
    %c4_109 = arith.constant 4 : index
    %c0_110 = arith.constant 0 : index
    %c0_111 = arith.constant 0 : index
    %92 = vector.load %arg3[%c4_109, %c0_110, %c0_111] : memref<5x96x56xf32, #tpu.memory_space<vmem>>, vector<1x96x56xf32>
    %93 = vector.shape_cast %92 : vector<1x96x56xf32> to vector<96x56xf32>
    %cst_112 = arith.constant dense<0.000000e+00> : vector<56x56xf32>
    %94 = tpu.matmul %88, %93, %cst_112 {dimension_numbers = #tpu.dot_dimension_numbers<[1], [0], [0], [1], [0, 0, 1, 1], [], []>} : vector<56x96xf32>, vector<96x56xf32>, vector<56x56xf32> -> vector<56x56xf32>
    %95 = arith.addf %85, %91 : vector<56x56xf32>
    %96 = arith.addf %86, %94 : vector<56x56xf32>
    %97 = arith.maximumf %95, %96 : vector<56x56xf32>
    %98 = arith.maximumf %48, %97 : vector<56x56xf32>
    %c0_113 = arith.constant 0 : index
    %c0_114 = arith.constant 0 : index
    %99 = vector.load %arg4[%c0_113, %c0_114] : memref<1x56xf32, #tpu.memory_space<vmem>>, vector<1x56xf32>
    %100 = vector.broadcast %99 : vector<1x56xf32> to vector<56x56xf32>
    %101 = arith.addf %98, %100 : vector<56x56xf32>
    %cst_115 = arith.constant 0.000000e+00 : f32
    %102 = vector.broadcast %cst_115 : f32 to vector<56x56xf32>
    %103 = arith.maximumf %101, %102 : vector<56x56xf32>
    %c0_116 = arith.constant 0 : index
    %c2_117 = arith.constant 2 : index
    %c0_118 = arith.constant 0 : index
    %c0_119 = arith.constant 0 : index
    %104 = vector.load %arg1[%c0_116, %c2_117, %c0_118, %c0_119] : memref<1x4x64x96xf32, #tpu.memory_space<vmem>>, vector<1x1x56x96xf32>
    %105 = vector.shape_cast %104 : vector<1x1x56x96xf32> to vector<56x96xf32>
    %c0_120 = arith.constant 0 : index
    %c0_121 = arith.constant 0 : index
    %c0_122 = arith.constant 0 : index
    %106 = vector.load %arg2[%c0_120, %c0_121, %c0_122] : memref<5x96x56xf32, #tpu.memory_space<vmem>>, vector<1x96x56xf32>
    %107 = vector.shape_cast %106 : vector<1x96x56xf32> to vector<96x56xf32>
    %cst_123 = arith.constant dense<0.000000e+00> : vector<56x56xf32>
    %108 = tpu.matmul %105, %107, %cst_123 {dimension_numbers = #tpu.dot_dimension_numbers<[1], [0], [0], [1], [0, 0, 1, 1], [], []>} : vector<56x96xf32>, vector<96x56xf32>, vector<56x56xf32> -> vector<56x56xf32>
    %c0_124 = arith.constant 0 : index
    %c0_125 = arith.constant 0 : index
    %c0_126 = arith.constant 0 : index
    %109 = vector.load %arg3[%c0_124, %c0_125, %c0_126] : memref<5x96x56xf32, #tpu.memory_space<vmem>>, vector<1x96x56xf32>
    %110 = vector.shape_cast %109 : vector<1x96x56xf32> to vector<96x56xf32>
    %cst_127 = arith.constant dense<0.000000e+00> : vector<56x56xf32>
    %111 = tpu.matmul %105, %110, %cst_127 {dimension_numbers = #tpu.dot_dimension_numbers<[1], [0], [0], [1], [0, 0, 1, 1], [], []>} : vector<56x96xf32>, vector<96x56xf32>, vector<56x56xf32> -> vector<56x56xf32>
    %c0_128 = arith.constant 0 : index
    %c3_129 = arith.constant 3 : index
    %c0_130 = arith.constant 0 : index
    %c0_131 = arith.constant 0 : index
    %112 = vector.load %arg1[%c0_128, %c3_129, %c0_130, %c0_131] : memref<1x4x64x96xf32, #tpu.memory_space<vmem>>, vector<1x1x56x96xf32>
    %113 = vector.shape_cast %112 : vector<1x1x56x96xf32> to vector<56x96xf32>
    %c1_132 = arith.constant 1 : index
    %c0_133 = arith.constant 0 : index
    %c0_134 = arith.constant 0 : index
    %114 = vector.load %arg2[%c1_132, %c0_133, %c0_134] : memref<5x96x56xf32, #tpu.memory_space<vmem>>, vector<1x96x56xf32>
    %115 = vector.shape_cast %114 : vector<1x96x56xf32> to vector<96x56xf32>
    %cst_135 = arith.constant dense<0.000000e+00> : vector<56x56xf32>
    %116 = tpu.matmul %113, %115, %cst_135 {dimension_numbers = #tpu.dot_dimension_numbers<[1], [0], [0], [1], [0, 0, 1, 1], [], []>} : vector<56x96xf32>, vector<96x56xf32>, vector<56x56xf32> -> vector<56x56xf32>
    %c1_136 = arith.constant 1 : index
    %c0_137 = arith.constant 0 : index
    %c0_138 = arith.constant 0 : index
    %117 = vector.load %arg3[%c1_136, %c0_137, %c0_138] : memref<5x96x56xf32, #tpu.memory_space<vmem>>, vector<1x96x56xf32>
    %118 = vector.shape_cast %117 : vector<1x96x56xf32> to vector<96x56xf32>
    %cst_139 = arith.constant dense<0.000000e+00> : vector<56x56xf32>
    %119 = tpu.matmul %113, %118, %cst_139 {dimension_numbers = #tpu.dot_dimension_numbers<[1], [0], [0], [1], [0, 0, 1, 1], [], []>} : vector<56x96xf32>, vector<96x56xf32>, vector<56x56xf32> -> vector<56x56xf32>
    %120 = arith.addf %108, %116 : vector<56x56xf32>
    %121 = arith.addf %111, %119 : vector<56x56xf32>
    %c0_140 = arith.constant 0 : index
    %c0_141 = arith.constant 0 : index
    %c8_142 = arith.constant 8 : index
    %c0_143 = arith.constant 0 : index
    %122 = vector.load %arg1[%c0_140, %c0_141, %c8_142, %c0_143] : memref<1x4x64x96xf32, #tpu.memory_space<vmem>>, vector<1x1x56x96xf32>
    %123 = vector.shape_cast %122 : vector<1x1x56x96xf32> to vector<56x96xf32>
    %c2_144 = arith.constant 2 : index
    %c0_145 = arith.constant 0 : index
    %c0_146 = arith.constant 0 : index
    %124 = vector.load %arg2[%c2_144, %c0_145, %c0_146] : memref<5x96x56xf32, #tpu.memory_space<vmem>>, vector<1x96x56xf32>
    %125 = vector.shape_cast %124 : vector<1x96x56xf32> to vector<96x56xf32>
    %cst_147 = arith.constant dense<0.000000e+00> : vector<56x56xf32>
    %126 = tpu.matmul %123, %125, %cst_147 {dimension_numbers = #tpu.dot_dimension_numbers<[1], [0], [0], [1], [0, 0, 1, 1], [], []>} : vector<56x96xf32>, vector<96x56xf32>, vector<56x56xf32> -> vector<56x56xf32>
    %c2_148 = arith.constant 2 : index
    %c0_149 = arith.constant 0 : index
    %c0_150 = arith.constant 0 : index
    %127 = vector.load %arg3[%c2_148, %c0_149, %c0_150] : memref<5x96x56xf32, #tpu.memory_space<vmem>>, vector<1x96x56xf32>
    %128 = vector.shape_cast %127 : vector<1x96x56xf32> to vector<96x56xf32>
    %cst_151 = arith.constant dense<0.000000e+00> : vector<56x56xf32>
    %129 = tpu.matmul %123, %128, %cst_151 {dimension_numbers = #tpu.dot_dimension_numbers<[1], [0], [0], [1], [0, 0, 1, 1], [], []>} : vector<56x96xf32>, vector<96x56xf32>, vector<56x56xf32> -> vector<56x56xf32>
    %130 = arith.addf %120, %126 : vector<56x56xf32>
    %131 = arith.addf %121, %129 : vector<56x56xf32>
    %c0_152 = arith.constant 0 : index
    %c1_153 = arith.constant 1 : index
    %c8_154 = arith.constant 8 : index
    %c0_155 = arith.constant 0 : index
    %132 = vector.load %arg1[%c0_152, %c1_153, %c8_154, %c0_155] : memref<1x4x64x96xf32, #tpu.memory_space<vmem>>, vector<1x1x56x96xf32>
    %133 = vector.shape_cast %132 : vector<1x1x56x96xf32> to vector<56x96xf32>
    %c3_156 = arith.constant 3 : index
    %c0_157 = arith.constant 0 : index
    %c0_158 = arith.constant 0 : index
    %134 = vector.load %arg2[%c3_156, %c0_157, %c0_158] : memref<5x96x56xf32, #tpu.memory_space<vmem>>, vector<1x96x56xf32>
    %135 = vector.shape_cast %134 : vector<1x96x56xf32> to vector<96x56xf32>
    %cst_159 = arith.constant dense<0.000000e+00> : vector<56x56xf32>
    %136 = tpu.matmul %133, %135, %cst_159 {dimension_numbers = #tpu.dot_dimension_numbers<[1], [0], [0], [1], [0, 0, 1, 1], [], []>} : vector<56x96xf32>, vector<96x56xf32>, vector<56x56xf32> -> vector<56x56xf32>
    %c3_160 = arith.constant 3 : index
    %c0_161 = arith.constant 0 : index
    %c0_162 = arith.constant 0 : index
    %137 = vector.load %arg3[%c3_160, %c0_161, %c0_162] : memref<5x96x56xf32, #tpu.memory_space<vmem>>, vector<1x96x56xf32>
    %138 = vector.shape_cast %137 : vector<1x96x56xf32> to vector<96x56xf32>
    %cst_163 = arith.constant dense<0.000000e+00> : vector<56x56xf32>
    %139 = tpu.matmul %133, %138, %cst_163 {dimension_numbers = #tpu.dot_dimension_numbers<[1], [0], [0], [1], [0, 0, 1, 1], [], []>} : vector<56x96xf32>, vector<96x56xf32>, vector<56x56xf32> -> vector<56x56xf32>
    %140 = arith.addf %130, %136 : vector<56x56xf32>
    %141 = arith.addf %131, %139 : vector<56x56xf32>
    %c0_164 = arith.constant 0 : index
    %c2_165 = arith.constant 2 : index
    %c8_166 = arith.constant 8 : index
    %c0_167 = arith.constant 0 : index
    %142 = vector.load %arg1[%c0_164, %c2_165, %c8_166, %c0_167] : memref<1x4x64x96xf32, #tpu.memory_space<vmem>>, vector<1x1x56x96xf32>
    %143 = vector.shape_cast %142 : vector<1x1x56x96xf32> to vector<56x96xf32>
    %c4_168 = arith.constant 4 : index
    %c0_169 = arith.constant 0 : index
    %c0_170 = arith.constant 0 : index
    %144 = vector.load %arg2[%c4_168, %c0_169, %c0_170] : memref<5x96x56xf32, #tpu.memory_space<vmem>>, vector<1x96x56xf32>
    %145 = vector.shape_cast %144 : vector<1x96x56xf32> to vector<96x56xf32>
    %cst_171 = arith.constant dense<0.000000e+00> : vector<56x56xf32>
    %146 = tpu.matmul %143, %145, %cst_171 {dimension_numbers = #tpu.dot_dimension_numbers<[1], [0], [0], [1], [0, 0, 1, 1], [], []>} : vector<56x96xf32>, vector<96x56xf32>, vector<56x56xf32> -> vector<56x56xf32>
    %c4_172 = arith.constant 4 : index
    %c0_173 = arith.constant 0 : index
    %c0_174 = arith.constant 0 : index
    %147 = vector.load %arg3[%c4_172, %c0_173, %c0_174] : memref<5x96x56xf32, #tpu.memory_space<vmem>>, vector<1x96x56xf32>
    %148 = vector.shape_cast %147 : vector<1x96x56xf32> to vector<96x56xf32>
    %cst_175 = arith.constant dense<0.000000e+00> : vector<56x56xf32>
    %149 = tpu.matmul %143, %148, %cst_175 {dimension_numbers = #tpu.dot_dimension_numbers<[1], [0], [0], [1], [0, 0, 1, 1], [], []>} : vector<56x96xf32>, vector<96x56xf32>, vector<56x56xf32> -> vector<56x56xf32>
    %150 = arith.addf %140, %146 : vector<56x56xf32>
    %151 = arith.addf %141, %149 : vector<56x56xf32>
    %152 = arith.maximumf %150, %151 : vector<56x56xf32>
    %c0_176 = arith.constant 0 : index
    %c3_177 = arith.constant 3 : index
    %c0_178 = arith.constant 0 : index
    %c0_179 = arith.constant 0 : index
    %153 = vector.load %arg1[%c0_176, %c3_177, %c0_178, %c0_179] : memref<1x4x64x96xf32, #tpu.memory_space<vmem>>, vector<1x1x56x96xf32>
    %154 = vector.shape_cast %153 : vector<1x1x56x96xf32> to vector<56x96xf32>
    %c0_180 = arith.constant 0 : index
    %c0_181 = arith.constant 0 : index
    %c0_182 = arith.constant 0 : index
    %155 = vector.load %arg2[%c0_180, %c0_181, %c0_182] : memref<5x96x56xf32, #tpu.memory_space<vmem>>, vector<1x96x56xf32>
    %156 = vector.shape_cast %155 : vector<1x96x56xf32> to vector<96x56xf32>
    %cst_183 = arith.constant dense<0.000000e+00> : vector<56x56xf32>
    %157 = tpu.matmul %154, %156, %cst_183 {dimension_numbers = #tpu.dot_dimension_numbers<[1], [0], [0], [1], [0, 0, 1, 1], [], []>} : vector<56x96xf32>, vector<96x56xf32>, vector<56x56xf32> -> vector<56x56xf32>
    %c0_184 = arith.constant 0 : index
    %c0_185 = arith.constant 0 : index
    %c0_186 = arith.constant 0 : index
    %158 = vector.load %arg3[%c0_184, %c0_185, %c0_186] : memref<5x96x56xf32, #tpu.memory_space<vmem>>, vector<1x96x56xf32>
    %159 = vector.shape_cast %158 : vector<1x96x56xf32> to vector<96x56xf32>
    %cst_187 = arith.constant dense<0.000000e+00> : vector<56x56xf32>
    %160 = tpu.matmul %154, %159, %cst_187 {dimension_numbers = #tpu.dot_dimension_numbers<[1], [0], [0], [1], [0, 0, 1, 1], [], []>} : vector<56x96xf32>, vector<96x56xf32>, vector<56x56xf32> -> vector<56x56xf32>
    %c0_188 = arith.constant 0 : index
    %c0_189 = arith.constant 0 : index
    %c8_190 = arith.constant 8 : index
    %c0_191 = arith.constant 0 : index
    %161 = vector.load %arg1[%c0_188, %c0_189, %c8_190, %c0_191] : memref<1x4x64x96xf32, #tpu.memory_space<vmem>>, vector<1x1x56x96xf32>
    %162 = vector.shape_cast %161 : vector<1x1x56x96xf32> to vector<56x96xf32>
    %c1_192 = arith.constant 1 : index
    %c0_193 = arith.constant 0 : index
    %c0_194 = arith.constant 0 : index
    %163 = vector.load %arg2[%c1_192, %c0_193, %c0_194] : memref<5x96x56xf32, #tpu.memory_space<vmem>>, vector<1x96x56xf32>
    %164 = vector.shape_cast %163 : vector<1x96x56xf32> to vector<96x56xf32>
    %cst_195 = arith.constant dense<0.000000e+00> : vector<56x56xf32>
    %165 = tpu.matmul %162, %164, %cst_195 {dimension_numbers = #tpu.dot_dimension_numbers<[1], [0], [0], [1], [0, 0, 1, 1], [], []>} : vector<56x96xf32>, vector<96x56xf32>, vector<56x56xf32> -> vector<56x56xf32>
    %c1_196 = arith.constant 1 : index
    %c0_197 = arith.constant 0 : index
    %c0_198 = arith.constant 0 : index
    %166 = vector.load %arg3[%c1_196, %c0_197, %c0_198] : memref<5x96x56xf32, #tpu.memory_space<vmem>>, vector<1x96x56xf32>
    %167 = vector.shape_cast %166 : vector<1x96x56xf32> to vector<96x56xf32>
    %cst_199 = arith.constant dense<0.000000e+00> : vector<56x56xf32>
    %168 = tpu.matmul %162, %167, %cst_199 {dimension_numbers = #tpu.dot_dimension_numbers<[1], [0], [0], [1], [0, 0, 1, 1], [], []>} : vector<56x96xf32>, vector<96x56xf32>, vector<56x56xf32> -> vector<56x56xf32>
    %169 = arith.addf %157, %165 : vector<56x56xf32>
    %170 = arith.addf %160, %168 : vector<56x56xf32>
    %c0_200 = arith.constant 0 : index
    %c1_201 = arith.constant 1 : index
    %c8_202 = arith.constant 8 : index
    %c0_203 = arith.constant 0 : index
    %171 = vector.load %arg1[%c0_200, %c1_201, %c8_202, %c0_203] : memref<1x4x64x96xf32, #tpu.memory_space<vmem>>, vector<1x1x56x96xf32>
    %172 = vector.shape_cast %171 : vector<1x1x56x96xf32> to vector<56x96xf32>
    %c2_204 = arith.constant 2 : index
    %c0_205 = arith.constant 0 : index
    %c0_206 = arith.constant 0 : index
    %173 = vector.load %arg2[%c2_204, %c0_205, %c0_206] : memref<5x96x56xf32, #tpu.memory_space<vmem>>, vector<1x96x56xf32>
    %174 = vector.shape_cast %173 : vector<1x96x56xf32> to vector<96x56xf32>
    %cst_207 = arith.constant dense<0.000000e+00> : vector<56x56xf32>
    %175 = tpu.matmul %172, %174, %cst_207 {dimension_numbers = #tpu.dot_dimension_numbers<[1], [0], [0], [1], [0, 0, 1, 1], [], []>} : vector<56x96xf32>, vector<96x56xf32>, vector<56x56xf32> -> vector<56x56xf32>
    %c2_208 = arith.constant 2 : index
    %c0_209 = arith.constant 0 : index
    %c0_210 = arith.constant 0 : index
    %176 = vector.load %arg3[%c2_208, %c0_209, %c0_210] : memref<5x96x56xf32, #tpu.memory_space<vmem>>, vector<1x96x56xf32>
    %177 = vector.shape_cast %176 : vector<1x96x56xf32> to vector<96x56xf32>
    %cst_211 = arith.constant dense<0.000000e+00> : vector<56x56xf32>
    %178 = tpu.matmul %172, %177, %cst_211 {dimension_numbers = #tpu.dot_dimension_numbers<[1], [0], [0], [1], [0, 0, 1, 1], [], []>} : vector<56x96xf32>, vector<96x56xf32>, vector<56x56xf32> -> vector<56x56xf32>
    %179 = arith.addf %169, %175 : vector<56x56xf32>
    %180 = arith.addf %170, %178 : vector<56x56xf32>
    %c0_212 = arith.constant 0 : index
    %c2_213 = arith.constant 2 : index
    %c8_214 = arith.constant 8 : index
    %c0_215 = arith.constant 0 : index
    %181 = vector.load %arg1[%c0_212, %c2_213, %c8_214, %c0_215] : memref<1x4x64x96xf32, #tpu.memory_space<vmem>>, vector<1x1x56x96xf32>
    %182 = vector.shape_cast %181 : vector<1x1x56x96xf32> to vector<56x96xf32>
    %c3_216 = arith.constant 3 : index
    %c0_217 = arith.constant 0 : index
    %c0_218 = arith.constant 0 : index
    %183 = vector.load %arg2[%c3_216, %c0_217, %c0_218] : memref<5x96x56xf32, #tpu.memory_space<vmem>>, vector<1x96x56xf32>
    %184 = vector.shape_cast %183 : vector<1x96x56xf32> to vector<96x56xf32>
    %cst_219 = arith.constant dense<0.000000e+00> : vector<56x56xf32>
    %185 = tpu.matmul %182, %184, %cst_219 {dimension_numbers = #tpu.dot_dimension_numbers<[1], [0], [0], [1], [0, 0, 1, 1], [], []>} : vector<56x96xf32>, vector<96x56xf32>, vector<56x56xf32> -> vector<56x56xf32>
    %c3_220 = arith.constant 3 : index
    %c0_221 = arith.constant 0 : index
    %c0_222 = arith.constant 0 : index
    %186 = vector.load %arg3[%c3_220, %c0_221, %c0_222] : memref<5x96x56xf32, #tpu.memory_space<vmem>>, vector<1x96x56xf32>
    %187 = vector.shape_cast %186 : vector<1x96x56xf32> to vector<96x56xf32>
    %cst_223 = arith.constant dense<0.000000e+00> : vector<56x56xf32>
    %188 = tpu.matmul %182, %187, %cst_223 {dimension_numbers = #tpu.dot_dimension_numbers<[1], [0], [0], [1], [0, 0, 1, 1], [], []>} : vector<56x96xf32>, vector<96x56xf32>, vector<56x56xf32> -> vector<56x56xf32>
    %189 = arith.addf %179, %185 : vector<56x56xf32>
    %190 = arith.addf %180, %188 : vector<56x56xf32>
    %c0_224 = arith.constant 0 : index
    %c3_225 = arith.constant 3 : index
    %c8_226 = arith.constant 8 : index
    %c0_227 = arith.constant 0 : index
    %191 = vector.load %arg1[%c0_224, %c3_225, %c8_226, %c0_227] : memref<1x4x64x96xf32, #tpu.memory_space<vmem>>, vector<1x1x56x96xf32>
    %192 = vector.shape_cast %191 : vector<1x1x56x96xf32> to vector<56x96xf32>
    %c4_228 = arith.constant 4 : index
    %c0_229 = arith.constant 0 : index
    %c0_230 = arith.constant 0 : index
    %193 = vector.load %arg2[%c4_228, %c0_229, %c0_230] : memref<5x96x56xf32, #tpu.memory_space<vmem>>, vector<1x96x56xf32>
    %194 = vector.shape_cast %193 : vector<1x96x56xf32> to vector<96x56xf32>
    %cst_231 = arith.constant dense<0.000000e+00> : vector<56x56xf32>
    %195 = tpu.matmul %192, %194, %cst_231 {dimension_numbers = #tpu.dot_dimension_numbers<[1], [0], [0], [1], [0, 0, 1, 1], [], []>} : vector<56x96xf32>, vector<96x56xf32>, vector<56x56xf32> -> vector<56x56xf32>
    %c4_232 = arith.constant 4 : index
    %c0_233 = arith.constant 0 : index
    %c0_234 = arith.constant 0 : index
    %196 = vector.load %arg3[%c4_232, %c0_233, %c0_234] : memref<5x96x56xf32, #tpu.memory_space<vmem>>, vector<1x96x56xf32>
    %197 = vector.shape_cast %196 : vector<1x96x56xf32> to vector<96x56xf32>
    %cst_235 = arith.constant dense<0.000000e+00> : vector<56x56xf32>
    %198 = tpu.matmul %192, %197, %cst_235 {dimension_numbers = #tpu.dot_dimension_numbers<[1], [0], [0], [1], [0, 0, 1, 1], [], []>} : vector<56x96xf32>, vector<96x56xf32>, vector<56x56xf32> -> vector<56x56xf32>
    %199 = arith.addf %189, %195 : vector<56x56xf32>
    %200 = arith.addf %190, %198 : vector<56x56xf32>
    %201 = arith.maximumf %199, %200 : vector<56x56xf32>
    %202 = arith.maximumf %152, %201 : vector<56x56xf32>
    %c0_236 = arith.constant 0 : index
    %c0_237 = arith.constant 0 : index
    %203 = vector.load %arg4[%c0_236, %c0_237] : memref<1x56xf32, #tpu.memory_space<vmem>>, vector<1x56xf32>
    %204 = vector.broadcast %203 : vector<1x56xf32> to vector<56x56xf32>
    %205 = arith.addf %202, %204 : vector<56x56xf32>
    %cst_238 = arith.constant 0.000000e+00 : f32
    %206 = vector.broadcast %cst_238 : f32 to vector<56x56xf32>
    %207 = arith.maximumf %205, %206 : vector<56x56xf32>
    %208 = vector.extract_strided_slice %103 {offsets = [0, 0], sizes = [40, 56], strides = [1, 1]} : vector<56x56xf32> to vector<40x56xf32>
    %c0_239 = arith.constant 0 : index
    %c0_240 = arith.constant 0 : index
    %c0_241 = arith.constant 0 : index
    %209 = vector.load %arg5[%c0_239, %c0_240, %c0_241] : memref<5x56x40xf32, #tpu.memory_space<vmem>>, vector<1x56x40xf32>
    %210 = vector.shape_cast %209 : vector<1x56x40xf32> to vector<56x40xf32>
    %cst_242 = arith.constant dense<0.000000e+00> : vector<40x40xf32>
    %211 = tpu.matmul %208, %210, %cst_242 {dimension_numbers = #tpu.dot_dimension_numbers<[1], [0], [0], [1], [0, 0, 1, 1], [], []>} : vector<40x56xf32>, vector<56x40xf32>, vector<40x40xf32> -> vector<40x40xf32>
    %c0_243 = arith.constant 0 : index
    %c0_244 = arith.constant 0 : index
    %c0_245 = arith.constant 0 : index
    %212 = vector.load %arg6[%c0_243, %c0_244, %c0_245] : memref<5x56x40xf32, #tpu.memory_space<vmem>>, vector<1x56x40xf32>
    %213 = vector.shape_cast %212 : vector<1x56x40xf32> to vector<56x40xf32>
    %cst_246 = arith.constant dense<0.000000e+00> : vector<40x40xf32>
    %214 = tpu.matmul %208, %213, %cst_246 {dimension_numbers = #tpu.dot_dimension_numbers<[1], [0], [0], [1], [0, 0, 1, 1], [], []>} : vector<40x56xf32>, vector<56x40xf32>, vector<40x40xf32> -> vector<40x40xf32>
    %215 = vector.extract_strided_slice %207 {offsets = [0, 0], sizes = [40, 56], strides = [1, 1]} : vector<56x56xf32> to vector<40x56xf32>
    %c1_247 = arith.constant 1 : index
    %c0_248 = arith.constant 0 : index
    %c0_249 = arith.constant 0 : index
    %216 = vector.load %arg5[%c1_247, %c0_248, %c0_249] : memref<5x56x40xf32, #tpu.memory_space<vmem>>, vector<1x56x40xf32>
    %217 = vector.shape_cast %216 : vector<1x56x40xf32> to vector<56x40xf32>
    %cst_250 = arith.constant dense<0.000000e+00> : vector<40x40xf32>
    %218 = tpu.matmul %215, %217, %cst_250 {dimension_numbers = #tpu.dot_dimension_numbers<[1], [0], [0], [1], [0, 0, 1, 1], [], []>} : vector<40x56xf32>, vector<56x40xf32>, vector<40x40xf32> -> vector<40x40xf32>
    %c1_251 = arith.constant 1 : index
    %c0_252 = arith.constant 0 : index
    %c0_253 = arith.constant 0 : index
    %219 = vector.load %arg6[%c1_251, %c0_252, %c0_253] : memref<5x56x40xf32, #tpu.memory_space<vmem>>, vector<1x56x40xf32>
    %220 = vector.shape_cast %219 : vector<1x56x40xf32> to vector<56x40xf32>
    %cst_254 = arith.constant dense<0.000000e+00> : vector<40x40xf32>
    %221 = tpu.matmul %215, %220, %cst_254 {dimension_numbers = #tpu.dot_dimension_numbers<[1], [0], [0], [1], [0, 0, 1, 1], [], []>} : vector<40x56xf32>, vector<56x40xf32>, vector<40x40xf32> -> vector<40x40xf32>
    %222 = arith.addf %211, %218 : vector<40x40xf32>
    %223 = arith.addf %214, %221 : vector<40x40xf32>
    %224 = vector.extract_strided_slice %103 {offsets = [8, 0], sizes = [40, 56], strides = [1, 1]} : vector<56x56xf32> to vector<40x56xf32>
    %c2_255 = arith.constant 2 : index
    %c0_256 = arith.constant 0 : index
    %c0_257 = arith.constant 0 : index
    %225 = vector.load %arg5[%c2_255, %c0_256, %c0_257] : memref<5x56x40xf32, #tpu.memory_space<vmem>>, vector<1x56x40xf32>
    %226 = vector.shape_cast %225 : vector<1x56x40xf32> to vector<56x40xf32>
    %cst_258 = arith.constant dense<0.000000e+00> : vector<40x40xf32>
    %227 = tpu.matmul %224, %226, %cst_258 {dimension_numbers = #tpu.dot_dimension_numbers<[1], [0], [0], [1], [0, 0, 1, 1], [], []>} : vector<40x56xf32>, vector<56x40xf32>, vector<40x40xf32> -> vector<40x40xf32>
    %c2_259 = arith.constant 2 : index
    %c0_260 = arith.constant 0 : index
    %c0_261 = arith.constant 0 : index
    %228 = vector.load %arg6[%c2_259, %c0_260, %c0_261] : memref<5x56x40xf32, #tpu.memory_space<vmem>>, vector<1x56x40xf32>
    %229 = vector.shape_cast %228 : vector<1x56x40xf32> to vector<56x40xf32>
    %cst_262 = arith.constant dense<0.000000e+00> : vector<40x40xf32>
    %230 = tpu.matmul %224, %229, %cst_262 {dimension_numbers = #tpu.dot_dimension_numbers<[1], [0], [0], [1], [0, 0, 1, 1], [], []>} : vector<40x56xf32>, vector<56x40xf32>, vector<40x40xf32> -> vector<40x40xf32>
    %231 = arith.addf %222, %227 : vector<40x40xf32>
    %232 = arith.addf %223, %230 : vector<40x40xf32>
    %233 = vector.extract_strided_slice %207 {offsets = [8, 0], sizes = [40, 56], strides = [1, 1]} : vector<56x56xf32> to vector<40x56xf32>
    %c3_263 = arith.constant 3 : index
    %c0_264 = arith.constant 0 : index
    %c0_265 = arith.constant 0 : index
    %234 = vector.load %arg5[%c3_263, %c0_264, %c0_265] : memref<5x56x40xf32, #tpu.memory_space<vmem>>, vector<1x56x40xf32>
    %235 = vector.shape_cast %234 : vector<1x56x40xf32> to vector<56x40xf32>
    %cst_266 = arith.constant dense<0.000000e+00> : vector<40x40xf32>
    %236 = tpu.matmul %233, %235, %cst_266 {dimension_numbers = #tpu.dot_dimension_numbers<[1], [0], [0], [1], [0, 0, 1, 1], [], []>} : vector<40x56xf32>, vector<56x40xf32>, vector<40x40xf32> -> vector<40x40xf32>
    %c3_267 = arith.constant 3 : index
    %c0_268 = arith.constant 0 : index
    %c0_269 = arith.constant 0 : index
    %237 = vector.load %arg6[%c3_267, %c0_268, %c0_269] : memref<5x56x40xf32, #tpu.memory_space<vmem>>, vector<1x56x40xf32>
    %238 = vector.shape_cast %237 : vector<1x56x40xf32> to vector<56x40xf32>
    %cst_270 = arith.constant dense<0.000000e+00> : vector<40x40xf32>
    %239 = tpu.matmul %233, %238, %cst_270 {dimension_numbers = #tpu.dot_dimension_numbers<[1], [0], [0], [1], [0, 0, 1, 1], [], []>} : vector<40x56xf32>, vector<56x40xf32>, vector<40x40xf32> -> vector<40x40xf32>
    %240 = arith.addf %231, %236 : vector<40x40xf32>
    %241 = arith.addf %232, %239 : vector<40x40xf32>
    %242 = vector.extract_strided_slice %103 {offsets = [16, 0], sizes = [40, 56], strides = [1, 1]} : vector<56x56xf32> to vector<40x56xf32>
    %c4_271 = arith.constant 4 : index
    %c0_272 = arith.constant 0 : index
    %c0_273 = arith.constant 0 : index
    %243 = vector.load %arg5[%c4_271, %c0_272, %c0_273] : memref<5x56x40xf32, #tpu.memory_space<vmem>>, vector<1x56x40xf32>
    %244 = vector.shape_cast %243 : vector<1x56x40xf32> to vector<56x40xf32>
    %cst_274 = arith.constant dense<0.000000e+00> : vector<40x40xf32>
    %245 = tpu.matmul %242, %244, %cst_274 {dimension_numbers = #tpu.dot_dimension_numbers<[1], [0], [0], [1], [0, 0, 1, 1], [], []>} : vector<40x56xf32>, vector<56x40xf32>, vector<40x40xf32> -> vector<40x40xf32>
    %c4_275 = arith.constant 4 : index
    %c0_276 = arith.constant 0 : index
    %c0_277 = arith.constant 0 : index
    %246 = vector.load %arg6[%c4_275, %c0_276, %c0_277] : memref<5x56x40xf32, #tpu.memory_space<vmem>>, vector<1x56x40xf32>
    %247 = vector.shape_cast %246 : vector<1x56x40xf32> to vector<56x40xf32>
    %cst_278 = arith.constant dense<0.000000e+00> : vector<40x40xf32>
    %248 = tpu.matmul %242, %247, %cst_278 {dimension_numbers = #tpu.dot_dimension_numbers<[1], [0], [0], [1], [0, 0, 1, 1], [], []>} : vector<40x56xf32>, vector<56x40xf32>, vector<40x40xf32> -> vector<40x40xf32>
    %249 = arith.addf %240, %245 : vector<40x40xf32>
    %250 = arith.addf %241, %248 : vector<40x40xf32>
    %251 = arith.maximumf %249, %250 : vector<40x40xf32>
    %252 = vector.extract_strided_slice %207 {offsets = [0, 0], sizes = [40, 56], strides = [1, 1]} : vector<56x56xf32> to vector<40x56xf32>
    %c0_279 = arith.constant 0 : index
    %c0_280 = arith.constant 0 : index
    %c0_281 = arith.constant 0 : index
    %253 = vector.load %arg5[%c0_279, %c0_280, %c0_281] : memref<5x56x40xf32, #tpu.memory_space<vmem>>, vector<1x56x40xf32>
    %254 = vector.shape_cast %253 : vector<1x56x40xf32> to vector<56x40xf32>
    %cst_282 = arith.constant dense<0.000000e+00> : vector<40x40xf32>
    %255 = tpu.matmul %252, %254, %cst_282 {dimension_numbers = #tpu.dot_dimension_numbers<[1], [0], [0], [1], [0, 0, 1, 1], [], []>} : vector<40x56xf32>, vector<56x40xf32>, vector<40x40xf32> -> vector<40x40xf32>
    %c0_283 = arith.constant 0 : index
    %c0_284 = arith.constant 0 : index
    %c0_285 = arith.constant 0 : index
    %256 = vector.load %arg6[%c0_283, %c0_284, %c0_285] : memref<5x56x40xf32, #tpu.memory_space<vmem>>, vector<1x56x40xf32>
    %257 = vector.shape_cast %256 : vector<1x56x40xf32> to vector<56x40xf32>
    %cst_286 = arith.constant dense<0.000000e+00> : vector<40x40xf32>
    %258 = tpu.matmul %252, %257, %cst_286 {dimension_numbers = #tpu.dot_dimension_numbers<[1], [0], [0], [1], [0, 0, 1, 1], [], []>} : vector<40x56xf32>, vector<56x40xf32>, vector<40x40xf32> -> vector<40x40xf32>
    %259 = vector.extract_strided_slice %103 {offsets = [8, 0], sizes = [40, 56], strides = [1, 1]} : vector<56x56xf32> to vector<40x56xf32>
    %c1_287 = arith.constant 1 : index
    %c0_288 = arith.constant 0 : index
    %c0_289 = arith.constant 0 : index
    %260 = vector.load %arg5[%c1_287, %c0_288, %c0_289] : memref<5x56x40xf32, #tpu.memory_space<vmem>>, vector<1x56x40xf32>
    %261 = vector.shape_cast %260 : vector<1x56x40xf32> to vector<56x40xf32>
    %cst_290 = arith.constant dense<0.000000e+00> : vector<40x40xf32>
    %262 = tpu.matmul %259, %261, %cst_290 {dimension_numbers = #tpu.dot_dimension_numbers<[1], [0], [0], [1], [0, 0, 1, 1], [], []>} : vector<40x56xf32>, vector<56x40xf32>, vector<40x40xf32> -> vector<40x40xf32>
    %c1_291 = arith.constant 1 : index
    %c0_292 = arith.constant 0 : index
    %c0_293 = arith.constant 0 : index
    %263 = vector.load %arg6[%c1_291, %c0_292, %c0_293] : memref<5x56x40xf32, #tpu.memory_space<vmem>>, vector<1x56x40xf32>
    %264 = vector.shape_cast %263 : vector<1x56x40xf32> to vector<56x40xf32>
    %cst_294 = arith.constant dense<0.000000e+00> : vector<40x40xf32>
    %265 = tpu.matmul %259, %264, %cst_294 {dimension_numbers = #tpu.dot_dimension_numbers<[1], [0], [0], [1], [0, 0, 1, 1], [], []>} : vector<40x56xf32>, vector<56x40xf32>, vector<40x40xf32> -> vector<40x40xf32>
    %266 = arith.addf %255, %262 : vector<40x40xf32>
    %267 = arith.addf %258, %265 : vector<40x40xf32>
    %268 = vector.extract_strided_slice %207 {offsets = [8, 0], sizes = [40, 56], strides = [1, 1]} : vector<56x56xf32> to vector<40x56xf32>
    %c2_295 = arith.constant 2 : index
    %c0_296 = arith.constant 0 : index
    %c0_297 = arith.constant 0 : index
    %269 = vector.load %arg5[%c2_295, %c0_296, %c0_297] : memref<5x56x40xf32, #tpu.memory_space<vmem>>, vector<1x56x40xf32>
    %270 = vector.shape_cast %269 : vector<1x56x40xf32> to vector<56x40xf32>
    %cst_298 = arith.constant dense<0.000000e+00> : vector<40x40xf32>
    %271 = tpu.matmul %268, %270, %cst_298 {dimension_numbers = #tpu.dot_dimension_numbers<[1], [0], [0], [1], [0, 0, 1, 1], [], []>} : vector<40x56xf32>, vector<56x40xf32>, vector<40x40xf32> -> vector<40x40xf32>
    %c2_299 = arith.constant 2 : index
    %c0_300 = arith.constant 0 : index
    %c0_301 = arith.constant 0 : index
    %272 = vector.load %arg6[%c2_299, %c0_300, %c0_301] : memref<5x56x40xf32, #tpu.memory_space<vmem>>, vector<1x56x40xf32>
    %273 = vector.shape_cast %272 : vector<1x56x40xf32> to vector<56x40xf32>
    %cst_302 = arith.constant dense<0.000000e+00> : vector<40x40xf32>
    %274 = tpu.matmul %268, %273, %cst_302 {dimension_numbers = #tpu.dot_dimension_numbers<[1], [0], [0], [1], [0, 0, 1, 1], [], []>} : vector<40x56xf32>, vector<56x40xf32>, vector<40x40xf32> -> vector<40x40xf32>
    %275 = arith.addf %266, %271 : vector<40x40xf32>
    %276 = arith.addf %267, %274 : vector<40x40xf32>
    %277 = vector.extract_strided_slice %103 {offsets = [16, 0], sizes = [40, 56], strides = [1, 1]} : vector<56x56xf32> to vector<40x56xf32>
    %c3_303 = arith.constant 3 : index
    %c0_304 = arith.constant 0 : index
    %c0_305 = arith.constant 0 : index
    %278 = vector.load %arg5[%c3_303, %c0_304, %c0_305] : memref<5x56x40xf32, #tpu.memory_space<vmem>>, vector<1x56x40xf32>
    %279 = vector.shape_cast %278 : vector<1x56x40xf32> to vector<56x40xf32>
    %cst_306 = arith.constant dense<0.000000e+00> : vector<40x40xf32>
    %280 = tpu.matmul %277, %279, %cst_306 {dimension_numbers = #tpu.dot_dimension_numbers<[1], [0], [0], [1], [0, 0, 1, 1], [], []>} : vector<40x56xf32>, vector<56x40xf32>, vector<40x40xf32> -> vector<40x40xf32>
    %c3_307 = arith.constant 3 : index
    %c0_308 = arith.constant 0 : index
    %c0_309 = arith.constant 0 : index
    %281 = vector.load %arg6[%c3_307, %c0_308, %c0_309] : memref<5x56x40xf32, #tpu.memory_space<vmem>>, vector<1x56x40xf32>
    %282 = vector.shape_cast %281 : vector<1x56x40xf32> to vector<56x40xf32>
    %cst_310 = arith.constant dense<0.000000e+00> : vector<40x40xf32>
    %283 = tpu.matmul %277, %282, %cst_310 {dimension_numbers = #tpu.dot_dimension_numbers<[1], [0], [0], [1], [0, 0, 1, 1], [], []>} : vector<40x56xf32>, vector<56x40xf32>, vector<40x40xf32> -> vector<40x40xf32>
    %284 = arith.addf %275, %280 : vector<40x40xf32>
    %285 = arith.addf %276, %283 : vector<40x40xf32>
    %286 = vector.extract_strided_slice %207 {offsets = [16, 0], sizes = [40, 56], strides = [1, 1]} : vector<56x56xf32> to vector<40x56xf32>
    %c4_311 = arith.constant 4 : index
    %c0_312 = arith.constant 0 : index
    %c0_313 = arith.constant 0 : index
    %287 = vector.load %arg5[%c4_311, %c0_312, %c0_313] : memref<5x56x40xf32, #tpu.memory_space<vmem>>, vector<1x56x40xf32>
    %288 = vector.shape_cast %287 : vector<1x56x40xf32> to vector<56x40xf32>
    %cst_314 = arith.constant dense<0.000000e+00> : vector<40x40xf32>
    %289 = tpu.matmul %286, %288, %cst_314 {dimension_numbers = #tpu.dot_dimension_numbers<[1], [0], [0], [1], [0, 0, 1, 1], [], []>} : vector<40x56xf32>, vector<56x40xf32>, vector<40x40xf32> -> vector<40x40xf32>
    %c4_315 = arith.constant 4 : index
    %c0_316 = arith.constant 0 : index
    %c0_317 = arith.constant 0 : index
    %290 = vector.load %arg6[%c4_315, %c0_316, %c0_317] : memref<5x56x40xf32, #tpu.memory_space<vmem>>, vector<1x56x40xf32>
    %291 = vector.shape_cast %290 : vector<1x56x40xf32> to vector<56x40xf32>
    %cst_318 = arith.constant dense<0.000000e+00> : vector<40x40xf32>
    %292 = tpu.matmul %286, %291, %cst_318 {dimension_numbers = #tpu.dot_dimension_numbers<[1], [0], [0], [1], [0, 0, 1, 1], [], []>} : vector<40x56xf32>, vector<56x40xf32>, vector<40x40xf32> -> vector<40x40xf32>
    %293 = arith.addf %284, %289 : vector<40x40xf32>
    %294 = arith.addf %285, %292 : vector<40x40xf32>
    %295 = arith.maximumf %293, %294 : vector<40x40xf32>
    %296 = arith.maximumf %251, %295 : vector<40x40xf32>
    %c0_319 = arith.constant 0 : index
    %c0_320 = arith.constant 0 : index
    %297 = vector.load %arg7[%c0_319, %c0_320] : memref<1x40xf32, #tpu.memory_space<vmem>>, vector<1x40xf32>
    %298 = vector.broadcast %297 : vector<1x40xf32> to vector<40x40xf32>
    %299 = arith.addf %296, %298 : vector<40x40xf32>
    %cst_321 = arith.constant 0.000000e+00 : f32
    %300 = vector.broadcast %cst_321 : f32 to vector<40x40xf32>
    %301 = arith.maximumf %299, %300 : vector<40x40xf32>
    %302 = vector.extract_strided_slice %301 {offsets = [0, 0], sizes = [8, 40], strides = [1, 1]} : vector<40x40xf32> to vector<8x40xf32>
    %c0_322 = arith.constant 0 : index
    %c0_323 = arith.constant 0 : index
    %c0_324 = arith.constant 0 : index
    %303 = vector.load %arg8[%c0_322, %c0_323, %c0_324] : memref<5x40x64xf32, #tpu.memory_space<vmem>>, vector<1x40x64xf32>
    %304 = vector.shape_cast %303 : vector<1x40x64xf32> to vector<40x64xf32>
    %cst_325 = arith.constant dense<0.000000e+00> : vector<8x64xf32>
    %305 = tpu.matmul %302, %304, %cst_325 {dimension_numbers = #tpu.dot_dimension_numbers<[1], [0], [0], [1], [0, 0, 1, 1], [], []>} : vector<8x40xf32>, vector<40x64xf32>, vector<8x64xf32> -> vector<8x64xf32>
    %306 = vector.extract_strided_slice %301 {offsets = [8, 0], sizes = [8, 40], strides = [1, 1]} : vector<40x40xf32> to vector<8x40xf32>
    %c1_326 = arith.constant 1 : index
    %c0_327 = arith.constant 0 : index
    %c0_328 = arith.constant 0 : index
    %307 = vector.load %arg8[%c1_326, %c0_327, %c0_328] : memref<5x40x64xf32, #tpu.memory_space<vmem>>, vector<1x40x64xf32>
    %308 = vector.shape_cast %307 : vector<1x40x64xf32> to vector<40x64xf32>
    %cst_329 = arith.constant dense<0.000000e+00> : vector<8x64xf32>
    %309 = tpu.matmul %306, %308, %cst_329 {dimension_numbers = #tpu.dot_dimension_numbers<[1], [0], [0], [1], [0, 0, 1, 1], [], []>} : vector<8x40xf32>, vector<40x64xf32>, vector<8x64xf32> -> vector<8x64xf32>
    %310 = arith.addf %305, %309 : vector<8x64xf32>
    %311 = vector.extract_strided_slice %301 {offsets = [16, 0], sizes = [8, 40], strides = [1, 1]} : vector<40x40xf32> to vector<8x40xf32>
    %c2_330 = arith.constant 2 : index
    %c0_331 = arith.constant 0 : index
    %c0_332 = arith.constant 0 : index
    %312 = vector.load %arg8[%c2_330, %c0_331, %c0_332] : memref<5x40x64xf32, #tpu.memory_space<vmem>>, vector<1x40x64xf32>
    %313 = vector.shape_cast %312 : vector<1x40x64xf32> to vector<40x64xf32>
    %cst_333 = arith.constant dense<0.000000e+00> : vector<8x64xf32>
    %314 = tpu.matmul %311, %313, %cst_333 {dimension_numbers = #tpu.dot_dimension_numbers<[1], [0], [0], [1], [0, 0, 1, 1], [], []>} : vector<8x40xf32>, vector<40x64xf32>, vector<8x64xf32> -> vector<8x64xf32>
    %315 = arith.addf %310, %314 : vector<8x64xf32>
    %316 = vector.extract_strided_slice %301 {offsets = [24, 0], sizes = [8, 40], strides = [1, 1]} : vector<40x40xf32> to vector<8x40xf32>
    %c3_334 = arith.constant 3 : index
    %c0_335 = arith.constant 0 : index
    %c0_336 = arith.constant 0 : index
    %317 = vector.load %arg8[%c3_334, %c0_335, %c0_336] : memref<5x40x64xf32, #tpu.memory_space<vmem>>, vector<1x40x64xf32>
    %318 = vector.shape_cast %317 : vector<1x40x64xf32> to vector<40x64xf32>
    %cst_337 = arith.constant dense<0.000000e+00> : vector<8x64xf32>
    %319 = tpu.matmul %316, %318, %cst_337 {dimension_numbers = #tpu.dot_dimension_numbers<[1], [0], [0], [1], [0, 0, 1, 1], [], []>} : vector<8x40xf32>, vector<40x64xf32>, vector<8x64xf32> -> vector<8x64xf32>
    %320 = arith.addf %315, %319 : vector<8x64xf32>
    %321 = vector.extract_strided_slice %301 {offsets = [32, 0], sizes = [8, 40], strides = [1, 1]} : vector<40x40xf32> to vector<8x40xf32>
    %c4_338 = arith.constant 4 : index
    %c0_339 = arith.constant 0 : index
    %c0_340 = arith.constant 0 : index
    %322 = vector.load %arg8[%c4_338, %c0_339, %c0_340] : memref<5x40x64xf32, #tpu.memory_space<vmem>>, vector<1x40x64xf32>
    %323 = vector.shape_cast %322 : vector<1x40x64xf32> to vector<40x64xf32>
    %cst_341 = arith.constant dense<0.000000e+00> : vector<8x64xf32>
    %324 = tpu.matmul %321, %323, %cst_341 {dimension_numbers = #tpu.dot_dimension_numbers<[1], [0], [0], [1], [0, 0, 1, 1], [], []>} : vector<8x40xf32>, vector<40x64xf32>, vector<8x64xf32> -> vector<8x64xf32>
    %325 = arith.addf %320, %324 : vector<8x64xf32>
    %c0_342 = arith.constant 0 : index
    %c0_343 = arith.constant 0 : index
    %326 = vector.load %arg9[%c0_342, %c0_343] : memref<1x64xf32, #tpu.memory_space<vmem>>, vector<1x64xf32>
    %327 = vector.broadcast %326 : vector<1x64xf32> to vector<8x64xf32>
    %328 = arith.addf %325, %327 : vector<8x64xf32>
    %cst_344 = arith.constant 0.000000e+00 : f32
    %329 = vector.broadcast %cst_344 : f32 to vector<8x64xf32>
    %330 = arith.maximumf %328, %329 : vector<8x64xf32>
    %c0_345 = arith.constant 0 : index
    %c0_346 = arith.constant 0 : index
    %331 = vector.load %arg10[%c0_345, %c0_346] : memref<64x10xf32, #tpu.memory_space<vmem>>, vector<64x10xf32>
    %cst_347 = arith.constant dense<0.000000e+00> : vector<8x10xf32>
    %332 = tpu.matmul %330, %331, %cst_347 {dimension_numbers = #tpu.dot_dimension_numbers<[1], [0], [0], [1], [0, 0, 1, 1], [], []>} : vector<8x64xf32>, vector<64x10xf32>, vector<8x10xf32> -> vector<8x10xf32>
    %c0_348 = arith.constant 0 : index
    %c0_349 = arith.constant 0 : index
    %333 = vector.load %arg11[%c0_348, %c0_349] : memref<1x10xf32, #tpu.memory_space<vmem>>, vector<1x10xf32>
    %334 = vector.broadcast %333 : vector<1x10xf32> to vector<8x10xf32>
    %335 = arith.addf %332, %334 : vector<8x10xf32>
    %c0_350 = arith.constant 0 : index
    %c0_351 = arith.constant 0 : index
    %336 = vector.load %arg12[%c0_350, %c0_351] : memref<8x10xf32, #tpu.memory_space<vmem>>, vector<8x10xf32>
    tpu.vector_store %arg12[%c0_350, %c0_351], %335 {strides = array<i32>} : memref<8x10xf32, #tpu.memory_space<vmem>>, vector<8x10xf32>,
    return
  }
  func.func @transform_0(%arg0: i32) -> (i32, i32, i32, i32) {
    %c0_i32 = arith.constant 0 : i32
    %c0_i32_0 = arith.constant 0 : i32
    %c0_i32_1 = arith.constant 0 : i32
    %c0_i32_2 = arith.constant 0 : i32
    return %arg0, %c0_i32, %c0_i32_0, %c0_i32_1 : i32, i32, i32, i32
  }
  func.func @transform_1(%arg0: i32) -> (i32, i32, i32) {
    %c0_i32 = arith.constant 0 : i32
    %c0_i32_0 = arith.constant 0 : i32
    %c0_i32_1 = arith.constant 0 : i32
    %c0_i32_2 = arith.constant 0 : i32
    return %c0_i32, %c0_i32_0, %c0_i32_1 : i32, i32, i32
  }
  func.func @transform_2(%arg0: i32) -> (i32, i32, i32) {
    %c0_i32 = arith.constant 0 : i32
    %c0_i32_0 = arith.constant 0 : i32
    %c0_i32_1 = arith.constant 0 : i32
    %c0_i32_2 = arith.constant 0 : i32
    return %c0_i32, %c0_i32_0, %c0_i32_1 : i32, i32, i32
  }
  func.func @transform_3(%arg0: i32) -> (i32, i32) {
    %c0_i32 = arith.constant 0 : i32
    %c0_i32_0 = arith.constant 0 : i32
    %c0_i32_1 = arith.constant 0 : i32
    return %c0_i32, %c0_i32_0 : i32, i32
  }
  func.func @transform_4(%arg0: i32) -> (i32, i32, i32) {
    %c0_i32 = arith.constant 0 : i32
    %c0_i32_0 = arith.constant 0 : i32
    %c0_i32_1 = arith.constant 0 : i32
    %c0_i32_2 = arith.constant 0 : i32
    return %c0_i32, %c0_i32_0, %c0_i32_1 : i32, i32, i32
  }
  func.func @transform_5(%arg0: i32) -> (i32, i32, i32) {
    %c0_i32 = arith.constant 0 : i32
    %c0_i32_0 = arith.constant 0 : i32
    %c0_i32_1 = arith.constant 0 : i32
    %c0_i32_2 = arith.constant 0 : i32
    return %c0_i32, %c0_i32_0, %c0_i32_1 : i32, i32, i32
  }
  func.func @transform_6(%arg0: i32) -> (i32, i32) {
    %c0_i32 = arith.constant 0 : i32
    %c0_i32_0 = arith.constant 0 : i32
    %c0_i32_1 = arith.constant 0 : i32
    return %c0_i32, %c0_i32_0 : i32, i32
  }
  func.func @transform_7(%arg0: i32) -> (i32, i32, i32) {
    %c0_i32 = arith.constant 0 : i32
    %c0_i32_0 = arith.constant 0 : i32
    %c0_i32_1 = arith.constant 0 : i32
    %c0_i32_2 = arith.constant 0 : i32
    return %c0_i32, %c0_i32_0, %c0_i32_1 : i32, i32, i32
  }
  func.func @transform_8(%arg0: i32) -> (i32, i32) {
    %c0_i32 = arith.constant 0 : i32
    %c0_i32_0 = arith.constant 0 : i32
    %c0_i32_1 = arith.constant 0 : i32
    return %c0_i32, %c0_i32_0 : i32, i32
  }
  func.func @transform_9(%arg0: i32) -> (i32, i32) {
    %c0_i32 = arith.constant 0 : i32
    %c0_i32_0 = arith.constant 0 : i32
    %c0_i32_1 = arith.constant 0 : i32
    return %c0_i32, %c0_i32_0 : i32, i32
  }
  func.func @transform_10(%arg0: i32) -> (i32, i32) {
    %c0_i32 = arith.constant 0 : i32
    %c0_i32_0 = arith.constant 0 : i32
    %c0_i32_1 = arith.constant 0 : i32
    return %c0_i32, %c0_i32_0 : i32, i32
  }
  func.func @transform_11(%arg0: i32) -> (i32, i32) {
    %c0_i32 = arith.constant 0 : i32
    %c0_i32_0 = arith.constant 0 : i32
    return %arg0, %c0_i32 : i32, i32
  }
}

</mosaic_0001>

<bundles_post_ra>
// kernel: cutmix_lenet_forward.1
= control target key start
LH: loop header
LB: loop body
LE: loop exit
PB: predicated region body
PF: predicated region fallthrough
CT: control target
= control target key end

     0   :  { %v17147_v0 = vmov 0.0   ;;  %vm90_vm0 = vcmask 785408   ;;  %vm11639_vm1 = vmmov 0   ;;  %vm4661_vm2 = vcmask 457728   ;;  %s17125_s1 = inlined_call_operand.vmem [shape: f32[5,96,56], index: 1, kind: input, shape index: {}]   ;;  %s17126_s2 = inlined_call_operand.vmem [shape: f32[5,96,56], index: 2, kind: input, shape index: {}]   ;;  %s17127_s0 = inlined_call_operand.vmem [shape: f32[1,4,64,96], index: 0, kind: input, shape index: {}]   ;;  %s17128_s4 = inlined_call_operand.vmem [shape: f32[5,56,40], index: 4, kind: input, shape index: {}]   ;;  %s17129_s5 = inlined_call_operand.vmem [shape: f32[5,56,40], index: 5, kind: input, shape index: {}]   ;;  %s17130_s3 = inlined_call_operand.vmem [shape: f32[1,56], index: 3, kind: input, shape index: {}]   ;;  %s17131_s7 = inlined_call_operand.vmem [shape: f32[5,40,64], index: 7, kind: input, shape index: {}]   ;;  %s17132_s6 = inlined_call_operand.vmem [shape: f32[1,40], index: 6, kind: input, shape index: {}]   ;;  %s17133_s9 = inlined_call_operand.vmem [shape: f32[64,10], index: 9, kind: input, shape index: {}]   ;;  %s17134_s8 = inlined_call_operand.vmem [shape: f32[1,64], index: 8, kind: input, shape index: {}]   ;;  %s17135_s10 = inlined_call_operand.vmem [shape: f32[1,10], index: 10, kind: input, shape index: {}]   ;;  %s17136_s11 = inlined_call_operand.vmem [shape: f32[8,10], index: 11, kind: output, shape index: {}]  }
   0x1   :  { %8797 = vmatprep.subr.mxu0 %v17147_v0  ;;  %8842 = vmatprep.subr.mxu1 %v17147_v0  ;;  %v11705_v1 = vld [vmem:[%s17125_s1 + $0xb8] sm:$0xff]  ;;  %v7171_v3 = vld [vmem:[%s17125_s1 + $0xb0] sm:$0xff]  ;;  %v11727_v5 = vld [vmem:[%s17125_s1 + $0xa8] sm:$0xff]  ;;  %vm6663_vm3 = vcmask 326656   ;;  %vm7074_vm4 = vcmask 523264   ;;  %vm7148_vm5 = vcmask 80896  }
   0x2   :  { %v11710_v2 = vld [vmem:[%s17126_s2 + $0xb8] sm:$0xff]  ;;  %8798 = vmatpush3.msra.mxu0 %v11705_v1  ;;  %v11720_v4 = vld [vmem:[%s17126_s2 + $0xb0] sm:$0xff]  ;;  %v11732_v6 = vld [vmem:[%s17126_s2 + $0xa8] sm:$0xff]  ;;  %8821 = vmatprep.mubr.msk.f32.mxu0 %vm11639_vm1, %v17147_v0 }
   0x3   :  { %8843 = vmatpush3.msra.mxu1 %v11710_v2  ;;  %8799 = vmatprep.subr.mxu0 %v17147_v0  ;;  %v7169_v7 = vld [vmem:[%s17125_s1 + $0xa0] sm:$0xff]  ;;  %v7168_v9 = vld [vmem:[%s17125_s1 + $0x98] sm:$0xff]  ;;  %v7167_v11 = vld [vmem:[%s17125_s1 + $0x90] sm:$0xff] }
   0x4   :  { %8844 = vmatprep.subr.mxu1 %v17147_v0  ;;  %8800 = vmatpush3.msra.mxu0 %v7171_v3  ;;  %v7188_v8 = vld [vmem:[%s17126_s2 + $0xa0] sm:$0xff]  ;;  %v7187_v10 = vld [vmem:[%s17126_s2 + $0x98] sm:$0xff]  ;;  %v7186_v12 = vld [vmem:[%s17126_s2 + $0x90] sm:$0xff] }
   0x5   :  { %8845 = vmatpush3.msra.mxu1 %v11720_v4  ;;  %8801 = vmatprep.subr.mxu0 %v17147_v0  ;;  %v7166_v13 = vld [vmem:[%s17125_s1 + $0x88] sm:$0xff]  ;;  %v7165_v15 = vld [vmem:[%s17125_s1 + $0x80] sm:$0xff]  ;;  %v7164_v17 = vld [vmem:[%s17125_s1 + $0x78] sm:$0xff] }
   0x6   :  { %8846 = vmatprep.subr.mxu1 %v17147_v0  ;;  %8802 = vmatpush3.msra.mxu0 %v11727_v5  ;;  %v7185_v14 = vld [vmem:[%s17126_s2 + $0x88] sm:$0xff]  ;;  %v7184_v16 = vld [vmem:[%s17126_s2 + $0x80] sm:$0xff]  ;;  %v7183_v18 = vld [vmem:[%s17126_s2 + $0x78] sm:$0xff] }
   0x7   :  { %8847 = vmatpush3.msra.mxu1 %v11732_v6  ;;  %8803 = vmatprep.subr.mxu0 %v17147_v0  ;;  %v7163_v19 = vld [vmem:[%s17125_s1 + $0x70] sm:$0xff]  ;;  %v7162_v21 = vld [vmem:[%s17125_s1 + $0x68] sm:$0xff]  ;;  %v7161_v23 = vld [vmem:[%s17125_s1 + $0x60] sm:$0xff] }
   0x8   :  { %8848 = vmatprep.subr.mxu1 %v17147_v0  ;;  %8804 = vmatpush3.msra.mxu0 %v7169_v7  ;;  %v7182_v20 = vld [vmem:[%s17126_s2 + $0x70] sm:$0xff]  ;;  %v7181_v22 = vld [vmem:[%s17126_s2 + $0x68] sm:$0xff]  ;;  %v11809_v24 = vld [vmem:[%s17126_s2 + $0x60] sm:$0xff] }
   0x9   :  { %8849 = vmatpush3.msra.mxu1 %v7188_v8  ;;  %8805 = vmatprep.subr.mxu0 %v17147_v0  ;;  %v7154_v25 = vld [vmem:[%s17127_s0 + $0x40] sm:$0xff]  ;;  %v11824_v26 = vld [vmem:[%s17125_s1 + $0x58] sm:$0xff]  ;;  %v7155_v28 = vld [vmem:[%s17127_s0 + $0x48] sm:$0xff] }
   0xa   :  { %8850 = vmatprep.subr.mxu1 %v17147_v0  ;;  %8806 = vmatpush3.msra.mxu0 %v7168_v9  ;;  %v11829_v27 = vld [vmem:[%s17126_s2 + $0x58] sm:$0xff]  ;;  %v11847_v29 = vld [vmem:[%s17125_s1 + $0x50] sm:$0xff]  ;;  %v11861_v31 = vld [vmem:[%s17125_s1 + $0x48] sm:$0xff] }
   0xb   :  { %8851 = vmatpush3.msra.mxu1 %v7187_v10  ;;  %8807 = vmatprep.subr.mxu0 %v17147_v0  ;;  %v11852_v30 = vld [vmem:[%s17126_s2 + $0x50] sm:$0xff]  ;;  %v11866_v32 = vld [vmem:[%s17126_s2 + $0x48] sm:$0xff]  ;;  %v11884_v34 = vld [vmem:[%s17125_s1 + $0x40] sm:$0xff] }
   0xc   :  { %8852 = vmatprep.subr.mxu1 %v17147_v0  ;;  %8808 = vmatpush3.msra.mxu0 %v7167_v11  ;;  %v7156_v33 = vld [vmem:[%s17127_s0 + $0x50] sm:$0xff]  ;;  %v11889_v35 = vld [vmem:[%s17126_s2 + $0x40] sm:$0xff]  ;;  %v11900_v36 = vld [vmem:[%s17125_s1 + $0x38] sm:$0xff] }
   0xd   :  { %8853 = vmatpush3.msra.mxu1 %v7186_v12  ;;  %8809 = vmatprep.subr.mxu0 %v17147_v0  ;;  %v11905_v37 = vld [vmem:[%s17126_s2 + $0x38] sm:$0xff]  ;;  %v11921_v39 = vld [vmem:[%s17125_s1 + $0x30] sm:$0xff]  ;;  %v11937_v41 = vld [vmem:[%s17125_s1 + $0x28] sm:$0xff] }
   0xe   :  { %8854 = vmatprep.subr.mxu1 %v17147_v0  ;;  %8810 = vmatpush3.msra.mxu0 %v7166_v13  ;;  %v7157_v38 = vld [vmem:[%s17127_s0 + $0x58] sm:$0xff]  ;;  %v11926_v40 = vld [vmem:[%s17126_s2 + $0x30] sm:$0xff]  ;;  %v11942_v42 = vld [vmem:[%s17126_s2 + $0x28] sm:$0xff] }
   0xf   :  { %8855 = vmatpush3.msra.mxu1 %v7185_v14  ;;  %8811 = vmatprep.subr.mxu0 %v17147_v0  ;;  %v7158_v43 = vld [vmem:[%s17127_s0 + $0x60] sm:$0xff]  ;;  %v7159_v46 = vld [vmem:[%s17127_s0 + $0x68] sm:$0xff]  ;;  %v11981_v47 = vld [vmem:[%s17125_s1 + $0x18] sm:$0xff] }
  0x10   :  { %8856 = vmatprep.subr.mxu1 %v17147_v0  ;;  %8812 = vmatpush3.msra.mxu0 %v7165_v15  ;;  %v11958_v44 = vld [vmem:[%s17125_s1 + $0x20] sm:$0xff]  ;;  %v11986_v48 = vld [vmem:[%s17126_s2 + $0x18] sm:$0xff]  ;;  %v11995_v49 = vld [vmem:[%s17125_s1 + $0x10] sm:$0xff] }
  0x11   :  { %8857 = vmatpush3.msra.mxu1 %v7184_v16  ;;  %8813 = vmatprep.subr.mxu0 %v17147_v0  ;;  %v11963_v45 = vld [vmem:[%s17126_s2 + $0x20] sm:$0xff]  ;;  %v12000_v50 = vld [vmem:[%s17126_s2 + $0x10] sm:$0xff]  ;;  %v12018_v52 = vld [vmem:[%s17125_s1 + $0x8] sm:$0xff] }
  0x12   :  { %8858 = vmatprep.subr.mxu1 %v17147_v0  ;;  %8814 = vmatpush3.msra.mxu0 %v7164_v17  ;;  %v7160_v51 = vld [vmem:[%s17127_s0 + $0x70] sm:$0xff]  ;;  %v12023_v53 = vld [vmem:[%s17126_s2 + $0x8] sm:$0xff]  ;;  %v12032_v54 = vld [vmem:[%s17125_s1] sm:$0xff] }
  0x13   :  { %8859 = vmatpush3.msra.mxu1 %v7183_v18  ;;  %8815 = vmatprep.subr.mxu0 %v17147_v0  ;;  %v12039_v55 = vld [vmem:[%s17126_s2] sm:$0xff]  ;;  %v12055_v57 = vld [vmem:[%s17125_s1 + $0x118] sm:$0xff]  ;;  %v12071_v59 = vld [vmem:[%s17127_s0 + $0x8] sm:$0xff] }
  0x14   :  { %8860 = vmatprep.subr.mxu1 %v17147_v0  ;;  %8816 = vmatpush3.msra.mxu0 %v7163_v19  ;;  %v38_v56 = vld [vmem:[%s17127_s0] sm:$0xff]  ;;  %v12060_v58 = vld [vmem:[%s17126_s2 + $0x118] sm:$0xff]  ;;  %v12080_v60 = vld [vmem:[%s17125_s1 + $0x110] sm:$0xff] }
  0x15   :  { %8861 = vmatpush3.msra.mxu1 %v7182_v20  ;;  %8817 = vmatprep.subr.mxu0 %v17147_v0  ;;  %v12085_v61 = vld [vmem:[%s17126_s2 + $0x110] sm:$0xff]  ;;  %v12096_v62 = vld [vmem:[%s17125_s1 + $0x108] sm:$0xff]  ;;  %v12121_v7 = vld [vmem:[%s17125_s1 + $0x100] sm:$0xff] }
  0x16   :  { %8862 = vmatprep.subr.mxu1 %v17147_v0  ;;  %8818 = vmatpush3.msra.mxu0 %v7162_v21  ;;  %v12101_v63 = vld [vmem:[%s17126_s2 + $0x108] sm:$0xff]  ;;  %v12112_v3 = vld [vmem:[%s17127_s0 + $0x10] sm:$0xff]  ;;  %v12126_v8 = vld [vmem:[%s17126_s2 + $0x100] sm:$0xff] }
  0x17   :  { %8863 = vmatpush3.msra.mxu1 %v7181_v22  ;;  %8819 = vmatprep.subr.mxu0 %v17147_v0  ;;  %v12139_v9 = vld [vmem:[%s17125_s1 + $0xf8] sm:$0xff]  ;;  %v12162_v12 = vld [vmem:[%s17125_s1 + $0xf0] sm:$0xff]  ;;  %v7225_v14 = vld [vmem:[%s17125_s1 + $0xe8] sm:$0xff] }
  0x18   :  { %8864 = vmatprep.subr.mxu1 %v17147_v0  ;;  %8820 = vmatpush3.msra.mxu0 %v7161_v23  ;;  %v12144_v10 = vld [vmem:[%s17126_s2 + $0xf8] sm:$0xff]  ;;  %v12167_v13 = vld [vmem:[%s17126_s2 + $0xf0] sm:$0xff]  ;;  %v7244_v15 = vld [vmem:[%s17126_s2 + $0xe8] sm:$0xff] }
  0x19   :  { %8865 = vmatpush3.msra.mxu1 %v11809_v24  ;;  %8866 = vmatprep.mubr.msk.f32.mxu1 %vm11639_vm1, %v17147_v0  ;;  %v12151_v11 = vld [vmem:[%s17127_s0 + $0x18] sm:$0xff]  ;;  %v12188_v16 = vld [vmem:[%s17127_s0 + $0x20] sm:$0xff]  ;;  %v12215_v19 = vld [vmem:[%s17127_s0 + $0x28] sm:$0xff] }
  0x1a   :  { %8822 = vmatmul.mubr.msk.f32.vlgmr.msra.gmra.mxu0 %vm90_vm0, %v7154_v25  ;;  %8867 = vmatmul.mubr.msk.f32.vlgmr.msra.gmra.mxu1 %vm90_vm0, %v7154_v25  ;;  %v12197_v17 = vld [vmem:[%s17125_s1 + $0xe0] sm:$0xff]  ;;  %v7223_v20 = vld [vmem:[%s17125_s1 + $0xd8] sm:$0xff]  ;;  %v7222_v22 = vld [vmem:[%s17125_s1 + $0xd0] sm:$0xff] }
  0x1b   :  { %8887 = vmatprep.subr.mxu0 %v17147_v0  ;;  %8932 = vmatprep.subr.mxu1 %v17147_v0  ;;  %v12202_v18 = vld [vmem:[%s17126_s2 + $0xe0] sm:$0xff]  ;;  %v7242_v21 = vld [vmem:[%s17126_s2 + $0xd8] sm:$0xff]  ;;  %v7241_v23 = vld [vmem:[%s17126_s2 + $0xd0] sm:$0xff] }
  0x1c   :  { %8888 = vmatpush3.msra.mxu0 %v11824_v26  ;;  %8933 = vmatpush3.msra.mxu1 %v11829_v27  ;;  %v12244_v25 = vld [vmem:[%s17127_s0 + $0x30] sm:$0xff] }
  0x1d   :  { %8824 = vmatprep.mubr.msk.f32.mxu0 %vm11639_vm1, %v17147_v0  ;;  %8869 = vmatprep.mubr.msk.f32.mxu1 %vm11639_vm1, %v17147_v0 }
  0x1e   :  { %8889 = vmatprep.subr.mxu0 %v17147_v0  ;;  %8934 = vmatprep.subr.mxu1 %v17147_v0 }
  0x1f   :  { %8825 = vmatmul.mubr.msk.f32.gmra.mxu0 %vm90_vm0, %v7155_v28  ;;  %8870 = vmatmul.mubr.msk.f32.gmra.mxu1 %vm90_vm0, %v7155_v28  ;;  %v7221_v28 = vld [vmem:[%s17125_s1 + $0xc8] sm:$0xff] }
  0x20   :  { %8890 = vmatpush3.msra.mxu0 %v11847_v29  ;;  %8935 = vmatpush3.msra.mxu1 %v11852_v30 }
  0x21   :  { %8891 = vmatprep.subr.mxu0 %v17147_v0  ;;  %8936 = vmatprep.subr.mxu1 %v17147_v0 }
  0x22   :  { %8892 = vmatpush3.msra.mxu0 %v11861_v31  ;;  %8937 = vmatpush3.msra.mxu1 %v11866_v32 }
  0x23   :  { %8827 = vmatprep.mubr.msk.f32.mxu0 %vm11639_vm1, %v17147_v0  ;;  %8872 = vmatprep.mubr.msk.f32.mxu1 %vm11639_vm1, %v17147_v0 }
  0x24   :  { %8893 = vmatprep.subr.mxu0 %v17147_v0  ;;  %8938 = vmatprep.subr.mxu1 %v17147_v0 }
  0x25   :  { %8828 = vmatmul.mubr.msk.f32.gmra.mxu0 %vm90_vm0, %v7156_v33  ;;  %8873 = vmatmul.mubr.msk.f32.gmra.mxu1 %vm90_vm0, %v7156_v33  ;;  %v7240_v33 = vld [vmem:[%s17126_s2 + $0xc8] sm:$0xff] }
  0x26   :  { %8894 = vmatpush3.msra.mxu0 %v11884_v34  ;;  %8939 = vmatpush3.msra.mxu1 %v11889_v35 }
  0x27   :  { %8895 = vmatprep.subr.mxu0 %v17147_v0  ;;  %8940 = vmatprep.subr.mxu1 %v17147_v0 }
  0x28   :  { %8830 = vmatprep.mubr.msk.f32.mxu0 %vm11639_vm1, %v17147_v0  ;;  %8875 = vmatprep.mubr.msk.f32.mxu1 %vm11639_vm1, %v17147_v0 }
  0x29   :  { %8896 = vmatpush3.msra.mxu0 %v11900_v36  ;;  %8941 = vmatpush3.msra.mxu1 %v11905_v37 }
  0x2a   :  { %8831 = vmatmul.mubr.msk.f32.gmra.mxu0 %vm90_vm0, %v7157_v38  ;;  %8876 = vmatmul.mubr.msk.f32.gmra.mxu1 %vm90_vm0, %v7157_v38  ;;  %v7220_v38 = vld [vmem:[%s17125_s1 + $0xc0] sm:$0xff] }
  0x2b   :  { %8897 = vmatprep.subr.mxu0 %v17147_v0  ;;  %8942 = vmatprep.subr.mxu1 %v17147_v0 }
  0x2c   :  { %8898 = vmatpush3.msra.mxu0 %v11921_v39  ;;  %8943 = vmatpush3.msra.mxu1 %v11926_v40 }
  0x2d   :  { %8899 = vmatprep.subr.mxu0 %v17147_v0  ;;  %8944 = vmatprep.subr.mxu1 %v17147_v0 }
  0x2e   :  { %8833 = vmatprep.mubr.msk.f32.mxu0 %vm11639_vm1, %v17147_v0  ;;  %8878 = vmatprep.mubr.msk.f32.mxu1 %vm11639_vm1, %v17147_v0 }
  0x2f   :  { %8900 = vmatpush3.msra.mxu0 %v11937_v41  ;;  %8945 = vmatpush3.msra.mxu1 %v11942_v42 }
  0x30   :  { %8834 = vmatmul.mubr.msk.f32.gmra.mxu0 %vm90_vm0, %v7158_v43  ;;  %8879 = vmatmul.mubr.msk.f32.gmra.mxu1 %vm90_vm0, %v7158_v43  ;;  %v7239_v43 = vld [vmem:[%s17126_s2 + $0xc0] sm:$0xff] }
  0x31   :  { %8901 = vmatprep.subr.mxu0 %v17147_v0  ;;  %8946 = vmatprep.subr.mxu1 %v17147_v0 }
  0x32   :  { %8902 = vmatpush3.msra.mxu0 %v11958_v44  ;;  %8947 = vmatpush3.msra.mxu1 %v11963_v45 }
  0x33   :  { %8836 = vmatprep.mubr.msk.f32.mxu0 %vm11639_vm1, %v17147_v0  ;;  %8881 = vmatprep.mubr.msk.f32.mxu1 %vm11639_vm1, %v17147_v0 }
  0x34   :  { %8903 = vmatprep.subr.mxu0 %v17147_v0  ;;  %8948 = vmatprep.subr.mxu1 %v17147_v0 }
  0x35   :  { %8837 = vmatmul.mubr.msk.f32.gmra.mxu0 %vm90_vm0, %v7159_v46  ;;  %8882 = vmatmul.mubr.msk.f32.gmra.mxu1 %vm90_vm0, %v7159_v46  ;;  %v12273_v46 = vld [vmem:[%s17127_s0 + $0x80] sm:$0xff] }
  0x36   :  { %8904 = vmatpush3.msra.mxu0 %v11981_v47  ;;  %8949 = vmatpush3.msra.mxu1 %v11986_v48 }
  0x37   :  { %8905 = vmatprep.subr.mxu0 %v17147_v0  ;;  %8950 = vmatprep.subr.mxu1 %v17147_v0 }
  0x38   :  { %8906 = vmatpush3.msra.mxu0 %v11995_v49  ;;  %8951 = vmatpush3.msra.mxu1 %v12000_v50 }
  0x39   :  { %8839 = vmatprep.mubr.msk.f32.mxu0 %vm11639_vm1, %v17147_v0  ;;  %8884 = vmatprep.mubr.msk.f32.mxu1 %vm11639_vm1, %v17147_v0 }
  0x3a   :  { %8840 = vmatmul.mubr.msk.f32.gmra.mxu0 %vm90_vm0, %v7160_v51  ;;  %8885 = vmatmul.mubr.msk.f32.gmra.mxu1 %vm90_vm0, %v7160_v51  ;;  %v7276_v51 = vld [vmem:[%s17125_s1 + $0x178] sm:$0xff] }
  0x3b   :  { %8907 = vmatprep.subr.mxu0 %v17147_v0  ;;  %8952 = vmatprep.subr.mxu1 %v17147_v0 }
  0x3c   :  { %8908 = vmatpush3.msra.mxu0 %v12018_v52  ;;  %8953 = vmatpush3.msra.mxu1 %v12023_v53 }
  0x3d   :  { %8909 = vmatprep.subr.mxu0 %v17147_v0  ;;  %8954 = vmatprep.subr.mxu1 %v17147_v0 }
  0x3e   :  { %8910 = vmatpush3.msra.mxu0 %v12032_v54  ;;  %8911 = vmatprep.mubr.msk.f32.mxu0 %vm11639_vm1, %v17147_v0 }
  0x3f   :  { %8955 = vmatpush3.msra.mxu1 %v12039_v55  ;;  %8956 = vmatprep.mubr.msk.f32.mxu1 %vm11639_vm1, %v17147_v0 }
  0x40   :  { %8912 = vmatmul.mubr.msk.f32.vlgmr.msra.gmra.mxu0 %vm90_vm0, %v38_v56  ;;  %8957 = vmatmul.mubr.msk.f32.vlgmr.msra.gmra.mxu1 %vm90_vm0, %v38_v56  ;;  %v7295_v56 = vld [vmem:[%s17126_s2 + $0x178] sm:$0xff] }
  0x41   :  { %8977 = vmatprep.subr.mxu0 %v17147_v0  ;;  %9022 = vmatprep.subr.mxu1 %v17147_v0 }
  0x42   :  { %8978 = vmatpush3.msra.mxu0 %v12055_v57  ;;  %9023 = vmatpush3.msra.mxu1 %v12060_v58 }
  0x43   :  { %8914 = vmatprep.mubr.msk.f32.mxu0 %vm11639_vm1, %v17147_v0  ;;  %8959 = vmatprep.mubr.msk.f32.mxu1 %vm11639_vm1, %v17147_v0 }
  0x44   :  { %8979 = vmatprep.subr.mxu0 %v17147_v0  ;;  %9024 = vmatprep.subr.mxu1 %v17147_v0 }
  0x45   :  { %8915 = vmatmul.mubr.msk.f32.gmra.mxu0 %vm90_vm0, %v12071_v59  ;;  %8960 = vmatmul.mubr.msk.f32.gmra.mxu1 %vm90_vm0, %v12071_v59 }
  0x46   :  { %8980 = vmatpush3.msra.mxu0 %v12080_v60  ;;  %9025 = vmatpush3.msra.mxu1 %v12085_v61 }
  0x47   :  { %8981 = vmatprep.subr.mxu0 %v17147_v0  ;;  %9026 = vmatprep.subr.mxu1 %v17147_v0 }
  0x48   :  { %8982 = vmatpush3.msra.mxu0 %v12096_v62  ;;  %9027 = vmatpush3.msra.mxu1 %v12101_v63 }
  0x49   :  { %8917 = vmatprep.mubr.msk.f32.mxu0 %vm11639_vm1, %v17147_v0  ;;  %8962 = vmatprep.mubr.msk.f32.mxu1 %vm11639_vm1, %v17147_v0 }
  0x4a   :  { %8983 = vmatprep.subr.mxu0 %v17147_v0  ;;  %9028 = vmatprep.subr.mxu1 %v17147_v0 }
  0x4b   :  { %8918 = vmatmul.mubr.msk.f32.gmra.mxu0 %vm90_vm0, %v12112_v3  ;;  %8963 = vmatmul.mubr.msk.f32.gmra.mxu1 %vm90_vm0, %v12112_v3 }
  0x4c   :  { %8984 = vmatpush3.msra.mxu0 %v12121_v7  ;;  %9029 = vmatpush3.msra.mxu1 %v12126_v8 }
  0x4d   :  { %8985 = vmatprep.subr.mxu0 %v17147_v0  ;;  %9030 = vmatprep.subr.mxu1 %v17147_v0 }
  0x4e   :  { %8920 = vmatprep.mubr.msk.f32.mxu0 %vm11639_vm1, %v17147_v0  ;;  %8965 = vmatprep.mubr.msk.f32.mxu1 %vm11639_vm1, %v17147_v0 }
  0x4f   :  { %8986 = vmatpush3.msra.mxu0 %v12139_v9  ;;  %9031 = vmatpush3.msra.mxu1 %v12144_v10 }
  0x50   :  { %8921 = vmatmul.mubr.msk.f32.gmra.mxu0 %vm90_vm0, %v12151_v11  ;;  %8966 = vmatmul.mubr.msk.f32.gmra.mxu1 %vm90_vm0, %v12151_v11 }
  0x51   :  { %8987 = vmatprep.subr.mxu0 %v17147_v0  ;;  %9032 = vmatprep.subr.mxu1 %v17147_v0 }
  0x52   :  { %8988 = vmatpush3.msra.mxu0 %v12162_v12  ;;  %9033 = vmatpush3.msra.mxu1 %v12167_v13 }
  0x53   :  { %8989 = vmatprep.subr.mxu0 %v17147_v0  ;;  %9034 = vmatprep.subr.mxu1 %v17147_v0 }
  0x54   :  { %8923 = vmatprep.mubr.msk.f32.mxu0 %vm11639_vm1, %v17147_v0  ;;  %8968 = vmatprep.mubr.msk.f32.mxu1 %vm11639_vm1, %v17147_v0 }
  0x55   :  { %8990 = vmatpush3.msra.mxu0 %v7225_v14  ;;  %9035 = vmatpush3.msra.mxu1 %v7244_v15  ;;  %v12294_v14 = vld [vmem:[%s17127_s0 + $0x88] sm:$0xff]  ;;  %v7275_v15 = vld [vmem:[%s17125_s1 + $0x170] sm:$0xff] }
  0x56   :  { %8924 = vmatmul.mubr.msk.f32.gmra.mxu0 %vm90_vm0, %v12188_v16  ;;  %8969 = vmatmul.mubr.msk.f32.gmra.mxu1 %vm90_vm0, %v12188_v16 }
  0x57   :  { %8991 = vmatprep.subr.mxu0 %v17147_v0  ;;  %9036 = vmatprep.subr.mxu1 %v17147_v0 }
  0x58   :  { %8992 = vmatpush3.msra.mxu0 %v12197_v17  ;;  %9037 = vmatpush3.msra.mxu1 %v12202_v18 }
  0x59   :  { %8926 = vmatprep.mubr.msk.f32.mxu0 %vm11639_vm1, %v17147_v0  ;;  %8971 = vmatprep.mubr.msk.f32.mxu1 %vm11639_vm1, %v17147_v0 }
  0x5a   :  { %8993 = vmatprep.subr.mxu0 %v17147_v0  ;;  %9038 = vmatprep.subr.mxu1 %v17147_v0 }
  0x5b   :  { %8927 = vmatmul.mubr.msk.f32.gmra.mxu0 %vm90_vm0, %v12215_v19  ;;  %8972 = vmatmul.mubr.msk.f32.gmra.mxu1 %vm90_vm0, %v12215_v19 }
  0x5c   :  { %8994 = vmatpush3.msra.mxu0 %v7223_v20  ;;  %9039 = vmatpush3.msra.mxu1 %v7242_v21  ;;  %v7294_v20 = vld [vmem:[%s17126_s2 + $0x170] sm:$0xff]  ;;  %v7274_v21 = vld [vmem:[%s17125_s1 + $0x168] sm:$0xff] }
  0x5d   :  { %8995 = vmatprep.subr.mxu0 %v17147_v0  ;;  %9040 = vmatprep.subr.mxu1 %v17147_v0 }
  0x5e   :  { %8996 = vmatpush3.msra.mxu0 %v7222_v22  ;;  %9041 = vmatpush3.msra.mxu1 %v7241_v23  ;;  %v7293_v22 = vld [vmem:[%s17126_s2 + $0x168] sm:$0xff]  ;;  %v12323_v23 = vld [vmem:[%s17127_s0 + $0x90] sm:$0xff] }
  0x5f   :  { %8929 = vmatprep.mubr.msk.f32.mxu0 %vm11639_vm1, %v17147_v0  ;;  %8974 = vmatprep.mubr.msk.f32.mxu1 %vm11639_vm1, %v17147_v0 }
  0x60   :  { %8930 = vmatmul.mubr.msk.f32.gmra.mxu0 %vm90_vm0, %v12244_v25  ;;  %8975 = vmatmul.mubr.msk.f32.gmra.mxu1 %vm90_vm0, %v12244_v25 }
  0x61   :  { %8997 = vmatprep.subr.mxu0 %v17147_v0  ;;  %9042 = vmatprep.subr.mxu1 %v17147_v0 }
  0x62   :  { %8998 = vmatpush3.msra.mxu0 %v7221_v28  ;;  %9043 = vmatpush3.msra.mxu1 %v7240_v33  ;;  %v7273_v28 = vld [vmem:[%s17125_s1 + $0x160] sm:$0xff] }
  0x63   :  { %8999 = vmatprep.subr.mxu0 %v17147_v0  ;;  %9044 = vmatprep.subr.mxu1 %v17147_v0  ;;  %v7292_v33 = vld [vmem:[%s17126_s2 + $0x160] sm:$0xff] }
  0x64   :  { %9000 = vmatpush3.msra.mxu0 %v7220_v38  ;;  %9001 = vmatprep.mubr.msk.f32.mxu0 %vm11639_vm1, %v17147_v0  ;;  %v7272_v38 = vld [vmem:[%s17125_s1 + $0x158] sm:$0xff] }
  0x65   :  { %9045 = vmatpush3.msra.mxu1 %v7239_v43  ;;  %9046 = vmatprep.mubr.msk.f32.mxu1 %vm11639_vm1, %v17147_v0  ;;  %v7291_v43 = vld [vmem:[%s17126_s2 + $0x158] sm:$0xff] }
  0x66   :  { %9002 = vmatmul.mubr.msk.f32.vlgmr.msra.gmra.mxu0 %vm90_vm0, %v12273_v46  ;;  %9047 = vmatmul.mubr.msk.f32.vlgmr.msra.gmra.mxu1 %vm90_vm0, %v12273_v46 }
  0x67   :  { %9067 = vmatprep.subr.mxu0 %v17147_v0  ;;  %9112 = vmatprep.subr.mxu1 %v17147_v0 }
  0x68   :  { %9068 = vmatpush3.msra.mxu0 %v7276_v51  ;;  %9113 = vmatpush3.msra.mxu1 %v7295_v56  ;;  %v12352_v51 = vld [vmem:[%s17127_s0 + $0x98] sm:$0xff]  ;;  %v7271_v56 = vld [vmem:[%s17125_s1 + $0x150] sm:$0xff] }
  0x69   :  { %9004 = vmatprep.mubr.msk.f32.mxu0 %vm11639_vm1, %v17147_v0  ;;  %9049 = vmatprep.mubr.msk.f32.mxu1 %vm11639_vm1, %v17147_v0 }
  0x6a   :  { %9069 = vmatprep.subr.mxu0 %v17147_v0  ;;  %9114 = vmatprep.subr.mxu1 %v17147_v0 }
  0x6b   :  { %9005 = vmatmul.mubr.msk.f32.gmra.mxu0 %vm90_vm0, %v12294_v14  ;;  %9050 = vmatmul.mubr.msk.f32.gmra.mxu1 %vm90_vm0, %v12294_v14 }
  0x6c   :  { %9070 = vmatpush3.msra.mxu0 %v7275_v15  ;;  %9115 = vmatpush3.msra.mxu1 %v7294_v20  ;;  %v7290_v15 = vld [vmem:[%s17126_s2 + $0x150] sm:$0xff]  ;;  %v7270_v20 = vld [vmem:[%s17125_s1 + $0x148] sm:$0xff] }
  0x6d   :  { %9071 = vmatprep.subr.mxu0 %v17147_v0  ;;  %9116 = vmatprep.subr.mxu1 %v17147_v0 }
  0x6e   :  { %9072 = vmatpush3.msra.mxu0 %v7274_v21  ;;  %9117 = vmatpush3.msra.mxu1 %v7293_v22  ;;  %v7289_v21 = vld [vmem:[%s17126_s2 + $0x148] sm:$0xff]  ;;  %v12381_v22 = vld [vmem:[%s17127_s0 + $0xa0] sm:$0xff] }
  0x6f   :  { %9007 = vmatprep.mubr.msk.f32.mxu0 %vm11639_vm1, %v17147_v0  ;;  %9052 = vmatprep.mubr.msk.f32.mxu1 %vm11639_vm1, %v17147_v0 }
  0x70   :  { %9073 = vmatprep.subr.mxu0 %v17147_v0  ;;  %9118 = vmatprep.subr.mxu1 %v17147_v0 }
  0x71   :  { %9008 = vmatmul.mubr.msk.f32.gmra.mxu0 %vm90_vm0, %v12323_v23  ;;  %9053 = vmatmul.mubr.msk.f32.gmra.mxu1 %vm90_vm0, %v12323_v23 }
  0x72   :  { %9074 = vmatpush3.msra.mxu0 %v7273_v28  ;;  %9119 = vmatpush3.msra.mxu1 %v7292_v33  ;;  %v7269_v28 = vld [vmem:[%s17125_s1 + $0x140] sm:$0xff] }
  0x73   :  { %9075 = vmatprep.subr.mxu0 %v17147_v0  ;;  %9120 = vmatprep.subr.mxu1 %v17147_v0  ;;  %v7288_v33 = vld [vmem:[%s17126_s2 + $0x140] sm:$0xff] }
  0x74   :  { %9010 = vmatprep.mubr.msk.f32.mxu0 %vm11639_vm1, %v17147_v0  ;;  %9055 = vmatprep.mubr.msk.f32.mxu1 %vm11639_vm1, %v17147_v0 }
  0x75   :  { %9076 = vmatpush3.msra.mxu0 %v7272_v38  ;;  %9121 = vmatpush3.msra.mxu1 %v7291_v43  ;;  %v12402_v38 = vld [vmem:[%s17127_s0 + $0xa8] sm:$0xff]  ;;  %v7268_v43 = vld [vmem:[%s17125_s1 + $0x138] sm:$0xff] }
  0x76   :  { %9011 = vmatmul.mubr.msk.f32.gmra.mxu0 %vm90_vm0, %v12352_v51  ;;  %9056 = vmatmul.mubr.msk.f32.gmra.mxu1 %vm90_vm0, %v12352_v51 }
  0x77   :  { %9077 = vmatprep.subr.mxu0 %v17147_v0  ;;  %9122 = vmatprep.subr.mxu1 %v17147_v0 }
  0x78   :  { %9078 = vmatpush3.msra.mxu0 %v7271_v56  ;;  %9123 = vmatpush3.msra.mxu1 %v7290_v15  ;;  %v7287_v56 = vld [vmem:[%s17126_s2 + $0x138] sm:$0xff]  ;;  %v7267_v15 = vld [vmem:[%s17125_s1 + $0x130] sm:$0xff] }
  0x79   :  { %9079 = vmatprep.subr.mxu0 %v17147_v0  ;;  %9124 = vmatprep.subr.mxu1 %v17147_v0 }
  0x7a   :  { %9013 = vmatprep.mubr.msk.f32.mxu0 %vm11639_vm1, %v17147_v0  ;;  %9058 = vmatprep.mubr.msk.f32.mxu1 %vm11639_vm1, %v17147_v0 }
  0x7b   :  { %9080 = vmatpush3.msra.mxu0 %v7270_v20  ;;  %9125 = vmatpush3.msra.mxu1 %v7289_v21  ;;  %v7286_v20 = vld [vmem:[%s17126_s2 + $0x130] sm:$0xff] }
  0x7c   :  { %9014 = vmatmul.mubr.msk.f32.gmra.mxu0 %vm90_vm0, %v12381_v22  ;;  %9059 = vmatmul.mubr.msk.f32.gmra.mxu1 %vm90_vm0, %v12381_v22  ;;  %v12431_v21 = vld [vmem:[%s17127_s0 + $0xb0] sm:$0xff] }
  0x7d   :  { %9081 = vmatprep.subr.mxu0 %v17147_v0  ;;  %9126 = vmatprep.subr.mxu1 %v17147_v0 }
  0x7e   :  { %9082 = vmatpush3.msra.mxu0 %v7269_v28  ;;  %9127 = vmatpush3.msra.mxu1 %v7288_v33  ;;  %v7266_v28 = vld [vmem:[%s17125_s1 + $0x128] sm:$0xff] }
  0x7f   :  { %9016 = vmatprep.mubr.msk.f32.mxu0 %vm11639_vm1, %v17147_v0  ;;  %9061 = vmatprep.mubr.msk.f32.mxu1 %vm11639_vm1, %v17147_v0  ;;  %v7285_v33 = vld [vmem:[%s17126_s2 + $0x128] sm:$0xff] }
  0x80   :  { %9083 = vmatprep.subr.mxu0 %v17147_v0  ;;  %9128 = vmatprep.subr.mxu1 %v17147_v0 }
  0x81   :  { %9017 = vmatmul.mubr.msk.f32.gmra.mxu0 %vm90_vm0, %v12402_v38  ;;  %9062 = vmatmul.mubr.msk.f32.gmra.mxu1 %vm90_vm0, %v12402_v38 }
  0x82   :  { %9084 = vmatpush3.msra.mxu0 %v7268_v43  ;;  %9129 = vmatpush3.msra.mxu1 %v7287_v56  ;;  %v7265_v43 = vld [vmem:[%s17125_s1 + $0x120] sm:$0xff] }
  0x83   :  { %9085 = vmatprep.subr.mxu0 %v17147_v0  ;;  %9130 = vmatprep.subr.mxu1 %v17147_v0  ;;  %v7284_v56 = vld [vmem:[%s17126_s2 + $0x120] sm:$0xff] }
  0x84   :  { %9086 = vmatpush3.msra.mxu0 %v7267_v15  ;;  %9131 = vmatpush3.msra.mxu1 %v7286_v20  ;;  %v12460_v15 = vld [vmem:[%s17127_s0 + $0xc0] sm:$0xff]  ;;  %v7314_v20 = vld [vmem:[%s17125_s1 + $0x1d8] sm:$0xff] }
  0x85   :  { %9019 = vmatprep.mubr.msk.f32.mxu0 %vm11639_vm1, %v17147_v0  ;;  %9064 = vmatprep.mubr.msk.f32.mxu1 %vm11639_vm1, %v17147_v0  ;;  %17162 = vst [vmem:[#allocation2_spill] sm:$0xff] %v12460_v15 }
  0x86   :  { %9020 = vmatmul.mubr.msk.f32.gmra.mxu0 %vm90_vm0, %v12431_v21  ;;  %9065 = vmatmul.mubr.msk.f32.gmra.mxu1 %vm90_vm0, %v12431_v21 }
  0x87   :  { %9087 = vmatprep.subr.mxu0 %v17147_v0  ;;  %9132 = vmatprep.subr.mxu1 %v17147_v0 }
  0x88   :  { %9088 = vmatpush3.msra.mxu0 %v7266_v28  ;;  %9133 = vmatpush3.msra.mxu1 %v7285_v33  ;;  %v7333_v28 = vld [vmem:[%s17126_s2 + $0x1d8] sm:$0xff]  ;;  %v12481_v33 = vld [vmem:[%s17127_s0 + $0xc8] sm:$0xff] }
  0x89   :  { %9089 = vmatprep.subr.mxu0 %v17147_v0  ;;  %9134 = vmatprep.subr.mxu1 %v17147_v0  ;;  %17163 = vst [vmem:[#allocation3_spill] sm:$0xff] %v12481_v33 }
  0x8a   :  { %9090 = vmatpush3.msra.mxu0 %v7265_v43  ;;  %9091 = vmatprep.mubr.msk.f32.mxu0 %vm11639_vm1, %v17147_v0  ;;  %v7313_v43 = vld [vmem:[%s17125_s1 + $0x1d0] sm:$0xff] }
  0x8b   :  { %9135 = vmatpush3.msra.mxu1 %v7284_v56  ;;  %9136 = vmatprep.mubr.msk.f32.mxu1 %vm11639_vm1, %v17147_v0  ;;  %v7332_v56 = vld [vmem:[%s17126_s2 + $0x1d0] sm:$0xff] }
  0x8c   :  { %9092 = vmatmul.mubr.msk.f32.vlgmr.msra.gmra.mxu0 %vm90_vm0, %v12460_v15  ;;  %9137 = vmatmul.mubr.msk.f32.vlgmr.msra.gmra.mxu1 %vm90_vm0, %v12460_v15  ;;  %v12539_v15 = vld [vmem:[%s17127_s0 + $0xd8] sm:$0xff] }
  0x8d   :  { %9157 = vmatprep.subr.mxu0 %v17147_v0  ;;  %9202 = vmatprep.subr.mxu1 %v17147_v0  ;;  %17165 = vst [vmem:[#allocation5_spill] sm:$0xff] %v12539_v15 }
  0x8e   :  { %9158 = vmatpush3.msra.mxu0 %v7314_v20  ;;  %9203 = vmatpush3.msra.mxu1 %v7333_v28  ;;  %v7312_v20 = vld [vmem:[%s17125_s1 + $0x1c8] sm:$0xff] }
  0x8f   :  { %9094 = vmatprep.mubr.msk.f32.mxu0 %vm11639_vm1, %v17147_v0  ;;  %9139 = vmatprep.mubr.msk.f32.mxu1 %vm11639_vm1, %v17147_v0  ;;  %v7331_v28 = vld [vmem:[%s17126_s2 + $0x1c8] sm:$0xff] }
  0x90   :  { %9159 = vmatprep.subr.mxu0 %v17147_v0  ;;  %9204 = vmatprep.subr.mxu1 %v17147_v0 }
  0x91   :  { %9095 = vmatmul.mubr.msk.f32.gmra.mxu0 %vm90_vm0, %v12481_v33  ;;  %9140 = vmatmul.mubr.msk.f32.gmra.mxu1 %vm90_vm0, %v12481_v33  ;;  %v12510_v33 = vld [vmem:[%s17127_s0 + $0xd0] sm:$0xff] }
  0x92   :  { %9160 = vmatpush3.msra.mxu0 %v7313_v43  ;;  %9205 = vmatpush3.msra.mxu1 %v7332_v56  ;;  %17164 = vst [vmem:[#allocation4_spill] sm:$0xff] %v12510_v33  ;;  %v7311_v43 = vld [vmem:[%s17125_s1 + $0x1c0] sm:$0xff] }
  0x93   :  { %9161 = vmatprep.subr.mxu0 %v17147_v0  ;;  %9206 = vmatprep.subr.mxu1 %v17147_v0  ;;  %v7330_v56 = vld [vmem:[%s17126_s2 + $0x1c0] sm:$0xff] }
  0x94   :  { %9162 = vmatpush3.msra.mxu0 %v7312_v20  ;;  %9207 = vmatpush3.msra.mxu1 %v7331_v28  ;;  %v7310_v20 = vld [vmem:[%s17125_s1 + $0x1b8] sm:$0xff] }
  0x95   :  { %9097 = vmatprep.mubr.msk.f32.mxu0 %vm11639_vm1, %v17147_v0  ;;  %9142 = vmatprep.mubr.msk.f32.mxu1 %vm11639_vm1, %v17147_v0  ;;  %v7329_v28 = vld [vmem:[%s17126_s2 + $0x1b8] sm:$0xff] }
  0x96   :  { %9163 = vmatprep.subr.mxu0 %v17147_v0  ;;  %9208 = vmatprep.subr.mxu1 %v17147_v0 }
  0x97   :  { %9098 = vmatmul.mubr.msk.f32.gmra.mxu0 %vm90_vm0, %v12510_v33  ;;  %9143 = vmatmul.mubr.msk.f32.gmra.mxu1 %vm90_vm0, %v12510_v33  ;;  %v12618_v33 = vld [vmem:[%s17127_s0 + $0xf0] sm:$0xff] }
  0x98   :  { %9164 = vmatpush3.msra.mxu0 %v7311_v43  ;;  %9209 = vmatpush3.msra.mxu1 %v7330_v56  ;;  %v7309_v43 = vld [vmem:[%s17125_s1 + $0x1b0] sm:$0xff] }
  0x99   :  { %9165 = vmatprep.subr.mxu0 %v17147_v0  ;;  %9210 = vmatprep.subr.mxu1 %v17147_v0  ;;  %v7328_v56 = vld [vmem:[%s17126_s2 + $0x1b0] sm:$0xff] }
  0x9a   :  { %9100 = vmatprep.mubr.msk.f32.mxu0 %vm11639_vm1, %v17147_v0  ;;  %9145 = vmatprep.mubr.msk.f32.mxu1 %vm11639_vm1, %v17147_v0 }
  0x9b   :  { %9166 = vmatpush3.msra.mxu0 %v7310_v20  ;;  %9211 = vmatpush3.msra.mxu1 %v7329_v28  ;;  %v7308_v20 = vld [vmem:[%s17125_s1 + $0x1a8] sm:$0xff] }
  0x9c   :  { %9101 = vmatmul.mubr.msk.f32.gmra.mxu0 %vm90_vm0, %v12539_v15  ;;  %9146 = vmatmul.mubr.msk.f32.gmra.mxu1 %vm90_vm0, %v12539_v15  ;;  %v7327_v28 = vld [vmem:[%s17126_s2 + $0x1a8] sm:$0xff]  ;;  %v12568_v15 = vld [vmem:[%s17127_s0 + $0xe0] sm:$0xff] }
  0x9d   :  { %9167 = vmatprep.subr.mxu0 %v17147_v0  ;;  %9212 = vmatprep.subr.mxu1 %v17147_v0  ;;  %17166 = vst [vmem:[#allocation6_spill] sm:$0xff] %v12568_v15 }
  0x9e   :  { %9168 = vmatpush3.msra.mxu0 %v7309_v43  ;;  %9213 = vmatpush3.msra.mxu1 %v7328_v56  ;;  %v7307_v43 = vld [vmem:[%s17125_s1 + $0x1a0] sm:$0xff] }
  0x9f   :  { %9169 = vmatprep.subr.mxu0 %v17147_v0  ;;  %9214 = vmatprep.subr.mxu1 %v17147_v0  ;;  %v7326_v56 = vld [vmem:[%s17126_s2 + $0x1a0] sm:$0xff] }
  0xa0   :  { %9103 = vmatprep.mubr.msk.f32.mxu0 %vm11639_vm1, %v17147_v0  ;;  %9148 = vmatprep.mubr.msk.f32.mxu1 %vm11639_vm1, %v17147_v0 }
  0xa1   :  { %9170 = vmatpush3.msra.mxu0 %v7308_v20  ;;  %9215 = vmatpush3.msra.mxu1 %v7327_v28  ;;  %v12589_v20 = vld [vmem:[%s17127_s0 + $0xe8] sm:$0xff]  ;;  %v7306_v28 = vld [vmem:[%s17125_s1 + $0x198] sm:$0xff] }
  0xa2   :  { %9104 = vmatmul.mubr.msk.f32.gmra.mxu0 %vm90_vm0, %v12568_v15  ;;  %9149 = vmatmul.mubr.msk.f32.gmra.mxu1 %vm90_vm0, %v12568_v15  ;;  %v7324_v15 = vld [vmem:[%s17126_s2 + $0x190] sm:$0xff] }
  0xa3   :  { %9171 = vmatprep.subr.mxu0 %v17147_v0  ;;  %9216 = vmatprep.subr.mxu1 %v17147_v0 }
  0xa4   :  { %9172 = vmatpush3.msra.mxu0 %v7307_v43  ;;  %9217 = vmatpush3.msra.mxu1 %v7326_v56  ;;  %v7325_v43 = vld [vmem:[%s17126_s2 + $0x198] sm:$0xff]  ;;  %v7305_v56 = vld [vmem:[%s17125_s1 + $0x190] sm:$0xff] }
  0xa5   :  { %9106 = vmatprep.mubr.msk.f32.mxu0 %vm11639_vm1, %v17147_v0  ;;  %9151 = vmatprep.mubr.msk.f32.mxu1 %vm11639_vm1, %v17147_v0 }
  0xa6   :  { %9173 = vmatprep.subr.mxu0 %v17147_v0  ;;  %9218 = vmatprep.subr.mxu1 %v17147_v0 }
  0xa7   :  { %9107 = vmatmul.mubr.msk.f32.gmra.mxu0 %vm90_vm0, %v12589_v20  ;;  %9152 = vmatmul.mubr.msk.f32.gmra.mxu1 %vm90_vm0, %v12589_v20 }
  0xa8   :  { %9174 = vmatpush3.msra.mxu0 %v7306_v28  ;;  %9219 = vmatpush3.msra.mxu1 %v7325_v43  ;;  %v7304_v28 = vld [vmem:[%s17125_s1 + $0x188] sm:$0xff] }
  0xa9   :  { %9175 = vmatprep.subr.mxu0 %v17147_v0  ;;  %9220 = vmatprep.subr.mxu1 %v17147_v0  ;;  %v7323_v43 = vld [vmem:[%s17126_s2 + $0x188] sm:$0xff] }
  0xaa   :  { %9176 = vmatpush3.msra.mxu0 %v7305_v56  ;;  %9221 = vmatpush3.msra.mxu1 %v7324_v15  ;;  %v7303_v15 = vld [vmem:[%s17125_s1 + $0x180] sm:$0xff] }
  0xab   :  { %9109 = vmatprep.mubr.msk.f32.mxu0 %vm11639_vm1, %v17147_v0  ;;  %9154 = vmatprep.mubr.msk.f32.mxu1 %vm11639_vm1, %v17147_v0  ;;  %v7322_v56 = vld [vmem:[%s17126_s2 + $0x180] sm:$0xff] }
  0xac   :  { %9110 = vmatmul.mubr.msk.f32.gmra.mxu0 %vm90_vm0, %v12618_v33  ;;  %9155 = vmatmul.mubr.msk.f32.gmra.mxu1 %vm90_vm0, %v12618_v33 }
  0xad   :  { %9177 = vmatprep.subr.mxu0 %v17147_v0  ;;  %9222 = vmatprep.subr.mxu1 %v17147_v0 }
  0xae   :  { %9178 = vmatpush3.msra.mxu0 %v7304_v28  ;;  %9223 = vmatpush3.msra.mxu1 %v7323_v43  ;;  %v11272_v28 = vld [vmem:[%s17125_s1 + $0x80] sm:$0xff] }
  0xaf   :  { %9179 = vmatprep.subr.mxu0 %v17147_v0  ;;  %9224 = vmatprep.subr.mxu1 %v17147_v0  ;;  %v11273_v43 = vld [vmem:[%s17126_s2 + $0x80] sm:$0xff] }
  0xb0   :  { %9180 = vmatpush3.msra.mxu0 %v7303_v15  ;;  %9181 = vmatprep.mubr.msk.f32.mxu0 %vm11639_vm1, %v17147_v0  ;;  %v11275_v15 = vld [vmem:[%s17126_s2 + $0x78] sm:$0xff] }
  0xb1   :  { %9225 = vmatpush3.msra.mxu1 %v7322_v56  ;;  %9226 = vmatprep.mubr.msk.f32.mxu1 %vm11639_vm1, %v17147_v0  ;;  %v12759_v56 = vld [vmem:[%s17127_s0 + $0x38] sm:$0xff] }
  0xb2   :  { %9182 = vmatmul.mubr.msk.f32.vlgmr.msra.gmra.mxu0 %vm90_vm0, %v12071_v59  ;;  %9227 = vmatmul.mubr.msk.f32.vlgmr.msra.gmra.mxu1 %vm90_vm0, %v12071_v59  ;;  %v11268_v59 = vld [vmem:[%s17125_s1 + $0x90] sm:$0xff] }
  0xb3   :  { %9247 = vmatprep.subr.mxu0 %v17147_v0  ;;  %9292 = vmatprep.subr.mxu1 %v17147_v0 }
  0xb4   :  { %9248 = vmatpush3.msra.mxu0 %v11705_v1  ;;  %9293 = vmatpush3.msra.mxu1 %v11710_v2  ;;  %v11263_v1 = vld [vmem:[%s17125_s1 + $0xb0] sm:$0xff]  ;;  %v11264_v2 = vld [vmem:[%s17125_s1 + $0xa0] sm:$0xff] }
  0xb5   :  { %9184 = vmatprep.mubr.msk.f32.mxu0 %vm11639_vm1, %v17147_v0  ;;  %9229 = vmatprep.mubr.msk.f32.mxu1 %vm11639_vm1, %v17147_v0 }
  0xb6   :  { %9249 = vmatprep.subr.mxu0 %v17147_v0  ;;  %9294 = vmatprep.subr.mxu1 %v17147_v0 }
  0xb7   :  { %9185 = vmatmul.mubr.msk.f32.gmra.mxu0 %vm90_vm0, %v12112_v3  ;;  %9230 = vmatmul.mubr.msk.f32.gmra.mxu1 %vm90_vm0, %v12112_v3  ;;  %v11269_v3 = vld [vmem:[%s17126_s2 + $0x90] sm:$0xff] }
  0xb8   :  { %9250 = vmatpush3.msra.mxu0 %v11263_v1  ;;  %9295 = vmatpush3.msra.mxu1 %v11720_v4  ;;  %v11265_v4 = vld [vmem:[%s17126_s2 + $0xa0] sm:$0xff]  ;;  %v11277_v1 = vld [vmem:[%s17126_s2 + $0x70] sm:$0xff] }
  0xb9   :  { %9251 = vmatprep.subr.mxu0 %v17147_v0  ;;  %9296 = vmatprep.subr.mxu1 %v17147_v0 }
  0xba   :  { %9252 = vmatpush3.msra.mxu0 %v11727_v5  ;;  %9297 = vmatpush3.msra.mxu1 %v11732_v6  ;;  %v11266_v5 = vld [vmem:[%s17125_s1 + $0x98] sm:$0xff] }
  0xbb   :  { %9187 = vmatprep.mubr.msk.f32.mxu0 %vm11639_vm1, %v17147_v0  ;;  %9232 = vmatprep.mubr.msk.f32.mxu1 %vm11639_vm1, %v17147_v0  ;;  %v11267_v6 = vld [vmem:[%s17126_s2 + $0x98] sm:$0xff] }
  0xbc   :  { %9253 = vmatprep.subr.mxu0 %v17147_v0  ;;  %9298 = vmatprep.subr.mxu1 %v17147_v0 }
  0xbd   :  { %9188 = vmatmul.mubr.msk.f32.gmra.mxu0 %vm90_vm0, %v12151_v11  ;;  %9233 = vmatmul.mubr.msk.f32.gmra.mxu1 %vm90_vm0, %v12151_v11  ;;  %v11270_v11 = vld [vmem:[%s17125_s1 + $0x88] sm:$0xff] }
  0xbe   :  { %9254 = vmatpush3.msra.mxu0 %v11264_v2  ;;  %9299 = vmatpush3.msra.mxu1 %v11265_v4  ;;  %v11278_v2 = vld [vmem:[%s17125_s1 + $0x68] sm:$0xff] }
  0xbf   :  { %9255 = vmatprep.subr.mxu0 %v17147_v0  ;;  %9300 = vmatprep.subr.mxu1 %v17147_v0  ;;  %v11279_v4 = vld [vmem:[%s17126_s2 + $0x68] sm:$0xff] }
  0xc0   :  { %9190 = vmatprep.mubr.msk.f32.mxu0 %vm11639_vm1, %v17147_v0  ;;  %9235 = vmatprep.mubr.msk.f32.mxu1 %vm11639_vm1, %v17147_v0 }
  0xc1   :  { %9256 = vmatpush3.msra.mxu0 %v11266_v5  ;;  %9301 = vmatpush3.msra.mxu1 %v11267_v6  ;;  %v11280_v5 = vld [vmem:[%s17125_s1 + $0x60] sm:$0xff] }
  0xc2   :  { %9191 = vmatmul.mubr.msk.f32.gmra.mxu0 %vm90_vm0, %v12188_v16  ;;  %9236 = vmatmul.mubr.msk.f32.gmra.mxu1 %vm90_vm0, %v12188_v16  ;;  %v11271_v16 = vld [vmem:[%s17126_s2 + $0x88] sm:$0xff] }
  0xc3   :  { %9257 = vmatprep.subr.mxu0 %v17147_v0  ;;  %9302 = vmatprep.subr.mxu1 %v17147_v0 }
  0xc4   :  { %9258 = vmatpush3.msra.mxu0 %v11268_v59  ;;  %9303 = vmatpush3.msra.mxu1 %v11269_v3 }
  0xc5   :  { %9259 = vmatprep.subr.mxu0 %v17147_v0  ;;  %9304 = vmatprep.subr.mxu1 %v17147_v0 }
  0xc6   :  { %9193 = vmatprep.mubr.msk.f32.mxu0 %vm11639_vm1, %v17147_v0  ;;  %9238 = vmatprep.mubr.msk.f32.mxu1 %vm11639_vm1, %v17147_v0 }
  0xc7   :  { %9260 = vmatpush3.msra.mxu0 %v11270_v11  ;;  %9305 = vmatpush3.msra.mxu1 %v11271_v16 }
  0xc8   :  { %9194 = vmatmul.mubr.msk.f32.gmra.mxu0 %vm90_vm0, %v12215_v19  ;;  %9239 = vmatmul.mubr.msk.f32.gmra.mxu1 %vm90_vm0, %v12215_v19  ;;  %v11274_v19 = vld [vmem:[%s17125_s1 + $0x78] sm:$0xff] }
  0xc9   :  { %9261 = vmatprep.subr.mxu0 %v17147_v0  ;;  %9306 = vmatprep.subr.mxu1 %v17147_v0 }
  0xca   :  { %9262 = vmatpush3.msra.mxu0 %v11272_v28  ;;  %9307 = vmatpush3.msra.mxu1 %v11273_v43 }
  0xcb   :  { %9196 = vmatprep.mubr.msk.f32.mxu0 %vm11639_vm1, %v17147_v0  ;;  %9241 = vmatprep.mubr.msk.f32.mxu1 %vm11639_vm1, %v17147_v0 }
  0xcc   :  { %9263 = vmatprep.subr.mxu0 %v17147_v0  ;;  %9308 = vmatprep.subr.mxu1 %v17147_v0 }
  0xcd   :  { %9197 = vmatmul.mubr.msk.f32.gmra.mxu0 %vm90_vm0, %v12244_v25  ;;  %9242 = vmatmul.mubr.msk.f32.gmra.mxu1 %vm90_vm0, %v12244_v25  ;;  %v11276_v25 = vld [vmem:[%s17125_s1 + $0x70] sm:$0xff] }
  0xce   :  { %9264 = vmatpush3.msra.mxu0 %v11274_v19  ;;  %9309 = vmatpush3.msra.mxu1 %v11275_v15 }
  0xcf   :  { %9265 = vmatprep.subr.mxu0 %v17147_v0  ;;  %9310 = vmatprep.subr.mxu1 %v17147_v0 }
  0xd0   :  { %9266 = vmatpush3.msra.mxu0 %v11276_v25  ;;  %9311 = vmatpush3.msra.mxu1 %v11277_v1  ;;  %v11284_v25 = vld [vmem:[%s17127_s0 + $0x58] sm:$0xff] }
  0xd1   :  { %9199 = vmatprep.mubr.msk.f32.mxu0 %vm11639_vm1, %v17147_v0  ;;  %9244 = vmatprep.mubr.msk.f32.mxu1 %vm11639_vm1, %v17147_v0 }
  0xd2   :  { %9200 = vmatmul.mubr.msk.f32.gmra.mxu0 %vm90_vm0, %v12759_v56  ;;  %9245 = vmatmul.mubr.msk.f32.gmra.mxu1 %vm90_vm0, %v12759_v56 }
  0xd3   :  { %9267 = vmatprep.subr.mxu0 %v17147_v0  ;;  %9312 = vmatprep.subr.mxu1 %v17147_v0 }
  0xd4   :  { %9268 = vmatpush3.msra.mxu0 %v11278_v2  ;;  %9313 = vmatpush3.msra.mxu1 %v11279_v4  ;;  %v11285_v4 = vld [vmem:[%s17125_s1 + $0xe8] sm:$0xff] }
  0xd5   :  { %9269 = vmatprep.subr.mxu0 %v17147_v0  ;;  %9314 = vmatprep.subr.mxu1 %v17147_v0 }
  0xd6   :  { %9270 = vmatpush3.msra.mxu0 %v11280_v5  ;;  %9271 = vmatprep.mubr.msk.f32.mxu0 %vm11639_vm1, %v17147_v0  ;;  %v11286_v5 = vld [vmem:[%s17126_s2 + $0xe8] sm:$0xff] }
  0xd7   :  { %9315 = vmatpush3.msra.mxu1 %v11809_v24  ;;  %9316 = vmatprep.mubr.msk.f32.mxu1 %vm11639_vm1, %v17147_v0 }
  0xd8   :  { %9272 = vmatmul.mubr.msk.f32.vlgmr.msra.gmra.mxu0 %vm90_vm0, %v12273_v46  ;;  %9317 = vmatmul.mubr.msk.f32.vlgmr.msra.gmra.mxu1 %vm90_vm0, %v12273_v46 }
  0xd9   :  { %9337 = vmatprep.subr.mxu0 %v17147_v0  ;;  %9382 = vmatprep.subr.mxu1 %v17147_v0 }
  0xda   :  { %9338 = vmatpush3.msra.mxu0 %v11824_v26  ;;  %9383 = vmatpush3.msra.mxu1 %v11829_v27  ;;  %v12801_v6 = vpop.f32.mrf.mxu0  ;;  %v12803_v24 = vpop.f32.mrf.mxu1 }
  0xdb   :  { %9274 = vmatprep.mubr.msk.f32.mxu0 %vm11639_vm1, %v17147_v0  ;;  %9319 = vmatprep.mubr.msk.f32.mxu1 %vm11639_vm1, %v17147_v0 }
  0xdc   :  { %9339 = vmatprep.subr.mxu0 %v17147_v0  ;;  %9384 = vmatprep.subr.mxu1 %v17147_v0  ;;  %v8823_v46 = vpop.f32.mrf.mxu0  ;;  %v8868_v59 = vpop.f32.mrf.mxu1 }
  0xdd   :  { %9275 = vmatmul.mubr.msk.f32.gmra.mxu0 %vm90_vm0, %v12294_v14  ;;  %9320 = vmatmul.mubr.msk.f32.gmra.mxu1 %vm90_vm0, %v12294_v14 }
  0xde   :  { %9340 = vmatpush3.msra.mxu0 %v11847_v29  ;;  %9385 = vmatpush3.msra.mxu1 %v11852_v30 }
  0xdf   :  { %9341 = vmatprep.subr.mxu0 %v17147_v0  ;;  %9386 = vmatprep.subr.mxu1 %v17147_v0  ;;  %v12819_v26 = vpop.f32.mrf.mxu0  ;;  %v12821_v27 = vpop.f32.mrf.mxu1 }
  0xe0   :  { %9342 = vmatpush3.msra.mxu0 %v11861_v31  ;;  %9387 = vmatpush3.msra.mxu1 %v11866_v32 }
  0xe1   :  { %9277 = vmatprep.mubr.msk.f32.mxu0 %vm11639_vm1, %v17147_v0  ;;  %9322 = vmatprep.mubr.msk.f32.mxu1 %vm11639_vm1, %v17147_v0  ;;  %v8826_v29 = vpop.f32.mrf.mxu0  ;;  %v8871_v30 = vpop.f32.mrf.mxu1 }
  0xe2   :  { %9343 = vmatprep.subr.mxu0 %v17147_v0  ;;  %9388 = vmatprep.subr.mxu1 %v17147_v0  ;;  %v11289_v29 = vld [vmem:[%s17125_s1 + $0xd8] sm:$0xff] }
  0xe3   :  { %9278 = vmatmul.mubr.msk.f32.gmra.mxu0 %vm90_vm0, %v12323_v23  ;;  %9323 = vmatmul.mubr.msk.f32.gmra.mxu1 %vm90_vm0, %v12323_v23  ;;  %v11290_v30 = vld [vmem:[%s17126_s2 + $0xd8] sm:$0xff] }
  0xe4   :  { %9344 = vmatpush3.msra.mxu0 %v11884_v34  ;;  %9389 = vmatpush3.msra.mxu1 %v11889_v35 }
  0xe5   :  { %9345 = vmatprep.subr.mxu0 %v17147_v0  ;;  %9390 = vmatprep.subr.mxu1 %v17147_v0  ;;  %v12839_v31 = vpop.f32.mrf.mxu0  ;;  %v12841_v32 = vpop.f32.mrf.mxu1 }
  0xe6   :  { %9280 = vmatprep.mubr.msk.f32.mxu0 %vm11639_vm1, %v17147_v0  ;;  %9325 = vmatprep.mubr.msk.f32.mxu1 %vm11639_vm1, %v17147_v0 }
  0xe7   :  { %9346 = vmatpush3.msra.mxu0 %v11900_v36  ;;  %9391 = vmatpush3.msra.mxu1 %v11905_v37  ;;  %v8829_v34 = vpop.f32.mrf.mxu0  ;;  %v8874_v35 = vpop.f32.mrf.mxu1 }
  0xe8   :  { %9281 = vmatmul.mubr.msk.f32.gmra.mxu0 %vm90_vm0, %v12352_v51  ;;  %9326 = vmatmul.mubr.msk.f32.gmra.mxu1 %vm90_vm0, %v12352_v51  ;;  %v11291_v34 = vld [vmem:[%s17125_s1 + $0xd0] sm:$0xff] }
  0xe9   :  { %9347 = vmatprep.subr.mxu0 %v17147_v0  ;;  %9392 = vmatprep.subr.mxu1 %v17147_v0  ;;  %v11292_v35 = vld [vmem:[%s17126_s2 + $0xd0] sm:$0xff] }
  0xea   :  { %9348 = vmatpush3.msra.mxu0 %v11921_v39  ;;  %9393 = vmatpush3.msra.mxu1 %v11926_v40  ;;  %v12857_v14 = vpop.f32.mrf.mxu0  ;;  %v12859_v36 = vpop.f32.mrf.mxu1 }
  0xeb   :  { %9349 = vmatprep.subr.mxu0 %v17147_v0  ;;  %9394 = vmatprep.subr.mxu1 %v17147_v0 }
  0xec   :  { %9283 = vmatprep.mubr.msk.f32.mxu0 %vm11639_vm1, %v17147_v0  ;;  %9328 = vmatprep.mubr.msk.f32.mxu1 %vm11639_vm1, %v17147_v0  ;;  %v8832_v37 = vpop.f32.mrf.mxu0  ;;  %v8877_v23 = vpop.f32.mrf.mxu1 }
  0xed   :  { %9350 = vmatpush3.msra.mxu0 %v11937_v41  ;;  %9395 = vmatpush3.msra.mxu1 %v11942_v42 }
  0xee   :  { %9284 = vmatmul.mubr.msk.f32.gmra.mxu0 %vm90_vm0, %v12381_v22  ;;  %9329 = vmatmul.mubr.msk.f32.gmra.mxu1 %vm90_vm0, %v12381_v22 }
  0xef   :  { %9351 = vmatprep.subr.mxu0 %v17147_v0  ;;  %9396 = vmatprep.subr.mxu1 %v17147_v0 }
  0xf0   :  { %9352 = vmatpush3.msra.mxu0 %v11958_v44  ;;  %9397 = vmatpush3.msra.mxu1 %v11963_v45  ;;  %v12877_v39 = vpop.f32.mrf.mxu0  ;;  %v12879_v40 = vpop.f32.mrf.mxu1 }
  0xf1   :  { %9286 = vmatprep.mubr.msk.f32.mxu0 %vm11639_vm1, %v17147_v0  ;;  %9331 = vmatprep.mubr.msk.f32.mxu1 %vm11639_vm1, %v17147_v0 }
  0xf2   :  { %9353 = vmatprep.subr.mxu0 %v17147_v0  ;;  %9398 = vmatprep.subr.mxu1 %v17147_v0  ;;  %v8835_v41 = vpop.f32.mrf.mxu0  ;;  %v8880_v42 = vpop.f32.mrf.mxu1 }
  0xf3   :  { %9287 = vmatmul.mubr.msk.f32.gmra.mxu0 %vm90_vm0, %v12402_v38  ;;  %9332 = vmatmul.mubr.msk.f32.gmra.mxu1 %vm90_vm0, %v12402_v38  ;;  %v11295_v41 = vld [vmem:[%s17126_s2 + $0xc8] sm:$0xff] }
  0xf4   :  { %9354 = vmatpush3.msra.mxu0 %v11981_v47  ;;  %9399 = vmatpush3.msra.mxu1 %v11986_v48 }
  0xf5   :  { %9355 = vmatprep.subr.mxu0 %v17147_v0  ;;  %9400 = vmatprep.subr.mxu1 %v17147_v0  ;;  %v12895_v44 = vpop.f32.mrf.mxu0  ;;  %v12897_v45 = vpop.f32.mrf.mxu1 }
  0xf6   :  { %9356 = vmatpush3.msra.mxu0 %v11995_v49  ;;  %9401 = vmatpush3.msra.mxu1 %v12000_v50 }
  0xf7   :  { %9289 = vmatprep.mubr.msk.f32.mxu0 %vm11639_vm1, %v17147_v0  ;;  %9334 = vmatprep.mubr.msk.f32.mxu1 %vm11639_vm1, %v17147_v0  ;;  %v8838_v47 = vpop.f32.mrf.mxu0  ;;  %v8883_v48 = vpop.f32.mrf.mxu1 }
  0xf8   :  { %9290 = vmatmul.mubr.msk.f32.gmra.mxu0 %vm90_vm0, %v12431_v21  ;;  %9335 = vmatmul.mubr.msk.f32.gmra.mxu1 %vm90_vm0, %v12431_v21  ;;  %v11282_v21 = vld [vmem:[%s17127_s0 + $0x48] sm:$0xff]  ;;  %v11296_v48 = vld [vmem:[%s17125_s1 + $0xc0] sm:$0xff] }
  0xf9   :  { %9357 = vmatprep.subr.mxu0 %v17147_v0  ;;  %9402 = vmatprep.subr.mxu1 %v17147_v0 }
  0xfa   :  { %9358 = vmatpush3.msra.mxu0 %v12018_v52  ;;  %9403 = vmatpush3.msra.mxu1 %v12023_v53  ;;  %v12913_v49 = vpop.f32.mrf.mxu0  ;;  %v12915_v50 = vpop.f32.mrf.mxu1  ;;  %v11281_v52 = vld [vmem:[%s17127_s0 + $0x40] sm:$0xff] }
  0xfb   :  { %9359 = vmatprep.subr.mxu0 %v17147_v0  ;;  %9404 = vmatprep.subr.mxu1 %v17147_v0 }
  0xfc   :  { %9360 = vmatpush3.msra.mxu0 %v12032_v54  ;;  %9361 = vmatprep.mubr.msk.f32.mxu0 %vm11639_vm1, %v17147_v0  ;;  %v8841_v51 = vpop.f32.mrf.mxu0  ;;  %v8886_v22 = vpop.f32.mrf.mxu1 }
  0xfd   :  { %9405 = vmatpush3.msra.mxu1 %v12039_v55  ;;  %9406 = vmatprep.mubr.msk.f32.mxu1 %vm11639_vm1, %v17147_v0 }
  0xfe   :  { %9362 = vmatmul.mubr.msk.f32.vlgmr.msra.gmra.mxu0 %vm90_vm0, %v11281_v52  ;;  %9407 = vmatmul.mubr.msk.f32.vlgmr.msra.gmra.mxu1 %vm90_vm0, %v11281_v52  ;;  %v11297_v52 = vld [vmem:[%s17126_s2 + $0xc0] sm:$0xff] }
  0xff   :  { %9427 = vmatprep.subr.mxu0 %v17147_v0  ;;  %9472 = vmatprep.subr.mxu1 %v17147_v0 }
 0x100   :  { %9428 = vmatpush3.msra.mxu0 %v12055_v57  ;;  %9473 = vmatpush3.msra.mxu1 %v12060_v58  ;;  %v412_v53 = vpop.f32.mrf.mxu0  ;;  %v512_v54 = vpop.f32.mrf.mxu1 }
 0x101   :  { %9364 = vmatprep.mubr.msk.f32.mxu0 %vm11639_vm1, %v17147_v0  ;;  %9409 = vmatprep.mubr.msk.f32.mxu1 %vm11639_vm1, %v17147_v0  ;;  %v12939_v55 = vadd.f32 %v412_v53, %v12801_v6  ;;  %v12942_v38 = vadd.f32 %v512_v54, %v12803_v24  ;;  %v11287_v6 = vld [vmem:[%s17127_s0 + $0x60] sm:$0xff]  ;;  %v11299_v53 = vld [vmem:[%s17126_s2 + $0x178] sm:$0xff] }
 0x102   :  { %9429 = vmatprep.subr.mxu0 %v17147_v0  ;;  %9474 = vmatprep.subr.mxu1 %v17147_v0  ;;  %v8913_v57 = vpop.f32.mrf.mxu0  ;;  %v8958_v58 = vpop.f32.mrf.mxu1 }
 0x103   :  { %9365 = vmatmul.mubr.msk.f32.gmra.mxu0 %vm90_vm0, %v11282_v21  ;;  %9410 = vmatmul.mubr.msk.f32.gmra.mxu1 %vm90_vm0, %v11282_v21 }
 0x104   :  { %9430 = vmatpush3.msra.mxu0 %v12080_v60  ;;  %9475 = vmatpush3.msra.mxu1 %v12085_v61 }
 0x105   :  { %9431 = vmatprep.subr.mxu0 %v17147_v0  ;;  %9476 = vmatprep.subr.mxu1 %v17147_v0  ;;  %v417_v3 = vpop.f32.mrf.mxu0  ;;  %v517_v11 = vpop.f32.mrf.mxu1 }
 0x106   :  { %9432 = vmatpush3.msra.mxu0 %v12096_v62  ;;  %9477 = vmatpush3.msra.mxu1 %v12101_v63  ;;  %v12958_v16 = vadd.f32 %v417_v3, %v12819_v26  ;;  %v12961_v28 = vadd.f32 %v517_v11, %v12821_v27  ;;  %v11283_v62 = vld [vmem:[%s17127_s0 + $0x50] sm:$0xff]  ;;  %v11288_v27 = vld [vmem:[%s17127_s0 + $0x68] sm:$0xff] }
 0x107   :  { %9367 = vmatprep.mubr.msk.f32.mxu0 %vm11639_vm1, %v17147_v0  ;;  %9412 = vmatprep.mubr.msk.f32.mxu1 %vm11639_vm1, %v17147_v0  ;;  %v8916_v60 = vpop.f32.mrf.mxu0  ;;  %v8961_v61 = vpop.f32.mrf.mxu1 }
 0x108   :  { %9433 = vmatprep.subr.mxu0 %v17147_v0  ;;  %9478 = vmatprep.subr.mxu1 %v17147_v0  ;;  %v17168_v60 = vld [vmem:[#allocation3_spill] sm:$0xff] }
 0x109   :  { %9368 = vmatmul.mubr.msk.f32.gmra.mxu0 %vm90_vm0, %v11283_v62  ;;  %9413 = vmatmul.mubr.msk.f32.gmra.mxu1 %vm90_vm0, %v11283_v62 }
 0x10a   :  { %9434 = vmatpush3.msra.mxu0 %v12121_v7  ;;  %9479 = vmatpush3.msra.mxu1 %v12126_v8 }
 0x10b   :  { %9435 = vmatprep.subr.mxu0 %v17147_v0  ;;  %9480 = vmatprep.subr.mxu1 %v17147_v0  ;;  %v422_v63 = vpop.f32.mrf.mxu0  ;;  %v522_v43 = vpop.f32.mrf.mxu1 }
 0x10c   :  { %9370 = vmatprep.mubr.msk.f32.mxu0 %vm11639_vm1, %v17147_v0  ;;  %9415 = vmatprep.mubr.msk.f32.mxu1 %vm11639_vm1, %v17147_v0  ;;  %v12983_v19 = vadd.f32 %v422_v63, %v12839_v31  ;;  %v12986_v15 = vadd.f32 %v522_v43, %v12841_v32  ;;  %v11302_v63 = vld [vmem:[%s17125_s1 + $0x168] sm:$0xff] }
 0x10d   :  { %9436 = vmatpush3.msra.mxu0 %v12139_v9  ;;  %9481 = vmatpush3.msra.mxu1 %v12144_v10  ;;  %v8919_v7 = vpop.f32.mrf.mxu0  ;;  %v8964_v8 = vpop.f32.mrf.mxu1  ;;  %v11303_v43 = vld [vmem:[%s17126_s2 + $0x168] sm:$0xff] }
 0x10e   :  { %9371 = vmatmul.mubr.msk.f32.gmra.mxu0 %vm90_vm0, %v11284_v25  ;;  %9416 = vmatmul.mubr.msk.f32.gmra.mxu1 %vm90_vm0, %v11284_v25 }
 0x10f   :  { %9437 = vmatprep.subr.mxu0 %v17147_v0  ;;  %9482 = vmatprep.subr.mxu1 %v17147_v0 }
 0x110   :  { %9438 = vmatpush3.msra.mxu0 %v12162_v12  ;;  %9483 = vmatpush3.msra.mxu1 %v12167_v13  ;;  %v427_v9 = vpop.f32.mrf.mxu0  ;;  %v527_v10 = vpop.f32.mrf.mxu1 }
 0x111   :  { %9439 = vmatprep.subr.mxu0 %v17147_v0  ;;  %9484 = vmatprep.subr.mxu1 %v17147_v0  ;;  %v13002_v1 = vadd.f32 %v427_v9, %v12857_v14  ;;  %v13005_v2 = vadd.f32 %v527_v10, %v12859_v36  ;;  %v17169_v10 = vld [vmem:[#allocation4_spill] sm:$0xff] }
 0x112   :  { %9373 = vmatprep.mubr.msk.f32.mxu0 %vm11639_vm1, %v17147_v0  ;;  %9418 = vmatprep.mubr.msk.f32.mxu1 %vm11639_vm1, %v17147_v0  ;;  %v8922_v12 = vpop.f32.mrf.mxu0  ;;  %v8967_v13 = vpop.f32.mrf.mxu1 }
 0x113   :  { %9440 = vmatpush3.msra.mxu0 %v11285_v4  ;;  %9485 = vmatpush3.msra.mxu1 %v11286_v5 }
 0x114   :  { %9374 = vmatmul.mubr.msk.f32.gmra.mxu0 %vm90_vm0, %v11287_v6  ;;  %9419 = vmatmul.mubr.msk.f32.gmra.mxu1 %vm90_vm0, %v11287_v6  ;;  %v11306_v6 = vld [vmem:[%s17125_s1 + $0x158] sm:$0xff] }
 0x115   :  { %9441 = vmatprep.subr.mxu0 %v17147_v0  ;;  %9486 = vmatprep.subr.mxu1 %v17147_v0 }
 0x116   :  { %9442 = vmatpush3.msra.mxu0 %v12197_v17  ;;  %9487 = vmatpush3.msra.mxu1 %v12202_v18  ;;  %v432_v24 = vpop.f32.mrf.mxu0  ;;  %v532_v46 = vpop.f32.mrf.mxu1 }
 0x117   :  { %9376 = vmatprep.mubr.msk.f32.mxu0 %vm11639_vm1, %v17147_v0  ;;  %9421 = vmatprep.mubr.msk.f32.mxu1 %vm11639_vm1, %v17147_v0  ;;  %v13031_v59 = vadd.f32 %v432_v24, %v12877_v39  ;;  %v13034_v26 = vadd.f32 %v532_v46, %v12879_v40  ;;  %v11293_v39 = vld [vmem:[%s17127_s0 + $0x70] sm:$0xff]  ;;  %v11294_v40 = vld [vmem:[%s17125_s1 + $0xc8] sm:$0xff]  ;;  %v11307_v24 = vld [vmem:[%s17126_s2 + $0x158] sm:$0xff] }
 0x118   :  { %9443 = vmatprep.subr.mxu0 %v17147_v0  ;;  %9488 = vmatprep.subr.mxu1 %v17147_v0  ;;  %v8925_v17 = vpop.f32.mrf.mxu0  ;;  %v8970_v18 = vpop.f32.mrf.mxu1 }
 0x119   :  { %9377 = vmatmul.mubr.msk.f32.gmra.mxu0 %vm90_vm0, %v11288_v27  ;;  %9422 = vmatmul.mubr.msk.f32.gmra.mxu1 %vm90_vm0, %v11288_v27  ;;  %v17170_v18 = vld [vmem:[#allocation5_spill] sm:$0xff] }
 0x11a   :  { %9444 = vmatpush3.msra.mxu0 %v11289_v29  ;;  %9489 = vmatpush3.msra.mxu1 %v11290_v30 }
 0x11b   :  { %9445 = vmatprep.subr.mxu0 %v17147_v0  ;;  %9490 = vmatprep.subr.mxu1 %v17147_v0  ;;  %v437_v31 = vpop.f32.mrf.mxu0  ;;  %v537_v32 = vpop.f32.mrf.mxu1 }
 0x11c   :  { %9446 = vmatpush3.msra.mxu0 %v11291_v34  ;;  %9491 = vmatpush3.msra.mxu1 %v11292_v35  ;;  %v13058_v14 = vadd.f32 %v437_v31, %v12895_v44  ;;  %v13061_v36 = vadd.f32 %v537_v32, %v12897_v45  ;;  %v11310_v35 = vld [vmem:[%s17125_s1 + $0x148] sm:$0xff] }
 0x11d   :  { %9379 = vmatprep.mubr.msk.f32.mxu0 %vm11639_vm1, %v17147_v0  ;;  %9424 = vmatprep.mubr.msk.f32.mxu1 %vm11639_vm1, %v17147_v0  ;;  %v8928_v37 = vpop.f32.mrf.mxu0  ;;  %v8973_v23 = vpop.f32.mrf.mxu1 }
 0x11e   :  { %9380 = vmatmul.mubr.msk.f32.gmra.mxu0 %vm90_vm0, %v11293_v39  ;;  %9425 = vmatmul.mubr.msk.f32.gmra.mxu1 %vm90_vm0, %v11293_v39  ;;  %v11312_v37 = vld [vmem:[%s17125_s1 + $0x140] sm:$0xff] }
 0x11f   :  { %9447 = vmatprep.subr.mxu0 %v17147_v0  ;;  %9492 = vmatprep.subr.mxu1 %v17147_v0  ;;  %v11313_v23 = vld [vmem:[%s17126_s2 + $0x140] sm:$0xff] }
 0x120   :  { %9448 = vmatpush3.msra.mxu0 %v11294_v40  ;;  %9493 = vmatpush3.msra.mxu1 %v11295_v41  ;;  %v442_v42 = vpop.f32.mrf.mxu0  ;;  %v542_v44 = vpop.f32.mrf.mxu1 }
 0x121   :  { %9449 = vmatprep.subr.mxu0 %v17147_v0  ;;  %9494 = vmatprep.subr.mxu1 %v17147_v0  ;;  %v13083_v45 = vadd.f32 %v442_v42, %v12913_v49  ;;  %v13086_v47 = vadd.f32 %v542_v44, %v12915_v50  ;;  %v17167_v49 = vld [vmem:[#allocation2_spill] sm:$0xff]  ;;  %v11298_v50 = vld [vmem:[%s17125_s1 + $0x178] sm:$0xff] }
 0x122   :  { %9450 = vmatpush3.msra.mxu0 %v11296_v48  ;;  %9451 = vmatprep.mubr.msk.f32.mxu0 %vm11639_vm1, %v17147_v0  ;;  %v8931_v51 = vpop.f32.mrf.mxu0  ;;  %v8976_v22 = vpop.f32.mrf.mxu1 }
 0x123   :  { %9495 = vmatpush3.msra.mxu1 %v11297_v52  ;;  %9496 = vmatprep.mubr.msk.f32.mxu1 %vm11639_vm1, %v17147_v0  ;;  %v11317_v52 = vld [vmem:[%s17126_s2 + $0x130] sm:$0xff] }
 0x124   :  { %9452 = vmatmul.mubr.msk.f32.vlgmr.msra.gmra.mxu0 %vm90_vm0, %v17167_v49  ;;  %9497 = vmatmul.mubr.msk.f32.vlgmr.msra.gmra.mxu1 %vm90_vm0, %v17167_v49 }
 0x125   :  { %9517 = vmatprep.subr.mxu0 %v17147_v0  ;;  %9562 = vmatprep.subr.mxu1 %v17147_v0 }
 0x126   :  { %9518 = vmatpush3.msra.mxu0 %v11298_v50  ;;  %9563 = vmatpush3.msra.mxu1 %v11299_v53  ;;  %v654_v54 = vpop.f32.mrf.mxu0  ;;  %v767_v57 = vpop.f32.mrf.mxu1 }
 0x127   :  { %9454 = vmatprep.mubr.msk.f32.mxu0 %vm11639_vm1, %v17147_v0  ;;  %9499 = vmatprep.mubr.msk.f32.mxu1 %vm11639_vm1, %v17147_v0  ;;  %v13115_v58 = vadd.f32 %v654_v54, %v12939_v55  ;;  %v13118_v21 = vadd.f32 %v767_v57, %v12942_v38  ;;  %v11300_v55 = vld [vmem:[%s17125_s1 + $0x170] sm:$0xff] }
 0x128   :  { %9519 = vmatprep.subr.mxu0 %v17147_v0  ;;  %9564 = vmatprep.subr.mxu1 %v17147_v0  ;;  %v9003_v3 = vpop.f32.mrf.mxu0  ;;  %v9048_v11 = vpop.f32.mrf.mxu1  ;;  %v11301_v38 = vld [vmem:[%s17126_s2 + $0x170] sm:$0xff] }
 0x129   :  { %9455 = vmatmul.mubr.msk.f32.gmra.mxu0 %vm90_vm0, %v17168_v60  ;;  %9500 = vmatmul.mubr.msk.f32.gmra.mxu1 %vm90_vm0, %v17168_v60  ;;  %v11320_v60 = vld [vmem:[%s17125_s1 + $0x120] sm:$0xff] }
 0x12a   :  { %9520 = vmatpush3.msra.mxu0 %v11300_v55  ;;  %9565 = vmatpush3.msra.mxu1 %v11301_v38 }
 0x12b   :  { %9521 = vmatprep.subr.mxu0 %v17147_v0  ;;  %9566 = vmatprep.subr.mxu1 %v17147_v0  ;;  %v659_v61 = vpop.f32.mrf.mxu0  ;;  %v772_v62 = vpop.f32.mrf.mxu1 }
 0x12c   :  { %9522 = vmatpush3.msra.mxu0 %v11302_v63  ;;  %9567 = vmatpush3.msra.mxu1 %v11303_v43  ;;  %v13141_v7 = vadd.f32 %v659_v61, %v12958_v16  ;;  %v13144_v8 = vadd.f32 %v772_v62, %v12961_v28  ;;  %v11304_v16 = vld [vmem:[%s17125_s1 + $0x160] sm:$0xff]  ;;  %v11324_v62 = vld [vmem:[%s17126_s2 + $0x1d8] sm:$0xff] }
 0x12d   :  { %9457 = vmatprep.mubr.msk.f32.mxu0 %vm11639_vm1, %v17147_v0  ;;  %9502 = vmatprep.mubr.msk.f32.mxu1 %vm11639_vm1, %v17147_v0  ;;  %v9006_v25 = vpop.f32.mrf.mxu0  ;;  %v9051_v9 = vpop.f32.mrf.mxu1  ;;  %v11305_v28 = vld [vmem:[%s17126_s2 + $0x160] sm:$0xff] }
 0x12e   :  { %9523 = vmatprep.subr.mxu0 %v17147_v0  ;;  %9568 = vmatprep.subr.mxu1 %v17147_v0  ;;  %v11321_v61 = vld [vmem:[%s17126_s2 + $0x120] sm:$0xff] }
 0x12f   :  { %9458 = vmatmul.mubr.msk.f32.gmra.mxu0 %vm90_vm0, %v17169_v10  ;;  %9503 = vmatmul.mubr.msk.f32.gmra.mxu1 %vm90_vm0, %v17169_v10 }
 0x130   :  { %9524 = vmatpush3.msra.mxu0 %v11304_v16  ;;  %9569 = vmatpush3.msra.mxu1 %v11305_v28  ;;  %v13324_v28 = vld [vmem:[%s17127_s0 + $0x10] sm:$0xff] }
 0x131   :  { %9525 = vmatprep.subr.mxu0 %v17147_v0  ;;  %9570 = vmatprep.subr.mxu1 %v17147_v0  ;;  %v664_v12 = vpop.f32.mrf.mxu0  ;;  %v777_v13 = vpop.f32.mrf.mxu1 }
 0x132   :  { %9460 = vmatprep.mubr.msk.f32.mxu0 %vm11639_vm1, %v17147_v0  ;;  %9505 = vmatprep.mubr.msk.f32.mxu1 %vm11639_vm1, %v17147_v0  ;;  %v13169_v4 = vadd.f32 %v664_v12, %v12983_v19  ;;  %v13172_v5 = vadd.f32 %v777_v13, %v12986_v15  ;;  %v11308_v19 = vld [vmem:[%s17125_s1 + $0x150] sm:$0xff] }
 0x133   :  { %9526 = vmatpush3.msra.mxu0 %v11306_v6  ;;  %9571 = vmatpush3.msra.mxu1 %v11307_v24  ;;  %v9009_v46 = vpop.f32.mrf.mxu0  ;;  %v9054_v17 = vpop.f32.mrf.mxu1  ;;  %v11309_v15 = vld [vmem:[%s17126_s2 + $0x150] sm:$0xff]  ;;  %v11328_v6 = vld [vmem:[%s17125_s1 + $0x1c8] sm:$0xff] }
 0x134   :  { %9461 = vmatmul.mubr.msk.f32.gmra.mxu0 %vm90_vm0, %v17170_v18  ;;  %9506 = vmatmul.mubr.msk.f32.gmra.mxu1 %vm90_vm0, %v17170_v18  ;;  %v11329_v24 = vld [vmem:[%s17126_s2 + $0x1c8] sm:$0xff] }
 0x135   :  { %9527 = vmatprep.subr.mxu0 %v17147_v0  ;;  %9572 = vmatprep.subr.mxu1 %v17147_v0 }
 0x136   :  { %9528 = vmatpush3.msra.mxu0 %v11308_v19  ;;  %9573 = vmatpush3.msra.mxu1 %v11309_v15  ;;  %v669_v27 = vpop.f32.mrf.mxu0  ;;  %v782_v29 = vpop.f32.mrf.mxu1  ;;  %v11332_v15 = vld [vmem:[%s17126_s2 + $0x1c0] sm:$0xff] }
 0x137   :  { %9529 = vmatprep.subr.mxu0 %v17147_v0  ;;  %9574 = vmatprep.subr.mxu1 %v17147_v0  ;;  %v13195_v30 = vadd.f32 %v669_v27, %v13002_v1  ;;  %v13198_v31 = vadd.f32 %v782_v29, %v13005_v2  ;;  %v11311_v1 = vld [vmem:[%s17126_s2 + $0x148] sm:$0xff]  ;;  %v17171_v2 = vld [vmem:[#allocation6_spill] sm:$0xff] }
 0x138   :  { %9463 = vmatprep.mubr.msk.f32.mxu0 %vm11639_vm1, %v17147_v0  ;;  %9508 = vmatprep.mubr.msk.f32.mxu1 %vm11639_vm1, %v17147_v0  ;;  %v9012_v32 = vpop.f32.mrf.mxu0  ;;  %v9057_v34 = vpop.f32.mrf.mxu1 }
 0x139   :  { %9530 = vmatpush3.msra.mxu0 %v11310_v35  ;;  %9575 = vmatpush3.msra.mxu1 %v11311_v1  ;;  %v11333_v35 = vld [vmem:[%s17125_s1 + $0x1b8] sm:$0xff] }
 0x13a   :  { %9464 = vmatmul.mubr.msk.f32.gmra.mxu0 %vm90_vm0, %v17171_v2  ;;  %9509 = vmatmul.mubr.msk.f32.gmra.mxu1 %vm90_vm0, %v17171_v2  ;;  %v11334_v1 = vld [vmem:[%s17126_s2 + $0x1b8] sm:$0xff] }
 0x13b   :  { %9531 = vmatprep.subr.mxu0 %v17147_v0  ;;  %9576 = vmatprep.subr.mxu1 %v17147_v0 }
 0x13c   :  { %9532 = vmatpush3.msra.mxu0 %v11312_v37  ;;  %9577 = vmatpush3.msra.mxu1 %v11313_v23  ;;  %v674_v39 = vpop.f32.mrf.mxu0  ;;  %v787_v40 = vpop.f32.mrf.mxu1  ;;  %v11337_v23 = vld [vmem:[%s17126_s2 + $0x1b0] sm:$0xff] }
 0x13d   :  { %9466 = vmatprep.mubr.msk.f32.mxu0 %vm11639_vm1, %v17147_v0  ;;  %9511 = vmatprep.mubr.msk.f32.mxu1 %vm11639_vm1, %v17147_v0  ;;  %v13227_v41 = vadd.f32 %v674_v39, %v13031_v59  ;;  %v13230_v42 = vadd.f32 %v787_v40, %v13034_v26  ;;  %v11314_v59 = vld [vmem:[%s17125_s1 + $0x138] sm:$0xff] }
 0x13e   :  { %9533 = vmatprep.subr.mxu0 %v17147_v0  ;;  %9578 = vmatprep.subr.mxu1 %v17147_v0  ;;  %v9015_v44 = vpop.f32.mrf.mxu0  ;;  %v9060_v48 = vpop.f32.mrf.mxu1  ;;  %v11315_v26 = vld [vmem:[%s17126_s2 + $0x138] sm:$0xff] }
 0x13f   :  { %9467 = vmatmul.mubr.msk.f32.gmra.mxu0 %vm90_vm0, %v12589_v20  ;;  %9512 = vmatmul.mubr.msk.f32.gmra.mxu1 %vm90_vm0, %v12589_v20  ;;  %v11316_v20 = vld [vmem:[%s17125_s1 + $0x130] sm:$0xff] }
 0x140   :  { %9534 = vmatpush3.msra.mxu0 %v11314_v59  ;;  %9579 = vmatpush3.msra.mxu1 %v11315_v26 }
 0x141   :  { %9535 = vmatprep.subr.mxu0 %v17147_v0  ;;  %9580 = vmatprep.subr.mxu1 %v17147_v0  ;;  %v679_v51 = vpop.f32.mrf.mxu0  ;;  %v792_v22 = vpop.f32.mrf.mxu1 }
 0x142   :  { %9536 = vmatpush3.msra.mxu0 %v11316_v20  ;;  %9581 = vmatpush3.msra.mxu1 %v11317_v52  ;;  %v13253_v49 = vadd.f32 %v679_v51, %v13058_v14  ;;  %v13256_v50 = vadd.f32 %v792_v22, %v13061_v36  ;;  %v11318_v14 = vld [vmem:[%s17125_s1 + $0x128] sm:$0xff]  ;;  %v11341_v22 = vld [vmem:[%s17125_s1 + $0x1a0] sm:$0xff] }
 0x143   :  { %9469 = vmatprep.mubr.msk.f32.mxu0 %vm11639_vm1, %v17147_v0  ;;  %9514 = vmatprep.mubr.msk.f32.mxu1 %vm11639_vm1, %v17147_v0  ;;  %v9018_v53 = vpop.f32.mrf.mxu0  ;;  %v9063_v54 = vpop.f32.mrf.mxu1  ;;  %v11319_v36 = vld [vmem:[%s17126_s2 + $0x128] sm:$0xff]  ;;  %v11342_v20 = vld [vmem:[%s17126_s2 + $0x1a0] sm:$0xff] }
 0x144   :  { %9470 = vmatmul.mubr.msk.f32.gmra.mxu0 %vm90_vm0, %v12618_v33  ;;  %9515 = vmatmul.mubr.msk.f32.gmra.mxu1 %vm90_vm0, %v12618_v33  ;;  %v11338_v51 = vld [vmem:[%s17125_s1 + $0x1a8] sm:$0xff] }
 0x145   :  { %9537 = vmatprep.subr.mxu0 %v17147_v0  ;;  %9582 = vmatprep.subr.mxu1 %v17147_v0 }
 0x146   :  { %9538 = vmatpush3.msra.mxu0 %v11318_v14  ;;  %9583 = vmatpush3.msra.mxu1 %v11319_v36  ;;  %v684_v57 = vpop.f32.mrf.mxu0  ;;  %v797_v3 = vpop.f32.mrf.mxu1 }
 0x147   :  { %9539 = vmatprep.subr.mxu0 %v17147_v0  ;;  %9584 = vmatprep.subr.mxu1 %v17147_v0  ;;  %v13277_v33 = vadd.f32 %v684_v57, %v13083_v45  ;;  %v13280_v11 = vadd.f32 %v797_v3, %v13086_v47  ;;  %v13295_v45 = vld [vmem:[%s17127_s0 + $0x8] sm:$0xff]  ;;  %v11323_v47 = vld [vmem:[%s17125_s1 + $0x1d8] sm:$0xff]  ;;  %v13456_v3 = vld [vmem:[%s17127_s0 + $0x30] sm:$0xff] }
 0x148   :  { %9540 = vmatpush3.msra.mxu0 %v11320_v60  ;;  %9541 = vmatprep.mubr.msk.f32.mxu0 %vm11639_vm1, %v17147_v0  ;;  %v9021_v55 = vpop.f32.mrf.mxu0  ;;  %v9066_v38 = vpop.f32.mrf.mxu1 }
 0x149   :  { %9585 = vmatpush3.msra.mxu1 %v11321_v61  ;;  %9586 = vmatprep.mubr.msk.f32.mxu1 %vm11639_vm1, %v17147_v0  ;;  %v11346_v38 = vld [vmem:[%s17125_s1 + $0x190] sm:$0xff] }
 0x14a   :  { %9542 = vmatmul.mubr.msk.f32.vlgmr.msra.gmra.mxu0 %vm90_vm0, %v13295_v45  ;;  %9587 = vmatmul.mubr.msk.f32.vlgmr.msra.gmra.mxu1 %vm90_vm0, %v13295_v45  ;;  %v11347_v61 = vld [vmem:[%s17126_s2 + $0x190] sm:$0xff] }
 0x14b   :  { %9607 = vmatprep.subr.mxu0 %v17147_v0  ;;  %9652 = vmatprep.subr.mxu1 %v17147_v0 }
 0x14c   :  { %9608 = vmatpush3.msra.mxu0 %v11323_v47  ;;  %9653 = vmatpush3.msra.mxu1 %v11324_v62  ;;  %v923_v63 = vpop.f32.mrf.mxu0  ;;  %v1036_v43 = vpop.f32.mrf.mxu1 }
 0x14d   :  { %9544 = vmatprep.mubr.msk.f32.mxu0 %vm11639_vm1, %v17147_v0  ;;  %9589 = vmatprep.mubr.msk.f32.mxu1 %vm11639_vm1, %v17147_v0  ;;  %v13314_v25 = vadd.f32 %v923_v63, %v13115_v58  ;;  %v13317_v9 = vadd.f32 %v1036_v43, %v13118_v21  ;;  %v11326_v58 = vld [vmem:[%s17125_s1 + $0x1d0] sm:$0xff] }
 0x14e   :  { %9609 = vmatprep.subr.mxu0 %v17147_v0  ;;  %9654 = vmatprep.subr.mxu1 %v17147_v0  ;;  %v9093_v10 = vpop.f32.mrf.mxu0  ;;  %v9138_v16 = vpop.f32.mrf.mxu1  ;;  %v11327_v21 = vld [vmem:[%s17126_s2 + $0x1d0] sm:$0xff] }
 0x14f   :  { %9545 = vmatmul.mubr.msk.f32.gmra.mxu0 %vm90_vm0, %v13324_v28  ;;  %9590 = vmatmul.mubr.msk.f32.gmra.mxu1 %vm90_vm0, %v13324_v28 }
 0x150   :  { %9610 = vmatpush3.msra.mxu0 %v11326_v58  ;;  %9655 = vmatpush3.msra.mxu1 %v11327_v21 }
 0x151   :  { %9611 = vmatprep.subr.mxu0 %v17147_v0  ;;  %9656 = vmatprep.subr.mxu1 %v17147_v0  ;;  %v928_v12 = vpop.f32.mrf.mxu0  ;;  %v1041_v13 = vpop.f32.mrf.mxu1 }
 0x152   :  { %9612 = vmatpush3.msra.mxu0 %v11328_v6  ;;  %9657 = vmatpush3.msra.mxu1 %v11329_v24  ;;  %v13345_v46 = vadd.f32 %v928_v12, %v13141_v7  ;;  %v13348_v17 = vadd.f32 %v1041_v13, %v13144_v8  ;;  %v13359_v7 = vld [vmem:[%s17127_s0 + $0x18] sm:$0xff]  ;;  %v11331_v8 = vld [vmem:[%s17125_s1 + $0x1c0] sm:$0xff] }
 0x153   :  { %9547 = vmatprep.mubr.msk.f32.mxu0 %vm11639_vm1, %v17147_v0  ;;  %9592 = vmatprep.mubr.msk.f32.mxu1 %vm11639_vm1, %v17147_v0  ;;  %v9096_v18 = vpop.f32.mrf.mxu0  ;;  %v9141_v19 = vpop.f32.mrf.mxu1  ;;  %v11350_v12 = vld [vmem:[%s17125_s1 + $0x180] sm:$0xff] }
 0x154   :  { %9613 = vmatprep.subr.mxu0 %v17147_v0  ;;  %9658 = vmatprep.subr.mxu1 %v17147_v0  ;;  %v11351_v24 = vld [vmem:[%s17126_s2 + $0x180] sm:$0xff]  ;;  %v13536_v18 = vld [vmem:[%s17127_s0 + $0x50] sm:$0xff] }
 0x155   :  { %9548 = vmatmul.mubr.msk.f32.gmra.mxu0 %vm90_vm0, %v13359_v7  ;;  %9593 = vmatmul.mubr.msk.f32.gmra.mxu1 %vm90_vm0, %v13359_v7 }
 0x156   :  { %9614 = vmatpush3.msra.mxu0 %v11331_v8  ;;  %9659 = vmatpush3.msra.mxu1 %v11332_v15 }
 0x157   :  { %9615 = vmatprep.subr.mxu0 %v17147_v0  ;;  %9660 = vmatprep.subr.mxu1 %v17147_v0  ;;  %v933_v27 = vpop.f32.mrf.mxu0  ;;  %v1046_v29 = vpop.f32.mrf.mxu1 }
 0x158   :  { %9550 = vmatprep.mubr.msk.f32.mxu0 %vm11639_vm1, %v17147_v0  ;;  %9595 = vmatprep.mubr.msk.f32.mxu1 %vm11639_vm1, %v17147_v0  ;;  %v13378_v32 = vadd.f32 %v933_v27, %v13169_v4  ;;  %v13381_v34 = vadd.f32 %v1046_v29, %v13172_v5  ;;  %v13392_v4 = vld [vmem:[%s17127_s0 + $0x20] sm:$0xff]  ;;  %v11336_v5 = vld [vmem:[%s17125_s1 + $0x1b0] sm:$0xff] }
 0x159   :  { %9616 = vmatpush3.msra.mxu0 %v11333_v35  ;;  %9661 = vmatpush3.msra.mxu1 %v11334_v1  ;;  %v9099_v2 = vpop.f32.mrf.mxu0  ;;  %v9144_v37 = vpop.f32.mrf.mxu1 }
 0x15a   :  { %9551 = vmatmul.mubr.msk.f32.gmra.mxu0 %vm90_vm0, %v13392_v4  ;;  %9596 = vmatmul.mubr.msk.f32.gmra.mxu1 %vm90_vm0, %v13392_v4 }
 0x15b   :  { %9617 = vmatprep.subr.mxu0 %v17147_v0  ;;  %9662 = vmatprep.subr.mxu1 %v17147_v0 }
 0x15c   :  { %9618 = vmatpush3.msra.mxu0 %v11336_v5  ;;  %9663 = vmatpush3.msra.mxu1 %v11337_v23  ;;  %v938_v39 = vpop.f32.mrf.mxu0  ;;  %v1051_v40 = vpop.f32.mrf.mxu1  ;;  %v11356_v5 = vld [vmem:[%s17125_s1 + $0xa8] sm:$0xff] }
 0x15d   :  { %9619 = vmatprep.subr.mxu0 %v17147_v0  ;;  %9664 = vmatprep.subr.mxu1 %v17147_v0  ;;  %v13409_v44 = vadd.f32 %v938_v39, %v13195_v30  ;;  %v13412_v48 = vadd.f32 %v1051_v40, %v13198_v31  ;;  %v11339_v30 = vld [vmem:[%s17126_s2 + $0x1a8] sm:$0xff]  ;;  %v13573_v39 = vld [vmem:[%s17127_s0 + $0x58] sm:$0xff] }
 0x15e   :  { %9553 = vmatprep.mubr.msk.f32.mxu0 %vm11639_vm1, %v17147_v0  ;;  %9598 = vmatprep.mubr.msk.f32.mxu1 %vm11639_vm1, %v17147_v0  ;;  %v9102_v59 = vpop.f32.mrf.mxu0  ;;  %v9147_v26 = vpop.f32.mrf.mxu1  ;;  %v13427_v31 = vld [vmem:[%s17127_s0 + $0x28] sm:$0xff] }
 0x15f   :  { %9620 = vmatpush3.msra.mxu0 %v11338_v51  ;;  %9665 = vmatpush3.msra.mxu1 %v11339_v30  ;;  %v11357_v23 = vld [vmem:[%s17126_s2 + $0xa8] sm:$0xff] }
 0x160   :  { %9554 = vmatmul.mubr.msk.f32.gmra.mxu0 %vm90_vm0, %v13427_v31  ;;  %9599 = vmatmul.mubr.msk.f32.gmra.mxu1 %vm90_vm0, %v13427_v31 }
 0x161   :  { %9621 = vmatprep.subr.mxu0 %v17147_v0  ;;  %9666 = vmatprep.subr.mxu1 %v17147_v0 }
 0x162   :  { %9622 = vmatpush3.msra.mxu0 %v11341_v22  ;;  %9667 = vmatpush3.msra.mxu1 %v11342_v20  ;;  %v943_v52 = vpop.f32.mrf.mxu0  ;;  %v1056_v53 = vpop.f32.mrf.mxu1  ;;  %v13604_v22 = vld [vmem:[%s17127_s0 + $0x60] sm:$0xff] }
 0x163   :  { %9556 = vmatprep.mubr.msk.f32.mxu0 %vm11639_vm1, %v17147_v0  ;;  %9601 = vmatprep.mubr.msk.f32.mxu1 %vm11639_vm1, %v17147_v0  ;;  %v13446_v54 = vadd.f32 %v943_v52, %v13227_v41  ;;  %v13449_v14 = vadd.f32 %v1056_v53, %v13230_v42  ;;  %v11344_v41 = vld [vmem:[%s17125_s1 + $0x198] sm:$0xff] }
 0x164   :  { %9623 = vmatprep.subr.mxu0 %v17147_v0  ;;  %9668 = vmatprep.subr.mxu1 %v17147_v0  ;;  %v9105_v36 = vpop.f32.mrf.mxu0  ;;  %v9150_v57 = vpop.f32.mrf.mxu1  ;;  %v11345_v42 = vld [vmem:[%s17126_s2 + $0x198] sm:$0xff] }
 0x165   :  { %9557 = vmatmul.mubr.msk.f32.gmra.mxu0 %vm90_vm0, %v13456_v3  ;;  %9602 = vmatmul.mubr.msk.f32.gmra.mxu1 %vm90_vm0, %v13456_v3  ;;  %v11360_v57 = vld [vmem:[%s17125_s1 + $0x98] sm:$0xff] }
 0x166   :  { %9624 = vmatpush3.msra.mxu0 %v11344_v41  ;;  %9669 = vmatpush3.msra.mxu1 %v11345_v42  ;;  %v11361_v41 = vld [vmem:[%s17126_s2 + $0x98] sm:$0xff] }
 0x167   :  { %9625 = vmatprep.subr.mxu0 %v17147_v0  ;;  %9670 = vmatprep.subr.mxu1 %v17147_v0  ;;  %v948_v60 = vpop.f32.mrf.mxu0  ;;  %v1061_v55 = vpop.f32.mrf.mxu1 }
 0x168   :  { %9626 = vmatpush3.msra.mxu0 %v11346_v38  ;;  %9671 = vmatpush3.msra.mxu1 %v11347_v61  ;;  %v13477_v47 = vadd.f32 %v948_v60, %v13253_v49  ;;  %v13480_v62 = vadd.f32 %v1061_v55, %v13256_v50  ;;  %v11348_v49 = vld [vmem:[%s17125_s1 + $0x188] sm:$0xff]  ;;  %v11363_v55 = vld [vmem:[%s17126_s2 + $0x90] sm:$0xff] }
 0x169   :  { %9559 = vmatprep.mubr.msk.f32.mxu0 %vm11639_vm1, %v17147_v0  ;;  %9604 = vmatprep.mubr.msk.f32.mxu1 %vm11639_vm1, %v17147_v0  ;;  %v9108_v63 = vpop.f32.mrf.mxu0  ;;  %v9153_v43 = vpop.f32.mrf.mxu1  ;;  %v11349_v50 = vld [vmem:[%s17126_s2 + $0x188] sm:$0xff] }
 0x16a   :  { %9560 = vmatmul.mubr.msk.f32.gmra.mxu0 %vm90_vm0, %v12759_v56  ;;  %9605 = vmatmul.mubr.msk.f32.gmra.mxu1 %vm90_vm0, %v12759_v56  ;;  %v13503_v56 = vld [vmem:[%s17127_s0 + $0x48] sm:$0xff] }
 0x16b   :  { %9627 = vmatprep.subr.mxu0 %v17147_v0  ;;  %9672 = vmatprep.subr.mxu1 %v17147_v0  ;;  %v13641_v63 = vld [vmem:[%s17127_s0 + $0x68] sm:$0xff] }
 0x16c   :  { %9628 = vmatpush3.msra.mxu0 %v11348_v49  ;;  %9673 = vmatpush3.msra.mxu1 %v11349_v50  ;;  %v953_v10 = vpop.f32.mrf.mxu0  ;;  %v1066_v16 = vpop.f32.mrf.mxu1 }
 0x16d   :  { %9629 = vmatprep.subr.mxu0 %v17147_v0  ;;  %9674 = vmatprep.subr.mxu1 %v17147_v0  ;;  %v13506_v58 = vadd.f32 %v953_v10, %v13277_v33  ;;  %v13509_v21 = vadd.f32 %v1066_v16, %v13280_v11  ;;  %v11352_v33 = vld [vmem:[%s17125_s1 + $0xb8] sm:$0xff]  ;;  %v11364_v16 = vld [vmem:[%s17125_s1 + $0x88] sm:$0xff] }
 0x16e   :  { %9630 = vmatpush3.msra.mxu0 %v11350_v12  ;;  %9631 = vmatprep.mubr.msk.f32.mxu0 %vm11639_vm1, %v17147_v0  ;;  %v9111_v13 = vpop.f32.mrf.mxu0  ;;  %v9156_v6 = vpop.f32.mrf.mxu1  ;;  %v11353_v11 = vld [vmem:[%s17126_s2 + $0xb8] sm:$0xff]  ;;  %v11366_v12 = vld [vmem:[%s17125_s1 + $0x80] sm:$0xff] }
 0x16f   :  { %9675 = vmatpush3.msra.mxu1 %v11351_v24  ;;  %9676 = vmatprep.mubr.msk.f32.mxu1 %vm11639_vm1, %v17147_v0  ;;  %v11367_v13 = vld [vmem:[%s17126_s2 + $0x80] sm:$0xff]  ;;  %v13676_v6 = vld [vmem:[%s17127_s0 + $0x70] sm:$0xff] }
 0x170   :  { %9632 = vmatmul.mubr.msk.f32.vlgmr.msra.gmra.mxu0 %vm90_vm0, %v13503_v56  ;;  %9677 = vmatmul.mubr.msk.f32.vlgmr.msra.gmra.mxu1 %vm90_vm0, %v13503_v56 }
 0x171   :  { %9697 = vmatprep.subr.mxu0 %v17147_v0  ;;  %9742 = vmatprep.subr.mxu1 %v17147_v0 }
 0x172   :  { %9698 = vmatpush3.msra.mxu0 %v11352_v33  ;;  %9743 = vmatpush3.msra.mxu1 %v11353_v11  ;;  %v1191_v19 = vpop.f32.mrf.mxu0  ;;  %v1304_v8 = vpop.f32.mrf.mxu1 }
 0x173   :  { %9634 = vmatprep.mubr.msk.f32.mxu0 %vm11639_vm1, %v17147_v0  ;;  %9679 = vmatprep.mubr.msk.f32.mxu1 %vm11639_vm1, %v17147_v0  ;;  %v13543_v15 = vadd.f32 %v1191_v19, %v13314_v25  ;;  %v13546_v27 = vadd.f32 %v1304_v8, %v13317_v9  ;;  %v11354_v25 = vld [vmem:[%s17125_s1 + $0xb0] sm:$0xff] }
 0x174   :  { %9699 = vmatprep.subr.mxu0 %v17147_v0  ;;  %9744 = vmatprep.subr.mxu1 %v17147_v0  ;;  %v9183_v29 = vpop.f32.mrf.mxu0  ;;  %v9228_v35 = vpop.f32.mrf.mxu1  ;;  %v11355_v9 = vld [vmem:[%s17126_s2 + $0xb0] sm:$0xff] }
 0x175   :  { %9635 = vmatmul.mubr.msk.f32.gmra.mxu0 %vm90_vm0, %v13536_v18  ;;  %9680 = vmatmul.mubr.msk.f32.gmra.mxu1 %vm90_vm0, %v13536_v18  ;;  %v1352_v1 = vmax.f32 %v13543_v15, %v13546_v27 }
 0x176   :  { %9700 = vmatpush3.msra.mxu0 %v11354_v25  ;;  %9745 = vmatpush3.msra.mxu1 %v11355_v9  ;;  %v13707_v25 = vld [vmem:[%s17127_s0 + $0x78] sm:$0xff] }
 0x177   :  { %9701 = vmatprep.subr.mxu0 %v17147_v0  ;;  %9746 = vmatprep.subr.mxu1 %v17147_v0  ;;  %v1196_v2 = vpop.f32.mrf.mxu0  ;;  %v1309_v37 = vpop.f32.mrf.mxu1 }
 0x178   :  { %9702 = vmatpush3.msra.mxu0 %v11356_v5  ;;  %9747 = vmatpush3.msra.mxu1 %v11357_v23  ;;  %v13576_v40 = vadd.f32 %v1196_v2, %v13345_v46  ;;  %v13579_v59 = vadd.f32 %v1309_v37, %v13348_v17  ;;  %v11358_v46 = vld [vmem:[%s17125_s1 + $0xa0] sm:$0xff]  ;;  %v11370_v37 = vld [vmem:[%s17125_s1 + $0x70] sm:$0xff] }
 0x179   :  { %9637 = vmatprep.mubr.msk.f32.mxu0 %vm11639_vm1, %v17147_v0  ;;  %9682 = vmatprep.mubr.msk.f32.mxu1 %vm11639_vm1, %v17147_v0  ;;  %v9186_v26 = vpop.f32.mrf.mxu0  ;;  %v9231_v51 = vpop.f32.mrf.mxu1  ;;  %v11359_v17 = vld [vmem:[%s17126_s2 + $0xa0] sm:$0xff]  ;;  %v11371_v5 = vld [vmem:[%s17126_s2 + $0x70] sm:$0xff] }
 0x17a   :  { %9703 = vmatprep.subr.mxu0 %v17147_v0  ;;  %9748 = vmatprep.subr.mxu1 %v17147_v0  ;;  %v1353_v30 = vmax.f32 %v13576_v40, %v13579_v59 }
 0x17b   :  { %9638 = vmatmul.mubr.msk.f32.gmra.mxu0 %vm90_vm0, %v13573_v39  ;;  %9683 = vmatmul.mubr.msk.f32.gmra.mxu1 %vm90_vm0, %v13573_v39 }
 0x17c   :  { %9704 = vmatpush3.msra.mxu0 %v11358_v46  ;;  %9749 = vmatpush3.msra.mxu1 %v11359_v17  ;;  %v11373_v17 = vld [vmem:[%s17126_s2 + $0x68] sm:$0xff] }
 0x17d   :  { %9705 = vmatprep.subr.mxu0 %v17147_v0  ;;  %9750 = vmatprep.subr.mxu1 %v17147_v0  ;;  %v1201_v20 = vpop.f32.mrf.mxu0  ;;  %v1314_v52 = vpop.f32.mrf.mxu1 }
 0x17e   :  { %9640 = vmatprep.mubr.msk.f32.mxu0 %vm11639_vm1, %v17147_v0  ;;  %9685 = vmatprep.mubr.msk.f32.mxu1 %vm11639_vm1, %v17147_v0  ;;  %v13611_v53 = vadd.f32 %v1201_v20, %v13378_v32  ;;  %v13614_v36 = vadd.f32 %v1314_v52, %v13381_v34  ;;  %v11362_v34 = vld [vmem:[%s17125_s1 + $0x90] sm:$0xff] }
 0x17f   :  { %9706 = vmatpush3.msra.mxu0 %v11360_v57  ;;  %9751 = vmatpush3.msra.mxu1 %v11361_v41  ;;  %v9189_v42 = vpop.f32.mrf.mxu0  ;;  %v9234_v60 = vpop.f32.mrf.mxu1 }
 0x180   :  { %9641 = vmatmul.mubr.msk.f32.gmra.mxu0 %vm90_vm0, %v13604_v22  ;;  %9686 = vmatmul.mubr.msk.f32.gmra.mxu1 %vm90_vm0, %v13604_v22  ;;  %v1354_v32 = vmax.f32 %v13611_v53, %v13614_v36  ;;  %v11374_v42 = vld [vmem:[%s17125_s1 + $0x60] sm:$0xff] }
 0x181   :  { %9707 = vmatprep.subr.mxu0 %v17147_v0  ;;  %9752 = vmatprep.subr.mxu1 %v17147_v0 }
 0x182   :  { %9708 = vmatpush3.msra.mxu0 %v11362_v34  ;;  %9753 = vmatpush3.msra.mxu1 %v11363_v55  ;;  %v1206_v38 = vpop.f32.mrf.mxu0  ;;  %v1319_v61 = vpop.f32.mrf.mxu1  ;;  %v11375_v55 = vld [vmem:[%s17126_s2 + $0x60] sm:$0xff] }
 0x183   :  { %9709 = vmatprep.subr.mxu0 %v17147_v0  ;;  %9754 = vmatprep.subr.mxu1 %v17147_v0  ;;  %v13644_v43 = vadd.f32 %v1206_v38, %v13409_v44  ;;  %v13647_v49 = vadd.f32 %v1319_v61, %v13412_v48  ;;  %v11365_v44 = vld [vmem:[%s17126_s2 + $0x88] sm:$0xff]  ;;  %v11377_v38 = vld [vmem:[%s17125_s1 + $0x58] sm:$0xff] }
 0x184   :  { %9643 = vmatprep.mubr.msk.f32.mxu0 %vm11639_vm1, %v17147_v0  ;;  %9688 = vmatprep.mubr.msk.f32.mxu1 %vm11639_vm1, %v17147_v0  ;;  %v9192_v50 = vpop.f32.mrf.mxu0  ;;  %v9237_v10 = vpop.f32.mrf.mxu1  ;;  %v11378_v61 = vld [vmem:[%s17126_s2 + $0x58] sm:$0xff] }
 0x185   :  { %9710 = vmatpush3.msra.mxu0 %v11364_v16  ;;  %9755 = vmatpush3.msra.mxu1 %v11365_v44  ;;  %v1355_v48 = vmax.f32 %v13644_v43, %v13647_v49 }
 0x186   :  { %9644 = vmatmul.mubr.msk.f32.gmra.mxu0 %vm90_vm0, %v13641_v63  ;;  %9689 = vmatmul.mubr.msk.f32.gmra.mxu1 %vm90_vm0, %v13641_v63 }
 0x187   :  { %9711 = vmatprep.subr.mxu0 %v17147_v0  ;;  %9756 = vmatprep.subr.mxu1 %v17147_v0 }
 0x188   :  { %9712 = vmatpush3.msra.mxu0 %v11366_v12  ;;  %9757 = vmatpush3.msra.mxu1 %v11367_v13  ;;  %v1211_v24 = vpop.f32.mrf.mxu0  ;;  %v1324_v33 = vpop.f32.mrf.mxu1  ;;  %v11379_v12 = vld [vmem:[%s17127_s0 + $0xc8] sm:$0xff]  ;;  %v11380_v13 = vld [vmem:[%s17125_s1 + $0x50] sm:$0xff] }
 0x189   :  { %9646 = vmatprep.mubr.msk.f32.mxu0 %vm11639_vm1, %v17147_v0  ;;  %9691 = vmatprep.mubr.msk.f32.mxu1 %vm11639_vm1, %v17147_v0  ;;  %v13683_v11 = vadd.f32 %v1211_v24, %v13446_v54  ;;  %v13686_v19 = vadd.f32 %v1324_v33, %v13449_v14  ;;  %v11368_v54 = vld [vmem:[%s17125_s1 + $0x78] sm:$0xff]  ;;  %v11381_v24 = vld [vmem:[%s17126_s2 + $0x50] sm:$0xff] }
 0x18a   :  { %9713 = vmatprep.subr.mxu0 %v17147_v0  ;;  %9758 = vmatprep.subr.mxu1 %v17147_v0  ;;  %v9195_v8 = vpop.f32.mrf.mxu0  ;;  %v9240_v29 = vpop.f32.mrf.mxu1  ;;  %v11369_v14 = vld [vmem:[%s17126_s2 + $0x78] sm:$0xff] }
 0x18b   :  { %9647 = vmatmul.mubr.msk.f32.gmra.mxu0 %vm90_vm0, %v13676_v6  ;;  %9692 = vmatmul.mubr.msk.f32.gmra.mxu1 %vm90_vm0, %v13676_v6  ;;  %v1356_v35 = vmax.f32 %v13683_v11, %v13686_v19  ;;  %v11382_v29 = vld [vmem:[%s17125_s1 + $0x48] sm:$0xff] }
 0x18c   :  { %9714 = vmatpush3.msra.mxu0 %v11368_v54  ;;  %9759 = vmatpush3.msra.mxu1 %v11369_v14  ;;  %v11383_v54 = vld [vmem:[%s17126_s2 + $0x48] sm:$0xff] }
 0x18d   :  { %9715 = vmatprep.subr.mxu0 %v17147_v0  ;;  %9760 = vmatprep.subr.mxu1 %v17147_v0  ;;  %v1216_v9 = vpop.f32.mrf.mxu0  ;;  %v1329_v2 = vpop.f32.mrf.mxu1 }
 0x18e   :  { %9716 = vmatpush3.msra.mxu0 %v11370_v37  ;;  %9761 = vmatpush3.msra.mxu1 %v11371_v5  ;;  %v13716_v23 = vadd.f32 %v1216_v9, %v13477_v47  ;;  %v13719_v26 = vadd.f32 %v1329_v2, %v13480_v62  ;;  %v11372_v62 = vld [vmem:[%s17125_s1 + $0x68] sm:$0xff]  ;;  %v11384_v2 = vld [vmem:[%s17127_s0 + $0xd0] sm:$0xff]  ;;  %v11385_v37 = vld [vmem:[%s17125_s1 + $0x40] sm:$0xff] }
 0x18f   :  { %9649 = vmatprep.mubr.msk.f32.mxu0 %vm11639_vm1, %v17147_v0  ;;  %9694 = vmatprep.mubr.msk.f32.mxu1 %vm11639_vm1, %v17147_v0  ;;  %v9198_v51 = vpop.f32.mrf.mxu0  ;;  %v9243_v46 = vpop.f32.mrf.mxu1  ;;  %v11386_v5 = vld [vmem:[%s17126_s2 + $0x40] sm:$0xff] }
 0x190   :  { %9650 = vmatmul.mubr.msk.f32.gmra.mxu0 %vm90_vm0, %v13707_v25  ;;  %9695 = vmatmul.mubr.msk.f32.gmra.mxu1 %vm90_vm0, %v13707_v25  ;;  %v1357_v47 = vmax.f32 %v13716_v23, %v13719_v26 }
 0x191   :  { %9717 = vmatprep.subr.mxu0 %v17147_v0  ;;  %9762 = vmatprep.subr.mxu1 %v17147_v0 }
 0x192   :  { %9718 = vmatpush3.msra.mxu0 %v11372_v62  ;;  %9763 = vmatpush3.msra.mxu1 %v11373_v17  ;;  %v1221_v20 = vpop.f32.mrf.mxu0  ;;  %v1334_v52 = vpop.f32.mrf.mxu1  ;;  %v11387_v62 = vld [vmem:[%s17125_s1 + $0x38] sm:$0xff] }
 0x193   :  { %9719 = vmatprep.subr.mxu0 %v17147_v0  ;;  %9764 = vmatprep.subr.mxu1 %v17147_v0  ;;  %v13742_v57 = vadd.f32 %v1221_v20, %v13506_v58  ;;  %v13745_v41 = vadd.f32 %v1334_v52, %v13509_v21  ;;  %v11376_v21 = vld [vmem:[%s17127_s0 + $0xc0] sm:$0xff]  ;;  %v11388_v17 = vld [vmem:[%s17126_s2 + $0x38] sm:$0xff] }
 0x194   :  { %9720 = vmatpush3.msra.mxu0 %v11374_v42  ;;  %9721 = vmatprep.mubr.msk.f32.mxu0 %vm11639_vm1, %v17147_v0  ;;  %v9201_v60 = vpop.f32.mrf.mxu0  ;;  %v9246_v34 = vpop.f32.mrf.mxu1  ;;  %v11389_v42 = vld [vmem:[%s17127_s0 + $0xd8] sm:$0xff] }
 0x195   :  { %9765 = vmatpush3.msra.mxu1 %v11375_v55  ;;  %9766 = vmatprep.mubr.msk.f32.mxu1 %vm11639_vm1, %v17147_v0  ;;  %v1358_v58 = vmax.f32 %v13742_v57, %v13745_v41  ;;  %v11390_v60 = vld [vmem:[%s17125_s1 + $0x30] sm:$0xff] }
 0x196   :  { %9722 = vmatmul.mubr.msk.f32.vlgmr.msra.gmra.mxu0 %vm90_vm0, %v11376_v21  ;;  %9767 = vmatmul.mubr.msk.f32.vlgmr.msra.gmra.mxu1 %vm90_vm0, %v11376_v21  ;;  %v11391_v34 = vld [vmem:[%s17126_s2 + $0x30] sm:$0xff] }
 0x197   :  { %9787 = vmatprep.subr.mxu0 %v17147_v0  ;;  %9832 = vmatprep.subr.mxu1 %v17147_v0 }
 0x198   :  { %9788 = vmatpush3.msra.mxu0 %v11377_v38  ;;  %9833 = vmatpush3.msra.mxu1 %v11378_v61  ;;  %v13772_v50 = vpop.f32.mrf.mxu0  ;;  %v13774_v10 = vpop.f32.mrf.mxu1 }
 0x199   :  { %9724 = vmatprep.mubr.msk.f32.mxu0 %vm11639_vm1, %v17147_v0  ;;  %9769 = vmatprep.mubr.msk.f32.mxu1 %vm11639_vm1, %v17147_v0 }
 0x19a   :  { %9789 = vmatprep.subr.mxu0 %v17147_v0  ;;  %9834 = vmatprep.subr.mxu1 %v17147_v0  ;;  %v9273_v16 = vpop.f32.mrf.mxu0  ;;  %v9318_v44 = vpop.f32.mrf.mxu1 }
 0x19b   :  { %9725 = vmatmul.mubr.msk.f32.gmra.mxu0 %vm90_vm0, %v11379_v12  ;;  %9770 = vmatmul.mubr.msk.f32.gmra.mxu1 %vm90_vm0, %v11379_v12  ;;  %v11392_v16 = vld [vmem:[%s17125_s1 + $0x28] sm:$0xff]  ;;  %v11394_v12 = vld [vmem:[%s17127_s0 + $0xe0] sm:$0xff] }
 0x19c   :  { %9790 = vmatpush3.msra.mxu0 %v11380_v13  ;;  %9835 = vmatpush3.msra.mxu1 %v11381_v24  ;;  %v11393_v44 = vld [vmem:[%s17126_s2 + $0x28] sm:$0xff]  ;;  %v11395_v13 = vld [vmem:[%s17125_s1 + $0x20] sm:$0xff] }
 0x19d   :  { %9791 = vmatprep.subr.mxu0 %v17147_v0  ;;  %9836 = vmatprep.subr.mxu1 %v17147_v0  ;;  %v13795_v33 = vpop.f32.mrf.mxu0  ;;  %v13797_v8 = vpop.f32.mrf.mxu1  ;;  %v11396_v24 = vld [vmem:[%s17126_s2 + $0x20] sm:$0xff] }
 0x19e   :  { %9792 = vmatpush3.msra.mxu0 %v11382_v29  ;;  %9837 = vmatpush3.msra.mxu1 %v11383_v54 }
 0x19f   :  { %9727 = vmatprep.mubr.msk.f32.mxu0 %vm11639_vm1, %v17147_v0  ;;  %9772 = vmatprep.mubr.msk.f32.mxu1 %vm11639_vm1, %v17147_v0  ;;  %v9276_v14 = vpop.f32.mrf.mxu0  ;;  %v9321_v9 = vpop.f32.mrf.mxu1 }
 0x1a0   :  { %9793 = vmatprep.subr.mxu0 %v17147_v0  ;;  %9838 = vmatprep.subr.mxu1 %v17147_v0 }
 0x1a1   :  { %9728 = vmatmul.mubr.msk.f32.gmra.mxu0 %vm90_vm0, %v11384_v2  ;;  %9773 = vmatmul.mubr.msk.f32.gmra.mxu1 %vm90_vm0, %v11384_v2  ;;  %v11397_v2 = vld [vmem:[%s17127_s0 + $0xe8] sm:$0xff] }
 0x1a2   :  { %9794 = vmatpush3.msra.mxu0 %v11385_v37  ;;  %9839 = vmatpush3.msra.mxu1 %v11386_v5  ;;  %v11398_v37 = vld [vmem:[%s17125_s1 + $0x18] sm:$0xff] }
 0x1a3   :  { %9795 = vmatprep.subr.mxu0 %v17147_v0  ;;  %9840 = vmatprep.subr.mxu1 %v17147_v0  ;;  %v13824_v51 = vpop.f32.mrf.mxu0  ;;  %v13826_v46 = vpop.f32.mrf.mxu1  ;;  %v11399_v5 = vld [vmem:[%s17126_s2 + $0x18] sm:$0xff] }
 0x1a4   :  { %9730 = vmatprep.mubr.msk.f32.mxu0 %vm11639_vm1, %v17147_v0  ;;  %9775 = vmatprep.mubr.msk.f32.mxu1 %vm11639_vm1, %v17147_v0 }
 0x1a5   :  { %9796 = vmatpush3.msra.mxu0 %v11387_v62  ;;  %9841 = vmatpush3.msra.mxu1 %v11388_v17  ;;  %v9279_v20 = vpop.f32.mrf.mxu0  ;;  %v9324_v52 = vpop.f32.mrf.mxu1 }
 0x1a6   :  { %9731 = vmatmul.mubr.msk.f32.gmra.mxu0 %vm90_vm0, %v11389_v42  ;;  %9776 = vmatmul.mubr.msk.f32.gmra.mxu1 %vm90_vm0, %v11389_v42  ;;  %v11400_v20 = vld [vmem:[%s17125_s1 + $0x10] sm:$0xff] }
 0x1a7   :  { %9797 = vmatprep.subr.mxu0 %v17147_v0  ;;  %9842 = vmatprep.subr.mxu1 %v17147_v0  ;;  %v11401_v52 = vld [vmem:[%s17126_s2 + $0x10] sm:$0xff] }
 0x1a8   :  { %9798 = vmatpush3.msra.mxu0 %v11390_v60  ;;  %9843 = vmatpush3.msra.mxu1 %v11391_v34  ;;  %v13851_v55 = vpop.f32.mrf.mxu0  ;;  %v13853_v21 = vpop.f32.mrf.mxu1  ;;  %v11402_v34 = vld [vmem:[%s17127_s0 + $0xf0] sm:$0xff] }
 0x1a9   :  { %9799 = vmatprep.subr.mxu0 %v17147_v0  ;;  %9844 = vmatprep.subr.mxu1 %v17147_v0 }
 0x1aa   :  { %9733 = vmatprep.mubr.msk.f32.mxu0 %vm11639_vm1, %v17147_v0  ;;  %9778 = vmatprep.mubr.msk.f32.mxu1 %vm11639_vm1, %v17147_v0  ;;  %v9282_v38 = vpop.f32.mrf.mxu0  ;;  %v9327_v61 = vpop.f32.mrf.mxu1 }
 0x1ab   :  { %9800 = vmatpush3.msra.mxu0 %v11392_v16  ;;  %9845 = vmatpush3.msra.mxu1 %v11393_v44  ;;  %v11403_v38 = vld [vmem:[%s17125_s1 + $0x8] sm:$0xff] }
 0x1ac   :  { %9734 = vmatmul.mubr.msk.f32.gmra.mxu0 %vm90_vm0, %v11394_v12  ;;  %9779 = vmatmul.mubr.msk.f32.gmra.mxu1 %vm90_vm0, %v11394_v12  ;;  %v11404_v61 = vld [vmem:[%s17126_s2 + $0x8] sm:$0xff]  ;;  %v11405_v12 = vld [vmem:[%s17125_s1] sm:$0xff] }
 0x1ad   :  { %9801 = vmatprep.subr.mxu0 %v17147_v0  ;;  %9846 = vmatprep.subr.mxu1 %v17147_v0 }
 0x1ae   :  { %9802 = vmatpush3.msra.mxu0 %v11395_v13  ;;  %9847 = vmatpush3.msra.mxu1 %v11396_v24  ;;  %v13880_v29 = vpop.f32.mrf.mxu0  ;;  %v13882_v54 = vpop.f32.mrf.mxu1 }
 0x1af   :  { %9736 = vmatprep.mubr.msk.f32.mxu0 %vm11639_vm1, %v17147_v0  ;;  %9781 = vmatprep.mubr.msk.f32.mxu1 %vm11639_vm1, %v17147_v0 }
 0x1b0   :  { %9803 = vmatprep.subr.mxu0 %v17147_v0  ;;  %9848 = vmatprep.subr.mxu1 %v17147_v0  ;;  %v9285_v14 = vpop.f32.mrf.mxu0  ;;  %v9330_v9 = vpop.f32.mrf.mxu1 }
 0x1b1   :  { %9737 = vmatmul.mubr.msk.f32.gmra.mxu0 %vm90_vm0, %v11397_v2  ;;  %9782 = vmatmul.mubr.msk.f32.gmra.mxu1 %vm90_vm0, %v11397_v2  ;;  %v11406_v14 = vld [vmem:[%s17126_s2] sm:$0xff]  ;;  %v11408_v2 = vld [vmem:[%s17125_s1 + $0x118] sm:$0xff] }
 0x1b2   :  { %9804 = vmatpush3.msra.mxu0 %v11398_v37  ;;  %9849 = vmatpush3.msra.mxu1 %v11399_v5  ;;  %v11407_v9 = vld [vmem:[%s17127_s0 + $0x80] sm:$0xff]  ;;  %v11409_v37 = vld [vmem:[%s17126_s2 + $0x118] sm:$0xff] }
 0x1b3   :  { %9805 = vmatprep.subr.mxu0 %v17147_v0  ;;  %9850 = vmatprep.subr.mxu1 %v17147_v0  ;;  %v13903_v62 = vpop.f32.mrf.mxu0  ;;  %v13905_v17 = vpop.f32.mrf.mxu1 }
 0x1b4   :  { %9806 = vmatpush3.msra.mxu0 %v11400_v20  ;;  %9851 = vmatpush3.msra.mxu1 %v11401_v52 }
 0x1b5   :  { %9739 = vmatprep.mubr.msk.f32.mxu0 %vm11639_vm1, %v17147_v0  ;;  %9784 = vmatprep.mubr.msk.f32.mxu1 %vm11639_vm1, %v17147_v0  ;;  %v9288_v42 = vpop.f32.mrf.mxu0  ;;  %v9333_v60 = vpop.f32.mrf.mxu1 }
 0x1b6   :  { %9740 = vmatmul.mubr.msk.f32.gmra.mxu0 %vm90_vm0, %v11402_v34  ;;  %9785 = vmatmul.mubr.msk.f32.gmra.mxu1 %vm90_vm0, %v11402_v34 }
 0x1b7   :  { %9807 = vmatprep.subr.mxu0 %v17147_v0  ;;  %9852 = vmatprep.subr.mxu1 %v17147_v0 }
 0x1b8   :  { %9808 = vmatpush3.msra.mxu0 %v11403_v38  ;;  %9853 = vmatpush3.msra.mxu1 %v11404_v61  ;;  %v13930_v16 = vpop.f32.mrf.mxu0  ;;  %v13932_v44 = vpop.f32.mrf.mxu1  ;;  %v11410_v38 = vld [vmem:[%s17127_s0 + $0x88] sm:$0xff] }
 0x1b9   :  { %9809 = vmatprep.subr.mxu0 %v17147_v0  ;;  %9854 = vmatprep.subr.mxu1 %v17147_v0 }
 0x1ba   :  { %9810 = vmatpush3.msra.mxu0 %v11405_v12  ;;  %9811 = vmatprep.mubr.msk.f32.mxu0 %vm11639_vm1, %v17147_v0  ;;  %v9291_v13 = vpop.f32.mrf.mxu0  ;;  %v9336_v24 = vpop.f32.mrf.mxu1 }
 0x1bb   :  { %9855 = vmatpush3.msra.mxu1 %v11406_v14  ;;  %9856 = vmatprep.mubr.msk.f32.mxu1 %vm11639_vm1, %v17147_v0  ;;  %v11413_v13 = vld [vmem:[%s17125_s1 + $0x108] sm:$0xff] }
 0x1bc   :  { %9812 = vmatmul.mubr.msk.f32.vlgmr.msra.gmra.mxu0 %vm90_vm0, %v11407_v9  ;;  %9857 = vmatmul.mubr.msk.f32.vlgmr.msra.gmra.mxu1 %vm90_vm0, %v11407_v9  ;;  %v11414_v24 = vld [vmem:[%s17126_s2 + $0x108] sm:$0xff] }
 0x1bd   :  { %9877 = vmatprep.subr.mxu0 %v17147_v0  ;;  %9922 = vmatprep.subr.mxu1 %v17147_v0 }
 0x1be   :  { %9878 = vmatpush3.msra.mxu0 %v11408_v2  ;;  %9923 = vmatpush3.msra.mxu1 %v11409_v37  ;;  %v1625_v5 = vpop.f32.mrf.mxu0  ;;  %v1725_v20 = vpop.f32.mrf.mxu1 }
 0x1bf   :  { %9814 = vmatprep.mubr.msk.f32.mxu0 %vm11639_vm1, %v17147_v0  ;;  %9859 = vmatprep.mubr.msk.f32.mxu1 %vm11639_vm1, %v17147_v0  ;;  %v13964_v52 = vadd.f32 %v1625_v5, %v13772_v50  ;;  %v13967_v42 = vadd.f32 %v1725_v20, %v13774_v10  ;;  %v11411_v50 = vld [vmem:[%s17125_s1 + $0x110] sm:$0xff]  ;;  %v11417_v5 = vld [vmem:[%s17126_s2 + $0x100] sm:$0xff] }
 0x1c0   :  { %9879 = vmatprep.subr.mxu0 %v17147_v0  ;;  %9924 = vmatprep.subr.mxu1 %v17147_v0  ;;  %v9363_v60 = vpop.f32.mrf.mxu0  ;;  %v9408_v34 = vpop.f32.mrf.mxu1  ;;  %v11412_v10 = vld [vmem:[%s17126_s2 + $0x110] sm:$0xff] }
 0x1c1   :  { %9815 = vmatmul.mubr.msk.f32.gmra.mxu0 %vm90_vm0, %v11410_v38  ;;  %9860 = vmatmul.mubr.msk.f32.gmra.mxu1 %vm90_vm0, %v11410_v38 }
 0x1c2   :  { %9880 = vmatpush3.msra.mxu0 %v11411_v50  ;;  %9925 = vmatpush3.msra.mxu1 %v11412_v10  ;;  %v11418_v50 = vld [vmem:[%s17125_s1 + $0xf8] sm:$0xff] }
 0x1c3   :  { %9881 = vmatprep.subr.mxu0 %v17147_v0  ;;  %9926 = vmatprep.subr.mxu1 %v17147_v0  ;;  %v1630_v61 = vpop.f32.mrf.mxu0  ;;  %v1730_v12 = vpop.f32.mrf.mxu1  ;;  %v11419_v10 = vld [vmem:[%s17126_s2 + $0xf8] sm:$0xff] }
 0x1c4   :  { %9882 = vmatpush3.msra.mxu0 %v11413_v13  ;;  %9927 = vmatpush3.msra.mxu1 %v11414_v24  ;;  %v13991_v14 = vadd.f32 %v1630_v61, %v13795_v33  ;;  %v13994_v9 = vadd.f32 %v1730_v12, %v13797_v8  ;;  %v11415_v33 = vld [vmem:[%s17127_s0 + $0x90] sm:$0xff]  ;;  %v11416_v8 = vld [vmem:[%s17125_s1 + $0x100] sm:$0xff] }
 0x1c5   :  { %9817 = vmatprep.mubr.msk.f32.mxu0 %vm11639_vm1, %v17147_v0  ;;  %9862 = vmatprep.mubr.msk.f32.mxu1 %vm11639_vm1, %v17147_v0  ;;  %v9366_v2 = vpop.f32.mrf.mxu0  ;;  %v9411_v37 = vpop.f32.mrf.mxu1  ;;  %v11422_v13 = vld [vmem:[%s17126_s2 + $0xf0] sm:$0xff] }
 0x1c6   :  { %9883 = vmatprep.subr.mxu0 %v17147_v0  ;;  %9928 = vmatprep.subr.mxu1 %v17147_v0 }
 0x1c7   :  { %9818 = vmatmul.mubr.msk.f32.gmra.mxu0 %vm90_vm0, %v11415_v33  ;;  %9863 = vmatmul.mubr.msk.f32.gmra.mxu1 %vm90_vm0, %v11415_v33 }
 0x1c8   :  { %9884 = vmatpush3.msra.mxu0 %v11416_v8  ;;  %9929 = vmatpush3.msra.mxu1 %v11417_v5 }
 0x1c9   :  { %9885 = vmatprep.subr.mxu0 %v17147_v0  ;;  %9930 = vmatprep.subr.mxu1 %v17147_v0  ;;  %v1635_v20 = vpop.f32.mrf.mxu0  ;;  %v1735_v60 = vpop.f32.mrf.mxu1 }
 0x1ca   :  { %9820 = vmatprep.mubr.msk.f32.mxu0 %vm11639_vm1, %v17147_v0  ;;  %9865 = vmatprep.mubr.msk.f32.mxu1 %vm11639_vm1, %v17147_v0  ;;  %v14020_v34 = vadd.f32 %v1635_v20, %v13824_v51  ;;  %v14023_v38 = vadd.f32 %v1735_v60, %v13826_v46  ;;  %v11420_v51 = vld [vmem:[%s17127_s0 + $0x98] sm:$0xff]  ;;  %v11421_v46 = vld [vmem:[%s17125_s1 + $0xf0] sm:$0xff]  ;;  %v11423_v20 = vld [vmem:[%s17125_s1 + $0xe8] sm:$0xff] }
 0x1cb   :  { %9886 = vmatpush3.msra.mxu0 %v11418_v50  ;;  %9931 = vmatpush3.msra.mxu1 %v11419_v10  ;;  %v9369_v61 = vpop.f32.mrf.mxu0  ;;  %v9414_v12 = vpop.f32.mrf.mxu1  ;;  %v11426_v60 = vld [vmem:[%s17125_s1 + $0xe0] sm:$0xff] }
 0x1cc   :  { %9821 = vmatmul.mubr.msk.f32.gmra.mxu0 %vm90_vm0, %v11420_v51  ;;  %9866 = vmatmul.mubr.msk.f32.gmra.mxu1 %vm90_vm0, %v11420_v51  ;;  %v11427_v50 = vld [vmem:[%s17126_s2 + $0xe0] sm:$0xff] }
 0x1cd   :  { %9887 = vmatprep.subr.mxu0 %v17147_v0  ;;  %9932 = vmatprep.subr.mxu1 %v17147_v0 }
 0x1ce   :  { %9888 = vmatpush3.msra.mxu0 %v11421_v46  ;;  %9933 = vmatpush3.msra.mxu1 %v11422_v13  ;;  %v1640_v24 = vpop.f32.mrf.mxu0  ;;  %v1740_v2 = vpop.f32.mrf.mxu1 }
 0x1cf   :  { %9889 = vmatprep.subr.mxu0 %v17147_v0  ;;  %9934 = vmatprep.subr.mxu1 %v17147_v0  ;;  %v14047_v37 = vadd.f32 %v1640_v24, %v13851_v55  ;;  %v14050_v33 = vadd.f32 %v1740_v2, %v13853_v21  ;;  %v11424_v55 = vld [vmem:[%s17126_s2 + $0xe8] sm:$0xff]  ;;  %v11425_v21 = vld [vmem:[%s17127_s0 + $0xa0] sm:$0xff] }
 0x1d0   :  { %9823 = vmatprep.mubr.msk.f32.mxu0 %vm11639_vm1, %v17147_v0  ;;  %9868 = vmatprep.mubr.msk.f32.mxu1 %vm11639_vm1, %v17147_v0  ;;  %v9372_v8 = vpop.f32.mrf.mxu0  ;;  %v9417_v5 = vpop.f32.mrf.mxu1  ;;  %v11428_v24 = vld [vmem:[%s17127_s0 + $0xa8] sm:$0xff] }
 0x1d1   :  { %9890 = vmatpush3.msra.mxu0 %v11423_v20  ;;  %9935 = vmatpush3.msra.mxu1 %v11424_v55  ;;  %v11431_v5 = vld [vmem:[%s17125_s1 + $0xd0] sm:$0xff] }
 0x1d2   :  { %9824 = vmatmul.mubr.msk.f32.gmra.mxu0 %vm90_vm0, %v11425_v21  ;;  %9869 = vmatmul.mubr.msk.f32.gmra.mxu1 %vm90_vm0, %v11425_v21  ;;  %v11432_v20 = vld [vmem:[%s17126_s2 + $0xd0] sm:$0xff] }
 0x1d3   :  { %9891 = vmatprep.subr.mxu0 %v17147_v0  ;;  %9936 = vmatprep.subr.mxu1 %v17147_v0 }
 0x1d4   :  { %9892 = vmatpush3.msra.mxu0 %v11426_v60  ;;  %9937 = vmatpush3.msra.mxu1 %v11427_v50  ;;  %v1645_v10 = vpop.f32.mrf.mxu0  ;;  %v1745_v61 = vpop.f32.mrf.mxu1 }
 0x1d5   :  { %9826 = vmatprep.mubr.msk.f32.mxu0 %vm11639_vm1, %v17147_v0  ;;  %9871 = vmatprep.mubr.msk.f32.mxu1 %vm11639_vm1, %v17147_v0  ;;  %v14080_v12 = vadd.f32 %v1645_v10, %v13880_v29  ;;  %v14083_v51 = vadd.f32 %v1745_v61, %v13882_v54  ;;  %v11429_v29 = vld [vmem:[%s17125_s1 + $0xd8] sm:$0xff]  ;;  %v11433_v10 = vld [vmem:[%s17127_s0 + $0xb0] sm:$0xff] }
 0x1d6   :  { %9893 = vmatprep.subr.mxu0 %v17147_v0  ;;  %9938 = vmatprep.subr.mxu1 %v17147_v0  ;;  %v9375_v46 = vpop.f32.mrf.mxu0  ;;  %v9420_v13 = vpop.f32.mrf.mxu1  ;;  %v11430_v54 = vld [vmem:[%s17126_s2 + $0xd8] sm:$0xff] }
 0x1d7   :  { %9827 = vmatmul.mubr.msk.f32.gmra.mxu0 %vm90_vm0, %v11428_v24  ;;  %9872 = vmatmul.mubr.msk.f32.gmra.mxu1 %vm90_vm0, %v11428_v24 }
 0x1d8   :  { %9894 = vmatpush3.msra.mxu0 %v11429_v29  ;;  %9939 = vmatpush3.msra.mxu1 %v11430_v54  ;;  %v11436_v29 = vld [vmem:[%s17125_s1 + $0xc0] sm:$0xff] }
 0x1d9   :  { %9895 = vmatprep.subr.mxu0 %v17147_v0  ;;  %9940 = vmatprep.subr.mxu1 %v17147_v0  ;;  %v1650_v2 = vpop.f32.mrf.mxu0  ;;  %v1750_v8 = vpop.f32.mrf.mxu1 }
 0x1da   :  { %9896 = vmatpush3.msra.mxu0 %v11431_v5  ;;  %9941 = vmatpush3.msra.mxu1 %v11432_v20  ;;  %v14107_v55 = vadd.f32 %v1650_v2, %v13903_v62  ;;  %v14110_v21 = vadd.f32 %v1750_v8, %v13905_v17  ;;  %v11434_v62 = vld [vmem:[%s17125_s1 + $0xc8] sm:$0xff]  ;;  %v11437_v8 = vld [vmem:[%s17126_s2 + $0xc0] sm:$0xff] }
 0x1db   :  { %9829 = vmatprep.mubr.msk.f32.mxu0 %vm11639_vm1, %v17147_v0  ;;  %9874 = vmatprep.mubr.msk.f32.mxu1 %vm11639_vm1, %v17147_v0  ;;  %v9378_v60 = vpop.f32.mrf.mxu0  ;;  %v9423_v50 = vpop.f32.mrf.mxu1  ;;  %v11435_v17 = vld [vmem:[%s17126_s2 + $0xc8] sm:$0xff] }
 0x1dc   :  { %9830 = vmatmul.mubr.msk.f32.gmra.mxu0 %vm90_vm0, %v11433_v10  ;;  %9875 = vmatmul.mubr.msk.f32.gmra.mxu1 %vm90_vm0, %v11433_v10 }
 0x1dd   :  { %9897 = vmatprep.subr.mxu0 %v17147_v0  ;;  %9942 = vmatprep.subr.mxu1 %v17147_v0 }
 0x1de   :  { %9898 = vmatpush3.msra.mxu0 %v11434_v62  ;;  %9943 = vmatpush3.msra.mxu1 %v11435_v17  ;;  %v1655_v61 = vpop.f32.mrf.mxu0  ;;  %v1755_v46 = vpop.f32.mrf.mxu1 }
 0x1df   :  { %9899 = vmatprep.subr.mxu0 %v17147_v0  ;;  %9944 = vmatprep.subr.mxu1 %v17147_v0  ;;  %v14132_v13 = vadd.f32 %v1655_v61, %v13930_v16  ;;  %v14135_v24 = vadd.f32 %v1755_v46, %v13932_v44  ;;  %v11438_v16 = vld [vmem:[%s17125_s1 + $0x178] sm:$0xff]  ;;  %v11443_v61 = vld [vmem:[%s17126_s2 + $0x168] sm:$0xff] }
 0x1e0   :  { %9900 = vmatpush3.msra.mxu0 %v11436_v29  ;;  %9901 = vmatprep.mubr.msk.f32.mxu0 %vm11639_vm1, %v17147_v0  ;;  %v9381_v54 = vpop.f32.mrf.mxu0  ;;  %v9426_v2 = vpop.f32.mrf.mxu1  ;;  %v11439_v44 = vld [vmem:[%s17126_s2 + $0x178] sm:$0xff] }
 0x1e1   :  { %9945 = vmatpush3.msra.mxu1 %v11437_v8  ;;  %9946 = vmatprep.mubr.msk.f32.mxu1 %vm11639_vm1, %v17147_v0 }
 0x1e2   :  { %9902 = vmatmul.mubr.msk.f32.vlgmr.msra.gmra.mxu0 %vm90_vm0, %v13295_v45  ;;  %9947 = vmatmul.mubr.msk.f32.vlgmr.msra.gmra.mxu1 %vm90_vm0, %v13295_v45 }
 0x1e3   :  { %9967 = vmatprep.subr.mxu0 %v17147_v0  ;;  %10012 = vmatprep.subr.mxu1 %v17147_v0 }
 0x1e4   :  { %9968 = vmatpush3.msra.mxu0 %v11438_v16  ;;  %10013 = vmatpush3.msra.mxu1 %v11439_v44  ;;  %v1825_v5 = vpop.f32.mrf.mxu0  ;;  %v1925_v20 = vpop.f32.mrf.mxu1 }
 0x1e5   :  { %9904 = vmatprep.mubr.msk.f32.mxu0 %vm11639_vm1, %v17147_v0  ;;  %9949 = vmatprep.mubr.msk.f32.mxu1 %vm11639_vm1, %v17147_v0  ;;  %v14164_v45 = vadd.f32 %v1825_v5, %v13964_v52  ;;  %v14167_v60 = vadd.f32 %v1925_v20, %v13967_v42  ;;  %v11440_v52 = vld [vmem:[%s17125_s1 + $0x170] sm:$0xff]  ;;  %v11446_v5 = vld [vmem:[%s17125_s1 + $0x158] sm:$0xff] }
 0x1e6   :  { %9969 = vmatprep.subr.mxu0 %v17147_v0  ;;  %10014 = vmatprep.subr.mxu1 %v17147_v0  ;;  %v9453_v50 = vpop.f32.mrf.mxu0  ;;  %v9498_v10 = vpop.f32.mrf.mxu1  ;;  %v11441_v42 = vld [vmem:[%s17126_s2 + $0x170] sm:$0xff]  ;;  %v11447_v20 = vld [vmem:[%s17126_s2 + $0x158] sm:$0xff] }
 0x1e7   :  { %9905 = vmatmul.mubr.msk.f32.gmra.mxu0 %vm90_vm0, %v13324_v28  ;;  %9950 = vmatmul.mubr.msk.f32.gmra.mxu1 %vm90_vm0, %v13324_v28  ;;  %v11442_v28 = vld [vmem:[%s17125_s1 + $0x168] sm:$0xff] }
 0x1e8   :  { %9970 = vmatpush3.msra.mxu0 %v11440_v52  ;;  %10015 = vmatpush3.msra.mxu1 %v11441_v42 }
 0x1e9   :  { %9971 = vmatprep.subr.mxu0 %v17147_v0  ;;  %10016 = vmatprep.subr.mxu1 %v17147_v0  ;;  %v1830_v62 = vpop.f32.mrf.mxu0  ;;  %v1930_v17 = vpop.f32.mrf.mxu1 }
 0x1ea   :  { %9972 = vmatpush3.msra.mxu0 %v11442_v28  ;;  %10017 = vmatpush3.msra.mxu1 %v11443_v61  ;;  %v14190_v46 = vadd.f32 %v1830_v62, %v13991_v14  ;;  %v14193_v29 = vadd.f32 %v1930_v17, %v13994_v9  ;;  %v11444_v14 = vld [vmem:[%s17125_s1 + $0x160] sm:$0xff]  ;;  %v11450_v61 = vld [vmem:[%s17125_s1 + $0x148] sm:$0xff] }
 0x1eb   :  { %9907 = vmatprep.mubr.msk.f32.mxu0 %vm11639_vm1, %v17147_v0  ;;  %9952 = vmatprep.mubr.msk.f32.mxu1 %vm11639_vm1, %v17147_v0  ;;  %v9456_v54 = vpop.f32.mrf.mxu0  ;;  %v9501_v2 = vpop.f32.mrf.mxu1  ;;  %v11445_v9 = vld [vmem:[%s17126_s2 + $0x160] sm:$0xff] }
 0x1ec   :  { %9973 = vmatprep.subr.mxu0 %v17147_v0  ;;  %10018 = vmatprep.subr.mxu1 %v17147_v0  ;;  %v11453_v54 = vld [vmem:[%s17126_s2 + $0x140] sm:$0xff] }
 0x1ed   :  { %9908 = vmatmul.mubr.msk.f32.gmra.mxu0 %vm90_vm0, %v13359_v7  ;;  %9953 = vmatmul.mubr.msk.f32.gmra.mxu1 %vm90_vm0, %v13359_v7 }
 0x1ee   :  { %9974 = vmatpush3.msra.mxu0 %v11444_v14  ;;  %10019 = vmatpush3.msra.mxu1 %v11445_v9 }
 0x1ef   :  { %9975 = vmatprep.subr.mxu0 %v17147_v0  ;;  %10020 = vmatprep.subr.mxu1 %v17147_v0  ;;  %v1835_v8 = vpop.f32.mrf.mxu0  ;;  %v1935_v16 = vpop.f32.mrf.mxu1 }
 0x1f0   :  { %9910 = vmatprep.mubr.msk.f32.mxu0 %vm11639_vm1, %v17147_v0  ;;  %9955 = vmatprep.mubr.msk.f32.mxu1 %vm11639_vm1, %v17147_v0  ;;  %v14218_v7 = vadd.f32 %v1835_v8, %v14020_v34  ;;  %v14221_v44 = vadd.f32 %v1935_v16, %v14023_v38  ;;  %v11448_v34 = vld [vmem:[%s17125_s1 + $0x150] sm:$0xff] }
 0x1f1   :  { %9976 = vmatpush3.msra.mxu0 %v11446_v5  ;;  %10021 = vmatpush3.msra.mxu1 %v11447_v20  ;;  %v9459_v50 = vpop.f32.mrf.mxu0  ;;  %v9504_v10 = vpop.f32.mrf.mxu1  ;;  %v11449_v38 = vld [vmem:[%s17126_s2 + $0x150] sm:$0xff] }
 0x1f2   :  { %9911 = vmatmul.mubr.msk.f32.gmra.mxu0 %vm90_vm0, %v13392_v4  ;;  %9956 = vmatmul.mubr.msk.f32.gmra.mxu1 %vm90_vm0, %v13392_v4  ;;  %v11457_v50 = vld [vmem:[%s17126_s2 + $0x130] sm:$0xff] }
 0x1f3   :  { %9977 = vmatprep.subr.mxu0 %v17147_v0  ;;  %10022 = vmatprep.subr.mxu1 %v17147_v0 }
 0x1f4   :  { %9978 = vmatpush3.msra.mxu0 %v11448_v34  ;;  %10023 = vmatpush3.msra.mxu1 %v11449_v38  ;;  %v1840_v52 = vpop.f32.mrf.mxu0  ;;  %v1940_v42 = vpop.f32.mrf.mxu1 }
 0x1f5   :  { %9979 = vmatprep.subr.mxu0 %v17147_v0  ;;  %10024 = vmatprep.subr.mxu1 %v17147_v0  ;;  %v14244_v4 = vadd.f32 %v1840_v52, %v14047_v37  ;;  %v14247_v62 = vadd.f32 %v1940_v42, %v14050_v33  ;;  %v11451_v37 = vld [vmem:[%s17126_s2 + $0x148] sm:$0xff]  ;;  %v11452_v33 = vld [vmem:[%s17125_s1 + $0x140] sm:$0xff]  ;;  %v14314_v42 = vld [vmem:[%s17127_s0 + $0x38] sm:$0xff] }
 0x1f6   :  { %9913 = vmatprep.mubr.msk.f32.mxu0 %vm11639_vm1, %v17147_v0  ;;  %9958 = vmatprep.mubr.msk.f32.mxu1 %vm11639_vm1, %v17147_v0  ;;  %v9462_v17 = vpop.f32.mrf.mxu0  ;;  %v9507_v28 = vpop.f32.mrf.mxu1 }
 0x1f7   :  { %9980 = vmatpush3.msra.mxu0 %v11450_v61  ;;  %10025 = vmatpush3.msra.mxu1 %v11451_v37 }
 0x1f8   :  { %9914 = vmatmul.mubr.msk.f32.gmra.mxu0 %vm90_vm0, %v13427_v31  ;;  %9959 = vmatmul.mubr.msk.f32.gmra.mxu1 %vm90_vm0, %v13427_v31 }
 0x1f9   :  { %9981 = vmatprep.subr.mxu0 %v17147_v0  ;;  %10026 = vmatprep.subr.mxu1 %v17147_v0 }
 0x1fa   :  { %9982 = vmatpush3.msra.mxu0 %v11452_v33  ;;  %10027 = vmatpush3.msra.mxu1 %v11453_v54  ;;  %v1845_v2 = vpop.f32.mrf.mxu0  ;;  %v1945_v14 = vpop.f32.mrf.mxu1  ;;  %v11461_v33 = vld [vmem:[%s17125_s1 + $0x120] sm:$0xff] }
 0x1fb   :  { %9916 = vmatprep.mubr.msk.f32.mxu0 %vm11639_vm1, %v17147_v0  ;;  %9961 = vmatprep.mubr.msk.f32.mxu1 %vm11639_vm1, %v17147_v0  ;;  %v14276_v31 = vadd.f32 %v1845_v2, %v14080_v12  ;;  %v14279_v9 = vadd.f32 %v1945_v14, %v14083_v51  ;;  %v11454_v12 = vld [vmem:[%s17125_s1 + $0x138] sm:$0xff]  ;;  %v11462_v14 = vld [vmem:[%s17126_s2 + $0x120] sm:$0xff] }
 0x1fc   :  { %9983 = vmatprep.subr.mxu0 %v17147_v0  ;;  %10028 = vmatprep.subr.mxu1 %v17147_v0  ;;  %v9465_v8 = vpop.f32.mrf.mxu0  ;;  %v9510_v16 = vpop.f32.mrf.mxu1  ;;  %v11455_v51 = vld [vmem:[%s17126_s2 + $0x138] sm:$0xff] }
 0x1fd   :  { %9917 = vmatmul.mubr.msk.f32.gmra.mxu0 %vm90_vm0, %v13456_v3  ;;  %9962 = vmatmul.mubr.msk.f32.gmra.mxu1 %vm90_vm0, %v13456_v3  ;;  %v11456_v3 = vld [vmem:[%s17125_s1 + $0x130] sm:$0xff] }
 0x1fe   :  { %9984 = vmatpush3.msra.mxu0 %v11454_v12  ;;  %10029 = vmatpush3.msra.mxu1 %v11455_v51 }
 0x1ff   :  { %9985 = vmatprep.subr.mxu0 %v17147_v0  ;;  %10030 = vmatprep.subr.mxu1 %v17147_v0  ;;  %v1850_v5 = vpop.f32.mrf.mxu0  ;;  %v1950_v20 = vpop.f32.mrf.mxu1 }
 0x200   :  { %9986 = vmatpush3.msra.mxu0 %v11456_v3  ;;  %10031 = vmatpush3.msra.mxu1 %v11457_v50  ;;  %v14302_v10 = vadd.f32 %v1850_v5, %v14107_v55  ;;  %v14305_v34 = vadd.f32 %v1950_v20, %v14110_v21  ;;  %v11459_v55 = vld [vmem:[%s17125_s1 + $0x128] sm:$0xff] }
 0x201   :  { %9919 = vmatprep.mubr.msk.f32.mxu0 %vm11639_vm1, %v17147_v0  ;;  %9964 = vmatprep.mubr.msk.f32.mxu1 %vm11639_vm1, %v17147_v0  ;;  %v9468_v38 = vpop.f32.mrf.mxu0  ;;  %v9513_v52 = vpop.f32.mrf.mxu1  ;;  %v11460_v21 = vld [vmem:[%s17126_s2 + $0x128] sm:$0xff] }
 0x202   :  { %9920 = vmatmul.mubr.msk.f32.gmra.mxu0 %vm90_vm0, %v14314_v42  ;;  %9965 = vmatmul.mubr.msk.f32.gmra.mxu1 %vm90_vm0, %v14314_v42  ;;  %v11468_v50 = vld [vmem:[%s17126_s2 + $0x1c8] sm:$0xff] }
 0x203   :  { %9987 = vmatprep.subr.mxu0 %v17147_v0  ;;  %10032 = vmatprep.subr.mxu1 %v17147_v0 }
 0x204   :  { %9988 = vmatpush3.msra.mxu0 %v11459_v55  ;;  %10033 = vmatpush3.msra.mxu1 %v11460_v21  ;;  %v1855_v17 = vpop.f32.mrf.mxu0  ;;  %v1955_v28 = vpop.f32.mrf.mxu1 }
 0x205   :  { %9989 = vmatprep.subr.mxu0 %v17147_v0  ;;  %10034 = vmatprep.subr.mxu1 %v17147_v0  ;;  %v14331_v61 = vadd.f32 %v1855_v17, %v14132_v13  ;;  %v14334_v37 = vadd.f32 %v1955_v28, %v14135_v24  ;;  %v11463_v13 = vld [vmem:[%s17125_s1 + $0x1d8] sm:$0xff] }
 0x206   :  { %9990 = vmatpush3.msra.mxu0 %v11461_v33  ;;  %9991 = vmatprep.mubr.msk.f32.mxu0 %vm11639_vm1, %v17147_v0  ;;  %v9471_v54 = vpop.f32.mrf.mxu0  ;;  %v9516_v2 = vpop.f32.mrf.mxu1  ;;  %v11464_v24 = vld [vmem:[%s17126_s2 + $0x1d8] sm:$0xff] }
 0x207   :  { %10035 = vmatpush3.msra.mxu1 %v11462_v14  ;;  %10036 = vmatprep.mubr.msk.f32.mxu1 %vm11639_vm1, %v17147_v0  ;;  %v11471_v54 = vld [vmem:[%s17125_s1 + $0x1b8] sm:$0xff] }
 0x208   :  { %9992 = vmatmul.mubr.msk.f32.vlgmr.msra.gmra.mxu0 %vm90_vm0, %v13503_v56  ;;  %10037 = vmatmul.mubr.msk.f32.vlgmr.msra.gmra.mxu1 %vm90_vm0, %v13503_v56  ;;  %v11472_v2 = vld [vmem:[%s17126_s2 + $0x1b8] sm:$0xff] }
 0x209   :  { %10057 = vmatprep.subr.mxu0 %v17147_v0  ;;  %10102 = vmatprep.subr.mxu1 %v17147_v0 }
 0x20a   :  { %10058 = vmatpush3.msra.mxu0 %v11463_v13  ;;  %10103 = vmatpush3.msra.mxu1 %v11464_v24  ;;  %v2039_v8 = vpop.f32.mrf.mxu0  ;;  %v2139_v16 = vpop.f32.mrf.mxu1 }
 0x20b   :  { %9994 = vmatprep.mubr.msk.f32.mxu0 %vm11639_vm1, %v17147_v0  ;;  %10039 = vmatprep.mubr.msk.f32.mxu1 %vm11639_vm1, %v17147_v0  ;;  %v14363_v56 = vadd.f32 %v2039_v8, %v14164_v45  ;;  %v14366_v12 = vadd.f32 %v2139_v16, %v14167_v60  ;;  %v11465_v45 = vld [vmem:[%s17125_s1 + $0x1d0] sm:$0xff] }
 0x20c   :  { %10059 = vmatprep.subr.mxu0 %v17147_v0  ;;  %10104 = vmatprep.subr.mxu1 %v17147_v0  ;;  %v9543_v51 = vpop.f32.mrf.mxu0  ;;  %v9588_v5 = vpop.f32.mrf.mxu1  ;;  %v11466_v60 = vld [vmem:[%s17126_s2 + $0x1d0] sm:$0xff] }
 0x20d   :  { %9995 = vmatmul.mubr.msk.f32.gmra.mxu0 %vm90_vm0, %v13536_v18  ;;  %10040 = vmatmul.mubr.msk.f32.gmra.mxu1 %vm90_vm0, %v13536_v18  ;;  %v11467_v18 = vld [vmem:[%s17125_s1 + $0x1c8] sm:$0xff] }
 0x20e   :  { %10060 = vmatpush3.msra.mxu0 %v11465_v45  ;;  %10105 = vmatpush3.msra.mxu1 %v11466_v60  ;;  %v11475_v45 = vld [vmem:[%s17125_s1 + $0x1a8] sm:$0xff]  ;;  %v11478_v60 = vld [vmem:[%s17126_s2 + $0x1a0] sm:$0xff] }
 0x20f   :  { %10061 = vmatprep.subr.mxu0 %v17147_v0  ;;  %10106 = vmatprep.subr.mxu1 %v17147_v0  ;;  %v2044_v20 = vpop.f32.mrf.mxu0  ;;  %v2144_v3 = vpop.f32.mrf.mxu1 }
 0x210   :  { %10062 = vmatpush3.msra.mxu0 %v11467_v18  ;;  %10107 = vmatpush3.msra.mxu1 %v11468_v50  ;;  %v14389_v38 = vadd.f32 %v2044_v20, %v14190_v46  ;;  %v14392_v52 = vadd.f32 %v2144_v3, %v14193_v29  ;;  %v11469_v46 = vld [vmem:[%s17125_s1 + $0x1c0] sm:$0xff] }
 0x211   :  { %9997 = vmatprep.mubr.msk.f32.mxu0 %vm11639_vm1, %v17147_v0  ;;  %10042 = vmatprep.mubr.msk.f32.mxu1 %vm11639_vm1, %v17147_v0  ;;  %v9546_v55 = vpop.f32.mrf.mxu0  ;;  %v9591_v21 = vpop.f32.mrf.mxu1  ;;  %v11470_v29 = vld [vmem:[%s17126_s2 + $0x1c0] sm:$0xff] }
 0x212   :  { %10063 = vmatprep.subr.mxu0 %v17147_v0  ;;  %10108 = vmatprep.subr.mxu1 %v17147_v0 }
 0x213   :  { %9998 = vmatmul.mubr.msk.f32.gmra.mxu0 %vm90_vm0, %v13573_v39  ;;  %10043 = vmatmul.mubr.msk.f32.gmra.mxu1 %vm90_vm0, %v13573_v39 }
 0x214   :  { %10064 = vmatpush3.msra.mxu0 %v11469_v46  ;;  %10109 = vmatpush3.msra.mxu1 %v11470_v29  ;;  %v11482_v29 = vld [vmem:[%s17126_s2 + $0x190] sm:$0xff] }
 0x215   :  { %10065 = vmatprep.subr.mxu0 %v17147_v0  ;;  %10110 = vmatprep.subr.mxu1 %v17147_v0  ;;  %v2049_v17 = vpop.f32.mrf.mxu0  ;;  %v2149_v28 = vpop.f32.mrf.mxu1 }
 0x216   :  { %10000 = vmatprep.mubr.msk.f32.mxu0 %vm11639_vm1, %v17147_v0  ;;  %10045 = vmatprep.mubr.msk.f32.mxu1 %vm11639_vm1, %v17147_v0  ;;  %v14417_v39 = vadd.f32 %v2049_v17, %v14218_v7  ;;  %v14420_v33 = vadd.f32 %v2149_v28, %v14221_v44  ;;  %v11473_v7 = vld [vmem:[%s17125_s1 + $0x1b0] sm:$0xff] }
 0x217   :  { %10066 = vmatpush3.msra.mxu0 %v11471_v54  ;;  %10111 = vmatpush3.msra.mxu1 %v11472_v2  ;;  %v9549_v14 = vpop.f32.mrf.mxu0  ;;  %v9594_v13 = vpop.f32.mrf.mxu1  ;;  %v11474_v44 = vld [vmem:[%s17126_s2 + $0x1b0] sm:$0xff] }
 0x218   :  { %10001 = vmatmul.mubr.msk.f32.gmra.mxu0 %vm90_vm0, %v13604_v22  ;;  %10046 = vmatmul.mubr.msk.f32.gmra.mxu1 %vm90_vm0, %v13604_v22 }
 0x219   :  { %10067 = vmatprep.subr.mxu0 %v17147_v0  ;;  %10112 = vmatprep.subr.mxu1 %v17147_v0 }
 0x21a   :  { %10068 = vmatpush3.msra.mxu0 %v11473_v7  ;;  %10113 = vmatpush3.msra.mxu1 %v11474_v44  ;;  %v2054_v24 = vpop.f32.mrf.mxu0  ;;  %v2154_v8 = vpop.f32.mrf.mxu1 }
 0x21b   :  { %10069 = vmatprep.subr.mxu0 %v17147_v0  ;;  %10114 = vmatprep.subr.mxu1 %v17147_v0  ;;  %v14443_v22 = vadd.f32 %v2054_v24, %v14244_v4  ;;  %v14446_v16 = vadd.f32 %v2154_v8, %v14247_v62  ;;  %v11476_v4 = vld [vmem:[%s17126_s2 + $0x1a8] sm:$0xff]  ;;  %v11477_v62 = vld [vmem:[%s17125_s1 + $0x1a0] sm:$0xff] }
 0x21c   :  { %10003 = vmatprep.mubr.msk.f32.mxu0 %vm11639_vm1, %v17147_v0  ;;  %10048 = vmatprep.mubr.msk.f32.mxu1 %vm11639_vm1, %v17147_v0  ;;  %v9552_v51 = vpop.f32.mrf.mxu0  ;;  %v9597_v5 = vpop.f32.mrf.mxu1  ;;  %v11485_v24 = vld [vmem:[%s17125_s1 + $0x180] sm:$0xff] }
 0x21d   :  { %10070 = vmatpush3.msra.mxu0 %v11475_v45  ;;  %10115 = vmatpush3.msra.mxu1 %v11476_v4  ;;  %v11486_v5 = vld [vmem:[%s17126_s2 + $0x180] sm:$0xff]  ;;  %v14560_v45 = vld [vmem:[%s17127_s0 + $0x90] sm:$0xff] }
 0x21e   :  { %10004 = vmatmul.mubr.msk.f32.gmra.mxu0 %vm90_vm0, %v13641_v63  ;;  %10049 = vmatmul.mubr.msk.f32.gmra.mxu1 %vm90_vm0, %v13641_v63 }
 0x21f   :  { %10071 = vmatprep.subr.mxu0 %v17147_v0  ;;  %10116 = vmatprep.subr.mxu1 %v17147_v0 }
 0x220   :  { %10072 = vmatpush3.msra.mxu0 %v11477_v62  ;;  %10117 = vmatpush3.msra.mxu1 %v11478_v60  ;;  %v2059_v20 = vpop.f32.mrf.mxu0  ;;  %v2159_v3 = vpop.f32.mrf.mxu1 }
 0x221   :  { %10006 = vmatprep.mubr.msk.f32.mxu0 %vm11639_vm1, %v17147_v0  ;;  %10051 = vmatprep.mubr.msk.f32.mxu1 %vm11639_vm1, %v17147_v0  ;;  %v14475_v63 = vadd.f32 %v2059_v20, %v14276_v31  ;;  %v14478_v18 = vadd.f32 %v2159_v3, %v14279_v9  ;;  %v11479_v31 = vld [vmem:[%s17125_s1 + $0x198] sm:$0xff] }
 0x222   :  { %10073 = vmatprep.subr.mxu0 %v17147_v0  ;;  %10118 = vmatprep.subr.mxu1 %v17147_v0  ;;  %v9555_v50 = vpop.f32.mrf.mxu0  ;;  %v9600_v55 = vpop.f32.mrf.mxu1  ;;  %v11480_v9 = vld [vmem:[%s17126_s2 + $0x198] sm:$0xff] }
 0x223   :  { %10007 = vmatmul.mubr.msk.f32.gmra.mxu0 %vm90_vm0, %v13676_v6  ;;  %10052 = vmatmul.mubr.msk.f32.gmra.mxu1 %vm90_vm0, %v13676_v6  ;;  %v11481_v6 = vld [vmem:[%s17125_s1 + $0x190] sm:$0xff] }
 0x224   :  { %10074 = vmatpush3.msra.mxu0 %v11479_v31  ;;  %10119 = vmatpush3.msra.mxu1 %v11480_v9  ;;  %v11489_v31 = vld [vmem:[%s17125_s1 + $0xb0] sm:$0xff] }
 0x225   :  { %10075 = vmatprep.subr.mxu0 %v17147_v0  ;;  %10120 = vmatprep.subr.mxu1 %v17147_v0  ;;  %v2064_v21 = vpop.f32.mrf.mxu0  ;;  %v2164_v46 = vpop.f32.mrf.mxu1 }
 0x226   :  { %10076 = vmatpush3.msra.mxu0 %v11481_v6  ;;  %10121 = vmatpush3.msra.mxu1 %v11482_v29  ;;  %v14501_v17 = vadd.f32 %v2064_v21, %v14302_v10  ;;  %v14504_v28 = vadd.f32 %v2164_v46, %v14305_v34  ;;  %v11483_v10 = vld [vmem:[%s17125_s1 + $0x188] sm:$0xff]  ;;  %v14596_v29 = vld [vmem:[%s17127_s0 + $0x98] sm:$0xff] }
 0x227   :  { %10009 = vmatprep.mubr.msk.f32.mxu0 %vm11639_vm1, %v17147_v0  ;;  %10054 = vmatprep.mubr.msk.f32.mxu1 %vm11639_vm1, %v17147_v0  ;;  %v9558_v54 = vpop.f32.mrf.mxu0  ;;  %v9603_v2 = vpop.f32.mrf.mxu1  ;;  %v11484_v34 = vld [vmem:[%s17126_s2 + $0x188] sm:$0xff] }
 0x228   :  { %10010 = vmatmul.mubr.msk.f32.gmra.mxu0 %vm90_vm0, %v13707_v25  ;;  %10055 = vmatmul.mubr.msk.f32.gmra.mxu1 %vm90_vm0, %v13707_v25  ;;  %v14527_v25 = vld [vmem:[%s17127_s0 + $0x88] sm:$0xff] }
 0x229   :  { %10077 = vmatprep.subr.mxu0 %v17147_v0  ;;  %10122 = vmatprep.subr.mxu1 %v17147_v0  ;;  %v11491_v46 = vld [vmem:[%s17125_s1 + $0xa8] sm:$0xff] }
 0x22a   :  { %10078 = vmatpush3.msra.mxu0 %v11483_v10  ;;  %10123 = vmatpush3.msra.mxu1 %v11484_v34  ;;  %v2069_v14 = vpop.f32.mrf.mxu0  ;;  %v2169_v13 = vpop.f32.mrf.mxu1  ;;  %v11492_v6 = vld [vmem:[%s17126_s2 + $0xa8] sm:$0xff]  ;;  %v14626_v34 = vld [vmem:[%s17127_s0 + $0xa0] sm:$0xff] }
 0x22b   :  { %10079 = vmatprep.subr.mxu0 %v17147_v0  ;;  %10124 = vmatprep.subr.mxu1 %v17147_v0  ;;  %v14530_v7 = vadd.f32 %v2069_v14, %v14331_v61  ;;  %v14533_v44 = vadd.f32 %v2169_v13, %v14334_v37  ;;  %v11487_v61 = vld [vmem:[%s17125_s1 + $0xb8] sm:$0xff] }
 0x22c   :  { %10080 = vmatpush3.msra.mxu0 %v11485_v24  ;;  %10081 = vmatprep.mubr.msk.f32.mxu0 %vm11639_vm1, %v17147_v0  ;;  %v9561_v8 = vpop.f32.mrf.mxu0  ;;  %v9606_v51 = vpop.f32.mrf.mxu1  ;;  %v11488_v37 = vld [vmem:[%s17126_s2 + $0xb8] sm:$0xff] }
 0x22d   :  { %10125 = vmatpush3.msra.mxu1 %v11486_v5  ;;  %10126 = vmatprep.mubr.msk.f32.mxu1 %vm11639_vm1, %v17147_v0  ;;  %v11496_v24 = vld [vmem:[%s17126_s2 + $0x98] sm:$0xff]  ;;  %v11498_v5 = vld [vmem:[%s17126_s2 + $0x90] sm:$0xff] }
 0x22e   :  { %10082 = vmatmul.mubr.msk.f32.vlgmr.msra.gmra.mxu0 %vm90_vm0, %v14527_v25  ;;  %10127 = vmatmul.mubr.msk.f32.vlgmr.msra.gmra.mxu1 %vm90_vm0, %v14527_v25 }
 0x22f   :  { %10147 = vmatprep.subr.mxu0 %v17147_v0  ;;  %10192 = vmatprep.subr.mxu1 %v17147_v0 }
 0x230   :  { %10148 = vmatpush3.msra.mxu0 %v11487_v61  ;;  %10193 = vmatpush3.msra.mxu1 %v11488_v37  ;;  %v2281_v4 = vpop.f32.mrf.mxu0  ;;  %v2381_v62 = vpop.f32.mrf.mxu1 }
 0x231   :  { %10084 = vmatprep.mubr.msk.f32.mxu0 %vm11639_vm1, %v17147_v0  ;;  %10129 = vmatprep.mubr.msk.f32.mxu1 %vm11639_vm1, %v17147_v0  ;;  %v2415_v60 = vadd.f32 %v2281_v4, %v14363_v56  ;;  %v2422_v20 = vadd.f32 %v2381_v62, %v14366_v12  ;;  %v11490_v56 = vld [vmem:[%s17126_s2 + $0xb0] sm:$0xff]  ;;  %v14662_v62 = vld [vmem:[%s17127_s0 + $0xa8] sm:$0xff] }
 0x232   :  { %10149 = vmatprep.subr.mxu0 %v17147_v0  ;;  %10194 = vmatprep.subr.mxu1 %v17147_v0  ;;  %v9633_v3 = vpop.f32.mrf.mxu0  ;;  %v9678_v50 = vpop.f32.mrf.mxu1 }
 0x233   :  { %10085 = vmatmul.mubr.msk.f32.gmra.mxu0 %vm90_vm0, %v14560_v45  ;;  %10130 = vmatmul.mubr.msk.f32.gmra.mxu1 %vm90_vm0, %v14560_v45  ;;  %v2429_v55 = vmax.f32 %v2415_v60, %v2422_v20  ;;  %v11500_v3 = vld [vmem:[%s17126_s2 + $0x88] sm:$0xff]  ;;  %v11501_v50 = vld [vmem:[%s17125_s1 + $0x80] sm:$0xff] }
 0x234   :  { %10150 = vmatpush3.msra.mxu0 %v11489_v31  ;;  %10195 = vmatpush3.msra.mxu1 %v11490_v56  ;;  %v14696_v31 = vld [vmem:[%s17127_s0 + $0xb0] sm:$0xff] }
 0x235   :  { %10151 = vmatprep.subr.mxu0 %v17147_v0  ;;  %10196 = vmatprep.subr.mxu1 %v17147_v0  ;;  %v14585_v12 = vmax.f32 %v1352_v1, %v2429_v55  ;;  %v2286_v9 = vpop.f32.mrf.mxu0  ;;  %v2386_v21 = vpop.f32.mrf.mxu1  ;;  %v11502_v55 = vld [vmem:[%s17126_s2 + $0x80] sm:$0xff] }
 0x236   :  { %10152 = vmatpush3.msra.mxu0 %v11491_v46  ;;  %10197 = vmatpush3.msra.mxu1 %v11492_v6  ;;  %v2416_v15 = vadd.f32 %v2286_v9, %v14389_v38  ;;  %v2423_v27 = vadd.f32 %v2386_v21, %v14392_v52  ;;  %v11493_v38 = vld [vmem:[%s17125_s1 + $0xa0] sm:$0xff]  ;;  %v11503_v6 = vld [vmem:[%s17125_s1 + $0x78] sm:$0xff] }
 0x237   :  { %10087 = vmatprep.mubr.msk.f32.mxu0 %vm11639_vm1, %v17147_v0  ;;  %10132 = vmatprep.mubr.msk.f32.mxu1 %vm11639_vm1, %v17147_v0  ;;  %v9636_v1 = vpop.f32.mrf.mxu0  ;;  %v9681_v54 = vpop.f32.mrf.mxu1  ;;  %v11494_v52 = vld [vmem:[%s17126_s2 + $0xa0] sm:$0xff] }
 0x238   :  { %10153 = vmatprep.subr.mxu0 %v17147_v0  ;;  %10198 = vmatprep.subr.mxu1 %v17147_v0  ;;  %v2430_v2 = vmax.f32 %v2416_v15, %v2423_v27  ;;  %v11505_v54 = vld [vmem:[%s17125_s1 + $0x70] sm:$0xff] }
 0x239   :  { %10088 = vmatmul.mubr.msk.f32.gmra.mxu0 %vm90_vm0, %v14596_v29  ;;  %10133 = vmatmul.mubr.msk.f32.gmra.mxu1 %vm90_vm0, %v14596_v29 }
 0x23a   :  { %10154 = vmatpush3.msra.mxu0 %v11493_v38  ;;  %10199 = vmatpush3.msra.mxu1 %v11494_v52  ;;  %v14619_v10 = vmax.f32 %v1353_v30, %v2430_v2  ;;  %v11495_v30 = vld [vmem:[%s17125_s1 + $0x98] sm:$0xff]  ;;  %v11506_v2 = vld [vmem:[%s17126_s2 + $0x70] sm:$0xff] }
 0x23b   :  { %10155 = vmatprep.subr.mxu0 %v17147_v0  ;;  %10200 = vmatprep.subr.mxu1 %v17147_v0  ;;  %v2291_v14 = vpop.f32.mrf.mxu0  ;;  %v2391_v13 = vpop.f32.mrf.mxu1 }
 0x23c   :  { %10090 = vmatprep.mubr.msk.f32.mxu0 %vm11639_vm1, %v17147_v0  ;;  %10135 = vmatprep.mubr.msk.f32.mxu1 %vm11639_vm1, %v17147_v0  ;;  %v2417_v40 = vadd.f32 %v2291_v14, %v14417_v39  ;;  %v2424_v59 = vadd.f32 %v2391_v13, %v14420_v33  ;;  %v11497_v33 = vld [vmem:[%s17125_s1 + $0x90] sm:$0xff] }
 0x23d   :  { %10156 = vmatpush3.msra.mxu0 %v11495_v30  ;;  %10201 = vmatpush3.msra.mxu1 %v11496_v24  ;;  %v9639_v8 = vpop.f32.mrf.mxu0  ;;  %v9684_v51 = vpop.f32.mrf.mxu1  ;;  %v11509_v24 = vld [vmem:[%s17125_s1 + $0x60] sm:$0xff] }
 0x23e   :  { %10091 = vmatmul.mubr.msk.f32.gmra.mxu0 %vm90_vm0, %v14626_v34  ;;  %10136 = vmatmul.mubr.msk.f32.gmra.mxu1 %vm90_vm0, %v14626_v34  ;;  %v2431_v39 = vmax.f32 %v2417_v40, %v2424_v59  ;;  %v11512_v51 = vld [vmem:[%s17125_s1 + $0x58] sm:$0xff] }
 0x23f   :  { %10157 = vmatprep.subr.mxu0 %v17147_v0  ;;  %10202 = vmatprep.subr.mxu1 %v17147_v0 }
 0x240   :  { %10158 = vmatpush3.msra.mxu0 %v11497_v33  ;;  %10203 = vmatpush3.msra.mxu1 %v11498_v5  ;;  %v14655_v61 = vmax.f32 %v1354_v32, %v2431_v39  ;;  %v2296_v37 = vpop.f32.mrf.mxu0  ;;  %v2396_v4 = vpop.f32.mrf.mxu1  ;;  %v11499_v32 = vld [vmem:[%s17125_s1 + $0x88] sm:$0xff]  ;;  %v11513_v39 = vld [vmem:[%s17126_s2 + $0x58] sm:$0xff] }
 0x241   :  { %10159 = vmatprep.subr.mxu0 %v17147_v0  ;;  %10204 = vmatprep.subr.mxu1 %v17147_v0  ;;  %v2418_v60 = vadd.f32 %v2296_v37, %v14443_v22  ;;  %v2425_v20 = vadd.f32 %v2396_v4, %v14446_v16  ;;  %v11515_v37 = vld [vmem:[%s17125_s1 + $0x50] sm:$0xff] }
 0x242   :  { %10093 = vmatprep.mubr.msk.f32.mxu0 %vm11639_vm1, %v17147_v0  ;;  %10138 = vmatprep.mubr.msk.f32.mxu1 %vm11639_vm1, %v17147_v0  ;;  %v9642_v53 = vpop.f32.mrf.mxu0  ;;  %v9687_v36 = vpop.f32.mrf.mxu1  ;;  %v11516_v4 = vld [vmem:[%s17126_s2 + $0x50] sm:$0xff] }
 0x243   :  { %10160 = vmatpush3.msra.mxu0 %v11499_v32  ;;  %10205 = vmatpush3.msra.mxu1 %v11500_v3  ;;  %v2432_v22 = vmax.f32 %v2418_v60, %v2425_v20  ;;  %v11517_v53 = vld [vmem:[%s17125_s1 + $0x48] sm:$0xff] }
 0x244   :  { %10094 = vmatmul.mubr.msk.f32.gmra.mxu0 %vm90_vm0, %v14662_v62  ;;  %10139 = vmatmul.mubr.msk.f32.gmra.mxu1 %vm90_vm0, %v14662_v62  ;;  %v11518_v36 = vld [vmem:[%s17126_s2 + $0x48] sm:$0xff] }
 0x245   :  { %10161 = vmatprep.subr.mxu0 %v17147_v0  ;;  %10206 = vmatprep.subr.mxu1 %v17147_v0  ;;  %v14685_v16 = vmax.f32 %v1355_v48, %v2432_v22  ;;  %v11519_v22 = vld [vmem:[%s17127_s0 + $0x18] sm:$0xff] }
 0x246   :  { %10162 = vmatpush3.msra.mxu0 %v11501_v50  ;;  %10207 = vmatpush3.msra.mxu1 %v11502_v55  ;;  %v2301_v56 = vpop.f32.mrf.mxu0  ;;  %v2401_v9 = vpop.f32.mrf.mxu1  ;;  %v11520_v50 = vld [vmem:[%s17125_s1 + $0x40] sm:$0xff] }
 0x247   :  { %10096 = vmatprep.mubr.msk.f32.mxu0 %vm11639_vm1, %v17147_v0  ;;  %10141 = vmatprep.mubr.msk.f32.mxu1 %vm11639_vm1, %v17147_v0  ;;  %v2419_v43 = vadd.f32 %v2301_v56, %v14475_v63  ;;  %v2426_v49 = vadd.f32 %v2401_v9, %v14478_v18  ;;  %v11504_v63 = vld [vmem:[%s17126_s2 + $0x78] sm:$0xff]  ;;  %v11521_v55 = vld [vmem:[%s17126_s2 + $0x40] sm:$0xff] }
 0x248   :  { %10163 = vmatprep.subr.mxu0 %v17147_v0  ;;  %10208 = vmatprep.subr.mxu1 %v17147_v0  ;;  %v9645_v48 = vpop.f32.mrf.mxu0  ;;  %v9690_v21 = vpop.f32.mrf.mxu1  ;;  %v14721_v18 = vld [vmem:[%s17127_s0 + $0xb8] sm:$0xff] }
 0x249   :  { %10097 = vmatmul.mubr.msk.f32.gmra.mxu0 %vm90_vm0, %v14696_v31  ;;  %10142 = vmatmul.mubr.msk.f32.gmra.mxu1 %vm90_vm0, %v14696_v31  ;;  %v2433_v46 = vmax.f32 %v2419_v43, %v2426_v49  ;;  %v11522_v43 = vld [vmem:[%s17125_s1 + $0x38] sm:$0xff] }
 0x24a   :  { %10164 = vmatpush3.msra.mxu0 %v11503_v6  ;;  %10209 = vmatpush3.msra.mxu1 %v11504_v63  ;;  %v11523_v49 = vld [vmem:[%s17126_s2 + $0x38] sm:$0xff]  ;;  %v11525_v6 = vld [vmem:[%s17125_s1 + $0x30] sm:$0xff] }
 0x24b   :  { %10165 = vmatprep.subr.mxu0 %v17147_v0  ;;  %10210 = vmatprep.subr.mxu1 %v17147_v0  ;;  %v14726_v15 = vmax.f32 %v1356_v35, %v2433_v46  ;;  %v2306_v27 = vpop.f32.mrf.mxu0  ;;  %v2406_v1 = vpop.f32.mrf.mxu1  ;;  %v11524_v46 = vld [vmem:[%s17127_s0 + $0x20] sm:$0xff]  ;;  %v11526_v63 = vld [vmem:[%s17126_s2 + $0x30] sm:$0xff] }
 0x24c   :  { %10166 = vmatpush3.msra.mxu0 %v11505_v54  ;;  %10211 = vmatpush3.msra.mxu1 %v11506_v2  ;;  %v2420_v38 = vadd.f32 %v2306_v27, %v14501_v17  ;;  %v2427_v52 = vadd.f32 %v2406_v1, %v14504_v28  ;;  %v11507_v17 = vld [vmem:[%s17125_s1 + $0x68] sm:$0xff] }
 0x24d   :  { %10099 = vmatprep.mubr.msk.f32.mxu0 %vm11639_vm1, %v17147_v0  ;;  %10144 = vmatprep.mubr.msk.f32.mxu1 %vm11639_vm1, %v17147_v0  ;;  %v9648_v11 = vpop.f32.mrf.mxu0  ;;  %v9693_v19 = vpop.f32.mrf.mxu1  ;;  %v11508_v28 = vld [vmem:[%s17126_s2 + $0x68] sm:$0xff] }
 0x24e   :  { %10100 = vmatmul.mubr.msk.f32.gmra.mxu0 %vm90_vm0, %v14721_v18  ;;  %10145 = vmatmul.mubr.msk.f32.gmra.mxu1 %vm90_vm0, %v14721_v18  ;;  %v2434_v35 = vmax.f32 %v2420_v38, %v2427_v52  ;;  %v11527_v38 = vld [vmem:[%s17125_s1 + $0x28] sm:$0xff]  ;;  %v11530_v19 = vld [vmem:[%s17125_s1 + $0x20] sm:$0xff] }
 0x24f   :  { %10167 = vmatprep.subr.mxu0 %v17147_v0  ;;  %10212 = vmatprep.subr.mxu1 %v17147_v0  ;;  %v11528_v52 = vld [vmem:[%s17126_s2 + $0x28] sm:$0xff] }
 0x250   :  { %10168 = vmatpush3.msra.mxu0 %v11507_v17  ;;  %10213 = vmatpush3.msra.mxu1 %v11508_v28  ;;  %v14755_v14 = vmax.f32 %v1357_v47, %v2434_v35  ;;  %v2311_v13 = vpop.f32.mrf.mxu0  ;;  %v2411_v40 = vpop.f32.mrf.mxu1  ;;  %v11510_v47 = vld [vmem:[%s17126_s2 + $0x60] sm:$0xff]  ;;  %v11529_v11 = vld [vmem:[%s17127_s0 + $0x28] sm:$0xff] }
 0x251   :  { %10169 = vmatprep.subr.mxu0 %v17147_v0  ;;  %10214 = vmatprep.subr.mxu1 %v17147_v0  ;;  %v2421_v59 = vadd.f32 %v2311_v13, %v14530_v7  ;;  %v2428_v30 = vadd.f32 %v2411_v40, %v14533_v44  ;;  %v11511_v44 = vld [vmem:[%s17127_s0 + $0x8] sm:$0xff]  ;;  %v11531_v35 = vld [vmem:[%s17126_s2 + $0x20] sm:$0xff] }
 0x252   :  { %10170 = vmatpush3.msra.mxu0 %v11509_v24  ;;  %10171 = vmatprep.mubr.msk.f32.mxu0 %vm11639_vm1, %v17147_v0  ;;  %v9651_v23 = vpop.f32.mrf.mxu0  ;;  %v9696_v26 = vpop.f32.mrf.mxu1  ;;  %v11534_v24 = vld [vmem:[%s17126_s2 + $0x18] sm:$0xff] }
 0x253   :  { %10215 = vmatpush3.msra.mxu1 %v11510_v47  ;;  %10216 = vmatprep.mubr.msk.f32.mxu1 %vm11639_vm1, %v17147_v0  ;;  %v2435_v7 = vmax.f32 %v2421_v59, %v2428_v30  ;;  %v11532_v59 = vld [vmem:[%s17127_s0 + $0x30] sm:$0xff]  ;;  %v11533_v30 = vld [vmem:[%s17125_s1 + $0x18] sm:$0xff] }
 0x254   :  { %10172 = vmatmul.mubr.msk.f32.vlgmr.msra.gmra.mxu0 %vm90_vm0, %v11511_v44  ;;  %10217 = vmatmul.mubr.msk.f32.vlgmr.msra.gmra.mxu1 %vm90_vm0, %v11511_v44  ;;  %v11535_v47 = vld [vmem:[%s17125_s1 + $0x10] sm:$0xff] }
 0x255   :  { %10237 = vmatprep.subr.mxu0 %v17147_v0  ;;  %10282 = vmatprep.subr.mxu1 %v17147_v0  ;;  %v14781_v8 = vmax.f32 %v1358_v58, %v2435_v7  ;;  %v11514_v58 = vld [vmem:[%s17127_s0 + $0x10] sm:$0xff] }
 0x256   :  { %10238 = vmatpush3.msra.mxu0 %v11512_v51  ;;  %10283 = vmatpush3.msra.mxu1 %v11513_v39  ;;  %v14789_v33 = vpop.f32.mrf.mxu0  ;;  %v14791_v5 = vpop.f32.mrf.mxu1  ;;  %v11536_v7 = vld [vmem:[%s17126_s2 + $0x10] sm:$0xff]  ;;  %v11537_v39 = vld [vmem:[%s17125_s1 + $0x8] sm:$0xff] }
 0x257   :  { %10174 = vmatprep.mubr.msk.f32.mxu0 %vm11639_vm1, %v17147_v0  ;;  %10219 = vmatprep.mubr.msk.f32.mxu1 %vm11639_vm1, %v17147_v0 }
 0x258   :  { %10239 = vmatprep.subr.mxu0 %v17147_v0  ;;  %10284 = vmatprep.subr.mxu1 %v17147_v0  ;;  %v9723_v57 = vpop.f32.mrf.mxu0  ;;  %v9768_v41 = vpop.f32.mrf.mxu1 }
 0x259   :  { %10175 = vmatmul.mubr.msk.f32.gmra.mxu0 %vm90_vm0, %v11514_v58  ;;  %10220 = vmatmul.mubr.msk.f32.gmra.mxu1 %vm90_vm0, %v11514_v58  ;;  %v11538_v57 = vld [vmem:[%s17126_s2 + $0x8] sm:$0xff] }
 0x25a   :  { %10240 = vmatpush3.msra.mxu0 %v11515_v37  ;;  %10285 = vmatpush3.msra.mxu1 %v11516_v4 }
 0x25b   :  { %10241 = vmatprep.subr.mxu0 %v17147_v0  ;;  %10286 = vmatprep.subr.mxu1 %v17147_v0  ;;  %v14812_v60 = vpop.f32.mrf.mxu0  ;;  %v14814_v20 = vpop.f32.mrf.mxu1 }
 0x25c   :  { %10242 = vmatpush3.msra.mxu0 %v11517_v53  ;;  %10287 = vmatpush3.msra.mxu1 %v11518_v36  ;;  %v11540_v53 = vld [vmem:[%s17126_s2] sm:$0xff] }
 0x25d   :  { %10177 = vmatprep.mubr.msk.f32.mxu0 %vm11639_vm1, %v17147_v0  ;;  %10222 = vmatprep.mubr.msk.f32.mxu1 %vm11639_vm1, %v17147_v0  ;;  %v9726_v32 = vpop.f32.mrf.mxu0  ;;  %v9771_v3 = vpop.f32.mrf.mxu1  ;;  %v11541_v36 = vld [vmem:[%s17127_s0 + $0xc0] sm:$0xff] }
 0x25e   :  { %10243 = vmatprep.subr.mxu0 %v17147_v0  ;;  %10288 = vmatprep.subr.mxu1 %v17147_v0  ;;  %v11542_v32 = vld [vmem:[%s17125_s1 + $0x118] sm:$0xff] }
 0x25f   :  { %10178 = vmatmul.mubr.msk.f32.gmra.mxu0 %vm90_vm0, %v11519_v22  ;;  %10223 = vmatmul.mubr.msk.f32.gmra.mxu1 %vm90_vm0, %v11519_v22  ;;  %v11543_v3 = vld [vmem:[%s17126_s2 + $0x118] sm:$0xff] }
 0x260   :  { %10244 = vmatpush3.msra.mxu0 %v11520_v50  ;;  %10289 = vmatpush3.msra.mxu1 %v11521_v55 }
 0x261   :  { %10245 = vmatprep.subr.mxu0 %v17147_v0  ;;  %10290 = vmatprep.subr.mxu1 %v17147_v0  ;;  %v14841_v56 = vpop.f32.mrf.mxu0  ;;  %v14843_v9 = vpop.f32.mrf.mxu1 }
 0x262   :  { %10180 = vmatprep.mubr.msk.f32.mxu0 %vm11639_vm1, %v17147_v0  ;;  %10225 = vmatprep.mubr.msk.f32.mxu1 %vm11639_vm1, %v17147_v0 }
 0x263   :  { %10246 = vmatpush3.msra.mxu0 %v11522_v43  ;;  %10291 = vmatpush3.msra.mxu1 %v11523_v49  ;;  %v9729_v48 = vpop.f32.mrf.mxu0  ;;  %v9774_v21 = vpop.f32.mrf.mxu1 }
 0x264   :  { %10181 = vmatmul.mubr.msk.f32.gmra.mxu0 %vm90_vm0, %v11524_v46  ;;  %10226 = vmatmul.mubr.msk.f32.gmra.mxu1 %vm90_vm0, %v11524_v46  ;;  %v11544_v21 = vld [vmem:[%s17127_s0 + $0xc8] sm:$0xff] }
 0x265   :  { %10247 = vmatprep.subr.mxu0 %v17147_v0  ;;  %10292 = vmatprep.subr.mxu1 %v17147_v0 }
 0x266   :  { %10248 = vmatpush3.msra.mxu0 %v11525_v6  ;;  %10293 = vmatpush3.msra.mxu1 %v11526_v63  ;;  %v14868_v27 = vpop.f32.mrf.mxu0  ;;  %v14870_v1 = vpop.f32.mrf.mxu1  ;;  %v11547_v63 = vld [vmem:[%s17125_s1 + $0x108] sm:$0xff] }
 0x267   :  { %10249 = vmatprep.subr.mxu0 %v17147_v0  ;;  %10294 = vmatprep.subr.mxu1 %v17147_v0 }
 0x268   :  { %10183 = vmatprep.mubr.msk.f32.mxu0 %vm11639_vm1, %v17147_v0  ;;  %10228 = vmatprep.mubr.msk.f32.mxu1 %vm11639_vm1, %v17147_v0  ;;  %v9732_v54 = vpop.f32.mrf.mxu0  ;;  %v9777_v2 = vpop.f32.mrf.mxu1 }
 0x269   :  { %10250 = vmatpush3.msra.mxu0 %v11527_v38  ;;  %10295 = vmatpush3.msra.mxu1 %v11528_v52  ;;  %v11548_v54 = vld [vmem:[%s17126_s2 + $0x108] sm:$0xff] }
 0x26a   :  { %10184 = vmatmul.mubr.msk.f32.gmra.mxu0 %vm90_vm0, %v11529_v11  ;;  %10229 = vmatmul.mubr.msk.f32.gmra.mxu1 %vm90_vm0, %v11529_v11 }
 0x26b   :  { %10251 = vmatprep.subr.mxu0 %v17147_v0  ;;  %10296 = vmatprep.subr.mxu1 %v17147_v0 }
 0x26c   :  { %10252 = vmatpush3.msra.mxu0 %v11530_v19  ;;  %10297 = vmatpush3.msra.mxu1 %v11531_v35  ;;  %v14897_v17 = vpop.f32.mrf.mxu0  ;;  %v14899_v28 = vpop.f32.mrf.mxu1  ;;  %v11551_v19 = vld [vmem:[%s17126_s2 + $0x100] sm:$0xff] }
 0x26d   :  { %10186 = vmatprep.mubr.msk.f32.mxu0 %vm11639_vm1, %v17147_v0  ;;  %10231 = vmatprep.mubr.msk.f32.mxu1 %vm11639_vm1, %v17147_v0 }
 0x26e   :  { %10253 = vmatprep.subr.mxu0 %v17147_v0  ;;  %10298 = vmatprep.subr.mxu1 %v17147_v0  ;;  %v9735_v13 = vpop.f32.mrf.mxu0  ;;  %v9780_v40 = vpop.f32.mrf.mxu1 }
 0x26f   :  { %10187 = vmatmul.mubr.msk.f32.gmra.mxu0 %vm90_vm0, %v11532_v59  ;;  %10232 = vmatmul.mubr.msk.f32.gmra.mxu1 %vm90_vm0, %v11532_v59 }
 0x270   :  { %10254 = vmatpush3.msra.mxu0 %v11533_v30  ;;  %10299 = vmatpush3.msra.mxu1 %v11534_v24  ;;  %v11552_v30 = vld [vmem:[%s17125_s1 + $0xf8] sm:$0xff] }
 0x271   :  { %10255 = vmatprep.subr.mxu0 %v17147_v0  ;;  %10300 = vmatprep.subr.mxu1 %v17147_v0  ;;  %v14920_v23 = vpop.f32.mrf.mxu0  ;;  %v14922_v26 = vpop.f32.mrf.mxu1  ;;  %v11553_v24 = vld [vmem:[%s17126_s2 + $0xf8] sm:$0xff] }
 0x272   :  { %10256 = vmatpush3.msra.mxu0 %v11535_v47  ;;  %10301 = vmatpush3.msra.mxu1 %v11536_v7 }
 0x273   :  { %10189 = vmatprep.mubr.msk.f32.mxu0 %vm11639_vm1, %v17147_v0  ;;  %10234 = vmatprep.mubr.msk.f32.mxu1 %vm11639_vm1, %v17147_v0  ;;  %v9738_v44 = vpop.f32.mrf.mxu0  ;;  %v9783_v51 = vpop.f32.mrf.mxu1 }
 0x274   :  { %10190 = vmatmul.mubr.msk.f32.gmra.mxu0 %vm90_vm0, %v14314_v42  ;;  %10235 = vmatmul.mubr.msk.f32.gmra.mxu1 %vm90_vm0, %v14314_v42  ;;  %v11539_v42 = vld [vmem:[%s17125_s1] sm:$0xff]  ;;  %v11556_v44 = vld [vmem:[%s17126_s2 + $0xf0] sm:$0xff] }
 0x275   :  { %10257 = vmatprep.subr.mxu0 %v17147_v0  ;;  %10302 = vmatprep.subr.mxu1 %v17147_v0 }
 0x276   :  { %10258 = vmatpush3.msra.mxu0 %v11537_v39  ;;  %10303 = vmatpush3.msra.mxu1 %v11538_v57  ;;  %v14946_v41 = vpop.f32.mrf.mxu0  ;;  %v14948_v58 = vpop.f32.mrf.mxu1 }
 0x277   :  { %10259 = vmatprep.subr.mxu0 %v17147_v0  ;;  %10304 = vmatprep.subr.mxu1 %v17147_v0 }
 0x278   :  { %10260 = vmatpush3.msra.mxu0 %v11539_v42  ;;  %10261 = vmatprep.mubr.msk.f32.mxu0 %vm11639_vm1, %v17147_v0  ;;  %v9741_v37 = vpop.f32.mrf.mxu0  ;;  %v9786_v4 = vpop.f32.mrf.mxu1 }
 0x279   :  { %10305 = vmatpush3.msra.mxu1 %v11540_v53  ;;  %10306 = vmatprep.mubr.msk.f32.mxu1 %vm11639_vm1, %v17147_v0  ;;  %v11557_v53 = vld [vmem:[%s17125_s1 + $0xe8] sm:$0xff] }
 0x27a   :  { %10262 = vmatmul.mubr.msk.f32.vlgmr.msra.gmra.mxu0 %vm90_vm0, %v11541_v36  ;;  %10307 = vmatmul.mubr.msk.f32.vlgmr.msra.gmra.mxu1 %vm90_vm0, %v11541_v36  ;;  %v11560_v36 = vld [vmem:[%s17125_s1 + $0xe0] sm:$0xff] }
 0x27b   :  { %10327 = vmatprep.subr.mxu0 %v17147_v0  ;;  %10372 = vmatprep.subr.mxu1 %v17147_v0 }
 0x27c   :  { %10328 = vmatpush3.msra.mxu0 %v11542_v32  ;;  %10373 = vmatpush3.msra.mxu1 %v11543_v3  ;;  %v2730_v22 = vpop.f32.mrf.mxu0  ;;  %v2830_v50 = vpop.f32.mrf.mxu1  ;;  %v11561_v32 = vld [vmem:[%s17126_s2 + $0xe0] sm:$0xff] }
 0x27d   :  { %10264 = vmatprep.mubr.msk.f32.mxu0 %vm11639_vm1, %v17147_v0  ;;  %10309 = vmatprep.mubr.msk.f32.mxu1 %vm11639_vm1, %v17147_v0  ;;  %v14980_v55 = vadd.f32 %v2730_v22, %v14789_v33  ;;  %v14983_v43 = vadd.f32 %v2830_v50, %v14791_v5  ;;  %v11545_v33 = vld [vmem:[%s17125_s1 + $0x110] sm:$0xff] }
 0x27e   :  { %10329 = vmatprep.subr.mxu0 %v17147_v0  ;;  %10374 = vmatprep.subr.mxu1 %v17147_v0  ;;  %v9813_v49 = vpop.f32.mrf.mxu0  ;;  %v9858_v48 = vpop.f32.mrf.mxu1  ;;  %v11546_v5 = vld [vmem:[%s17126_s2 + $0x110] sm:$0xff] }
 0x27f   :  { %10265 = vmatmul.mubr.msk.f32.gmra.mxu0 %vm90_vm0, %v11544_v21  ;;  %10310 = vmatmul.mubr.msk.f32.gmra.mxu1 %vm90_vm0, %v11544_v21 }
 0x280   :  { %10330 = vmatpush3.msra.mxu0 %v11545_v33  ;;  %10375 = vmatpush3.msra.mxu1 %v11546_v5  ;;  %v11562_v33 = vld [vmem:[%s17127_s0 + $0xe8] sm:$0xff] }
 0x281   :  { %10331 = vmatprep.subr.mxu0 %v17147_v0  ;;  %10376 = vmatprep.subr.mxu1 %v17147_v0  ;;  %v2735_v46 = vpop.f32.mrf.mxu0  ;;  %v2835_v6 = vpop.f32.mrf.mxu1 }
 0x282   :  { %10332 = vmatpush3.msra.mxu0 %v11547_v63  ;;  %10377 = vmatpush3.msra.mxu1 %v11548_v54  ;;  %v15007_v2 = vadd.f32 %v2735_v46, %v14812_v60  ;;  %v15010_v38 = vadd.f32 %v2835_v6, %v14814_v20  ;;  %v11549_v60 = vld [vmem:[%s17127_s0 + $0xd0] sm:$0xff]  ;;  %v11550_v20 = vld [vmem:[%s17125_s1 + $0x100] sm:$0xff] }
 0x283   :  { %10267 = vmatprep.mubr.msk.f32.mxu0 %vm11639_vm1, %v17147_v0  ;;  %10312 = vmatprep.mubr.msk.f32.mxu1 %vm11639_vm1, %v17147_v0  ;;  %v9816_v52 = vpop.f32.mrf.mxu0  ;;  %v9861_v11 = vpop.f32.mrf.mxu1  ;;  %v11565_v6 = vld [vmem:[%s17125_s1 + $0xd0] sm:$0xff] }
 0x284   :  { %10333 = vmatprep.subr.mxu0 %v17147_v0  ;;  %10378 = vmatprep.subr.mxu1 %v17147_v0  ;;  %v11566_v63 = vld [vmem:[%s17126_s2 + $0xd0] sm:$0xff] }
 0x285   :  { %10268 = vmatmul.mubr.msk.f32.gmra.mxu0 %vm90_vm0, %v11549_v60  ;;  %10313 = vmatmul.mubr.msk.f32.gmra.mxu1 %vm90_vm0, %v11549_v60 }
 0x286   :  { %10334 = vmatpush3.msra.mxu0 %v11550_v20  ;;  %10379 = vmatpush3.msra.mxu1 %v11551_v19  ;;  %v11567_v20 = vld [vmem:[%s17127_s0 + $0xf0] sm:$0xff] }
 0x287   :  { %10335 = vmatprep.subr.mxu0 %v17147_v0  ;;  %10380 = vmatprep.subr.mxu1 %v17147_v0  ;;  %v2740_v35 = vpop.f32.mrf.mxu0  ;;  %v2840_v13 = vpop.f32.mrf.mxu1 }
 0x288   :  { %10270 = vmatprep.mubr.msk.f32.mxu0 %vm11639_vm1, %v17147_v0  ;;  %10315 = vmatprep.mubr.msk.f32.mxu1 %vm11639_vm1, %v17147_v0  ;;  %v15036_v40 = vadd.f32 %v2740_v35, %v14841_v56  ;;  %v15039_v59 = vadd.f32 %v2840_v13, %v14843_v9  ;;  %v11554_v56 = vld [vmem:[%s17127_s0 + $0xd8] sm:$0xff]  ;;  %v11555_v9 = vld [vmem:[%s17125_s1 + $0xf0] sm:$0xff] }
 0x289   :  { %10336 = vmatpush3.msra.mxu0 %v11552_v30  ;;  %10381 = vmatpush3.msra.mxu1 %v11553_v24  ;;  %v9819_v47 = vpop.f32.mrf.mxu0  ;;  %v9864_v7 = vpop.f32.mrf.mxu1  ;;  %v11570_v24 = vld [vmem:[%s17125_s1 + $0xc0] sm:$0xff] }
 0x28a   :  { %10271 = vmatmul.mubr.msk.f32.gmra.mxu0 %vm90_vm0, %v11554_v56  ;;  %10316 = vmatmul.mubr.msk.f32.gmra.mxu1 %vm90_vm0, %v11554_v56  ;;  %v11571_v56 = vld [vmem:[%s17126_s2 + $0xc0] sm:$0xff] }
 0x28b   :  { %10337 = vmatprep.subr.mxu0 %v17147_v0  ;;  %10382 = vmatprep.subr.mxu1 %v17147_v0 }
 0x28c   :  { %10338 = vmatpush3.msra.mxu0 %v11555_v9  ;;  %10383 = vmatpush3.msra.mxu1 %v11556_v44  ;;  %v2745_v51 = vpop.f32.mrf.mxu0  ;;  %v2845_v39 = vpop.f32.mrf.mxu1  ;;  %v11574_v9 = vld [vmem:[%s17126_s2 + $0x178] sm:$0xff] }
 0x28d   :  { %10339 = vmatprep.subr.mxu0 %v17147_v0  ;;  %10384 = vmatprep.subr.mxu1 %v17147_v0  ;;  %v15063_v57 = vadd.f32 %v2745_v51, %v14868_v27  ;;  %v15066_v42 = vadd.f32 %v2845_v39, %v14870_v1  ;;  %v11558_v27 = vld [vmem:[%s17126_s2 + $0xe8] sm:$0xff]  ;;  %v11559_v1 = vld [vmem:[%s17127_s0 + $0xe0] sm:$0xff] }
 0x28e   :  { %10273 = vmatprep.mubr.msk.f32.mxu0 %vm11639_vm1, %v17147_v0  ;;  %10318 = vmatprep.mubr.msk.f32.mxu1 %vm11639_vm1, %v17147_v0  ;;  %v9822_v37 = vpop.f32.mrf.mxu0  ;;  %v9867_v4 = vpop.f32.mrf.mxu1 }
 0x28f   :  { %10340 = vmatpush3.msra.mxu0 %v11557_v53  ;;  %10385 = vmatpush3.msra.mxu1 %v11558_v27  ;;  %v11575_v27 = vld [vmem:[%s17127_s0 + $0x50] sm:$0xff] }
 0x290   :  { %10274 = vmatmul.mubr.msk.f32.gmra.mxu0 %vm90_vm0, %v11559_v1  ;;  %10319 = vmatmul.mubr.msk.f32.gmra.mxu1 %vm90_vm0, %v11559_v1 }
 0x291   :  { %10341 = vmatprep.subr.mxu0 %v17147_v0  ;;  %10386 = vmatprep.subr.mxu1 %v17147_v0 }
 0x292   :  { %10342 = vmatpush3.msra.mxu0 %v11560_v36  ;;  %10387 = vmatpush3.msra.mxu1 %v11561_v32  ;;  %v2750_v3 = vpop.f32.mrf.mxu0  ;;  %v2850_v22 = vpop.f32.mrf.mxu1  ;;  %v11578_v32 = vld [vmem:[%s17125_s1 + $0x168] sm:$0xff] }
 0x293   :  { %10276 = vmatprep.mubr.msk.f32.mxu0 %vm11639_vm1, %v17147_v0  ;;  %10321 = vmatprep.mubr.msk.f32.mxu1 %vm11639_vm1, %v17147_v0  ;;  %v15096_v50 = vadd.f32 %v2750_v3, %v14897_v17  ;;  %v15099_v49 = vadd.f32 %v2850_v22, %v14899_v28  ;;  %v11563_v17 = vld [vmem:[%s17125_s1 + $0xd8] sm:$0xff]  ;;  %v11579_v3 = vld [vmem:[%s17126_s2 + $0x168] sm:$0xff] }
 0x294   :  { %10343 = vmatprep.subr.mxu0 %v17147_v0  ;;  %10388 = vmatprep.subr.mxu1 %v17147_v0  ;;  %v9825_v48 = vpop.f32.mrf.mxu0  ;;  %v9870_v21 = vpop.f32.mrf.mxu1  ;;  %v11564_v28 = vld [vmem:[%s17126_s2 + $0xd8] sm:$0xff] }
 0x295   :  { %10277 = vmatmul.mubr.msk.f32.gmra.mxu0 %vm90_vm0, %v11562_v33  ;;  %10322 = vmatmul.mubr.msk.f32.gmra.mxu1 %vm90_vm0, %v11562_v33 }
 0x296   :  { %10344 = vmatpush3.msra.mxu0 %v11563_v17  ;;  %10389 = vmatpush3.msra.mxu1 %v11564_v28  ;;  %v11582_v17 = vld [vmem:[%s17126_s2 + $0x160] sm:$0xff] }
 0x297   :  { %10345 = vmatprep.subr.mxu0 %v17147_v0  ;;  %10390 = vmatprep.subr.mxu1 %v17147_v0  ;;  %v2755_v5 = vpop.f32.mrf.mxu0  ;;  %v2855_v46 = vpop.f32.mrf.mxu1 }
 0x298   :  { %10346 = vmatpush3.msra.mxu0 %v11565_v6  ;;  %10391 = vmatpush3.msra.mxu1 %v11566_v63  ;;  %v15123_v54 = vadd.f32 %v2755_v5, %v14920_v23  ;;  %v15126_v52 = vadd.f32 %v2855_v46, %v14922_v26  ;;  %v11568_v23 = vld [vmem:[%s17125_s1 + $0xc8] sm:$0xff]  ;;  %v11583_v63 = vld [vmem:[%s17125_s1 + $0x158] sm:$0xff] }
 0x299   :  { %10279 = vmatprep.mubr.msk.f32.mxu0 %vm11639_vm1, %v17147_v0  ;;  %10324 = vmatprep.mubr.msk.f32.mxu1 %vm11639_vm1, %v17147_v0  ;;  %v9828_v11 = vpop.f32.mrf.mxu0  ;;  %v9873_v60 = vpop.f32.mrf.mxu1  ;;  %v11569_v26 = vld [vmem:[%s17126_s2 + $0xc8] sm:$0xff] }
 0x29a   :  { %10280 = vmatmul.mubr.msk.f32.gmra.mxu0 %vm90_vm0, %v11567_v20  ;;  %10325 = vmatmul.mubr.msk.f32.gmra.mxu1 %vm90_vm0, %v11567_v20  ;;  %v11584_v11 = vld [vmem:[%s17126_s2 + $0x158] sm:$0xff] }
 0x29b   :  { %10347 = vmatprep.subr.mxu0 %v17147_v0  ;;  %10392 = vmatprep.subr.mxu1 %v17147_v0 }
 0x29c   :  { %10348 = vmatpush3.msra.mxu0 %v11568_v23  ;;  %10393 = vmatpush3.msra.mxu1 %v11569_v26  ;;  %v2760_v19 = vpop.f32.mrf.mxu0  ;;  %v2860_v35 = vpop.f32.mrf.mxu1  ;;  %v11587_v23 = vld [vmem:[%s17126_s2 + $0x150] sm:$0xff] }
 0x29d   :  { %10349 = vmatprep.subr.mxu0 %v17147_v0  ;;  %10394 = vmatprep.subr.mxu1 %v17147_v0  ;;  %v15148_v13 = vadd.f32 %v2760_v19, %v14946_v41  ;;  %v15151_v30 = vadd.f32 %v2860_v35, %v14948_v58  ;;  %v11572_v41 = vld [vmem:[%s17127_s0 + $0x48] sm:$0xff]  ;;  %v11573_v58 = vld [vmem:[%s17125_s1 + $0x178] sm:$0xff] }
 0x29e   :  { %10350 = vmatpush3.msra.mxu0 %v11570_v24  ;;  %10351 = vmatprep.mubr.msk.f32.mxu0 %vm11639_vm1, %v17147_v0  ;;  %v9831_v47 = vpop.f32.mrf.mxu0  ;;  %v9876_v7 = vpop.f32.mrf.mxu1 }
 0x29f   :  { %10395 = vmatpush3.msra.mxu1 %v11571_v56  ;;  %10396 = vmatprep.mubr.msk.f32.mxu1 %vm11639_vm1, %v17147_v0  ;;  %v11588_v56 = vld [vmem:[%s17125_s1 + $0x148] sm:$0xff] }
 0x2a0   :  { %10352 = vmatmul.mubr.msk.f32.vlgmr.msra.gmra.mxu0 %vm90_vm0, %v11572_v41  ;;  %10397 = vmatmul.mubr.msk.f32.vlgmr.msra.gmra.mxu1 %vm90_vm0, %v11572_v41  ;;  %v11591_v41 = vld [vmem:[%s17125_s1 + $0x140] sm:$0xff] }
 0x2a1   :  { %10417 = vmatprep.subr.mxu0 %v17147_v0  ;;  %10462 = vmatprep.subr.mxu1 %v17147_v0 }
 0x2a2   :  { %10418 = vmatpush3.msra.mxu0 %v11573_v58  ;;  %10463 = vmatpush3.msra.mxu1 %v11574_v9  ;;  %v2930_v44 = vpop.f32.mrf.mxu0  ;;  %v3030_v51 = vpop.f32.mrf.mxu1  ;;  %v11592_v58 = vld [vmem:[%s17126_s2 + $0x140] sm:$0xff] }
 0x2a3   :  { %10354 = vmatprep.mubr.msk.f32.mxu0 %vm11639_vm1, %v17147_v0  ;;  %10399 = vmatprep.mubr.msk.f32.mxu1 %vm11639_vm1, %v17147_v0  ;;  %v15181_v39 = vadd.f32 %v2930_v44, %v14980_v55  ;;  %v15184_v37 = vadd.f32 %v3030_v51, %v14983_v43  ;;  %v11576_v55 = vld [vmem:[%s17125_s1 + $0x170] sm:$0xff] }
 0x2a4   :  { %10419 = vmatprep.subr.mxu0 %v17147_v0  ;;  %10464 = vmatprep.subr.mxu1 %v17147_v0  ;;  %v9903_v4 = vpop.f32.mrf.mxu0  ;;  %v9948_v53 = vpop.f32.mrf.mxu1  ;;  %v11577_v43 = vld [vmem:[%s17126_s2 + $0x170] sm:$0xff] }
 0x2a5   :  { %10355 = vmatmul.mubr.msk.f32.gmra.mxu0 %vm90_vm0, %v11575_v27  ;;  %10400 = vmatmul.mubr.msk.f32.gmra.mxu1 %vm90_vm0, %v11575_v27 }
 0x2a6   :  { %10420 = vmatpush3.msra.mxu0 %v11576_v55  ;;  %10465 = vmatpush3.msra.mxu1 %v11577_v43  ;;  %v11593_v55 = vld [vmem:[%s17127_s0 + $0x70] sm:$0xff] }
 0x2a7   :  { %10421 = vmatprep.subr.mxu0 %v17147_v0  ;;  %10466 = vmatprep.subr.mxu1 %v17147_v0  ;;  %v2935_v1 = vpop.f32.mrf.mxu0  ;;  %v3035_v36 = vpop.f32.mrf.mxu1 }
 0x2a8   :  { %10422 = vmatpush3.msra.mxu0 %v11578_v32  ;;  %10467 = vmatpush3.msra.mxu1 %v11579_v3  ;;  %v15208_v22 = vadd.f32 %v2935_v1, %v15007_v2  ;;  %v15211_v48 = vadd.f32 %v3035_v36, %v15010_v38  ;;  %v11580_v2 = vld [vmem:[%s17127_s0 + $0x58] sm:$0xff]  ;;  %v11581_v38 = vld [vmem:[%s17125_s1 + $0x160] sm:$0xff]  ;;  %v11596_v36 = vld [vmem:[%s17125_s1 + $0x130] sm:$0xff] }
 0x2a9   :  { %10357 = vmatprep.mubr.msk.f32.mxu0 %vm11639_vm1, %v17147_v0  ;;  %10402 = vmatprep.mubr.msk.f32.mxu1 %vm11639_vm1, %v17147_v0  ;;  %v9906_v21 = vpop.f32.mrf.mxu0  ;;  %v9951_v33 = vpop.f32.mrf.mxu1  ;;  %v11597_v32 = vld [vmem:[%s17126_s2 + $0x130] sm:$0xff] }
 0x2aa   :  { %10423 = vmatprep.subr.mxu0 %v17147_v0  ;;  %10468 = vmatprep.subr.mxu1 %v17147_v0 }
 0x2ab   :  { %10358 = vmatmul.mubr.msk.f32.gmra.mxu0 %vm90_vm0, %v11580_v2  ;;  %10403 = vmatmul.mubr.msk.f32.gmra.mxu1 %vm90_vm0, %v11580_v2 }
 0x2ac   :  { %10424 = vmatpush3.msra.mxu0 %v11581_v38  ;;  %10469 = vmatpush3.msra.mxu1 %v11582_v17  ;;  %v11598_v38 = vld [vmem:[%s17127_s0 + $0x78] sm:$0xff] }
 0x2ad   :  { %10425 = vmatprep.subr.mxu0 %v17147_v0  ;;  %10470 = vmatprep.subr.mxu1 %v17147_v0  ;;  %v2940_v28 = vpop.f32.mrf.mxu0  ;;  %v3040_v5 = vpop.f32.mrf.mxu1 }
 0x2ae   :  { %10360 = vmatprep.mubr.msk.f32.mxu0 %vm11639_vm1, %v17147_v0  ;;  %10405 = vmatprep.mubr.msk.f32.mxu1 %vm11639_vm1, %v17147_v0  ;;  %v15237_v46 = vadd.f32 %v2940_v28, %v15036_v40  ;;  %v15240_v6 = vadd.f32 %v3040_v5, %v15039_v59  ;;  %v11585_v40 = vld [vmem:[%s17127_s0 + $0x60] sm:$0xff]  ;;  %v11586_v59 = vld [vmem:[%s17125_s1 + $0x150] sm:$0xff] }
 0x2af   :  { %10426 = vmatpush3.msra.mxu0 %v11583_v63  ;;  %10471 = vmatpush3.msra.mxu1 %v11584_v11  ;;  %v9909_v60 = vpop.f32.mrf.mxu0  ;;  %v9954_v20 = vpop.f32.mrf.mxu1  ;;  %v11601_v11 = vld [vmem:[%s17125_s1 + $0x120] sm:$0xff] }
 0x2b0   :  { %10361 = vmatmul.mubr.msk.f32.gmra.mxu0 %vm90_vm0, %v11585_v40  ;;  %10406 = vmatmul.mubr.msk.f32.gmra.mxu1 %vm90_vm0, %v11585_v40  ;;  %v11602_v40 = vld [vmem:[%s17126_s2 + $0x120] sm:$0xff] }
 0x2b1   :  { %10427 = vmatprep.subr.mxu0 %v17147_v0  ;;  %10472 = vmatprep.subr.mxu1 %v17147_v0 }
 0x2b2   :  { %10428 = vmatpush3.msra.mxu0 %v11586_v59  ;;  %10473 = vmatpush3.msra.mxu1 %v11587_v23  ;;  %v2945_v26 = vpop.f32.mrf.mxu0  ;;  %v3045_v19 = vpop.f32.mrf.mxu1 }
 0x2b3   :  { %10429 = vmatprep.subr.mxu0 %v17147_v0  ;;  %10474 = vmatprep.subr.mxu1 %v17147_v0  ;;  %v15264_v35 = vadd.f32 %v2945_v26, %v15063_v57  ;;  %v15267_v24 = vadd.f32 %v3045_v19, %v15066_v42  ;;  %v11589_v57 = vld [vmem:[%s17126_s2 + $0x148] sm:$0xff] }
 0x2b4   :  { %10363 = vmatprep.mubr.msk.f32.mxu0 %vm11639_vm1, %v17147_v0  ;;  %10408 = vmatprep.mubr.msk.f32.mxu1 %vm11639_vm1, %v17147_v0  ;;  %v9912_v47 = vpop.f32.mrf.mxu0  ;;  %v9957_v7 = vpop.f32.mrf.mxu1  ;;  %v11590_v42 = vld [vmem:[%s17127_s0 + $0x68] sm:$0xff] }
 0x2b5   :  { %10430 = vmatpush3.msra.mxu0 %v11588_v56  ;;  %10475 = vmatpush3.msra.mxu1 %v11589_v57  ;;  %v11608_v57 = vld [vmem:[%s17126_s2 + $0x1c8] sm:$0xff] }
 0x2b6   :  { %10364 = vmatmul.mubr.msk.f32.gmra.mxu0 %vm90_vm0, %v11590_v42  ;;  %10409 = vmatmul.mubr.msk.f32.gmra.mxu1 %vm90_vm0, %v11590_v42 }
 0x2b7   :  { %10431 = vmatprep.subr.mxu0 %v17147_v0  ;;  %10476 = vmatprep.subr.mxu1 %v17147_v0 }
 0x2b8   :  { %10432 = vmatpush3.msra.mxu0 %v11591_v41  ;;  %10477 = vmatpush3.msra.mxu1 %v11592_v58  ;;  %v2950_v9 = vpop.f32.mrf.mxu0  ;;  %v3050_v44 = vpop.f32.mrf.mxu1 }
 0x2b9   :  { %10366 = vmatprep.mubr.msk.f32.mxu0 %vm11639_vm1, %v17147_v0  ;;  %10411 = vmatprep.mubr.msk.f32.mxu1 %vm11639_vm1, %v17147_v0  ;;  %v15297_v51 = vadd.f32 %v2950_v9, %v15096_v50  ;;  %v15300_v4 = vadd.f32 %v3050_v44, %v15099_v49  ;;  %v11594_v50 = vld [vmem:[%s17125_s1 + $0x138] sm:$0xff] }
 0x2ba   :  { %10433 = vmatprep.subr.mxu0 %v17147_v0  ;;  %10478 = vmatprep.subr.mxu1 %v17147_v0  ;;  %v9915_v53 = vpop.f32.mrf.mxu0  ;;  %v9960_v27 = vpop.f32.mrf.mxu1  ;;  %v11595_v49 = vld [vmem:[%s17126_s2 + $0x138] sm:$0xff] }
 0x2bb   :  { %10367 = vmatmul.mubr.msk.f32.gmra.mxu0 %vm90_vm0, %v11593_v55  ;;  %10412 = vmatmul.mubr.msk.f32.gmra.mxu1 %vm90_vm0, %v11593_v55  ;;  %v11611_v55 = vld [vmem:[%s17125_s1 + $0x1b8] sm:$0xff] }
 0x2bc   :  { %10434 = vmatpush3.msra.mxu0 %v11594_v50  ;;  %10479 = vmatpush3.msra.mxu1 %v11595_v49  ;;  %v11612_v50 = vld [vmem:[%s17126_s2 + $0x1b8] sm:$0xff] }
 0x2bd   :  { %10435 = vmatprep.subr.mxu0 %v17147_v0  ;;  %10480 = vmatprep.subr.mxu1 %v17147_v0  ;;  %v2955_v43 = vpop.f32.mrf.mxu0  ;;  %v3055_v1 = vpop.f32.mrf.mxu1 }
 0x2be   :  { %10436 = vmatpush3.msra.mxu0 %v11596_v36  ;;  %10481 = vmatpush3.msra.mxu1 %v11597_v32  ;;  %v15324_v3 = vadd.f32 %v2955_v43, %v15123_v54  ;;  %v15327_v21 = vadd.f32 %v3055_v1, %v15126_v52  ;;  %v11599_v54 = vld [vmem:[%s17125_s1 + $0x128] sm:$0xff] }
 0x2bf   :  { %10369 = vmatprep.mubr.msk.f32.mxu0 %vm11639_vm1, %v17147_v0  ;;  %10414 = vmatprep.mubr.msk.f32.mxu1 %vm11639_vm1, %v17147_v0  ;;  %v9918_v33 = vpop.f32.mrf.mxu0  ;;  %v9963_v2 = vpop.f32.mrf.mxu1  ;;  %v11600_v52 = vld [vmem:[%s17126_s2 + $0x128] sm:$0xff] }
 0x2c0   :  { %10370 = vmatmul.mubr.msk.f32.gmra.mxu0 %vm90_vm0, %v11598_v38  ;;  %10415 = vmatmul.mubr.msk.f32.gmra.mxu1 %vm90_vm0, %v11598_v38  ;;  %v11615_v38 = vld [vmem:[%s17125_s1 + $0x1a8] sm:$0xff] }
 0x2c1   :  { %10437 = vmatprep.subr.mxu0 %v17147_v0  ;;  %10482 = vmatprep.subr.mxu1 %v17147_v0 }
 0x2c2   :  { %10438 = vmatpush3.msra.mxu0 %v11599_v54  ;;  %10483 = vmatpush3.msra.mxu1 %v11600_v52  ;;  %v2960_v17 = vpop.f32.mrf.mxu0  ;;  %v3060_v28 = vpop.f32.mrf.mxu1  ;;  %v11618_v54 = vld [vmem:[%s17126_s2 + $0x1a0] sm:$0xff] }
 0x2c3   :  { %10439 = vmatprep.subr.mxu0 %v17147_v0  ;;  %10484 = vmatprep.subr.mxu1 %v17147_v0  ;;  %v15349_v5 = vadd.f32 %v2960_v17, %v15148_v13  ;;  %v15352_v63 = vadd.f32 %v3060_v28, %v15151_v30  ;;  %v11603_v13 = vld [vmem:[%s17125_s1 + $0x1d8] sm:$0xff] }
 0x2c4   :  { %10440 = vmatpush3.msra.mxu0 %v11601_v11  ;;  %10441 = vmatprep.mubr.msk.f32.mxu0 %vm11639_vm1, %v17147_v0  ;;  %v9921_v60 = vpop.f32.mrf.mxu0  ;;  %v9966_v20 = vpop.f32.mrf.mxu1  ;;  %v11604_v30 = vld [vmem:[%s17126_s2 + $0x1d8] sm:$0xff] }
 0x2c5   :  { %10485 = vmatpush3.msra.mxu1 %v11602_v40  ;;  %10486 = vmatprep.mubr.msk.f32.mxu1 %vm11639_vm1, %v17147_v0 }
 0x2c6   :  { %10442 = vmatmul.mubr.msk.f32.vlgmr.msra.gmra.mxu0 %vm90_vm0, %v14527_v25  ;;  %10487 = vmatmul.mubr.msk.f32.vlgmr.msra.gmra.mxu1 %vm90_vm0, %v14527_v25 }
 0x2c7   :  { %10507 = vmatprep.subr.mxu0 %v17147_v0  ;;  %10552 = vmatprep.subr.mxu1 %v17147_v0 }
 0x2c8   :  { %10508 = vmatpush3.msra.mxu0 %v11603_v13  ;;  %10553 = vmatpush3.msra.mxu1 %v11604_v30  ;;  %v3144_v59 = vpop.f32.mrf.mxu0  ;;  %v3244_v23 = vpop.f32.mrf.mxu1  ;;  %v11622_v13 = vld [vmem:[%s17126_s2 + $0x190] sm:$0xff] }
 0x2c9   :  { %10444 = vmatprep.mubr.msk.f32.mxu0 %vm11639_vm1, %v17147_v0  ;;  %10489 = vmatprep.mubr.msk.f32.mxu1 %vm11639_vm1, %v17147_v0  ;;  %v15381_v25 = vadd.f32 %v3144_v59, %v15181_v39  ;;  %v15384_v26 = vadd.f32 %v3244_v23, %v15184_v37  ;;  %v11605_v39 = vld [vmem:[%s17125_s1 + $0x1d0] sm:$0xff] }
 0x2ca   :  { %10509 = vmatprep.subr.mxu0 %v17147_v0  ;;  %10554 = vmatprep.subr.mxu1 %v17147_v0  ;;  %v9993_v19 = vpop.f32.mrf.mxu0  ;;  %v10038_v47 = vpop.f32.mrf.mxu1  ;;  %v11606_v37 = vld [vmem:[%s17126_s2 + $0x1d0] sm:$0xff] }
 0x2cb   :  { %10445 = vmatmul.mubr.msk.f32.gmra.mxu0 %vm90_vm0, %v14560_v45  ;;  %10490 = vmatmul.mubr.msk.f32.gmra.mxu1 %vm90_vm0, %v14560_v45  ;;  %v11607_v45 = vld [vmem:[%s17125_s1 + $0x1c8] sm:$0xff] }
 0x2cc   :  { %10510 = vmatpush3.msra.mxu0 %v11605_v39  ;;  %10555 = vmatpush3.msra.mxu1 %v11606_v37 }
 0x2cd   :  { %10511 = vmatprep.subr.mxu0 %v17147_v0  ;;  %10556 = vmatprep.subr.mxu1 %v17147_v0  ;;  %v3149_v7 = vpop.f32.mrf.mxu0  ;;  %v3249_v56 = vpop.f32.mrf.mxu1 }
 0x2ce   :  { %10512 = vmatpush3.msra.mxu0 %v11607_v45  ;;  %10557 = vmatpush3.msra.mxu1 %v11608_v57  ;;  %v15407_v42 = vadd.f32 %v3149_v7, %v15208_v22  ;;  %v15410_v41 = vadd.f32 %v3249_v56, %v15211_v48  ;;  %v11609_v22 = vld [vmem:[%s17125_s1 + $0x1c0] sm:$0xff] }
 0x2cf   :  { %10447 = vmatprep.mubr.msk.f32.mxu0 %vm11639_vm1, %v17147_v0  ;;  %10492 = vmatprep.mubr.msk.f32.mxu1 %vm11639_vm1, %v17147_v0  ;;  %v9996_v58 = vpop.f32.mrf.mxu0  ;;  %v10041_v9 = vpop.f32.mrf.mxu1  ;;  %v11610_v48 = vld [vmem:[%s17126_s2 + $0x1c0] sm:$0xff] }
 0x2d0   :  { %10513 = vmatprep.subr.mxu0 %v17147_v0  ;;  %10558 = vmatprep.subr.mxu1 %v17147_v0  ;;  %v11625_v56 = vld [vmem:[%s17125_s1 + $0x180] sm:$0xff] }
 0x2d1   :  { %10448 = vmatmul.mubr.msk.f32.gmra.mxu0 %vm90_vm0, %v14596_v29  ;;  %10493 = vmatmul.mubr.msk.f32.gmra.mxu1 %vm90_vm0, %v14596_v29  ;;  %v11626_v58 = vld [vmem:[%s17126_s2 + $0x180] sm:$0xff] }
 0x2d2   :  { %10514 = vmatpush3.msra.mxu0 %v11609_v22  ;;  %10559 = vmatpush3.msra.mxu1 %v11610_v48 }
 0x2d3   :  { %10515 = vmatprep.subr.mxu0 %v17147_v0  ;;  %10560 = vmatprep.subr.mxu1 %v17147_v0  ;;  %v3154_v44 = vpop.f32.mrf.mxu0  ;;  %v3254_v53 = vpop.f32.mrf.mxu1 }
 0x2d4   :  { %10450 = vmatprep.mubr.msk.f32.mxu0 %vm11639_vm1, %v17147_v0  ;;  %10495 = vmatprep.mubr.msk.f32.mxu1 %vm11639_vm1, %v17147_v0  ;;  %v15435_v29 = vadd.f32 %v3154_v44, %v15237_v46  ;;  %v15438_v27 = vadd.f32 %v3254_v53, %v15240_v6  ;;  %v11613_v46 = vld [vmem:[%s17125_s1 + $0x1b0] sm:$0xff] }
 0x2d5   :  { %10516 = vmatpush3.msra.mxu0 %v11611_v55  ;;  %10561 = vmatpush3.msra.mxu1 %v11612_v50  ;;  %v9999_v49 = vpop.f32.mrf.mxu0  ;;  %v10044_v43 = vpop.f32.mrf.mxu1  ;;  %v11614_v6 = vld [vmem:[%s17126_s2 + $0x1b0] sm:$0xff] }
 0x2d6   :  { %10451 = vmatmul.mubr.msk.f32.gmra.mxu0 %vm90_vm0, %v14626_v34  ;;  %10496 = vmatmul.mubr.msk.f32.gmra.mxu1 %vm90_vm0, %v14626_v34 }
 0x2d7   :  { %10517 = vmatprep.subr.mxu0 %v17147_v0  ;;  %10562 = vmatprep.subr.mxu1 %v17147_v0 }
 0x2d8   :  { %10518 = vmatpush3.msra.mxu0 %v11613_v46  ;;  %10563 = vmatpush3.msra.mxu1 %v11614_v6  ;;  %v3159_v1 = vpop.f32.mrf.mxu0  ;;  %v3259_v36 = vpop.f32.mrf.mxu1  ;;  %v7555_v46 = vld [vmem:[%s17127_s0 + $0xe0] sm:$0xff] }
 0x2d9   :  { %10519 = vmatprep.subr.mxu0 %v17147_v0  ;;  %10564 = vmatprep.subr.mxu1 %v17147_v0  ;;  %v15461_v34 = vadd.f32 %v3159_v1, %v15264_v35  ;;  %v15464_v32 = vadd.f32 %v3259_v36, %v15267_v24  ;;  %v11616_v35 = vld [vmem:[%s17126_s2 + $0x1a8] sm:$0xff]  ;;  %v11617_v24 = vld [vmem:[%s17125_s1 + $0x1a0] sm:$0xff] }
 0x2da   :  { %10453 = vmatprep.mubr.msk.f32.mxu0 %vm11639_vm1, %v17147_v0  ;;  %10498 = vmatprep.mubr.msk.f32.mxu1 %vm11639_vm1, %v17147_v0  ;;  %v10002_v33 = vpop.f32.mrf.mxu0  ;;  %v10047_v2 = vpop.f32.mrf.mxu1 }
 0x2db   :  { %10520 = vmatpush3.msra.mxu0 %v11615_v38  ;;  %10565 = vmatpush3.msra.mxu1 %v11616_v35 }
 0x2dc   :  { %10454 = vmatmul.mubr.msk.f32.gmra.mxu0 %vm90_vm0, %v14662_v62  ;;  %10499 = vmatmul.mubr.msk.f32.gmra.mxu1 %vm90_vm0, %v14662_v62 }
 0x2dd   :  { %10521 = vmatprep.subr.mxu0 %v17147_v0  ;;  %10566 = vmatprep.subr.mxu1 %v17147_v0 }
 0x2de   :  { %10522 = vmatpush3.msra.mxu0 %v11617_v24  ;;  %10567 = vmatpush3.msra.mxu1 %v11618_v54  ;;  %v3164_v52 = vpop.f32.mrf.mxu0  ;;  %v3264_v17 = vpop.f32.mrf.mxu1 }
 0x2df   :  { %10456 = vmatprep.mubr.msk.f32.mxu0 %vm11639_vm1, %v17147_v0  ;;  %10501 = vmatprep.mubr.msk.f32.mxu1 %vm11639_vm1, %v17147_v0  ;;  %v15493_v62 = vadd.f32 %v3164_v52, %v15297_v51  ;;  %v15496_v28 = vadd.f32 %v3264_v17, %v15300_v4  ;;  %v11619_v51 = vld [vmem:[%s17125_s1 + $0x198] sm:$0xff] }
 0x2e0   :  { %10523 = vmatprep.subr.mxu0 %v17147_v0  ;;  %10568 = vmatprep.subr.mxu1 %v17147_v0  ;;  %v10005_v11 = vpop.f32.mrf.mxu0  ;;  %v10050_v60 = vpop.f32.mrf.mxu1  ;;  %v11620_v4 = vld [vmem:[%s17126_s2 + $0x198] sm:$0xff] }
 0x2e1   :  { %10457 = vmatmul.mubr.msk.f32.gmra.mxu0 %vm90_vm0, %v14696_v31  ;;  %10502 = vmatmul.mubr.msk.f32.gmra.mxu1 %vm90_vm0, %v14696_v31  ;;  %v11621_v31 = vld [vmem:[%s17125_s1 + $0x190] sm:$0xff] }
 0x2e2   :  { %10524 = vmatpush3.msra.mxu0 %v11619_v51  ;;  %10569 = vmatpush3.msra.mxu1 %v11620_v4 }
 0x2e3   :  { %10525 = vmatprep.subr.mxu0 %v17147_v0  ;;  %10570 = vmatprep.subr.mxu1 %v17147_v0  ;;  %v3169_v20 = vpop.f32.mrf.mxu0  ;;  %v3269_v40 = vpop.f32.mrf.mxu1 }
 0x2e4   :  { %10526 = vmatpush3.msra.mxu0 %v11621_v31  ;;  %10571 = vmatpush3.msra.mxu1 %v11622_v13  ;;  %v15519_v30 = vadd.f32 %v3169_v20, %v15324_v3  ;;  %v15522_v59 = vadd.f32 %v3269_v40, %v15327_v21  ;;  %v11623_v3 = vld [vmem:[%s17125_s1 + $0x188] sm:$0xff] }
 0x2e5   :  { %10459 = vmatprep.mubr.msk.f32.mxu0 %vm11639_vm1, %v17147_v0  ;;  %10504 = vmatprep.mubr.msk.f32.mxu1 %vm11639_vm1, %v17147_v0  ;;  %v10008_v23 = vpop.f32.mrf.mxu0  ;;  %v10053_v19 = vpop.f32.mrf.mxu1  ;;  %v11624_v21 = vld [vmem:[%s17126_s2 + $0x188] sm:$0xff] }
 0x2e6   :  { %10460 = vmatmul.mubr.msk.f32.gmra.mxu0 %vm90_vm0, %v14721_v18  ;;  %10505 = vmatmul.mubr.msk.f32.gmra.mxu1 %vm90_vm0, %v14721_v18  ;;  %v7552_v18 = vld [vmem:[%s17127_s0 + $0xc8] sm:$0xff] }
 0x2e7   :  { %10527 = vmatprep.subr.mxu0 %v17147_v0  ;;  %10572 = vmatprep.subr.mxu1 %v17147_v0 }
 0x2e8   :  { %10528 = vmatpush3.msra.mxu0 %v11623_v3  ;;  %10573 = vmatpush3.msra.mxu1 %v11624_v21  ;;  %v3174_v47 = vpop.f32.mrf.mxu0  ;;  %v3274_v39 = vpop.f32.mrf.mxu1 }
 0x2e9   :  { %10529 = vmatprep.subr.mxu0 %v17147_v0  ;;  %10574 = vmatprep.subr.mxu1 %v17147_v0  ;;  %v15546_v37 = vadd.f32 %v3174_v47, %v15349_v5  ;;  %v15549_v7 = vadd.f32 %v3274_v39, %v15352_v63  ;;  %v7553_v5 = vld [vmem:[%s17127_s0 + $0xd0] sm:$0xff] }
 0x2ea   :  { %10530 = vmatpush3.msra.mxu0 %v11625_v56  ;;  %10531 = vmatprep.mubr.msk.f32.mxu0 %vm11639_vm1, %v17147_v0  ;;  %v10011_v45 = vpop.f32.mrf.mxu0  ;;  %v10056_v57 = vpop.f32.mrf.mxu1 }
 0x2eb   :  { %10575 = vmatpush3.msra.mxu1 %v11626_v58  ;;  %10576 = vmatprep.mubr.msk.f32.mxu1 %vm11639_vm1, %v17147_v0 }
 0x2ec   :  { %10532 = vmatmul.mubr.msk.f32.vlgmr.msra.gmra.mxu0 %vm90_vm0, %v7552_v18  ;;  %10577 = vmatmul.mubr.msk.f32.vlgmr.msra.gmra.mxu1 %vm90_vm0, %v7552_v18 }
 0x2ed   :  { %10534 = vmatprep.mubr.msk.f32.mxu0 %vm11639_vm1, %v17147_v0  ;;  %10579 = vmatprep.mubr.msk.f32.mxu1 %vm11639_vm1, %v17147_v0 }
 0x2ee   :  { %v3386_v63 = vpop.f32.mrf.mxu0  ;;  %v3486_v9 = vpop.f32.mrf.mxu1  ;;  %10597 = vmatprep.subr.mxu0 %v17147_v0  ;;  %10626 = vmatprep.subr.mxu1 %v17147_v0 }
 0x2ef   :  { %v15573_v22 = vadd.f32 %v3386_v63, %v15381_v25  ;;  %v15576_v48 = vadd.f32 %v3486_v9, %v15384_v26  ;;  %v7554_v25 = vld [vmem:[%s17127_s0 + $0xd8] sm:$0xff] }
 0x2f0   :  { %10535 = vmatmul.mubr.msk.f32.gmra.mxu0 %vm90_vm0, %v7553_v5  ;;  %10580 = vmatmul.mubr.msk.f32.gmra.mxu1 %vm90_vm0, %v7553_v5  ;;  %v10083_v44 = vpop.f32.mrf.mxu0  ;;  %v10128_v53 = vpop.f32.mrf.mxu1 }
 0x2f1   :  { %10537 = vmatprep.mubr.msk.f32.mxu0 %vm11639_vm1, %v17147_v0  ;;  %10582 = vmatprep.mubr.msk.f32.mxu1 %vm11639_vm1, %v17147_v0 }
 0x2f3   :  { %v3391_v55 = vpop.f32.mrf.mxu0  ;;  %v3491_v50 = vpop.f32.mrf.mxu1 }
 0x2f4   :  { %10538 = vmatmul.mubr.msk.f32.gmra.mxu0 %vm90_vm0, %v7554_v25  ;;  %10583 = vmatmul.mubr.msk.f32.gmra.mxu1 %vm90_vm0, %v7554_v25  ;;  %v15592_v49 = vadd.f32 %v3391_v55, %v15407_v42  ;;  %v15595_v43 = vadd.f32 %v3491_v50, %v15410_v41  ;;  %v7556_v42 = vld [vmem:[%s17127_s0 + $0xe8] sm:$0xff] }
 0x2f5   :  { %10540 = vmatprep.mubr.msk.f32.mxu0 %vm11639_vm1, %v17147_v0  ;;  %10585 = vmatprep.mubr.msk.f32.mxu1 %vm11639_vm1, %v17147_v0  ;;  %v10086_v6 = vpop.f32.mrf.mxu0  ;;  %v10131_v1 = vpop.f32.mrf.mxu1  ;;  %v7579_v25 = vld [vmem:[%s17128_s4 + $0x68] sm:$0xff] }
 0x2f6   :  { %10598 = vmatpush3.msra.mxu0 %v7579_v25  ;;  %v7578_v6 = vld [vmem:[%s17128_s4 + $0x60] sm:$0xff] }
 0x2f7   :  { %10599 = vmatprep.subr.mxu0 %v17147_v0  ;;  %v7590_v1 = vld [vmem:[%s17129_s5 + $0x60] sm:$0xff] }
 0x2f8   :  { %10541 = vmatmul.mubr.msk.f32.gmra.mxu0 %vm90_vm0, %v7555_v46  ;;  %10586 = vmatmul.mubr.msk.f32.gmra.mxu1 %vm90_vm0, %v7555_v46 }
 0x2f9   :  { %10543 = vmatprep.mubr.msk.f32.mxu0 %vm11639_vm1, %v17147_v0  ;;  %10588 = vmatprep.mubr.msk.f32.mxu1 %vm11639_vm1, %v17147_v0  ;;  %v3396_v41 = vpop.f32.mrf.mxu0  ;;  %v3496_v33 = vpop.f32.mrf.mxu1 }
 0x2fa   :  { %v15616_v2 = vadd.f32 %v3396_v41, %v15435_v29  ;;  %v15619_v38 = vadd.f32 %v3496_v33, %v15438_v27  ;;  %v7557_v29 = vld [vmem:[%s17127_s0 + $0xf0] sm:$0xff]  ;;  %10600 = vmatpush3.msra.mxu0 %v7578_v6 }
 0x2fb   :  { %v10089_v35 = vpop.f32.mrf.mxu0  ;;  %v10134_v24 = vpop.f32.mrf.mxu1  ;;  %10601 = vmatprep.subr.mxu0 %v17147_v0 }
 0x2fc   :  { %10544 = vmatmul.mubr.msk.f32.gmra.mxu0 %vm90_vm0, %v7556_v42  ;;  %10589 = vmatmul.mubr.msk.f32.gmra.mxu1 %vm90_vm0, %v7556_v42  ;;  %v7577_v24 = vld [vmem:[%s17128_s4 + $0x58] sm:$0xff] }
 0x2fd   :  { %10546 = vmatprep.mubr.msk.f32.mxu0 %vm11639_vm1, %v17147_v0  ;;  %10591 = vmatprep.mubr.msk.f32.mxu1 %vm11639_vm1, %v17147_v0 }
 0x2fe   :  { %v3401_v27 = vpop.f32.mrf.mxu0  ;;  %v3501_v52 = vpop.f32.mrf.mxu1  ;;  %10602 = vmatpush3.msra.mxu0 %v7577_v24 }
 0x2ff   :  { %v15633_v17 = vadd.f32 %v3401_v27, %v15461_v34  ;;  %v15636_v11 = vadd.f32 %v3501_v52, %v15464_v32  ;;  %v7558_v34 = vld [vmem:[%s17127_s0 + $0xf8] sm:$0xff]  ;;  %10603 = vmatprep.subr.mxu0 %v17147_v0 }
 0x300   :  { %10547 = vmatmul.mubr.msk.f32.gmra.mxu0 %vm90_vm0, %v7557_v29  ;;  %10592 = vmatmul.mubr.msk.f32.gmra.mxu1 %vm90_vm0, %v7557_v29  ;;  %v10092_v60 = vpop.f32.mrf.mxu0  ;;  %v10137_v51 = vpop.f32.mrf.mxu1  ;;  %v7589_v29 = vld [vmem:[%s17129_s5 + $0x58] sm:$0xff] }
 0x301   :  { %10549 = vmatprep.mubr.msk.f32.mxu0 %vm11639_vm1, %v17147_v0  ;;  %10594 = vmatprep.mubr.msk.f32.mxu1 %vm11639_vm1, %v17147_v0 }
 0x304   :  { %10550 = vmatmul.mubr.msk.f32.gmra.mxu0 %vm90_vm0, %v7558_v34  ;;  %10595 = vmatmul.mubr.msk.f32.gmra.mxu1 %vm90_vm0, %v7558_v34  ;;  %v3406_v4 = vpop.f32.mrf.mxu0  ;;  %v3506_v20 = vpop.f32.mrf.mxu1  ;;  %v7576_v34 = vld [vmem:[%s17128_s4 + $0x50] sm:$0xff] }
 0x305   :  { %v15652_v40 = vadd.f32 %v3406_v4, %v15493_v62  ;;  %v15655_v31 = vadd.f32 %v3506_v20, %v15496_v28  ;;  %10611 = vmatprep.mubr.msk.f32.mxu0 %vm11639_vm1, %v17147_v0  ;;  %10640 = vmatprep.mubr.msk.f32.mxu1 %vm11639_vm1, %v17147_v0  ;;  %v7588_v4 = vld [vmem:[%s17129_s5 + $0x50] sm:$0xff] }
 0x306   :  { %v10095_v13 = vpop.f32.mrf.mxu0  ;;  %v10140_v23 = vpop.f32.mrf.mxu1  ;;  %10604 = vmatpush3.msra.mxu0 %v7576_v34 }
 0x307   :  { %10605 = vmatprep.subr.mxu0 %v17147_v0 }
 0x309   :  { %v3411_v3 = vpop.f32.mrf.mxu0  ;;  %v3511_v21 = vpop.f32.mrf.mxu1 }
 0x30a   :  { %v15664_v47 = vadd.f32 %v3411_v3, %v15519_v30  ;;  %v15667_v62 = vadd.f32 %v3511_v21, %v15522_v59 }
 0x30b   :  { %v10098_v28 = vpop.f32.mrf.mxu0  ;;  %v10143_v39 = vpop.f32.mrf.mxu1 }
 0x30e   :  { %v3416_v56 = vpop.f32.mrf.mxu0  ;;  %v3516_v45 = vpop.f32.mrf.mxu1 }
 0x30f   :  { %v15672_v57 = vadd.f32 %v3416_v56, %v15546_v37  ;;  %v15675_v58 = vadd.f32 %v3516_v45, %v15549_v7  ;;  %v7591_v37 = vld [vmem:[%s17129_s5 + $0x68] sm:$0xff] }
 0x310   :  { %v10101_v5 = vpop.f32.mrf.mxu0  ;;  %v10146_v63 = vpop.f32.mrf.mxu1  ;;  %10627 = vmatpush3.msra.mxu1 %v7591_v37  ;;  %v15726_v45 = vld [vmem:[%s17128_s4 + $0x48] sm:$0xff]  ;;  %v15748_v37 = vld [vmem:[%s17128_s4 + $0x38] sm:$0xff] }
 0x311   :  { %10628 = vmatprep.subr.mxu1 %v17147_v0  ;;  %v15731_v5 = vld [vmem:[%s17129_s5 + $0x48] sm:$0xff]  ;;  %10606 = vmatpush3.msra.mxu0 %v15726_v45  ;;  %v7574_v63 = vld [vmem:[%s17128_s4 + $0x40] sm:$0xff] }
 0x312   :  { %10629 = vmatpush3.msra.mxu1 %v7590_v1  ;;  %10607 = vmatprep.subr.mxu0 %v17147_v0 }
 0x313   :  { %10630 = vmatprep.subr.mxu1 %v17147_v0  ;;  %10608 = vmatpush3.msra.mxu0 %v7574_v63 }
 0x314   :  { %v15679_v59 = vpop.f32.mrf.mxu0  ;;  %v15681_v9 = vpop.f32.mrf.mxu1  ;;  %10631 = vmatpush3.msra.mxu1 %v7589_v29  ;;  %10609 = vmatprep.subr.mxu0 %v17147_v0 }
 0x315   :  { %10632 = vmatprep.subr.mxu1 %v17147_v0  ;;  %10610 = vmatpush3.msra.mxu0 %v15748_v37 }
 0x316   :  { %v10173_v44 = vpop.f32.mrf.mxu0  ;;  %v10218_v53 = vpop.f32.mrf.mxu1  ;;  %10633 = vmatpush3.msra.mxu1 %v7588_v4  ;;  %10655 = vmatprep.subr.mxu0 %v17147_v0 }
 0x317   :  { %10634 = vmatprep.subr.mxu1 %v17147_v0  ;;  %v7586_v44 = vld [vmem:[%s17129_s5 + $0x40] sm:$0xff] }
 0x318   :  { %10635 = vmatpush3.msra.mxu1 %v15731_v5 }
 0x319   :  { %v15689_v7 = vpop.f32.mrf.mxu0  ;;  %v15691_v55 = vpop.f32.mrf.mxu1  ;;  %10636 = vmatprep.subr.mxu1 %v17147_v0 }
 0x31a   :  { %10637 = vmatpush3.msra.mxu1 %v7586_v44 }
 0x31b   :  { %v10176_v50 = vpop.f32.mrf.mxu0  ;;  %v10221_v46 = vpop.f32.mrf.mxu1  ;;  %10638 = vmatprep.subr.mxu1 %v17147_v0 }
 0x31c   :  { %v15753_v50 = vld [vmem:[%s17129_s5 + $0x38] sm:$0xff] }
 0x31d   :  { %17172 = vst [vmem:[#allocation2_spill] sm:$0xff] %v15753_v50  ;;  %10639 = vmatpush3.msra.mxu1 %v15753_v50 }
 0x31e   :  { %10684 = vmatprep.subr.mxu1 %v17147_v0 }
 0x31f   :  { %v15701_v42 = vpop.f32.mrf.mxu0  ;;  %v15703_v41 = vpop.f32.mrf.mxu1 }
 0x321   :  { %v10179_v33 = vpop.f32.mrf.mxu0  ;;  %v10224_v35 = vpop.f32.mrf.mxu1 }
 0x324   :  { %v3622_v27 = vpop.f32.mrf.mxu0  ;;  %v3722_v52 = vpop.f32.mrf.mxu1 }
 0x326   :  { %v10182_v60 = vpop.f32.mrf.mxu0  ;;  %v10227_v51 = vpop.f32.mrf.mxu1 }
 0x32a   :  { %v3627_v20 = vpop.f32.mrf.mxu0  ;;  %v3727_v13 = vpop.f32.mrf.mxu1 }
 0x32c   :  { %v10185_v23 = vpop.f32.mrf.mxu0  ;;  %v10230_v3 = vpop.f32.mrf.mxu1 }
 0x32f   :  { %v3632_v21 = vpop.f32.mrf.mxu0  ;;  %v3732_v28 = vpop.f32.mrf.mxu1 }
 0x331   :  { %v10188_v39 = vpop.f32.mrf.mxu0  ;;  %v10233_v56 = vpop.f32.mrf.mxu1 }
 0x334   :  { %v3637_v53 = vpop.f32.mrf.mxu0  ;;  %v3737_v25 = vpop.f32.mrf.mxu1 }
 0x336   :  { %v10191_v46 = vpop.f32.mrf.mxu0  ;;  %v10236_v6 = vpop.f32.mrf.mxu1 }
 0x33a   :  { %v3807_v1 = vpop.f32.mrf.mxu0  ;;  %v3907_v33 = vpop.f32.mrf.mxu1 }
 0x33b   :  { %v3808_v35 = vadd.f32 %v3807_v1, %v15679_v59  ;;  %v3908_v24 = vadd.f32 %v3907_v33, %v15681_v9 }
 0x33c   :  { %v10263_v29 = vpop.f32.mrf.mxu0  ;;  %v10308_v60 = vpop.f32.mrf.mxu1 }
 0x33f   :  { %v3812_v51 = vpop.f32.mrf.mxu0  ;;  %v3912_v34 = vpop.f32.mrf.mxu1 }
 0x340   :  { %v3813_v4 = vadd.f32 %v3812_v51, %v15689_v7  ;;  %v3913_v23 = vadd.f32 %v3912_v34, %v15691_v55 }
 0x341   :  { %v10266_v3 = vpop.f32.mrf.mxu0  ;;  %v10311_v39 = vpop.f32.mrf.mxu1 }
 0x345   :  { %v3817_v56 = vpop.f32.mrf.mxu0  ;;  %v3917_v63 = vpop.f32.mrf.mxu1 }
 0x346   :  { %v3818_v44 = vadd.f32 %v3817_v56, %v15701_v42  ;;  %v3918_v46 = vadd.f32 %v3917_v63, %v15703_v41 }
 0x347   :  { %v10269_v6 = vpop.f32.mrf.mxu0  ;;  %v10314_v59 = vpop.f32.mrf.mxu1 }
 0x34a   :  { %v3822_v1 = vpop.f32.mrf.mxu0  ;;  %v3922_v9 = vpop.f32.mrf.mxu1 }
 0x34b   :  { %v3823_v33 = vadd.f32 %v3822_v1, %v3622_v27  ;;  %v3923_v29 = vadd.f32 %v3922_v9, %v3722_v52 }
 0x34c   :  { %v10272_v60 = vpop.f32.mrf.mxu0  ;;  %v10317_v30 = vpop.f32.mrf.mxu1 }
 0x350   :  { %v3827_v18 = vpop.f32.mrf.mxu0  ;;  %v3927_v7 = vpop.f32.mrf.mxu1 }
 0x351   :  { %v3828_v51 = vadd.f32 %v3827_v18, %v3627_v20  ;;  %v3928_v55 = vadd.f32 %v3927_v7, %v3727_v13 }
 0x352   :  { %v10275_v34 = vpop.f32.mrf.mxu0  ;;  %v10320_v3 = vpop.f32.mrf.mxu1 }
 0x355   :  { %v3832_v39 = vpop.f32.mrf.mxu0  ;;  %v3932_v19 = vpop.f32.mrf.mxu1 }
 0x356   :  { %v3833_v32 = vadd.f32 %v3832_v39, %v3632_v21  ;;  %v3933_v42 = vadd.f32 %v3932_v19, %v3732_v28 }
 0x357   :  { %v10278_v56 = vpop.f32.mrf.mxu0  ;;  %v10323_v41 = vpop.f32.mrf.mxu1 }
 0x35a   :  { %v3837_v63 = vpop.f32.mrf.mxu0  ;;  %v3937_v6 = vpop.f32.mrf.mxu1 }
 0x35b   :  { %v3838_v59 = vadd.f32 %v3837_v63, %v3637_v53  ;;  %v3938_v0 = vadd.f32 %v3937_v6, %v3737_v25 }
 0x35c   :  { %v10281_v27 = vpop.f32.mrf.mxu0  ;;  %v10326_v52 = vpop.f32.mrf.mxu1 }
 0x360   :  { %v4007_v1 = vpop.f32.mrf.mxu0  ;;  %v4107_v30 = vpop.f32.mrf.mxu1 }
 0x361   :  { %v15765_v9 = vadd.f32 %v4007_v1, %v3808_v35  ;;  %v15767_v18 = vadd.f32 %v4107_v30, %v3908_v24 }
 0x362   :  { %v10353_v20 = vpop.f32.mrf.mxu0  ;;  %v10398_v13 = vpop.f32.mrf.mxu1 }
 0x365   :  { %v4012_v60 = vpop.f32.mrf.mxu0  ;;  %v4112_v7 = vpop.f32.mrf.mxu1 }
 0x366   :  { %v15769_v21 = vadd.f32 %v4012_v60, %v3813_v4  ;;  %v15771_v19 = vadd.f32 %v4112_v7, %v3913_v23 }
 0x367   :  { %v10356_v28 = vpop.f32.mrf.mxu0  ;;  %v10401_v34 = vpop.f32.mrf.mxu1 }
 0x36b   :  { %v4017_v53 = vpop.f32.mrf.mxu0  ;;  %v4117_v25 = vpop.f32.mrf.mxu1 }
 0x36c   :  { %v15773_v3 = vadd.f32 %v4017_v53, %v3818_v44  ;;  %v15775_v39 = vadd.f32 %v4117_v25, %v3918_v46 }
 0x36d   :  { %v10359_v35 = vpop.f32.mrf.mxu0  ;;  %v10404_v56 = vpop.f32.mrf.mxu1 }
 0x370   :  { %v4022_v24 = vpop.f32.mrf.mxu0  ;;  %v4122_v41 = vpop.f32.mrf.mxu1 }
 0x371   :  { %v15777_v63 = vadd.f32 %v4022_v24, %v3823_v33  ;;  %v15779_v6 = vadd.f32 %v4122_v41, %v3923_v29 }
 0x372   :  { %v10362_v4 = vpop.f32.mrf.mxu0  ;;  %v10407_v27 = vpop.f32.mrf.mxu1 }
 0x376   :  { %v4027_v23 = vpop.f32.mrf.mxu0  ;;  %v4127_v52 = vpop.f32.mrf.mxu1 }
 0x377   :  { %v15781_v1 = vadd.f32 %v4027_v23, %v3828_v51  ;;  %v15783_v30 = vadd.f32 %v4127_v52, %v3928_v55 }
 0x378   :  { %v10365_v44 = vpop.f32.mrf.mxu0  ;;  %v10410_v20 = vpop.f32.mrf.mxu1 }
 0x37b   :  { %v4032_v46 = vpop.f32.mrf.mxu0  ;;  %v4132_v13 = vpop.f32.mrf.mxu1 }
 0x37c   :  { %v4146_v60 = vadd.f32 %v4032_v46, %v3833_v32  ;;  %v4153_v7 = vadd.f32 %v4132_v13, %v3933_v42 }
 0x37d   :  { %v10368_v28 = vpop.f32.mrf.mxu0  ;;  %v10413_v34 = vpop.f32.mrf.mxu1 }
 0x380   :  { %v4037_v33 = vpop.f32.mrf.mxu0  ;;  %v4137_v53 = vpop.f32.mrf.mxu1 }
 0x381   :  { %v4147_v29 = vadd.f32 %v4037_v33, %v3838_v59  ;;  %v4154_v25 = vadd.f32 %v4137_v53, %v3938_v0 }
 0x382   :  { %v10371_v35 = vpop.f32.mrf.mxu0  ;;  %v10416_v56 = vpop.f32.mrf.mxu1 }
 0x386   :  { %v4221_v24 = vpop.f32.mrf.mxu0  ;;  %v4321_v41 = vpop.f32.mrf.mxu1 }
 0x387   :  { %v4355_v26 = vadd.f32 %v4221_v24, %v15765_v9 }
 0x388   :  { %v10443_v51 = vpop.f32.mrf.mxu0  ;;  %v10488_v4 = vpop.f32.mrf.mxu1 }
 0x38b   :  { %v4226_v55 = vpop.f32.mrf.mxu0  ;;  %v4326_v27 = vpop.f32.mrf.mxu1 }
 0x38d   :  { %v10446_v23 = vpop.f32.mrf.mxu0  ;;  %v10491_v52 = vpop.f32.mrf.mxu1 }
 0x391   :  { %v4231_v44 = vpop.f32.mrf.mxu0  ;;  %v4331_v20 = vpop.f32.mrf.mxu1 }
 0x393   :  { %v10449_v32 = vpop.f32.mrf.mxu0  ;;  %v10494_v42 = vpop.f32.mrf.mxu1 }
 0x396   :  { %v4236_v46 = vpop.f32.mrf.mxu0  ;;  %v4336_v13 = vpop.f32.mrf.mxu1 }
 0x398   :  { %v10452_v28 = vpop.f32.mrf.mxu0  ;;  %v10497_v34 = vpop.f32.mrf.mxu1 }
 0x39c   :  { %v15785_v59 = vpop.f32.mrf.mxu0  ;;  %v15787_v0 = vpop.f32.mrf.mxu1 }
 0x39e   :  { %v10455_v33 = vpop.f32.mrf.mxu0  ;;  %v10500_v53 = vpop.f32.mrf.mxu1 }
 0x39f   :  { %v4362_v33 = vadd.f32 %v4321_v41, %v15767_v18 }
 0x3a1   :  { %v4246_v35 = vpop.f32.mrf.mxu0  ;;  %v4346_v56 = vpop.f32.mrf.mxu1 }
 0x3a2   :  { %v15789_v51 = vadd.f32 %v4246_v35, %v4146_v60  ;;  %v15791_v4 = vadd.f32 %v4346_v56, %v4153_v7 }
 0x3a3   :  { %v10458_v23 = vpop.f32.mrf.mxu0  ;;  %v10503_v52 = vpop.f32.mrf.mxu1 }
 0x3a4   :  { %v4356_v23 = vadd.f32 %v4226_v55, %v15769_v21  ;;  %v4363_v52 = vadd.f32 %v4326_v27, %v15771_v19  ;;  %v4357_v21 = vadd.f32 %v4231_v44, %v15773_v3  ;;  %v4364_v19 = vadd.f32 %v4331_v20, %v15775_v39  ;;  %v15820_v3 = vld [vmem:[%s17128_s4 + $0x30] sm:$0xff] }
 0x3a5   :  { %v15825_v39 = vld [vmem:[%s17129_s5 + $0x30] sm:$0xff]  ;;  %v4358_v44 = vadd.f32 %v4236_v46, %v15777_v63 }
 0x3a6   :  { %v4251_v32 = vpop.f32.mrf.mxu0  ;;  %v4351_v42 = vpop.f32.mrf.mxu1 }
 0x3a7   :  { %v15793_v54 = vadd.f32 %v4251_v32, %v4147_v29  ;;  %v15795_v28 = vadd.f32 %v4351_v42, %v4154_v25 }
 0x3a8   :  { %v10461_v34 = vpop.f32.mrf.mxu0  ;;  %v10506_v36 = vpop.f32.mrf.mxu1 }
 0x3a9   :  { %v17173_v36 = vmax.f32 %v15573_v22, %v15576_v48  ;;  %v17174_v48 = vmax.f32 %v15592_v49, %v15595_v43 }
 0x3ac   :  { %v4463_v53 = vpop.f32.mrf.mxu0  ;;  %v4563_v50 = vpop.f32.mrf.mxu1 }
 0x3ad   :  { %v4597_v60 = vadd.f32 %v4463_v53, %v4355_v26  ;;  %v4604_v35 = vadd.f32 %v4563_v50, %v4362_v33  ;;  %v15807_v26 = vld [vmem:[%s17130_s3] ss:$0 sm:$0xff] }
 0x3ae   :  { %v10533_v7 = vpop.f32.mrf.mxu0  ;;  %v10578_v56 = vpop.f32.mrf.mxu1 }
 0x3af   :  { %v4611_v29 = vmax.f32 %v4597_v60, %v4604_v35  ;;  %v4365_v7 = vadd.f32 %v4336_v13, %v15779_v6  ;;  %v17175_v6 = vmax.f32 %v15616_v2, %v15619_v38  ;;  %v4359_v2 = vadd.f32 %v15785_v59, %v15781_v1 }
 0x3b0   :  { %v4468_v32 = vpop.f32.mrf.mxu0  ;;  %v4568_v25 = vpop.f32.mrf.mxu1 }
 0x3b1   :  { %v4618_v42 = vmax.f32 %v17173_v36, %v4611_v29  ;;  %v4598_v9 = vadd.f32 %v4468_v32, %v4356_v23  ;;  %v4605_v24 = vadd.f32 %v4568_v25, %v4363_v52  ;;  %v17176_v29 = vmov 0.0   ;;  %v15848_v32 = vld [vmem:[%s17128_s4 + $0x28] sm:$0xff] }
 0x3b2   :  { %v10536_v50 = vpop.f32.mrf.mxu0  ;;  %v10581_v18 = vpop.f32.mrf.mxu1  ;;  %v15853_v25 = vld [vmem:[%s17129_s5 + $0x28] sm:$0xff] }
 0x3b3   :  { %v4625_v41 = vadd.f32 %v15807_v26, %v4618_v42  ;;  %v4612_v55 = vmax.f32 %v4598_v9, %v4605_v24  ;;  %v4366_v42 = vadd.f32 %v15787_v0, %v15783_v30  ;;  %v15871_v50 = vld [vmem:[%s17128_s4 + $0x20] sm:$0xff]  ;;  %v17177_v18 = vmax.f32 %v15633_v17, %v15636_v11  ;;  %v15895_v17 = vld [vmem:[%s17128_s4 + $0x18] sm:$0xff] }
 0x3b4   :  { %v4473_v27 = vpop.f32.mrf.mxu0  ;;  %v4573_v34 = vpop.f32.mrf.mxu1  ;;  %v15876_v30 = vld [vmem:[%s17129_s5 + $0x20] sm:$0xff]  ;;  %v15900_v11 = vld [vmem:[%s17129_s5 + $0x18] sm:$0xff] }
 0x3b5   :  { %v15812_v22 = vmax.f32 %v4625_v41, 0.0  ;;  %v4619_v33 = vmax.f32 %v17174_v48, %v4612_v55  ;;  %v4599_v53 = vadd.f32 %v4473_v27, %v4357_v21  ;;  %v4606_v60 = vadd.f32 %v4573_v34, %v4364_v19 }
 0x3b6   :  { %v10539_v20 = vpop.f32.mrf.mxu0  ;;  %v10584_v35 = vpop.f32.mrf.mxu1 }
 0x3b7   :  { %v4626_v49 = vadd.f32 %v15807_v26, %v4619_v33  ;;  %v4613_v43 = vmax.f32 %v4599_v53, %v4606_v60  ;;  %10612 = vmatmul.mubr.msk.f32.vlgmr.msra.gmra.mxu0 %vm4661_vm2, %v15812_v22  ;;  %10641 = vmatmul.mubr.msk.f32.vlgmr.msra.gmra.mxu1 %vm4661_vm2, %v15812_v22 }
 0x3b8   :  { %v4478_v56 = vpop.f32.mrf.mxu0  ;;  %v4578_v23 = vpop.f32.mrf.mxu1  ;;  %10656 = vmatpush3.msra.mxu0 %v15820_v3  ;;  %10685 = vmatpush3.msra.mxu1 %v15825_v39 }
 0x3b9   :  { %v15836_v63 = vmax.f32 %v4626_v49, 0.0  ;;  %v4620_v46 = vmax.f32 %v17175_v6, %v4613_v43  ;;  %v4600_v13 = vadd.f32 %v4478_v56, %v4358_v44  ;;  %v4607_v52 = vadd.f32 %v4578_v23, %v4365_v7  ;;  %10614 = vmatprep.mubr.msk.f32.mxu0 %vm11639_vm1, %v17176_v29  ;;  %10643 = vmatprep.mubr.msk.f32.mxu1 %vm11639_vm1, %v17176_v29 }
 0x3ba   :  { %v10542_v38 = vpop.f32.mrf.mxu0  ;;  %v10587_v36 = vpop.f32.mrf.mxu1  ;;  %10657 = vmatprep.subr.mxu0 %v17176_v29  ;;  %10686 = vmatprep.subr.mxu1 %v17176_v29  ;;  %v17178_v44 = vmax.f32 %v15652_v40, %v15655_v31  ;;  %v15925_v40 = vld [vmem:[%s17128_s4 + $0x10] sm:$0xff] }
 0x3bb   :  { %v4627_v9 = vadd.f32 %v15807_v26, %v4620_v46  ;;  %v4614_v24 = vmax.f32 %v4600_v13, %v4607_v52  ;;  %10615 = vmatmul.mubr.msk.f32.gmra.mxu0 %vm4661_vm2, %v15836_v63  ;;  %10644 = vmatmul.mubr.msk.f32.gmra.mxu1 %vm4661_vm2, %v15836_v63  ;;  %v15930_v31 = vld [vmem:[%s17129_s5 + $0x10] sm:$0xff]  ;;  %v17179_v46 = vmax.f32 %v15664_v47, %v15667_v62  ;;  %v15956_v47 = vld [vmem:[%s17128_s4 + $0x8] sm:$0xff] }
 0x3bc   :  { %10658 = vmatpush3.msra.mxu0 %v15848_v32  ;;  %10687 = vmatpush3.msra.mxu1 %v15853_v25  ;;  %v4483_v1 = vpop.f32.mrf.mxu0  ;;  %v4583_v59 = vpop.f32.mrf.mxu1  ;;  %v2450_v62 = vadd.f32 %v15807_v26, %v14585_v12  ;;  %v15986_v12 = vld [vmem:[%s17129_s5] sm:$0xff] }
 0x3bd   :  { %v15878_v0 = vmax.f32 %v4627_v9, 0.0  ;;  %v4621_v21 = vmax.f32 %v17177_v18, %v4614_v24  ;;  %v4601_v19 = vadd.f32 %v4483_v1, %v4359_v2  ;;  %v4608_v41 = vadd.f32 %v4583_v59, %v4366_v42  ;;  %10659 = vmatprep.subr.mxu0 %v17176_v29  ;;  %10688 = vmatprep.subr.mxu1 %v17176_v29  ;;  %v15979_v24 = vld [vmem:[%s17128_s4] sm:$0xff]  ;;  %v16023_v18 = vld [vmem:[%s17128_s4 + $0x98] sm:$0xff] }
 0x3be   :  { %v10545_v55 = vpop.f32.mrf.mxu0  ;;  %v10590_v27 = vpop.f32.mrf.mxu1  ;;  %10617 = vmatprep.mubr.msk.f32.mxu0 %vm11639_vm1, %v17176_v29  ;;  %10646 = vmatprep.mubr.msk.f32.mxu1 %vm11639_vm1, %v17176_v29  ;;  %v16001_v1 = vld [vmem:[%s17128_s4 + $0xa0] sm:$0xff] }
 0x3bf   :  { %v4628_v34 = vadd.f32 %v15807_v26, %v4621_v21  ;;  %v4615_v48 = vmax.f32 %v4601_v19, %v4608_v41  ;;  %10660 = vmatpush3.msra.mxu0 %v15871_v50  ;;  %10689 = vmatpush3.msra.mxu1 %v15876_v30  ;;  %v16006_v59 = vld [vmem:[%s17129_s5 + $0xa0] sm:$0xff]  ;;  %v16028_v21 = vld [vmem:[%s17129_s5 + $0x98] sm:$0xff]  ;;  %v2452_v19 = vadd.f32 %v15807_v26, %v14655_v61  ;;  %v16043_v41 = vld [vmem:[%s17128_s4 + $0x90] sm:$0xff] }
 0x3c0   :  { %10618 = vmatmul.mubr.msk.f32.gmra.mxu0 %vm4661_vm2, %v15878_v0  ;;  %10647 = vmatmul.mubr.msk.f32.gmra.mxu1 %vm4661_vm2, %v15878_v0  ;;  %v4488_v33 = vpop.f32.mrf.mxu0  ;;  %v4588_v53 = vpop.f32.mrf.mxu1  ;;  %v16048_v61 = vld [vmem:[%s17129_s5 + $0x90] sm:$0xff]  ;;  %v2453_v27 = vadd.f32 %v15807_v26, %v14685_v16 }
 0x3c1   :  { %v15906_v60 = vmax.f32 %v4628_v34, 0.0  ;;  %v4622_v20 = vmax.f32 %v17178_v44, %v4615_v48  ;;  %v4602_v35 = vadd.f32 %v4488_v33, %v15789_v51  ;;  %v4609_v7 = vadd.f32 %v4588_v53, %v15791_v4  ;;  %10661 = vmatprep.subr.mxu0 %v17176_v29  ;;  %10690 = vmatprep.subr.mxu1 %v17176_v29  ;;  %v16065_v34 = vld [vmem:[%s17128_s4 + $0x88] sm:$0xff]  ;;  %v16091_v53 = vld [vmem:[%s17128_s4 + $0x80] sm:$0xff] }
 0x3c2   :  { %10662 = vmatpush3.msra.mxu0 %v15895_v17  ;;  %10691 = vmatpush3.msra.mxu1 %v15900_v11  ;;  %v10548_v49 = vpop.f32.mrf.mxu0  ;;  %v10593_v43 = vpop.f32.mrf.mxu1  ;;  %v16052_v55 = vmax.f32 %v2452_v19, 0.0  ;;  %v16070_v48 = vld [vmem:[%s17129_s5 + $0x88] sm:$0xff]  ;;  %v16078_v16 = vmax.f32 %v2453_v27, 0.0  ;;  %v2454_v33 = vadd.f32 %v15807_v26, %v14726_v15  ;;  %v16096_v44 = vld [vmem:[%s17129_s5 + $0x80] sm:$0xff]  ;;  %v16293_v19 = vld [vmem:[%s17128_s4 + $0x110] sm:$0xff] }
 0x3c3   :  { %v4629_v56 = vadd.f32 %v15807_v26, %v4622_v20  ;;  %v4616_v23 = vmax.f32 %v4602_v35, %v4609_v7  ;;  %10620 = vmatprep.mubr.msk.f32.mxu0 %vm11639_vm1, %v17176_v29  ;;  %10649 = vmatprep.mubr.msk.f32.mxu1 %vm11639_vm1, %v17176_v29  ;;  %v16115_v20 = vld [vmem:[%s17128_s4 + $0x78] sm:$0xff]  ;;  %v16131_v7 = vld [vmem:[%s17128_s4 + $0x70] sm:$0xff]  ;;  %17182 = vst [vmem:[#allocation4_spill] sm:$0xff] %v16293_v19 }
 0x3c4   :  { %10621 = vmatmul.mubr.msk.f32.gmra.mxu0 %vm4661_vm2, %v15906_v60  ;;  %10650 = vmatmul.mubr.msk.f32.gmra.mxu1 %vm4661_vm2, %v15906_v60  ;;  %v4493_v51 = vpop.f32.mrf.mxu0  ;;  %v4593_v4 = vpop.f32.mrf.mxu1  ;;  %v16106_v15 = vmax.f32 %v2454_v33, 0.0  ;;  %v16120_v35 = vld [vmem:[%s17129_s5 + $0x78] sm:$0xff]  ;;  %v16138_v49 = vld [vmem:[%s17129_s5 + $0x70] sm:$0xff]  ;;  %v16315_v33 = vld [vmem:[%s17128_s4 + $0x108] sm:$0xff] }
 0x3c5   :  { %v15936_v6 = vmax.f32 %v4629_v56, 0.0  ;;  %v15941_v13 = vmax.f32 %v17179_v46, %v4616_v23  ;;  %10663 = vmatprep.subr.mxu0 %v17176_v29  ;;  %10692 = vmatprep.subr.mxu1 %v17176_v29  ;;  %v4603_v52 = vadd.f32 %v4493_v51, %v15793_v54  ;;  %v4610_v2 = vadd.f32 %v4593_v4, %v15795_v28  ;;  %v15961_v54 = vld [vmem:[%s17129_s5 + $0x8] sm:$0xff]  ;;  %v16151_v43 = vld [vmem:[%s17128_s4 + $0xd8] sm:$0xff]  ;;  %v16173_v23 = vld [vmem:[%s17128_s4 + $0xd0] sm:$0xff] }
 0x3c6   :  { %10664 = vmatpush3.msra.mxu0 %v15925_v40  ;;  %10693 = vmatpush3.msra.mxu1 %v15930_v31  ;;  %v10551_v38 = vpop.f32.mrf.mxu0  ;;  %v10596_v36 = vpop.f32.mrf.mxu1  ;;  %v17180_v28 = vmax.f32 %v15672_v57, %v15675_v58  ;;  %v2457_v57 = vmax.f32 %v2450_v62, 0.0  ;;  %v2451_v58 = vadd.f32 %v15807_v26, %v14619_v10  ;;  %v16156_v56 = vld [vmem:[%s17129_s5 + $0xd8] sm:$0xff]  ;;  %v16178_v51 = vld [vmem:[%s17129_s5 + $0xd0] sm:$0xff]  ;;  %v16191_v4 = vld [vmem:[%s17128_s4 + $0xc8] sm:$0xff]  ;;  %17184 = vst [vmem:[#allocation6_spill] sm:$0xff] %v16315_v33 }
 0x3c7   :  { %v4617_v42 = vmax.f32 %v4603_v52, %v4610_v2  ;;  %10623 = vmatprep.mubr.msk.f32.mxu0 %vm11639_vm1, %v17176_v29  ;;  %10652 = vmatprep.mubr.msk.f32.mxu1 %vm11639_vm1, %v17176_v29  ;;  %v16196_v46 = vld [vmem:[%s17129_s5 + $0xc8] sm:$0xff]  ;;  %v16209_v52 = vld [vmem:[%s17128_s4 + $0xc0] sm:$0xff]  ;;  %v2455_v38 = vadd.f32 %v15807_v26, %v14755_v14  ;;  %v16233_v36 = vld [vmem:[%s17128_s4 + $0xb8] sm:$0xff] }
 0x3c8   :  { %10665 = vmatprep.subr.mxu0 %v17176_v29  ;;  %10694 = vmatprep.subr.mxu1 %v17176_v29  ;;  %v16014_v10 = vmax.f32 %v2451_v58, 0.0  ;;  %v16214_v2 = vld [vmem:[%s17129_s5 + $0xc0] sm:$0xff]  ;;  %v16257_v62 = vld [vmem:[%s17128_s4 + $0xb0] sm:$0xff]  ;;  %v16280_v58 = vld [vmem:[%s17129_s5 + $0xa8] sm:$0xff] }
 0x3c9   :  { %v15970_v9 = vmax.f32 %v17180_v28, %v4617_v42  ;;  %10624 = vmatmul.mubr.msk.f32.gmra.mxu0 %vm4661_vm2, %v15936_v6  ;;  %10653 = vmatmul.mubr.msk.f32.gmra.mxu1 %vm4661_vm2, %v15936_v6  ;;  %v16238_v42 = vld [vmem:[%s17129_s5 + $0xb8] sm:$0xff]  ;;  %v16248_v14 = vmax.f32 %v2455_v38, 0.0  ;;  %v16262_v28 = vld [vmem:[%s17129_s5 + $0xb0] sm:$0xff]  ;;  %v16320_v38 = vld [vmem:[%s17129_s5 + $0x108] sm:$0xff] }
 0x3ca   :  { %10666 = vmatpush3.msra.mxu0 %v15956_v47  ;;  %10695 = vmatpush3.msra.mxu1 %v15961_v54  ;;  %v16298_v27 = vld [vmem:[%s17129_s5 + $0x110] sm:$0xff]  ;;  %17185 = vst [vmem:[#allocation7_spill] sm:$0xff] %v16320_v38 }
 0x3cb   :  { %17181 = vst [vmem:[#allocation3_spill] sm:$0xff] %v15970_v9  ;;  %10667 = vmatprep.subr.mxu0 %v17176_v29  ;;  %10696 = vmatprep.subr.mxu1 %v17176_v29  ;;  %17183 = vst [vmem:[#allocation5_spill] sm:$0xff] %v16298_v27  ;;  %v16333_v9 = vld [vmem:[%s17128_s4 + $0x100] sm:$0xff] }
 0x3cc   :  { %10668 = vmatpush3.msra.mxu0 %v15979_v24  ;;  %10669 = vmatprep.mubr.msk.f32.mxu0 %vm11639_vm1, %v17176_v29  ;;  %17186 = vst [vmem:[#allocation8_spill] sm:$0xff] %v16333_v9 }
 0x3cd   :  { %10697 = vmatpush3.msra.mxu1 %v15986_v12  ;;  %10698 = vmatprep.mubr.msk.f32.mxu1 %vm11639_vm1, %v17176_v29 }
 0x3ce   :  { %10670 = vmatmul.mubr.msk.f32.vlgmr.msra.gmra.mxu0 %vm4661_vm2, %v2457_v57  ;;  %10699 = vmatmul.mubr.msk.f32.vlgmr.msra.gmra.mxu1 %vm4661_vm2, %v2457_v57  ;;  %v16273_v57 = vld [vmem:[%s17128_s4 + $0xa8] sm:$0xff] }
 0x3cf   :  { %10713 = vmatprep.subr.mxu0 %v17176_v29  ;;  %10742 = vmatprep.subr.mxu1 %v17176_v29 }
 0x3d0   :  { %10714 = vmatpush3.msra.mxu0 %v16001_v1  ;;  %10743 = vmatpush3.msra.mxu1 %v16006_v59 }
 0x3d1   :  { %10672 = vmatprep.mubr.msk.f32.mxu0 %vm11639_vm1, %v17176_v29  ;;  %10701 = vmatprep.mubr.msk.f32.mxu1 %vm11639_vm1, %v17176_v29 }
 0x3d2   :  { %10715 = vmatprep.subr.mxu0 %v17176_v29  ;;  %10744 = vmatprep.subr.mxu1 %v17176_v29 }
 0x3d3   :  { %10673 = vmatmul.mubr.msk.f32.gmra.mxu0 %vm4661_vm2, %v16014_v10  ;;  %10702 = vmatmul.mubr.msk.f32.gmra.mxu1 %vm4661_vm2, %v16014_v10 }
 0x3d4   :  { %10716 = vmatpush3.msra.mxu0 %v16023_v18  ;;  %10745 = vmatpush3.msra.mxu1 %v16028_v21 }
 0x3d5   :  { %10717 = vmatprep.subr.mxu0 %v17176_v29  ;;  %10746 = vmatprep.subr.mxu1 %v17176_v29 }
 0x3d6   :  { %10675 = vmatprep.mubr.msk.f32.mxu0 %vm11639_vm1, %v17176_v29  ;;  %10704 = vmatprep.mubr.msk.f32.mxu1 %vm11639_vm1, %v17176_v29 }
 0x3d7   :  { %10718 = vmatpush3.msra.mxu0 %v16043_v41  ;;  %10747 = vmatpush3.msra.mxu1 %v16048_v61 }
 0x3d8   :  { %10676 = vmatmul.mubr.msk.f32.gmra.mxu0 %vm4661_vm2, %v16052_v55  ;;  %10705 = vmatmul.mubr.msk.f32.gmra.mxu1 %vm4661_vm2, %v16052_v55 }
 0x3d9   :  { %10719 = vmatprep.subr.mxu0 %v17176_v29  ;;  %10748 = vmatprep.subr.mxu1 %v17176_v29 }
 0x3da   :  { %10720 = vmatpush3.msra.mxu0 %v16065_v34  ;;  %10749 = vmatpush3.msra.mxu1 %v16070_v48 }
 0x3db   :  { %10678 = vmatprep.mubr.msk.f32.mxu0 %vm11639_vm1, %v17176_v29  ;;  %10707 = vmatprep.mubr.msk.f32.mxu1 %vm11639_vm1, %v17176_v29 }
 0x3dc   :  { %10679 = vmatmul.mubr.msk.f32.gmra.mxu0 %vm4661_vm2, %v16078_v16  ;;  %10708 = vmatmul.mubr.msk.f32.gmra.mxu1 %vm4661_vm2, %v16078_v16 }
 0x3dd   :  { %10721 = vmatprep.subr.mxu0 %v17176_v29  ;;  %10750 = vmatprep.subr.mxu1 %v17176_v29 }
 0x3de   :  { %10722 = vmatpush3.msra.mxu0 %v16091_v53  ;;  %10751 = vmatpush3.msra.mxu1 %v16096_v44 }
 0x3df   :  { %10681 = vmatprep.mubr.msk.f32.mxu0 %vm11639_vm1, %v17176_v29  ;;  %10710 = vmatprep.mubr.msk.f32.mxu1 %vm11639_vm1, %v17176_v29 }
 0x3e0   :  { %10723 = vmatprep.subr.mxu0 %v17176_v29  ;;  %10752 = vmatprep.subr.mxu1 %v17176_v29 }
 0x3e1   :  { %10682 = vmatmul.mubr.msk.f32.gmra.mxu0 %vm4661_vm2, %v16106_v15  ;;  %10711 = vmatmul.mubr.msk.f32.gmra.mxu1 %vm4661_vm2, %v16106_v15 }
 0x3e2   :  { %10724 = vmatpush3.msra.mxu0 %v16115_v20  ;;  %10753 = vmatpush3.msra.mxu1 %v16120_v35 }
 0x3e3   :  { %10725 = vmatprep.subr.mxu0 %v17176_v29  ;;  %10754 = vmatprep.subr.mxu1 %v17176_v29 }
 0x3e4   :  { %10726 = vmatpush3.msra.mxu0 %v16131_v7  ;;  %10727 = vmatprep.mubr.msk.f32.mxu0 %vm11639_vm1, %v17176_v29 }
 0x3e5   :  { %10755 = vmatpush3.msra.mxu1 %v16138_v49  ;;  %10756 = vmatprep.mubr.msk.f32.mxu1 %vm11639_vm1, %v17176_v29 }
 0x3e6   :  { %10728 = vmatmul.mubr.msk.f32.vlgmr.msra.gmra.mxu0 %vm4661_vm2, %v16014_v10  ;;  %10757 = vmatmul.mubr.msk.f32.vlgmr.msra.gmra.mxu1 %vm4661_vm2, %v16014_v10 }
 0x3e7   :  { %10771 = vmatprep.subr.mxu0 %v17176_v29  ;;  %10800 = vmatprep.subr.mxu1 %v17176_v29 }
 0x3e8   :  { %10772 = vmatpush3.msra.mxu0 %v16151_v43  ;;  %10801 = vmatpush3.msra.mxu1 %v16156_v56 }
 0x3e9   :  { %10730 = vmatprep.mubr.msk.f32.mxu0 %vm11639_vm1, %v17176_v29  ;;  %10759 = vmatprep.mubr.msk.f32.mxu1 %vm11639_vm1, %v17176_v29 }
 0x3ea   :  { %10773 = vmatprep.subr.mxu0 %v17176_v29  ;;  %10802 = vmatprep.subr.mxu1 %v17176_v29 }
 0x3eb   :  { %10731 = vmatmul.mubr.msk.f32.gmra.mxu0 %vm4661_vm2, %v16052_v55  ;;  %10760 = vmatmul.mubr.msk.f32.gmra.mxu1 %vm4661_vm2, %v16052_v55 }
 0x3ec   :  { %10774 = vmatpush3.msra.mxu0 %v16173_v23  ;;  %10803 = vmatpush3.msra.mxu1 %v16178_v51 }
 0x3ed   :  { %10775 = vmatprep.subr.mxu0 %v17176_v29  ;;  %10804 = vmatprep.subr.mxu1 %v17176_v29 }
 0x3ee   :  { %10733 = vmatprep.mubr.msk.f32.mxu0 %vm11639_vm1, %v17176_v29  ;;  %10762 = vmatprep.mubr.msk.f32.mxu1 %vm11639_vm1, %v17176_v29 }
 0x3ef   :  { %10776 = vmatpush3.msra.mxu0 %v16191_v4  ;;  %10805 = vmatpush3.msra.mxu1 %v16196_v46 }
 0x3f0   :  { %10734 = vmatmul.mubr.msk.f32.gmra.mxu0 %vm4661_vm2, %v16078_v16  ;;  %10763 = vmatmul.mubr.msk.f32.gmra.mxu1 %vm4661_vm2, %v16078_v16 }
 0x3f1   :  { %10777 = vmatprep.subr.mxu0 %v17176_v29  ;;  %10806 = vmatprep.subr.mxu1 %v17176_v29 }
 0x3f2   :  { %10778 = vmatpush3.msra.mxu0 %v16209_v52  ;;  %10807 = vmatpush3.msra.mxu1 %v16214_v2 }
 0x3f3   :  { %10736 = vmatprep.mubr.msk.f32.mxu0 %vm11639_vm1, %v17176_v29  ;;  %10765 = vmatprep.mubr.msk.f32.mxu1 %vm11639_vm1, %v17176_v29 }
 0x3f4   :  { %10737 = vmatmul.mubr.msk.f32.gmra.mxu0 %vm4661_vm2, %v16106_v15  ;;  %10766 = vmatmul.mubr.msk.f32.gmra.mxu1 %vm4661_vm2, %v16106_v15 }
 0x3f5   :  { %10779 = vmatprep.subr.mxu0 %v17176_v29  ;;  %10808 = vmatprep.subr.mxu1 %v17176_v29 }
 0x3f6   :  { %10780 = vmatpush3.msra.mxu0 %v16233_v36  ;;  %10809 = vmatpush3.msra.mxu1 %v16238_v42 }
 0x3f7   :  { %10739 = vmatprep.mubr.msk.f32.mxu0 %vm11639_vm1, %v17176_v29  ;;  %10768 = vmatprep.mubr.msk.f32.mxu1 %vm11639_vm1, %v17176_v29 }
 0x3f8   :  { %10781 = vmatprep.subr.mxu0 %v17176_v29  ;;  %10810 = vmatprep.subr.mxu1 %v17176_v29 }
 0x3f9   :  { %10740 = vmatmul.mubr.msk.f32.gmra.mxu0 %vm4661_vm2, %v16248_v14  ;;  %10769 = vmatmul.mubr.msk.f32.gmra.mxu1 %vm4661_vm2, %v16248_v14 }
 0x3fa   :  { %10782 = vmatpush3.msra.mxu0 %v16257_v62  ;;  %10811 = vmatpush3.msra.mxu1 %v16262_v28 }
 0x3fb   :  { %10783 = vmatprep.subr.mxu0 %v17176_v29  ;;  %10812 = vmatprep.subr.mxu1 %v17176_v29 }
 0x3fc   :  { %10784 = vmatpush3.msra.mxu0 %v16273_v57  ;;  %10785 = vmatprep.mubr.msk.f32.mxu0 %vm11639_vm1, %v17176_v29 }
 0x3fd   :  { %10813 = vmatpush3.msra.mxu1 %v16280_v58  ;;  %10814 = vmatprep.mubr.msk.f32.mxu1 %vm11639_vm1, %v17176_v29 }
 0x3fe   :  { %10786 = vmatmul.mubr.msk.f32.vlgmr.msra.gmra.mxu0 %vm4661_vm2, %v15836_v63  ;;  %10815 = vmatmul.mubr.msk.f32.vlgmr.msra.gmra.mxu1 %vm4661_vm2, %v15836_v63 }
 0x3ff   :  { %10829 = vmatprep.subr.mxu0 %v17176_v29  ;;  %10858 = vmatprep.subr.mxu1 %v17176_v29 }
 0x400   :  { %10830 = vmatpush3.msra.mxu0 %v16293_v19  ;;  %10859 = vmatpush3.msra.mxu1 %v16298_v27  ;;  %v16338_v27 = vld [vmem:[%s17129_s5 + $0x100] sm:$0xff]  ;;  %v16404_v19 = vld [vmem:[%s17129_s5 + $0xe8] sm:$0xff] }
 0x401   :  { %10788 = vmatprep.mubr.msk.f32.mxu0 %vm11639_vm1, %v17176_v29  ;;  %10817 = vmatprep.mubr.msk.f32.mxu1 %vm11639_vm1, %v17176_v29  ;;  %17187 = vst [vmem:[#allocation9_spill] sm:$0xff] %v16338_v27  ;;  %17191 = vst [vmem:[#allocation13_spill] sm:$0xff] %v16404_v19 }
 0x402   :  { %10831 = vmatprep.subr.mxu0 %v17176_v29  ;;  %10860 = vmatprep.subr.mxu1 %v17176_v29 }
 0x403   :  { %10789 = vmatmul.mubr.msk.f32.gmra.mxu0 %vm4661_vm2, %v15878_v0  ;;  %10818 = vmatmul.mubr.msk.f32.gmra.mxu1 %vm4661_vm2, %v15878_v0 }
 0x404   :  { %10832 = vmatpush3.msra.mxu0 %v16315_v33  ;;  %10861 = vmatpush3.msra.mxu1 %v16320_v38  ;;  %v16351_v38 = vld [vmem:[%s17128_s4 + $0xf8] sm:$0xff] }
 0x405   :  { %10833 = vmatprep.subr.mxu0 %v17176_v29  ;;  %10862 = vmatprep.subr.mxu1 %v17176_v29  ;;  %17188 = vst [vmem:[#allocation10_spill] sm:$0xff] %v16351_v38  ;;  %v16356_v33 = vld [vmem:[%s17129_s5 + $0xf8] sm:$0xff] }
 0x406   :  { %10791 = vmatprep.mubr.msk.f32.mxu0 %vm11639_vm1, %v17176_v29  ;;  %10820 = vmatprep.mubr.msk.f32.mxu1 %vm11639_vm1, %v17176_v29  ;;  %17189 = vst [vmem:[#allocation11_spill] sm:$0xff] %v16356_v33 }
 0x407   :  { %10834 = vmatpush3.msra.mxu0 %v16333_v9  ;;  %10863 = vmatpush3.msra.mxu1 %v16338_v27  ;;  %v4630_v27 = vadd.f32 %v15807_v26, %v15941_v13  ;;  %v16375_v9 = vld [vmem:[%s17128_s4 + $0xf0] sm:$0xff] }
 0x408   :  { %10792 = vmatmul.mubr.msk.f32.gmra.mxu0 %vm4661_vm2, %v15906_v60  ;;  %10821 = vmatmul.mubr.msk.f32.gmra.mxu1 %vm4661_vm2, %v15906_v60 }
 0x409   :  { %10835 = vmatprep.subr.mxu0 %v17176_v29  ;;  %10864 = vmatprep.subr.mxu1 %v17176_v29  ;;  %v16390_v13 = vmax.f32 %v4630_v27, 0.0  ;;  %v16415_v27 = vld [vmem:[%s17128_s4 + $0xe0] sm:$0xff] }
 0x40a   :  { %10836 = vmatpush3.msra.mxu0 %v16351_v38  ;;  %10865 = vmatpush3.msra.mxu1 %v16356_v33  ;;  %v16380_v38 = vld [vmem:[%s17129_s5 + $0xf0] sm:$0xff]  ;;  %v16399_v33 = vld [vmem:[%s17128_s4 + $0xe8] sm:$0xff]  ;;  %17192 = vst [vmem:[#allocation14_spill] sm:$0xff] %v16415_v27 }
 0x40b   :  { %10794 = vmatprep.mubr.msk.f32.mxu0 %vm11639_vm1, %v17176_v29  ;;  %10823 = vmatprep.mubr.msk.f32.mxu1 %vm11639_vm1, %v17176_v29  ;;  %17190 = vst [vmem:[#allocation12_spill] sm:$0xff] %v16380_v38 }
 0x40c   :  { %10795 = vmatmul.mubr.msk.f32.gmra.mxu0 %vm4661_vm2, %v15936_v6  ;;  %10824 = vmatmul.mubr.msk.f32.gmra.mxu1 %vm4661_vm2, %v15936_v6 }
 0x40d   :  { %10837 = vmatprep.subr.mxu0 %v17176_v29  ;;  %10866 = vmatprep.subr.mxu1 %v17176_v29 }
 0x40e   :  { %10838 = vmatpush3.msra.mxu0 %v16375_v9  ;;  %10867 = vmatpush3.msra.mxu1 %v16380_v38  ;;  %v16422_v38 = vld [vmem:[%s17129_s5 + $0xe0] sm:$0xff] }
 0x40f   :  { %10797 = vmatprep.mubr.msk.f32.mxu0 %vm11639_vm1, %v17176_v29  ;;  %10826 = vmatprep.mubr.msk.f32.mxu1 %vm11639_vm1, %v17176_v29  ;;  %17193 = vst [vmem:[#allocation15_spill] sm:$0xff] %v16422_v38 }
 0x410   :  { %10839 = vmatprep.subr.mxu0 %v17176_v29  ;;  %10868 = vmatprep.subr.mxu1 %v17176_v29 }
 0x411   :  { %10798 = vmatmul.mubr.msk.f32.gmra.mxu0 %vm4661_vm2, %v16390_v13  ;;  %10827 = vmatmul.mubr.msk.f32.gmra.mxu1 %vm4661_vm2, %v16390_v13 }
 0x412   :  { %10840 = vmatpush3.msra.mxu0 %v16399_v33  ;;  %10869 = vmatpush3.msra.mxu1 %v16404_v19  ;;  %v11631_v19 = vld [vmem:[%s17128_s4 + $0x58] sm:$0xff] }
 0x413   :  { %10841 = vmatprep.subr.mxu0 %v17176_v29  ;;  %10870 = vmatprep.subr.mxu1 %v17176_v29 }
 0x414   :  { %10842 = vmatpush3.msra.mxu0 %v16415_v27  ;;  %10843 = vmatprep.mubr.msk.f32.mxu0 %vm11639_vm1, %v17176_v29  ;;  %v11627_v27 = vld [vmem:[%s17128_s4 + $0x68] sm:$0xff] }
 0x415   :  { %10871 = vmatpush3.msra.mxu1 %v16422_v38  ;;  %10872 = vmatprep.mubr.msk.f32.mxu1 %vm11639_vm1, %v17176_v29  ;;  %v11628_v38 = vld [vmem:[%s17129_s5 + $0x68] sm:$0xff] }
 0x416   :  { %10844 = vmatmul.mubr.msk.f32.vlgmr.msra.gmra.mxu0 %vm4661_vm2, %v16052_v55  ;;  %10873 = vmatmul.mubr.msk.f32.vlgmr.msra.gmra.mxu1 %vm4661_vm2, %v16052_v55 }
 0x417   :  { %10887 = vmatprep.subr.mxu0 %v17176_v29  ;;  %10916 = vmatprep.subr.mxu1 %v17176_v29 }
 0x418   :  { %10888 = vmatpush3.msra.mxu0 %v11627_v27  ;;  %10917 = vmatpush3.msra.mxu1 %v11628_v38  ;;  %v11629_v38 = vld [vmem:[%s17128_s4 + $0x60] sm:$0xff] }
 0x419   :  { %10846 = vmatprep.mubr.msk.f32.mxu0 %vm11639_vm1, %v17176_v29  ;;  %10875 = vmatprep.mubr.msk.f32.mxu1 %vm11639_vm1, %v17176_v29  ;;  %v11630_v27 = vld [vmem:[%s17129_s5 + $0x60] sm:$0xff] }
 0x41a   :  { %10889 = vmatprep.subr.mxu0 %v17176_v29  ;;  %10918 = vmatprep.subr.mxu1 %v17176_v29 }
 0x41b   :  { %10847 = vmatmul.mubr.msk.f32.gmra.mxu0 %vm4661_vm2, %v16078_v16  ;;  %10876 = vmatmul.mubr.msk.f32.gmra.mxu1 %vm4661_vm2, %v16078_v16 }
 0x41c   :  { %10890 = vmatpush3.msra.mxu0 %v11629_v38  ;;  %10919 = vmatpush3.msra.mxu1 %v11630_v27  ;;  %v11632_v38 = vld [vmem:[%s17129_s5 + $0x58] sm:$0xff]  ;;  %v11633_v27 = vld [vmem:[%s17128_s4 + $0x50] sm:$0xff] }
 0x41d   :  { %10891 = vmatprep.subr.mxu0 %v17176_v29  ;;  %10920 = vmatprep.subr.mxu1 %v17176_v29 }
 0x41e   :  { %10849 = vmatprep.mubr.msk.f32.mxu0 %vm11639_vm1, %v17176_v29  ;;  %10878 = vmatprep.mubr.msk.f32.mxu1 %vm11639_vm1, %v17176_v29 }
 0x41f   :  { %10892 = vmatpush3.msra.mxu0 %v11631_v19  ;;  %10921 = vmatpush3.msra.mxu1 %v11632_v38  ;;  %v11634_v19 = vld [vmem:[%s17129_s5 + $0x50] sm:$0xff]  ;;  %v2456_v38 = vadd.f32 %v15807_v26, %v14781_v8  ;;  %v17194_v26 = vld [vmem:[#allocation2_spill] sm:$0xff] }
 0x420   :  { %10850 = vmatmul.mubr.msk.f32.gmra.mxu0 %vm4661_vm2, %v16106_v15  ;;  %10879 = vmatmul.mubr.msk.f32.gmra.mxu1 %vm4661_vm2, %v16106_v15 }
 0x421   :  { %10893 = vmatprep.subr.mxu0 %v17176_v29  ;;  %10922 = vmatprep.subr.mxu1 %v17176_v29  ;;  %v16498_v8 = vmax.f32 %v2456_v38, 0.0 }
 0x422   :  { %10894 = vmatpush3.msra.mxu0 %v11633_v27  ;;  %10923 = vmatpush3.msra.mxu1 %v11634_v19 }
 0x423   :  { %10852 = vmatprep.mubr.msk.f32.mxu0 %vm11639_vm1, %v17176_v29  ;;  %10881 = vmatprep.mubr.msk.f32.mxu1 %vm11639_vm1, %v17176_v29 }
 0x424   :  { %10853 = vmatmul.mubr.msk.f32.gmra.mxu0 %vm4661_vm2, %v16248_v14  ;;  %10882 = vmatmul.mubr.msk.f32.gmra.mxu1 %vm4661_vm2, %v16248_v14 }
 0x425   :  { %10895 = vmatprep.subr.mxu0 %v17176_v29  ;;  %10924 = vmatprep.subr.mxu1 %v17176_v29 }
 0x426   :  { %10896 = vmatpush3.msra.mxu0 %v15726_v45  ;;  %10925 = vmatpush3.msra.mxu1 %v15731_v5  ;;  %v11635_v45 = vld [vmem:[%s17128_s4 + $0x40] sm:$0xff] }
 0x427   :  { %10855 = vmatprep.mubr.msk.f32.mxu0 %vm11639_vm1, %v17176_v29  ;;  %10884 = vmatprep.mubr.msk.f32.mxu1 %vm11639_vm1, %v17176_v29  ;;  %v11636_v5 = vld [vmem:[%s17129_s5 + $0x40] sm:$0xff] }
 0x428   :  { %10897 = vmatprep.subr.mxu0 %v17176_v29  ;;  %10926 = vmatprep.subr.mxu1 %v17176_v29 }
 0x429   :  { %10856 = vmatmul.mubr.msk.f32.gmra.mxu0 %vm4661_vm2, %v16498_v8  ;;  %10885 = vmatmul.mubr.msk.f32.gmra.mxu1 %vm4661_vm2, %v16498_v8 }
 0x42a   :  { %10898 = vmatpush3.msra.mxu0 %v11635_v45  ;;  %10927 = vmatpush3.msra.mxu1 %v11636_v5 }
 0x42b   :  { %10899 = vmatprep.subr.mxu0 %v17176_v29  ;;  %10928 = vmatprep.subr.mxu1 %v17176_v29 }
 0x42c   :  { %10900 = vmatpush3.msra.mxu0 %v15748_v37  ;;  %10901 = vmatprep.mubr.msk.f32.mxu0 %vm11639_vm1, %v17176_v29 }
 0x42d   :  { %10929 = vmatpush3.msra.mxu1 %v17194_v26  ;;  %10930 = vmatprep.mubr.msk.f32.mxu1 %vm11639_vm1, %v17176_v29 }
 0x42e   :  { %10902 = vmatmul.mubr.msk.f32.vlgmr.msra.gmra.mxu0 %vm4661_vm2, %v16014_v10  ;;  %10931 = vmatmul.mubr.msk.f32.vlgmr.msra.gmra.mxu1 %vm4661_vm2, %v16014_v10 }
 0x42f   :  { %10945 = vmatprep.subr.mxu0 %v17176_v29  ;;  %10974 = vmatprep.subr.mxu1 %v17176_v29 }
 0x430   :  { %10946 = vmatpush3.msra.mxu0 %v15820_v3  ;;  %10975 = vmatpush3.msra.mxu1 %v15825_v39  ;;  %v17195_v3 = vld [vmem:[#allocation4_spill] sm:$0xff]  ;;  %v17196_v39 = vld [vmem:[#allocation5_spill] sm:$0xff] }
 0x431   :  { %10904 = vmatprep.mubr.msk.f32.mxu0 %vm11639_vm1, %v17176_v29  ;;  %10933 = vmatprep.mubr.msk.f32.mxu1 %vm11639_vm1, %v17176_v29 }
 0x432   :  { %10947 = vmatprep.subr.mxu0 %v17176_v29  ;;  %10976 = vmatprep.subr.mxu1 %v17176_v29 }
 0x433   :  { %10905 = vmatmul.mubr.msk.f32.gmra.mxu0 %vm4661_vm2, %v16052_v55  ;;  %10934 = vmatmul.mubr.msk.f32.gmra.mxu1 %vm4661_vm2, %v16052_v55 }
 0x434   :  { %10948 = vmatpush3.msra.mxu0 %v15848_v32  ;;  %10977 = vmatpush3.msra.mxu1 %v15853_v25 }
 0x435   :  { %10949 = vmatprep.subr.mxu0 %v17176_v29  ;;  %10978 = vmatprep.subr.mxu1 %v17176_v29 }
 0x436   :  { %10907 = vmatprep.mubr.msk.f32.mxu0 %vm11639_vm1, %v17176_v29  ;;  %10936 = vmatprep.mubr.msk.f32.mxu1 %vm11639_vm1, %v17176_v29 }
 0x437   :  { %10950 = vmatpush3.msra.mxu0 %v15871_v50  ;;  %10979 = vmatpush3.msra.mxu1 %v15876_v30  ;;  %v17197_v30 = vld [vmem:[#allocation6_spill] sm:$0xff] }
 0x438   :  { %10908 = vmatmul.mubr.msk.f32.gmra.mxu0 %vm4661_vm2, %v16078_v16  ;;  %10937 = vmatmul.mubr.msk.f32.gmra.mxu1 %vm4661_vm2, %v16078_v16 }
 0x439   :  { %10951 = vmatprep.subr.mxu0 %v17176_v29  ;;  %10980 = vmatprep.subr.mxu1 %v17176_v29 }
 0x43a   :  { %10952 = vmatpush3.msra.mxu0 %v15895_v17  ;;  %10981 = vmatpush3.msra.mxu1 %v15900_v11  ;;  %v17198_v17 = vld [vmem:[#allocation7_spill] sm:$0xff] }
 0x43b   :  { %10910 = vmatprep.mubr.msk.f32.mxu0 %vm11639_vm1, %v17176_v29  ;;  %10939 = vmatprep.mubr.msk.f32.mxu1 %vm11639_vm1, %v17176_v29 }
 0x43c   :  { %10911 = vmatmul.mubr.msk.f32.gmra.mxu0 %vm4661_vm2, %v16106_v15  ;;  %10940 = vmatmul.mubr.msk.f32.gmra.mxu1 %vm4661_vm2, %v16106_v15 }
 0x43d   :  { %10953 = vmatprep.subr.mxu0 %v17176_v29  ;;  %10982 = vmatprep.subr.mxu1 %v17176_v29 }
 0x43e   :  { %10954 = vmatpush3.msra.mxu0 %v15925_v40  ;;  %10983 = vmatpush3.msra.mxu1 %v15930_v31  ;;  %v17199_v31 = vld [vmem:[#allocation8_spill] sm:$0xff] }
 0x43f   :  { %10913 = vmatprep.mubr.msk.f32.mxu0 %vm11639_vm1, %v17176_v29  ;;  %10942 = vmatprep.mubr.msk.f32.mxu1 %vm11639_vm1, %v17176_v29 }
 0x440   :  { %10955 = vmatprep.subr.mxu0 %v17176_v29  ;;  %10984 = vmatprep.subr.mxu1 %v17176_v29 }
 0x441   :  { %10914 = vmatmul.mubr.msk.f32.gmra.mxu0 %vm4661_vm2, %v16248_v14  ;;  %10943 = vmatmul.mubr.msk.f32.gmra.mxu1 %vm4661_vm2, %v16248_v14 }
 0x442   :  { %10956 = vmatpush3.msra.mxu0 %v15956_v47  ;;  %10985 = vmatpush3.msra.mxu1 %v15961_v54  ;;  %v17200_v47 = vld [vmem:[#allocation9_spill] sm:$0xff] }
 0x443   :  { %10957 = vmatprep.subr.mxu0 %v17176_v29  ;;  %10986 = vmatprep.subr.mxu1 %v17176_v29 }
 0x444   :  { %10958 = vmatpush3.msra.mxu0 %v15979_v24  ;;  %10959 = vmatprep.mubr.msk.f32.mxu0 %vm11639_vm1, %v17176_v29 }
 0x445   :  { %10987 = vmatpush3.msra.mxu1 %v15986_v12  ;;  %10988 = vmatprep.mubr.msk.f32.mxu1 %vm11639_vm1, %v17176_v29  ;;  %v17201_v12 = vld [vmem:[#allocation10_spill] sm:$0xff] }
 0x446   :  { %10960 = vmatmul.mubr.msk.f32.vlgmr.msra.gmra.mxu0 %vm4661_vm2, %v15812_v22  ;;  %10989 = vmatmul.mubr.msk.f32.vlgmr.msra.gmra.mxu1 %vm4661_vm2, %v15812_v22 }
 0x447   :  { %11003 = vmatprep.subr.mxu0 %v17176_v29  ;;  %11032 = vmatprep.subr.mxu1 %v17176_v29 }
 0x448   :  { %11004 = vmatpush3.msra.mxu0 %v16001_v1  ;;  %11033 = vmatpush3.msra.mxu1 %v16006_v59  ;;  %v17202_v1 = vld [vmem:[#allocation11_spill] sm:$0xff] }
 0x449   :  { %10962 = vmatprep.mubr.msk.f32.mxu0 %vm11639_vm1, %v17176_v29  ;;  %10991 = vmatprep.mubr.msk.f32.mxu1 %vm11639_vm1, %v17176_v29 }
 0x44a   :  { %11005 = vmatprep.subr.mxu0 %v17176_v29  ;;  %11034 = vmatprep.subr.mxu1 %v17176_v29 }
 0x44b   :  { %10963 = vmatmul.mubr.msk.f32.gmra.mxu0 %vm4661_vm2, %v15836_v63  ;;  %10992 = vmatmul.mubr.msk.f32.gmra.mxu1 %vm4661_vm2, %v15836_v63 }
 0x44c   :  { %11006 = vmatpush3.msra.mxu0 %v16023_v18  ;;  %11035 = vmatpush3.msra.mxu1 %v16028_v21 }
 0x44d   :  { %11007 = vmatprep.subr.mxu0 %v17176_v29  ;;  %11036 = vmatprep.subr.mxu1 %v17176_v29 }
 0x44e   :  { %10965 = vmatprep.mubr.msk.f32.mxu0 %vm11639_vm1, %v17176_v29  ;;  %10994 = vmatprep.mubr.msk.f32.mxu1 %vm11639_vm1, %v17176_v29 }
 0x44f   :  { %11008 = vmatpush3.msra.mxu0 %v16043_v41  ;;  %11037 = vmatpush3.msra.mxu1 %v16048_v61  ;;  %v17203_v41 = vld [vmem:[#allocation12_spill] sm:$0xff] }
 0x450   :  { %10966 = vmatmul.mubr.msk.f32.gmra.mxu0 %vm4661_vm2, %v15878_v0  ;;  %10995 = vmatmul.mubr.msk.f32.gmra.mxu1 %vm4661_vm2, %v15878_v0 }
 0x451   :  { %11009 = vmatprep.subr.mxu0 %v17176_v29  ;;  %11038 = vmatprep.subr.mxu1 %v17176_v29 }
 0x452   :  { %11010 = vmatpush3.msra.mxu0 %v16065_v34  ;;  %11039 = vmatpush3.msra.mxu1 %v16070_v48  ;;  %v17204_v48 = vld [vmem:[#allocation13_spill] sm:$0xff] }
 0x453   :  { %10968 = vmatprep.mubr.msk.f32.mxu0 %vm11639_vm1, %v17176_v29  ;;  %10997 = vmatprep.mubr.msk.f32.mxu1 %vm11639_vm1, %v17176_v29 }
 0x454   :  { %10969 = vmatmul.mubr.msk.f32.gmra.mxu0 %vm4661_vm2, %v15906_v60  ;;  %10998 = vmatmul.mubr.msk.f32.gmra.mxu1 %vm4661_vm2, %v15906_v60 }
 0x455   :  { %11011 = vmatprep.subr.mxu0 %v17176_v29  ;;  %11040 = vmatprep.subr.mxu1 %v17176_v29 }
 0x456   :  { %11012 = vmatpush3.msra.mxu0 %v16091_v53  ;;  %11041 = vmatpush3.msra.mxu1 %v16096_v44  ;;  %v17205_v44 = vld [vmem:[#allocation14_spill] sm:$0xff] }
 0x457   :  { %10971 = vmatprep.mubr.msk.f32.mxu0 %vm11639_vm1, %v17176_v29  ;;  %11000 = vmatprep.mubr.msk.f32.mxu1 %vm11639_vm1, %v17176_v29 }
 0x458   :  { %11013 = vmatprep.subr.mxu0 %v17176_v29  ;;  %11042 = vmatprep.subr.mxu1 %v17176_v29 }
 0x459   :  { %10972 = vmatmul.mubr.msk.f32.gmra.mxu0 %vm4661_vm2, %v15936_v6  ;;  %11001 = vmatmul.mubr.msk.f32.gmra.mxu1 %vm4661_vm2, %v15936_v6 }
 0x45a   :  { %11014 = vmatpush3.msra.mxu0 %v16115_v20  ;;  %11043 = vmatpush3.msra.mxu1 %v16120_v35 }
 0x45b   :  { %11015 = vmatprep.subr.mxu0 %v17176_v29  ;;  %11044 = vmatprep.subr.mxu1 %v17176_v29 }
 0x45c   :  { %11016 = vmatpush3.msra.mxu0 %v16131_v7  ;;  %11017 = vmatprep.mubr.msk.f32.mxu0 %vm11639_vm1, %v17176_v29 }
 0x45d   :  { %11045 = vmatpush3.msra.mxu1 %v16138_v49  ;;  %11046 = vmatprep.mubr.msk.f32.mxu1 %vm11639_vm1, %v17176_v29 }
 0x45e   :  { %11018 = vmatmul.mubr.msk.f32.vlgmr.msra.gmra.mxu0 %vm4661_vm2, %v15836_v63  ;;  %11047 = vmatmul.mubr.msk.f32.vlgmr.msra.gmra.mxu1 %vm4661_vm2, %v15836_v63 }
 0x45f   :  { %11061 = vmatprep.subr.mxu0 %v17176_v29  ;;  %11090 = vmatprep.subr.mxu1 %v17176_v29 }
 0x460   :  { %11062 = vmatpush3.msra.mxu0 %v16151_v43  ;;  %11091 = vmatpush3.msra.mxu1 %v16156_v56 }
 0x461   :  { %11020 = vmatprep.mubr.msk.f32.mxu0 %vm11639_vm1, %v17176_v29  ;;  %11049 = vmatprep.mubr.msk.f32.mxu1 %vm11639_vm1, %v17176_v29 }
 0x462   :  { %11063 = vmatprep.subr.mxu0 %v17176_v29  ;;  %11092 = vmatprep.subr.mxu1 %v17176_v29 }
 0x463   :  { %11021 = vmatmul.mubr.msk.f32.gmra.mxu0 %vm4661_vm2, %v15878_v0  ;;  %11050 = vmatmul.mubr.msk.f32.gmra.mxu1 %vm4661_vm2, %v15878_v0 }
 0x464   :  { %11064 = vmatpush3.msra.mxu0 %v16173_v23  ;;  %11093 = vmatpush3.msra.mxu1 %v16178_v51 }
 0x465   :  { %11065 = vmatprep.subr.mxu0 %v17176_v29  ;;  %11094 = vmatprep.subr.mxu1 %v17176_v29 }
 0x466   :  { %11023 = vmatprep.mubr.msk.f32.mxu0 %vm11639_vm1, %v17176_v29  ;;  %11052 = vmatprep.mubr.msk.f32.mxu1 %vm11639_vm1, %v17176_v29 }
 0x467   :  { %11066 = vmatpush3.msra.mxu0 %v16191_v4  ;;  %11095 = vmatpush3.msra.mxu1 %v16196_v46 }
 0x468   :  { %11024 = vmatmul.mubr.msk.f32.gmra.mxu0 %vm4661_vm2, %v15906_v60  ;;  %11053 = vmatmul.mubr.msk.f32.gmra.mxu1 %vm4661_vm2, %v15906_v60 }
 0x469   :  { %11067 = vmatprep.subr.mxu0 %v17176_v29  ;;  %11096 = vmatprep.subr.mxu1 %v17176_v29 }
 0x46a   :  { %11068 = vmatpush3.msra.mxu0 %v16209_v52  ;;  %11097 = vmatpush3.msra.mxu1 %v16214_v2  ;;  %v17207_v2 = vld [vmem:[#allocation3_spill] sm:$0xff] }
 0x46b   :  { %11026 = vmatprep.mubr.msk.f32.mxu0 %vm11639_vm1, %v17176_v29  ;;  %11055 = vmatprep.mubr.msk.f32.mxu1 %vm11639_vm1, %v17176_v29 }
 0x46c   :  { %11027 = vmatmul.mubr.msk.f32.gmra.mxu0 %vm4661_vm2, %v15936_v6  ;;  %11056 = vmatmul.mubr.msk.f32.gmra.mxu1 %vm4661_vm2, %v15936_v6 }
 0x46d   :  { %11069 = vmatprep.subr.mxu0 %v17176_v29  ;;  %11098 = vmatprep.subr.mxu1 %v17176_v29 }
 0x46e   :  { %11070 = vmatpush3.msra.mxu0 %v16233_v36  ;;  %11099 = vmatpush3.msra.mxu1 %v16238_v42 }
 0x46f   :  { %11029 = vmatprep.mubr.msk.f32.mxu0 %vm11639_vm1, %v17176_v29  ;;  %11058 = vmatprep.mubr.msk.f32.mxu1 %vm11639_vm1, %v17176_v29 }
 0x470   :  { %11071 = vmatprep.subr.mxu0 %v17176_v29  ;;  %11100 = vmatprep.subr.mxu1 %v17176_v29 }
 0x471   :  { %11030 = vmatmul.mubr.msk.f32.gmra.mxu0 %vm4661_vm2, %v16390_v13  ;;  %11059 = vmatmul.mubr.msk.f32.gmra.mxu1 %vm4661_vm2, %v16390_v13 }
 0x472   :  { %11072 = vmatpush3.msra.mxu0 %v16257_v62  ;;  %11101 = vmatpush3.msra.mxu1 %v16262_v28 }
 0x473   :  { %11073 = vmatprep.subr.mxu0 %v17176_v29  ;;  %11102 = vmatprep.subr.mxu1 %v17176_v29 }
 0x474   :  { %11074 = vmatpush3.msra.mxu0 %v16273_v57  ;;  %11075 = vmatprep.mubr.msk.f32.mxu0 %vm11639_vm1, %v17176_v29 }
 0x475   :  { %11103 = vmatpush3.msra.mxu1 %v16280_v58  ;;  %11104 = vmatprep.mubr.msk.f32.mxu1 %vm11639_vm1, %v17176_v29 }
 0x476   :  { %11076 = vmatmul.mubr.msk.f32.vlgmr.msra.gmra.mxu0 %vm4661_vm2, %v16052_v55  ;;  %11105 = vmatmul.mubr.msk.f32.vlgmr.msra.gmra.mxu1 %vm4661_vm2, %v16052_v55 }
 0x477   :  { %11119 = vmatprep.subr.mxu0 %v17176_v29  ;;  %11148 = vmatprep.subr.mxu1 %v17176_v29  ;;  %v16734_v37 = vpop.f32.mrf.mxu0  ;;  %v16736_v22 = vpop.f32.mrf.mxu1 }
 0x478   :  { %11120 = vmatpush3.msra.mxu0 %v17195_v3  ;;  %11149 = vmatpush3.msra.mxu1 %v17196_v39 }
 0x479   :  { %11078 = vmatprep.mubr.msk.f32.mxu0 %vm11639_vm1, %v17176_v29  ;;  %11107 = vmatprep.mubr.msk.f32.mxu1 %vm11639_vm1, %v17176_v29  ;;  %v10613_v63 = vpop.f32.mrf.mxu0  ;;  %v10642_v32 = vpop.f32.mrf.mxu1 }
 0x47a   :  { %11121 = vmatprep.subr.mxu0 %v17176_v29  ;;  %11150 = vmatprep.subr.mxu1 %v17176_v29 }
 0x47b   :  { %11079 = vmatmul.mubr.msk.f32.gmra.mxu0 %vm4661_vm2, %v16078_v16  ;;  %11108 = vmatmul.mubr.msk.f32.gmra.mxu1 %vm4661_vm2, %v16078_v16  ;;  %v16750_v25 = vpop.f32.mrf.mxu0  ;;  %v16752_v50 = vpop.f32.mrf.mxu1 }
 0x47c   :  { %11122 = vmatpush3.msra.mxu0 %v17197_v30  ;;  %11151 = vmatpush3.msra.mxu1 %v17198_v17 }
 0x47d   :  { %11123 = vmatprep.subr.mxu0 %v17176_v29  ;;  %11152 = vmatprep.subr.mxu1 %v17176_v29  ;;  %v10616_v11 = vpop.f32.mrf.mxu0  ;;  %v10645_v40 = vpop.f32.mrf.mxu1 }
 0x47e   :  { %11081 = vmatprep.mubr.msk.f32.mxu0 %vm11639_vm1, %v17176_v29  ;;  %11110 = vmatprep.mubr.msk.f32.mxu1 %vm11639_vm1, %v17176_v29 }
 0x47f   :  { %11124 = vmatpush3.msra.mxu0 %v17199_v31  ;;  %11153 = vmatpush3.msra.mxu1 %v17200_v47 }
 0x480   :  { %11082 = vmatmul.mubr.msk.f32.gmra.mxu0 %vm4661_vm2, %v16106_v15  ;;  %11111 = vmatmul.mubr.msk.f32.gmra.mxu1 %vm4661_vm2, %v16106_v15  ;;  %v16768_v54 = vpop.f32.mrf.mxu0  ;;  %v16770_v24 = vpop.f32.mrf.mxu1  ;;  %v17206_v15 = vld [vmem:[#allocation15_spill] sm:$0xff] }
 0x481   :  { %11125 = vmatprep.subr.mxu0 %v17176_v29  ;;  %11154 = vmatprep.subr.mxu1 %v17176_v29 }
 0x482   :  { %11126 = vmatpush3.msra.mxu0 %v17201_v12  ;;  %11155 = vmatpush3.msra.mxu1 %v17202_v1  ;;  %v10619_v59 = vpop.f32.mrf.mxu0  ;;  %v10648_v10 = vpop.f32.mrf.mxu1 }
 0x483   :  { %11084 = vmatprep.mubr.msk.f32.mxu0 %vm11639_vm1, %v17176_v29  ;;  %11113 = vmatprep.mubr.msk.f32.mxu1 %vm11639_vm1, %v17176_v29 }
 0x484   :  { %11085 = vmatmul.mubr.msk.f32.gmra.mxu0 %vm4661_vm2, %v16248_v14  ;;  %11114 = vmatmul.mubr.msk.f32.gmra.mxu1 %vm4661_vm2, %v16248_v14  ;;  %v16784_v18 = vpop.f32.mrf.mxu0  ;;  %v16786_v21 = vpop.f32.mrf.mxu1 }
 0x485   :  { %11127 = vmatprep.subr.mxu0 %v17176_v29  ;;  %11156 = vmatprep.subr.mxu1 %v17176_v29 }
 0x486   :  { %11128 = vmatpush3.msra.mxu0 %v16375_v9  ;;  %11157 = vmatpush3.msra.mxu1 %v17203_v41  ;;  %v10622_v61 = vpop.f32.mrf.mxu0  ;;  %v10651_v55 = vpop.f32.mrf.mxu1 }
 0x487   :  { %11087 = vmatprep.mubr.msk.f32.mxu0 %vm11639_vm1, %v17176_v29  ;;  %11116 = vmatprep.mubr.msk.f32.mxu1 %vm11639_vm1, %v17176_v29 }
 0x488   :  { %11129 = vmatprep.subr.mxu0 %v17176_v29  ;;  %11158 = vmatprep.subr.mxu1 %v17176_v29 }
 0x489   :  { %11088 = vmatmul.mubr.msk.f32.gmra.mxu0 %vm4661_vm2, %v16498_v8  ;;  %11117 = vmatmul.mubr.msk.f32.gmra.mxu1 %vm4661_vm2, %v16498_v8  ;;  %v16802_v9 = vpop.f32.mrf.mxu0  ;;  %v16804_v34 = vpop.f32.mrf.mxu1 }
 0x48a   :  { %11130 = vmatpush3.msra.mxu0 %v16399_v33  ;;  %11159 = vmatpush3.msra.mxu1 %v17204_v48 }
 0x48b   :  { %11131 = vmatprep.subr.mxu0 %v17176_v29  ;;  %11160 = vmatprep.subr.mxu1 %v17176_v29  ;;  %v10625_v16 = vpop.f32.mrf.mxu0  ;;  %v10654_v53 = vpop.f32.mrf.mxu1 }
 0x48c   :  { %11132 = vmatpush3.msra.mxu0 %v17205_v44  ;;  %11133 = vmatprep.mubr.msk.f32.mxu0 %vm11639_vm1, %v17176_v29 }
 0x48d   :  { %11161 = vmatpush3.msra.mxu1 %v17206_v15  ;;  %11162 = vmatprep.mubr.msk.f32.mxu1 %vm11639_vm1, %v17176_v29 }
 0x48e   :  { %11134 = vmatmul.mubr.msk.f32.vlgmr.msra.gmra.mxu0 %vm4661_vm2, %v15878_v0  ;;  %11163 = vmatmul.mubr.msk.f32.vlgmr.msra.gmra.mxu1 %vm4661_vm2, %v15878_v0  ;;  %v4946_v20 = vpop.f32.mrf.mxu0  ;;  %v5036_v35 = vpop.f32.mrf.mxu1 }
 0x48f   :  { %11136 = vmatprep.mubr.msk.f32.mxu0 %vm11639_vm1, %v17176_v29  ;;  %11165 = vmatprep.mubr.msk.f32.mxu1 %vm11639_vm1, %v17176_v29  ;;  %v4947_v7 = vadd.f32 %v4946_v20, %v16734_v37  ;;  %v5037_v49 = vadd.f32 %v5036_v35, %v16736_v22 }
 0x490   :  { %v10671_v43 = vpop.f32.mrf.mxu0  ;;  %v10700_v56 = vpop.f32.mrf.mxu1  ;;  %11177 = vmatprep.subr.mxu0 %v17176_v29  ;;  %11190 = vmatprep.subr.mxu1 %v17176_v29 }
 0x492   :  { %11137 = vmatmul.mubr.msk.f32.gmra.mxu0 %vm4661_vm2, %v15906_v60  ;;  %11166 = vmatmul.mubr.msk.f32.gmra.mxu1 %vm4661_vm2, %v15906_v60  ;;  %v11637_v60 = vld [vmem:[%s17130_s3] ss:$0 sm:$0xff] }
 0x493   :  { %11139 = vmatprep.mubr.msk.f32.mxu0 %vm11639_vm1, %v17176_v29  ;;  %11168 = vmatprep.mubr.msk.f32.mxu1 %vm11639_vm1, %v17176_v29  ;;  %v4951_v0 = vpop.f32.mrf.mxu0  ;;  %v5041_v23 = vpop.f32.mrf.mxu1  ;;  %v4631_v36 = vadd.f32 %v11637_v60, %v17207_v2 }
 0x494   :  { %v4952_v51 = vadd.f32 %v4951_v0, %v16750_v25  ;;  %v5042_v4 = vadd.f32 %v5041_v23, %v16752_v50 }
 0x495   :  { %v10674_v46 = vpop.f32.mrf.mxu0  ;;  %v10703_v52 = vpop.f32.mrf.mxu1  ;;  %v4638_v58 = vmax.f32 %v4631_v36, 0.0 }
 0x496   :  { %11140 = vmatmul.mubr.msk.f32.gmra.mxu0 %vm4661_vm2, %v15936_v6  ;;  %11169 = vmatmul.mubr.msk.f32.gmra.mxu1 %vm4661_vm2, %v15936_v6 }
 0x497   :  { %11142 = vmatprep.mubr.msk.f32.mxu0 %vm11639_vm1, %v17176_v29  ;;  %11171 = vmatprep.mubr.msk.f32.mxu1 %vm11639_vm1, %v17176_v29 }
 0x498   :  { %v4956_v42 = vpop.f32.mrf.mxu0  ;;  %v5046_v14 = vpop.f32.mrf.mxu1 }
 0x499   :  { %v4957_v62 = vadd.f32 %v4956_v42, %v16768_v54  ;;  %v5047_v28 = vadd.f32 %v5046_v14, %v16770_v24 }
 0x49a   :  { %11143 = vmatmul.mubr.msk.f32.gmra.mxu0 %vm4661_vm2, %v16390_v13  ;;  %11172 = vmatmul.mubr.msk.f32.gmra.mxu1 %vm4661_vm2, %v16390_v13  ;;  %v10677_v6 = vpop.f32.mrf.mxu0  ;;  %v10706_v57 = vpop.f32.mrf.mxu1 }
 0x49b   :  { %11145 = vmatprep.mubr.msk.f32.mxu0 %vm11639_vm1, %v17176_v29  ;;  %11174 = vmatprep.mubr.msk.f32.mxu1 %vm11639_vm1, %v17176_v29  ;;  %v7734_v6 = vld [vmem:[%s17131_s7 + $0x48] sm:$0xff] }
 0x49c   :  { %v4961_v33 = vpop.f32.mrf.mxu0  ;;  %v5051_v27 = vpop.f32.mrf.mxu1  ;;  %11178 = vmatpush3.msra.mxu0 %v7734_v6 }
 0x49d   :  { %v4962_v19 = vadd.f32 %v4961_v33, %v16784_v18  ;;  %v5052_v38 = vadd.f32 %v5051_v27, %v16786_v21  ;;  %11179 = vmatprep.subr.mxu0 %v17176_v29 }
 0x49e   :  { %11146 = vmatmul.mubr.msk.f32.gmra.mxu0 %vm4661_vm2, %v4638_v58  ;;  %11175 = vmatmul.mubr.msk.f32.gmra.mxu1 %vm4661_vm2, %v4638_v58  ;;  %v10680_v13 = vpop.f32.mrf.mxu0  ;;  %v10709_v8 = vpop.f32.mrf.mxu1 }
 0x49f   :  { %11200 = vmatprep.mubr.msk.f32.mxu1 %vm11639_vm1, %v17176_v29  ;;  %11187 = vmatprep.mubr.msk.f32.mxu0 %vm11639_vm1, %v17176_v29  ;;  %v6656_v13 = vld [vmem:[%s17131_s7 + $0x20] sm:$0xff] }
 0x4a0   :  { %11191 = vmatpush3.msra.mxu1 %v6656_v13 }
 0x4a1   :  { %v4966_v45 = vpop.f32.mrf.mxu0  ;;  %v5056_v5 = vpop.f32.mrf.mxu1  ;;  %11192 = vmatprep.subr.mxu1 %v17176_v29 }
 0x4a2   :  { %v4967_v26 = vadd.f32 %v4966_v45, %v16802_v9  ;;  %v5057_v37 = vadd.f32 %v5056_v5, %v16804_v34  ;;  %v6655_v5 = vld [vmem:[%s17131_s7 + $0x18] sm:$0xff] }
 0x4a3   :  { %v10683_v22 = vpop.f32.mrf.mxu0  ;;  %v10712_v3 = vpop.f32.mrf.mxu1  ;;  %11193 = vmatpush3.msra.mxu1 %v6655_v5 }
 0x4a4   :  { %11194 = vmatprep.subr.mxu1 %v17176_v29 }
 0x4a6   :  { %v5137_v39 = vpop.f32.mrf.mxu0  ;;  %v5235_v63 = vpop.f32.mrf.mxu1 }
 0x4a7   :  { %v5259_v32 = vadd.f32 %v5137_v39, %v4947_v7  ;;  %v5264_v25 = vadd.f32 %v5235_v63, %v5037_v49  ;;  %v6654_v39 = vld [vmem:[%s17131_s7 + $0x10] sm:$0xff]  ;;  %v7733_v63 = vld [vmem:[%s17131_s7 + $0x40] sm:$0xff] }
 0x4a8   :  { %v10729_v50 = vpop.f32.mrf.mxu0  ;;  %v10758_v30 = vpop.f32.mrf.mxu1  ;;  %11195 = vmatpush3.msra.mxu1 %v6654_v39  ;;  %11180 = vmatpush3.msra.mxu0 %v7733_v63 }
 0x4a9   :  { %11196 = vmatprep.subr.mxu1 %v17176_v29  ;;  %11181 = vmatprep.subr.mxu0 %v17176_v29  ;;  %v7732_v30 = vld [vmem:[%s17131_s7 + $0x38] sm:$0xff] }
 0x4aa   :  { %11182 = vmatpush3.msra.mxu0 %v7732_v30 }
 0x4ab   :  { %v5142_v17 = vpop.f32.mrf.mxu0  ;;  %v5240_v11 = vpop.f32.mrf.mxu1  ;;  %11183 = vmatprep.subr.mxu0 %v17176_v29 }
 0x4ac   :  { %v5260_v40 = vadd.f32 %v5142_v17, %v4952_v51  ;;  %v5265_v31 = vadd.f32 %v5240_v11, %v5042_v4 }
 0x4ad   :  { %v10732_v47 = vpop.f32.mrf.mxu0  ;;  %v10761_v54 = vpop.f32.mrf.mxu1 }
 0x4ae   :  { %v7731_v54 = vld [vmem:[%s17131_s7 + $0x30] sm:$0xff] }
 0x4af   :  { %11184 = vmatpush3.msra.mxu0 %v7731_v54 }
 0x4b0   :  { %v5147_v24 = vpop.f32.mrf.mxu0  ;;  %v5245_v12 = vpop.f32.mrf.mxu1  ;;  %11185 = vmatprep.subr.mxu0 %v17176_v29 }
 0x4b1   :  { %v5261_v1 = vadd.f32 %v5147_v24, %v4957_v62  ;;  %v5266_v59 = vadd.f32 %v5245_v12, %v5047_v28  ;;  %v7730_v12 = vld [vmem:[%s17131_s7 + $0x28] sm:$0xff] }
 0x4b2   :  { %v10735_v10 = vpop.f32.mrf.mxu0  ;;  %v10764_v18 = vpop.f32.mrf.mxu1  ;;  %11186 = vmatpush3.msra.mxu0 %v7730_v12 }
 0x4b3   :  { %11203 = vmatprep.subr.mxu0 %v17176_v29 }
 0x4b4   :  { %v5152_v21 = vpop.f32.mrf.mxu0  ;;  %v5250_v41 = vpop.f32.mrf.mxu1 }
 0x4b5   :  { %v5262_v61 = vadd.f32 %v5152_v21, %v4962_v19  ;;  %v5267_v55 = vadd.f32 %v5250_v41, %v5052_v38 }
 0x4b6   :  { %v10738_v9 = vpop.f32.mrf.mxu0  ;;  %v10767_v34 = vpop.f32.mrf.mxu1 }
 0x4b9   :  { %v5157_v48 = vpop.f32.mrf.mxu0  ;;  %v5255_v16 = vpop.f32.mrf.mxu1 }
 0x4ba   :  { %v5263_v53 = vadd.f32 %v5157_v48, %v4967_v26  ;;  %v5268_v44 = vadd.f32 %v5255_v16, %v5057_v37 }
 0x4bb   :  { %v10741_v15 = vpop.f32.mrf.mxu0  ;;  %v10770_v20 = vpop.f32.mrf.mxu1 }
 0x4be   :  { %v5346_v35 = vpop.f32.mrf.mxu0  ;;  %v5444_v7 = vpop.f32.mrf.mxu1 }
 0x4bf   :  { %v5468_v49 = vadd.f32 %v5346_v35, %v5259_v32  ;;  %v5473_v43 = vadd.f32 %v5444_v7, %v5264_v25  ;;  %v6653_v32 = vld [vmem:[%s17131_s7 + $0x8] sm:$0xff] }
 0x4c0   :  { %v10787_v56 = vpop.f32.mrf.mxu0  ;;  %v10816_v0 = vpop.f32.mrf.mxu1  ;;  %11197 = vmatpush3.msra.mxu1 %v6653_v32 }
 0x4c1   :  { %11198 = vmatprep.subr.mxu1 %v17176_v29 }
 0x4c3   :  { %v5351_v23 = vpop.f32.mrf.mxu0  ;;  %v5449_v51 = vpop.f32.mrf.mxu1 }
 0x4c4   :  { %v5469_v4 = vadd.f32 %v5351_v23, %v5260_v40  ;;  %v5474_v46 = vadd.f32 %v5449_v51, %v5265_v31  ;;  %v6652_v40 = vld [vmem:[%s17131_s7] sm:$0xff] }
 0x4c5   :  { %v10790_v52 = vpop.f32.mrf.mxu0  ;;  %v10819_v60 = vpop.f32.mrf.mxu1  ;;  %11199 = vmatpush3.msra.mxu1 %v6652_v40 }
 0x4c6   :  { %11216 = vmatprep.subr.mxu1 %v17176_v29 }
 0x4c8   :  { %v5356_v2 = vpop.f32.mrf.mxu0  ;;  %v5454_v36 = vpop.f32.mrf.mxu1 }
 0x4c9   :  { %v16870_v42 = vadd.f32 %v5356_v2, %v5261_v1  ;;  %v16872_v14 = vadd.f32 %v5454_v36, %v5266_v59 }
 0x4ca   :  { %v10793_v62 = vpop.f32.mrf.mxu0  ;;  %v10822_v28 = vpop.f32.mrf.mxu1 }
 0x4cc   :  { %v5361_v57 = vpop.f32.mrf.mxu0  ;;  %v5459_v58 = vpop.f32.mrf.mxu1 }
 0x4cd   :  { %v5471_v33 = vadd.f32 %v5361_v57, %v5262_v61  ;;  %v5476_v27 = vadd.f32 %v5459_v58, %v5267_v55 }
 0x4ce   :  { %v10796_v19 = vpop.f32.mrf.mxu0  ;;  %v10825_v38 = vpop.f32.mrf.mxu1 }
 0x4d1   :  { %v5366_v8 = vpop.f32.mrf.mxu0  ;;  %v5464_v45 = vpop.f32.mrf.mxu1 }
 0x4d2   :  { %v5472_v26 = vadd.f32 %v5366_v8, %v5263_v53  ;;  %v5477_v37 = vadd.f32 %v5464_v45, %v5268_v44 }
 0x4d3   :  { %v10799_v22 = vpop.f32.mrf.mxu0  ;;  %v10828_v3 = vpop.f32.mrf.mxu1 }
 0x4d6   :  { %v5555_v25 = vpop.f32.mrf.mxu0  ;;  %v5653_v50 = vpop.f32.mrf.mxu1 }
 0x4d7   :  { %v16900_v17 = vadd.f32 %v5555_v25, %v5468_v49  ;;  %v16902_v11 = vadd.f32 %v5653_v50, %v5473_v43 }
 0x4d8   :  { %v10845_v31 = vpop.f32.mrf.mxu0  ;;  %v10874_v47 = vpop.f32.mrf.mxu1 }
 0x4d9   :  { %v5687_v24 = vmax.f32 %v16900_v17, %v16902_v11 }
 0x4db   :  { %v5560_v1 = vpop.f32.mrf.mxu0  ;;  %v5658_v59 = vpop.f32.mrf.mxu1 }
 0x4dc   :  { %v16919_v10 = vadd.f32 %v5560_v1, %v5469_v4  ;;  %v16921_v18 = vadd.f32 %v5658_v59, %v5474_v46 }
 0x4dd   :  { %v10848_v21 = vpop.f32.mrf.mxu0  ;;  %v10877_v41 = vpop.f32.mrf.mxu1 }
 0x4de   :  { %v5688_v61 = vmax.f32 %v16919_v10, %v16921_v18  ;;  %v7746_v10 = vld [vmem:[%s17131_s7 + $0x90] sm:$0xff] }
 0x4e0   :  { %v5565_v55 = vpop.f32.mrf.mxu0  ;;  %v5663_v9 = vpop.f32.mrf.mxu1 }
 0x4e1   :  { %v16927_v34 = vadd.f32 %v5565_v55, %v16870_v42  ;;  %v16930_v48 = vadd.f32 %v5663_v9, %v16872_v14 }
 0x4e2   :  { %v10851_v16 = vpop.f32.mrf.mxu0  ;;  %v10880_v53 = vpop.f32.mrf.mxu1 }
 0x4e3   :  { %v5689_v44 = vmax.f32 %v16927_v34, %v16930_v48 }
 0x4e4   :  { %v5570_v15 = vpop.f32.mrf.mxu0  ;;  %v5668_v20 = vpop.f32.mrf.mxu1 }
 0x4e5   :  { %v16934_v35 = vadd.f32 %v5570_v15, %v5471_v33  ;;  %v16936_v7 = vadd.f32 %v5668_v20, %v5476_v27 }
 0x4e6   :  { %v10854_v49 = vpop.f32.mrf.mxu0  ;;  %v10883_v43 = vpop.f32.mrf.mxu1 }
 0x4e7   :  { %v5690_v56 = vmax.f32 %v16934_v35, %v16936_v7 }
 0x4e9   :  { %v5575_v0 = vpop.f32.mrf.mxu0  ;;  %v5673_v23 = vpop.f32.mrf.mxu1 }
 0x4ea   :  { %v16940_v51 = vadd.f32 %v5575_v0, %v5472_v26  ;;  %v16942_v4 = vadd.f32 %v5673_v23, %v5477_v37 }
 0x4eb   :  { %v10857_v46 = vpop.f32.mrf.mxu0  ;;  %v10886_v52 = vpop.f32.mrf.mxu1 }
 0x4ec   :  { %v5691_v60 = vmax.f32 %v16940_v51, %v16942_v4  ;;  %v7753_v51 = vld [vmem:[%s17131_s7 + $0xc0] sm:$0xff]  ;;  %v7752_v4 = vld [vmem:[%s17131_s7 + $0xb8] sm:$0xff] }
 0x4ee   :  { %v5758_v2 = vpop.f32.mrf.mxu0  ;;  %v5848_v36 = vpop.f32.mrf.mxu1 }
 0x4f0   :  { %v10903_v42 = vpop.f32.mrf.mxu0  ;;  %v10932_v14 = vpop.f32.mrf.mxu1 }
 0x4f3   :  { %v5763_v62 = vpop.f32.mrf.mxu0  ;;  %v5853_v28 = vpop.f32.mrf.mxu1 }
 0x4f5   :  { %v10906_v6 = vpop.f32.mrf.mxu0  ;;  %v10935_v57 = vpop.f32.mrf.mxu1 }
 0x4f8   :  { %v5768_v58 = vpop.f32.mrf.mxu0  ;;  %v5858_v33 = vpop.f32.mrf.mxu1 }
 0x4fa   :  { %v10909_v27 = vpop.f32.mrf.mxu0  ;;  %v10938_v19 = vpop.f32.mrf.mxu1 }
 0x4fc   :  { %v5773_v38 = vpop.f32.mrf.mxu0  ;;  %v5863_v13 = vpop.f32.mrf.mxu1 }
 0x4fe   :  { %v10912_v8 = vpop.f32.mrf.mxu0  ;;  %v10941_v45 = vpop.f32.mrf.mxu1 }
 0x501   :  { %v5778_v5 = vpop.f32.mrf.mxu0  ;;  %v5868_v26 = vpop.f32.mrf.mxu1 }
 0x503   :  { %v10915_v37 = vpop.f32.mrf.mxu0  ;;  %v10944_v22 = vpop.f32.mrf.mxu1 }
 0x506   :  { %v5938_v3 = vpop.f32.mrf.mxu0  ;;  %v6028_v39 = vpop.f32.mrf.mxu1 }
 0x507   :  { %v16946_v63 = vadd.f32 %v5938_v3, %v5758_v2  ;;  %v16948_v32 = vadd.f32 %v6028_v39, %v5848_v36 }
 0x508   :  { %v10961_v25 = vpop.f32.mrf.mxu0  ;;  %v10990_v50 = vpop.f32.mrf.mxu1 }
 0x50b   :  { %v5943_v30 = vpop.f32.mrf.mxu0  ;;  %v6033_v40 = vpop.f32.mrf.mxu1 }
 0x50c   :  { %v16950_v31 = vadd.f32 %v5943_v30, %v5763_v62  ;;  %v16952_v47 = vadd.f32 %v6033_v40, %v5853_v28 }
 0x50d   :  { %v10964_v54 = vpop.f32.mrf.mxu0  ;;  %v10993_v12 = vpop.f32.mrf.mxu1 }
 0x510   :  { %v5948_v1 = vpop.f32.mrf.mxu0  ;;  %v6038_v59 = vpop.f32.mrf.mxu1 }
 0x511   :  { %v16954_v21 = vadd.f32 %v5948_v1, %v5768_v58  ;;  %v16956_v41 = vadd.f32 %v6038_v59, %v5858_v33 }
 0x512   :  { %v10967_v55 = vpop.f32.mrf.mxu0  ;;  %v10996_v9 = vpop.f32.mrf.mxu1 }
 0x514   :  { %v5953_v16 = vpop.f32.mrf.mxu0  ;;  %v6043_v53 = vpop.f32.mrf.mxu1 }
 0x515   :  { %v16958_v15 = vadd.f32 %v5953_v16, %v5773_v38  ;;  %v16960_v20 = vadd.f32 %v6043_v53, %v5863_v13 }
 0x516   :  { %v10970_v49 = vpop.f32.mrf.mxu0  ;;  %v10999_v43 = vpop.f32.mrf.mxu1 }
 0x519   :  { %v5958_v0 = vpop.f32.mrf.mxu0  ;;  %v6048_v23 = vpop.f32.mrf.mxu1 }
 0x51a   :  { %v16962_v46 = vadd.f32 %v5958_v0, %v5778_v5  ;;  %v16964_v52 = vadd.f32 %v6048_v23, %v5868_v26 }
 0x51b   :  { %v10973_v2 = vpop.f32.mrf.mxu0  ;;  %v11002_v36 = vpop.f32.mrf.mxu1 }
 0x51e   :  { %v6118_v42 = vpop.f32.mrf.mxu0  ;;  %v6208_v14 = vpop.f32.mrf.mxu1 }
 0x520   :  { %v11019_v62 = vpop.f32.mrf.mxu0  ;;  %v11048_v28 = vpop.f32.mrf.mxu1 }
 0x521   :  { %v6232_v62 = vadd.f32 %v6118_v42, %v16946_v63  ;;  %v6237_v28 = vadd.f32 %v6208_v14, %v16948_v32  ;;  %v16982_v32 = vld [vmem:[%s17132_s6] ss:$0 sm:$0xff] }
 0x523   :  { %v6123_v6 = vpop.f32.mrf.mxu0  ;;  %v6213_v57 = vpop.f32.mrf.mxu1 }
 0x525   :  { %v11022_v58 = vpop.f32.mrf.mxu0  ;;  %v11051_v33 = vpop.f32.mrf.mxu1 }
 0x528   :  { %v6128_v27 = vpop.f32.mrf.mxu0  ;;  %v6218_v19 = vpop.f32.mrf.mxu1 }
 0x529   :  { %v6234_v63 = vadd.f32 %v6128_v27, %v16954_v21 }
 0x52a   :  { %v11025_v38 = vpop.f32.mrf.mxu0  ;;  %v11054_v13 = vpop.f32.mrf.mxu1 }
 0x52c   :  { %v6133_v8 = vpop.f32.mrf.mxu0  ;;  %v6223_v45 = vpop.f32.mrf.mxu1 }
 0x52e   :  { %v11028_v5 = vpop.f32.mrf.mxu0  ;;  %v11057_v37 = vpop.f32.mrf.mxu1 }
 0x531   :  { %v16966_v26 = vpop.f32.mrf.mxu0  ;;  %v16968_v22 = vpop.f32.mrf.mxu1 }
 0x532   :  { %v6236_v18 = vadd.f32 %v16966_v26, %v16962_v46  ;;  %v7741_v46 = vld [vmem:[%s17131_s7 + $0x70] sm:$0xff] }
 0x533   :  { %v11031_v3 = vpop.f32.mrf.mxu0  ;;  %v11060_v39 = vpop.f32.mrf.mxu1 }
 0x534   :  { %v6233_v3 = vadd.f32 %v6123_v6, %v16950_v31  ;;  %v6238_v39 = vadd.f32 %v6213_v57, %v16952_v47  ;;  %v6239_v31 = vadd.f32 %v6218_v19, %v16956_v41  ;;  %v7747_v19 = vld [vmem:[%s17131_s7 + $0x98] sm:$0xff] }
 0x536   :  { %v6308_v25 = vpop.f32.mrf.mxu0  ;;  %v6398_v50 = vpop.f32.mrf.mxu1 }
 0x537   :  { %v6422_v38 = vadd.f32 %v6308_v25, %v6232_v62  ;;  %v6427_v13 = vadd.f32 %v6398_v50, %v6237_v28  ;;  %v6240_v62 = vadd.f32 %v6223_v45, %v16960_v20 }
 0x538   :  { %v11077_v30 = vpop.f32.mrf.mxu0  ;;  %v11106_v40 = vpop.f32.mrf.mxu1 }
 0x53b   :  { %v6313_v54 = vpop.f32.mrf.mxu0  ;;  %v6403_v12 = vpop.f32.mrf.mxu1 }
 0x53d   :  { %v11080_v1 = vpop.f32.mrf.mxu0  ;;  %v11109_v59 = vpop.f32.mrf.mxu1 }
 0x540   :  { %v6318_v55 = vpop.f32.mrf.mxu0  ;;  %v6408_v9 = vpop.f32.mrf.mxu1 }
 0x542   :  { %v11083_v16 = vpop.f32.mrf.mxu0  ;;  %v11112_v53 = vpop.f32.mrf.mxu1 }
 0x543   :  { %v6423_v16 = vadd.f32 %v6313_v54, %v6233_v3  ;;  %v6428_v53 = vadd.f32 %v6403_v12, %v6238_v39  ;;  %v6424_v54 = vadd.f32 %v6318_v55, %v6234_v63  ;;  %v6429_v12 = vadd.f32 %v6408_v9, %v6239_v31  ;;  %v7744_v3 = vld [vmem:[%s17131_s7 + $0x80] sm:$0xff] }
 0x544   :  { %v6323_v49 = vpop.f32.mrf.mxu0  ;;  %v6413_v43 = vpop.f32.mrf.mxu1 }
 0x546   :  { %v11086_v0 = vpop.f32.mrf.mxu0  ;;  %v11115_v23 = vpop.f32.mrf.mxu1 }
 0x547   :  { %v6235_v23 = vadd.f32 %v6133_v8, %v16958_v15  ;;  %v6430_v15 = vadd.f32 %v6413_v43, %v6240_v62  ;;  %v7059_v62 = vld [vmem:[%s17133_s9] sm:$0xff] }
 0x549   :  { %v16970_v2 = vpop.f32.mrf.mxu0  ;;  %v16972_v36 = vpop.f32.mrf.mxu1 }
 0x54b   :  { %v11089_v58 = vpop.f32.mrf.mxu0  ;;  %v11118_v33 = vpop.f32.mrf.mxu1 }
 0x54c   :  { %v6425_v33 = vadd.f32 %v6323_v49, %v6235_v23  ;;  %v7060_v23 = vld [vmem:[%s17133_s9 + $0x8] sm:$0xff] }
 0x54e   :  { %v6501_v5 = vpop.f32.mrf.mxu0  ;;  %v6591_v37 = vpop.f32.mrf.mxu1 }
 0x54f   :  { %v6615_v30 = vadd.f32 %v6501_v5, %v6422_v38  ;;  %v6620_v40 = vadd.f32 %v6591_v37, %v6427_v13  ;;  %v6426_v37 = vadd.f32 %v16970_v2, %v6236_v18 }
 0x550   :  { %v11135_v1 = vpop.f32.mrf.mxu0  ;;  %v11164_v59 = vpop.f32.mrf.mxu1 }
 0x551   :  { %v6625_v0 = vmax.f32 %v6615_v30, %v6620_v40  ;;  %v7739_v1 = vld [vmem:[%s17131_s7 + $0x60] sm:$0xff]  ;;  %v7743_v59 = vld [vmem:[%s17131_s7 + $0x78] sm:$0xff] }
 0x552   :  { %v6506_v42 = vpop.f32.mrf.mxu0  ;;  %v6596_v14 = vpop.f32.mrf.mxu1 }
 0x553   :  { %v6630_v47 = vmax.f32 %v5687_v24, %v6625_v0  ;;  %v6616_v6 = vadd.f32 %v6506_v42, %v6423_v16  ;;  %v6621_v57 = vadd.f32 %v6596_v14, %v6428_v53  ;;  %v7738_v0 = vld [vmem:[%s17131_s7 + $0x58] sm:$0xff]  ;;  %v7737_v14 = vld [vmem:[%s17131_s7 + $0x50] sm:$0xff] }
 0x554   :  { %v11138_v25 = vpop.f32.mrf.mxu0  ;;  %v11167_v50 = vpop.f32.mrf.mxu1 }
 0x555   :  { %v6642_v21 = vadd.f32 %v16982_v32, %v6630_v47  ;;  %v6626_v27 = vmax.f32 %v6616_v6, %v6621_v57  ;;  %v7750_v6 = vld [vmem:[%s17131_s7 + $0xa8] sm:$0xff]  ;;  %v7749_v57 = vld [vmem:[%s17131_s7 + $0xa0] sm:$0xff]  ;;  %v7065_v50 = vld [vmem:[%s17133_s9 + $0x30] sm:$0xff] }
 0x556   :  { %v6511_v28 = vpop.f32.mrf.mxu0  ;;  %v6601_v58 = vpop.f32.mrf.mxu1 }
 0x557   :  { %v6647_v41 = vmax.f32 %v6642_v21, 0.0  ;;  %v6631_v17 = vmax.f32 %v5688_v61, %v6626_v27  ;;  %v6617_v11 = vadd.f32 %v6511_v28, %v6424_v54  ;;  %v6622_v24 = vadd.f32 %v6601_v58, %v6429_v12  ;;  %v7064_v54 = vld [vmem:[%s17133_s9 + $0x28] sm:$0xff]  ;;  %v7063_v12 = vld [vmem:[%s17133_s9 + $0x20] sm:$0xff]  ;;  %v7062_v21 = vld [vmem:[%s17133_s9 + $0x18] sm:$0xff] }
 0x558   :  { %v11141_v55 = vpop.f32.mrf.mxu0  ;;  %v11170_v9 = vpop.f32.mrf.mxu1  ;;  %v6241_v61 = vadd.f32 %v16968_v22, %v16964_v52  ;;  %v7745_v52 = vld [vmem:[%s17131_s7 + $0x88] sm:$0xff]  ;;  %v7061_v27 = vld [vmem:[%s17133_s9 + $0x10] sm:$0xff] }
 0x559   :  { %v6643_v20 = vadd.f32 %v16982_v32, %v6631_v17  ;;  %v6627_v8 = vmax.f32 %v6617_v11, %v6622_v24  ;;  %11201 = vmatmul.mubr.msk.f32.vlgmr.msra.gmra.mxu1 %vm6663_vm3, %v6647_v41 }
 0x55a   :  { %v6516_v45 = vpop.f32.mrf.mxu0  ;;  %v6606_v38 = vpop.f32.mrf.mxu1  ;;  %11217 = vmatpush3.msra.mxu1 %v7747_v19  ;;  %11226 = vmatprep.mubr.msk.f32.mxu1 %vm11639_vm1, %v17176_v29  ;;  %v6431_v34 = vadd.f32 %v16972_v36, %v6241_v61 }
 0x55b   :  { %v6648_v49 = vmax.f32 %v6643_v20, 0.0  ;;  %v6632_v43 = vmax.f32 %v5689_v44, %v6627_v8  ;;  %v6618_v13 = vadd.f32 %v6516_v45, %v6425_v33  ;;  %v6623_v5 = vadd.f32 %v6606_v38, %v6430_v15  ;;  %11218 = vmatprep.subr.mxu1 %v17176_v29  ;;  %v7740_v44 = vld [vmem:[%s17131_s7 + $0x68] sm:$0xff]  ;;  %v7756_v45 = vld [vmem:[%s17135_s10] ss:$0 sm:$0xff] }
 0x55c   :  { %v11144_v26 = vpop.f32.mrf.mxu0  ;;  %v11173_v22 = vpop.f32.mrf.mxu1  ;;  %11219 = vmatpush3.msra.mxu1 %v7746_v10 }
 0x55d   :  { %v6628_v48 = vmax.f32 %v6618_v13, %v6623_v5  ;;  %11188 = vmatmul.mubr.msk.f32.vlgmr.msra.gmra.mxu0 %vm6663_vm3, %v6648_v49  ;;  %11220 = vmatprep.subr.mxu1 %v17176_v29  ;;  %v6644_v35 = vadd.f32 %v16982_v32, %v6632_v43 }
 0x55e   :  { %11204 = vmatpush3.msra.mxu0 %v7741_v46  ;;  %v6521_v39 = vpop.f32.mrf.mxu0  ;;  %v6611_v30 = vpop.f32.mrf.mxu1  ;;  %11221 = vmatpush3.msra.mxu1 %v7745_v52 }
 0x55f   :  { %v6633_v2 = vmax.f32 %v5690_v56, %v6628_v48  ;;  %v6619_v36 = vadd.f32 %v6521_v39, %v6426_v37  ;;  %v6624_v40 = vadd.f32 %v6611_v30, %v6431_v34  ;;  %11205 = vmatprep.subr.mxu0 %v17176_v29  ;;  %11222 = vmatprep.subr.mxu1 %v17176_v29  ;;  %v6649_v31 = vmax.f32 %v6644_v35, 0.0 }
 0x560   :  { %11206 = vmatpush3.msra.mxu0 %v7740_v44  ;;  %v11147_v16 = vpop.f32.mrf.mxu0  ;;  %v11176_v53 = vpop.f32.mrf.mxu1  ;;  %11223 = vmatpush3.msra.mxu1 %v7744_v3 }
 0x561   :  { %v6645_v7 = vadd.f32 %v16982_v32, %v6633_v2  ;;  %v6629_v56 = vmax.f32 %v6619_v36, %v6624_v40  ;;  %11207 = vmatprep.subr.mxu0 %v17176_v29  ;;  %11224 = vmatprep.subr.mxu1 %v17176_v29 }
 0x562   :  { %11208 = vmatpush3.msra.mxu0 %v7739_v1  ;;  %11225 = vmatpush3.msra.mxu1 %v7743_v59 }
 0x563   :  { %v6650_v63 = vmax.f32 %v6645_v7, 0.0  ;;  %v6634_v42 = vmax.f32 %v5691_v60, %v6629_v56  ;;  %11209 = vmatprep.subr.mxu0 %v17176_v29  ;;  %11213 = vmatprep.mubr.msk.f32.mxu0 %vm11639_vm1, %v17176_v29  ;;  %v7751_v60 = vld [vmem:[%s17131_s7 + $0xb0] sm:$0xff] }
 0x564   :  { %11210 = vmatpush3.msra.mxu0 %v7738_v0  ;;  %11242 = vmatprep.subr.mxu1 %v17176_v29 }
 0x565   :  { %11211 = vmatprep.subr.mxu0 %v17176_v29  ;;  %11227 = vmatmul.mubr.msk.f32.vlgmr.msra.gmra.mxu1 %vm6663_vm3, %v6650_v63  ;;  %v6646_v47 = vadd.f32 %v16982_v32, %v6634_v42  ;;  %v7066_v32 = vld [vmem:[%s17133_s9 + $0x38] sm:$0xff] }
 0x566   :  { %11212 = vmatpush3.msra.mxu0 %v7737_v14  ;;  %11258 = vmatprep.mubr.msk.f32.mxu1 %vm11639_vm1, %v17176_v29 }
 0x567   :  { %11214 = vmatmul.mubr.msk.f32.vlgmr.msra.gmra.mxu0 %vm6663_vm3, %v6649_v31  ;;  %11229 = vmatprep.subr.mxu0 %v17176_v29  ;;  %v6651_v25 = vmax.f32 %v6646_v47, 0.0 }
 0x568   :  { %11230 = vmatpush3.msra.mxu0 %v7753_v51  ;;  %11239 = vmatprep.mubr.msk.f32.mxu0 %vm11639_vm1, %v17176_v29 }
 0x569   :  { %11231 = vmatprep.subr.mxu0 %v17176_v29  ;;  %11243 = vmatpush3.msra.mxu1 %v7066_v32 }
 0x56a   :  { %11232 = vmatpush3.msra.mxu0 %v7752_v4  ;;  %11244 = vmatprep.subr.mxu1 %v17176_v29 }
 0x56b   :  { %11233 = vmatprep.subr.mxu0 %v17176_v29  ;;  %11245 = vmatpush3.msra.mxu1 %v7065_v50 }
 0x56c   :  { %11234 = vmatpush3.msra.mxu0 %v7751_v60  ;;  %11246 = vmatprep.subr.mxu1 %v17176_v29 }
 0x56d   :  { %11235 = vmatprep.subr.mxu0 %v17176_v29  ;;  %11247 = vmatpush3.msra.mxu1 %v7064_v54 }
 0x56e   :  { %11236 = vmatpush3.msra.mxu0 %v7750_v6  ;;  %11248 = vmatprep.subr.mxu1 %v17176_v29 }
 0x56f   :  { %11237 = vmatprep.subr.mxu0 %v17176_v29  ;;  %11249 = vmatpush3.msra.mxu1 %v7063_v12 }
 0x570   :  { %11238 = vmatpush3.msra.mxu0 %v7749_v57  ;;  %11250 = vmatprep.subr.mxu1 %v17176_v29 }
 0x571   :  { %11240 = vmatmul.mubr.msk.f32.vlgmr.msra.gmra.mxu0 %vm6663_vm3, %v6651_v25  ;;  %11251 = vmatpush3.msra.mxu1 %v7062_v21 }
 0x572   :  { %11252 = vmatprep.subr.mxu1 %v17176_v29 }
 0x573   :  { %11253 = vmatpush3.msra.mxu1 %v7061_v27 }
 0x574   :  { %11254 = vmatprep.subr.mxu1 %v17176_v29 }
 0x575   :  { %11255 = vmatpush3.msra.mxu1 %v7060_v23 }
 0x576   :  { %11256 = vmatprep.subr.mxu1 %v17176_v29  ;;  %v7755_v29 = vld [vmem:[%s17134_s8] ss:$0 sm:$0xff] }
 0x577   :  { %11257 = vmatpush3.msra.mxu1 %v7059_v62 }
 0x619   :  { %v6806_v28 = vpop.f32.mrf.mxu1 }
 0x61b   :  { %v11202_v58 = vpop.f32.mrf.mxu1 }
 0x61d   :  { %v6733_v41 = vpop.f32.mrf.mxu0 }
 0x61e   :  { %v6807_v9 = vadd.f32 %v6806_v28, %v6733_v41 }
 0x61f   :  { %v11189_v17 = vpop.f32.mrf.mxu0 }
 0x625   :  { %v6965_v11 = vpop.f32.mrf.mxu1 }
 0x627   :  { %v6885_v24 = vpop.f32.mrf.mxu0  ;;  %v11228_v19 = vpop.f32.mrf.mxu1 }
 0x628   :  { %v6889_v33 = vadd.f32 %v6885_v24, %v6807_v9 }
 0x629   :  { %v11215_v55 = vpop.f32.mrf.mxu0 }
 0x62a   :  { %v6969_v15 = vadd.f32 %v6965_v11, %v6889_v33 }
 0x631   :  { %v7045_v20 = vpop.f32.mrf.mxu0 }
 0x632   :  { %v7049_v8 = vadd.f32 %v7045_v20, %v6969_v15 }
 0x633   :  { %v11241_v10 = vpop.f32.mrf.mxu0 }
 0x634   :  { %v7057_v18 = vadd.f32 %v7755_v29, %v7049_v8 }
 0x636   :  { %v7058_v61 = vmax.f32 %v7057_v18, 0.0 }
 0x638   :  { %11259 = vmatmul.mubr.msk.f32.vlgmr.msra.gmra.mxu1 %vm7074_vm4, %v7058_v61 }
 0x6f8   :  { %v7144_v38 = vpop.f32.mrf.mxu1 }
 0x6f9   :  { %v7145_v49 = vadd.f32 %v7756_v45, %v7144_v38 }
 0x6fa   :  { %v11260_v43 = vpop.f32.mrf.mxu1 }
 0x6fb   :  { %7149 = vst.msk [vmem:[%s17136_s11] sm:$0xff] %vm7148_vm5, %v7145_v49 }

</bundles_post_ra>
